<compile_context>
chip_gen: v7x
topology: tpu7x:2x2x1
jax: 0.10.0
libtpu: 0.0.40
codegen_flags: <defaults>
</compile_context>

<pallas_src>
import functools

import numpy as np
import jax
import jax.numpy as jnp
from jax import lax
from jax.experimental import pallas as pl
from jax.experimental.pallas import tpu as pltpu

# Keep the pure-JAX reference (lax.conv / einsum) at full f32 precision so the
# correctness check against the Pallas path is tight.
jax.config.update("jax_default_matmul_precision", "highest")


# ----------------------------- helpers (host) --------------------------------
def _round_up(x, m):
    return ((x + m - 1) // m) * m


def _interp_matrix(n_in, n_out):
    """A (n_out, n_in) s.t. out = A @ in == bilinear upsample, align_corners=True."""
    A = np.zeros((n_out, n_in), np.float32)
    if n_in == 1:
        A[:, 0] = 1.0
        return A
    scale = (n_in - 1) / (n_out - 1)
    for o in range(n_out):
        s = o * scale
        i0 = min(int(np.floor(s)), n_in - 1)
        i1 = min(i0 + 1, n_in - 1)
        f = s - i0
        A[o, i0] += 1.0 - f
        A[o, i1] += f
    return A


# ----------------------------- Pallas kernel ---------------------------------
def _make_up_kernel(C1, C2, C_mid, C_out, PW, L, shifts, K1p, K2p):
    """Fused upsample + concat + (conv3x3+ReLU) x2 for one batch element."""
    Ctot = C1 + C2
    K1 = 9 * Ctot
    K2 = 9 * C_mid

    def kernel(x1_ref, x2_ref, mp_ref, p2_ref, w1_ref, b1_ref,
               w2_ref, b2_ref, g_ref, q_ref, o_ref, col1, col2):
        f32 = jnp.float32

        # Scatter both inputs into the zero-padded "flat" (C, PADL) layout.
        # x2: pure placement (P2);  x1: bilinear upsample fused with placement
        # (MP = kron(Ay,Ax)^T @ P2).  No gathers, no jnp.pad, no concat in HBM.
        x2p = jnp.dot(x2_ref[0], p2_ref[...], preferred_element_type=f32)
        x1p = jnp.dot(x1_ref[0], mp_ref[...], preferred_element_type=f32)

        # ---- conv1: im2col into VMEM scratch, then ONE K=9*Cin matmul -------
        if K1p > K1:
            col1[K1:K1p, :] = jnp.zeros((K1p - K1, L), f32)
        for t, d in enumerate(shifts):
            r = t * Ctot
            col1[r:r + C2, :] = x2p[:, d:d + L]          # skip (x2) channels
            col1[r + C2:r + Ctot, :] = x1p[:, d:d + L]   # upsampled x1 channels
        h = jnp.dot(w1_ref[...], col1[...], preferred_element_type=f32)
        h = jnp.maximum(h + b1_ref[...], 0.0)

        # Re-embed conv1 output into the zero-padded flat layout (drops the
        # wrap columns and re-adds the 1-pixel halo) -- one constant matmul.
        hp = jnp.dot(h, g_ref[...], preferred_element_type=f32)

        # ---- conv2: same im2col trick, ONE K=9*C_mid matmul ------------------
        if K2p > K2:
            col2[K2:K2p, :] = jnp.zeros((K2p - K2, L), f32)
        for t, d in enumerate(shifts):
            col2[t * C_mid:(t + 1) * C_mid, :] = hp[:, d:d + L]
        y = jnp.dot(w2_ref[...], col2[...], preferred_element_type=f32)
        y = jnp.maximum(y + b2_ref[...], 0.0)

        # Compact wide rows -> dense (C_out, OH*OW) and store lane-dense.
        res = jnp.dot(y, q_ref[...], preferred_element_type=f32)
        o_ref[...] = res[None].astype(o_ref.dtype)

    return kernel


# ------------------------------ wrapper ---------------------------------------
def up_forward(x1_nchw, x2_nchw, params):
    """Forward of `Up` (bilinear=True, batchnorm=False, num_convs=2). NCHW I/O."""
    B, C1, H, W = x1_nchw.shape
    B2, C2, OH, OW = x2_nchw.shape
    assert B == B2
    # TODO(synk): general F.pad path for odd spatial mismatch; this fused kernel
    # assumes the standard UNet case x2 spatial == 2 * x1 spatial (diffX=diffY=0).
    assert OH == 2 * H and OW == 2 * W, "expect x2 spatial == 2 * x1 spatial"

    C_mid = params["w1"].shape[0]
    C_out = params["w2"].shape[0]
    Ctot = C1 + C2
    HW, OHW = H * W, OH * OW
    PW = OW + 2                                   # padded-grid row stride
    PH = OH + 2
    L = _round_up((OH - 1) * PW + OW, 8)          # "wide row" conv output length
    PADL = _round_up(max(PH * PW, 2 * PW + 2 + L), 128)
    shifts = tuple(ky * PW + kx for ky in range(3) for kx in range(3))
    K1, K2 = 9 * Ctot, 9 * C_mid
    K1p, K2p = _round_up(K1, 8), _round_up(K2, 8)

    # ---- compile-time constant matrices (numpy -> baked into the program) ----
    Ay = _interp_matrix(H, OH)
    Ax = _interp_matrix(W, OW)
    M = np.kron(Ay, Ax)                           # (OHW, HW) bilinear upsample
    P2 = np.zeros((OHW, PADL), np.float32)        # dense -> padded flat scatter
    for y in range(OH):
        for x in range(OW):
            P2[y * OW + x, (y + 1) * PW + (x + 1)] = 1.0
    MP = (M.T @ P2).astype(np.float32)            # upsample + scatter, fused
    G = np.zeros((L, PADL), np.float32)           # wide rows -> padded flat
    Q = np.zeros((L, OHW), np.float32)            # wide rows -> dense output
    for j in range(L):
        y, x = j // PW, j % PW
        if y < OH and x < OW:
            G[j, j + PW + 1] = 1.0
            Q[j, y * OW + x] = 1.0

    # ---- pack weights: torch (Cout, Cin, 3, 3) -> (Cout, 9*Cin), tap-major ---
    w1f = jnp.transpose(params["w1"], (0, 2, 3, 1)).reshape(C_mid, K1)
    w1f = jnp.pad(w1f, ((0, 0), (0, K1p - K1))).astype(jnp.float32)
    w2f = jnp.transpose(params["w2"], (0, 2, 3, 1)).reshape(C_out, K2)
    w2f = jnp.pad(w2f, ((0, 0), (0, K2p - K2))).astype(jnp.float32)
    b1 = params["b1"].reshape(C_mid, 1).astype(jnp.float32)
    b2 = params["b2"].reshape(C_out, 1).astype(jnp.float32)

    # ---- flatten spatial (free, contiguous reshape; layout stays NCHW) -------
    x1f = x1_nchw.reshape(B, C1, HW).astype(jnp.float32)
    x2f = x2_nchw.reshape(B, C2, OHW).astype(jnp.float32)

    kernel = _make_up_kernel(C1, C2, C_mid, C_out, PW, L, shifts, K1p, K2p)
    const2 = lambda b: (0, 0)

    out = pl.pallas_call(
        kernel,
        out_shape=jax.ShapeDtypeStruct((B, C_out, OHW), jnp.float32),
        grid=(B,),
        in_specs=[
            pl.BlockSpec((1, C1, HW), lambda b: (b, 0, 0)),
            pl.BlockSpec((1, C2, OHW), lambda b: (b, 0, 0)),
            pl.BlockSpec((HW, PADL), const2),
            pl.BlockSpec((OHW, PADL), const2),
            pl.BlockSpec((C_mid, K1p), const2),
            pl.BlockSpec((C_mid, 1), const2),
            pl.BlockSpec((C_out, K2p), const2),
            pl.BlockSpec((C_out, 1), const2),
            pl.BlockSpec((L, PADL), const2),
            pl.BlockSpec((L, OHW), const2),
        ],
        out_specs=pl.BlockSpec((1, C_out, OHW), lambda b: (b, 0, 0)),
        scratch_shapes=[pltpu.VMEM((K1p, L), jnp.float32),
                        pltpu.VMEM((K2p, L), jnp.float32)],
        compiler_params=pltpu.CompilerParams(
            dimension_semantics=("parallel",)),   # shard batch across v7x cores
    )(x1f, x2f, jnp.asarray(MP), jnp.asarray(P2), w1f, b1, w2f, b2,
      jnp.asarray(G), jnp.asarray(Q))

    return out.reshape(B, C_out, OH, OW)


# ----------------------- pure-JAX reference (for checking) --------------------
def _up_ref(x1, x2, params):
    B, C1, H, W = x1.shape
    Ay = jnp.asarray(_interp_matrix(H, 2 * H))
    Ax = jnp.asarray(_interp_matrix(W, 2 * W))
    x1u = jnp.einsum("oh,bchw->bcow", Ay, x1)
    x1u = jnp.einsum("xw,bcow->bcox", Ax, x1u)
    x = jnp.concatenate([x2, x1u], axis=1)

    def conv_relu(v, w, b):
        y = lax.conv_general_dilated(
            v, w, window_strides=(1, 1), padding="SAME",
            dimension_numbers=("NCHW", "OIHW", "NCHW"))
        return jnp.maximum(y + b[None, :, None, None], 0.0)

    h = conv_relu(x, params["w1"], params["b1"])
    return conv_relu(h, params["w2"], params["b2"])


if __name__ == "__main__":
    # Module config: Up(in_channels=8, out_channels=4, bilinear=True)
    in_channels = 8                    # concat channels (C1 + C2)
    mid_channels = in_channels // 2    # = 4
    out_channels = 4
    B, H, W = 2, 8, 8                  # x1 spatial; x2 is (2H, 2W)

    key = jax.random.PRNGKey(0)
    k1, k2, k3, k4, k5, k6 = jax.random.split(key, 6)

    # Parameters in PyTorch layout: conv weight (Cout, Cin, 3, 3).
    params = {
        "w1": 0.1 * jax.random.normal(k1, (mid_channels, in_channels, 3, 3),
                                      jnp.float32),
        "b1": 0.05 * jax.random.normal(k2, (mid_channels,), jnp.float32),
        "w2": 0.1 * jax.random.normal(k3, (out_channels, mid_channels, 3, 3),
                                      jnp.float32),
        "b2": 0.05 * jax.random.normal(k4, (out_channels,), jnp.float32),
    }

    # Inputs in PyTorch NCHW convention.
    x1 = jax.random.normal(k5, (B, in_channels // 2, H, W), jnp.float32)
    x2 = jax.random.normal(k6, (B, in_channels // 2, 2 * H, 2 * W), jnp.float32)

    out = jax.block_until_ready(jax.jit(up_forward)(x1, x2, params))
    assert out.shape == (B, out_channels, 2 * H, 2 * W), out.shape

    ref = _up_ref(x1, x2, params)
    assert jnp.allclose(out, ref, atol=1e-3, rtol=1e-3), (
        "mismatch vs reference, max |diff| = %e"
        % float(jnp.max(jnp.abs(out - ref))))

    print("KERNEL_OK")
</pallas_src>

<mosaic_0001>
module attributes {stable_mosaic.version = 11 : i64} {
  func.func @kernel(%arg0: i32, %arg1: memref<1x4x64xf32, #tpu.memory_space<vmem>>, %arg2: memref<1x4x256xf32, #tpu.memory_space<vmem>>, %arg3: memref<64x384xf32, #tpu.memory_space<vmem>>, %arg4: memref<256x384xf32, #tpu.memory_space<vmem>>, %arg5: memref<4x72xf32, #tpu.memory_space<vmem>>, %arg6: memref<4x1xf32, #tpu.memory_space<vmem>>, %arg7: memref<4x40xf32, #tpu.memory_space<vmem>>, %arg8: memref<4x1xf32, #tpu.memory_space<vmem>>, %arg9: memref<288x384xf32, #tpu.memory_space<vmem>>, %arg10: memref<288x256xf32, #tpu.memory_space<vmem>>, %arg11: memref<1x4x256xf32, #tpu.memory_space<vmem>>, %arg12: memref<72x288xf32, #tpu.memory_space<vmem>>, %arg13: memref<40x288xf32, #tpu.memory_space<vmem>>) attributes {dimension_semantics = [#tpu.dimension_semantics<parallel>], iteration_bounds = array<i64: 2>, scalar_prefetch = 0 : i64, scratch_operands = 2 : i64, tpu.core_type = #tpu.core_type<tc>, window_params = [{transform_indices = @transform_0, window_bounds = array<i64: 1, 4, 64>}, {transform_indices = @transform_1, window_bounds = array<i64: 1, 4, 256>}, {pipeline_mode = #tpu.pipeline_mode<synchronous>, transform_indices = @transform_2, window_bounds = array<i64: 64, 384>}, {pipeline_mode = #tpu.pipeline_mode<synchronous>, transform_indices = @transform_3, window_bounds = array<i64: 256, 384>}, {pipeline_mode = #tpu.pipeline_mode<synchronous>, transform_indices = @transform_4, window_bounds = array<i64: 4, 72>}, {pipeline_mode = #tpu.pipeline_mode<synchronous>, transform_indices = @transform_5, window_bounds = array<i64: 4, 1>}, {pipeline_mode = #tpu.pipeline_mode<synchronous>, transform_indices = @transform_6, window_bounds = array<i64: 4, 40>}, {pipeline_mode = #tpu.pipeline_mode<synchronous>, transform_indices = @transform_7, window_bounds = array<i64: 4, 1>}, {pipeline_mode = #tpu.pipeline_mode<synchronous>, transform_indices = @transform_8, window_bounds = array<i64: 288, 384>}, {pipeline_mode = #tpu.pipeline_mode<synchronous>, transform_indices = @transform_9, window_bounds = array<i64: 288, 256>}, {transform_indices = @transform_10, window_bounds = array<i64: 1, 4, 256>}]} {
    %c0 = arith.constant 0 : index
    %c0_0 = arith.constant 0 : index
    %c0_1 = arith.constant 0 : index
    %0 = vector.load %arg2[%c0, %c0_0, %c0_1] : memref<1x4x256xf32, #tpu.memory_space<vmem>>, vector<1x4x256xf32>
    %1 = vector.shape_cast %0 : vector<1x4x256xf32> to vector<4x256xf32>
    %c0_2 = arith.constant 0 : index
    %c0_3 = arith.constant 0 : index
    %2 = vector.load %arg4[%c0_2, %c0_3] : memref<256x384xf32, #tpu.memory_space<vmem>>, vector<256x384xf32>
    %cst = arith.constant dense<0.000000e+00> : vector<4x384xf32>
    %3 = tpu.matmul %1, %2, %cst {dimension_numbers = #tpu.dot_dimension_numbers<[1], [0], [0], [1], [0, 0, 1, 1], [], []>, precision = #tpu.contract_precision<fp32>} : vector<4x256xf32>, vector<256x384xf32>, vector<4x384xf32> -> vector<4x384xf32>
    %c0_4 = arith.constant 0 : index
    %c0_5 = arith.constant 0 : index
    %c0_6 = arith.constant 0 : index
    %4 = vector.load %arg1[%c0_4, %c0_5, %c0_6] : memref<1x4x64xf32, #tpu.memory_space<vmem>>, vector<1x4x64xf32>
    %5 = vector.shape_cast %4 : vector<1x4x64xf32> to vector<4x64xf32>
    %c0_7 = arith.constant 0 : index
    %c0_8 = arith.constant 0 : index
    %6 = vector.load %arg3[%c0_7, %c0_8] : memref<64x384xf32, #tpu.memory_space<vmem>>, vector<64x384xf32>
    %cst_9 = arith.constant dense<0.000000e+00> : vector<4x384xf32>
    %7 = tpu.matmul %5, %6, %cst_9 {dimension_numbers = #tpu.dot_dimension_numbers<[1], [0], [0], [1], [0, 0, 1, 1], [], []>, precision = #tpu.contract_precision<fp32>} : vector<4x64xf32>, vector<64x384xf32>, vector<4x384xf32> -> vector<4x384xf32>
    %8 = vector.extract_strided_slice %3 {offsets = [0, 0], sizes = [4, 288], strides = [1, 1]} : vector<4x384xf32> to vector<4x288xf32>
    %c0_10 = arith.constant 0 : index
    %c0_11 = arith.constant 0 : index
    %9 = vector.load %arg12[%c0_10, %c0_11] : memref<72x288xf32, #tpu.memory_space<vmem>>, vector<4x288xf32>
    tpu.vector_store %arg12[%c0_10, %c0_11], %8 {strides = array<i32>} : memref<72x288xf32, #tpu.memory_space<vmem>>, vector<4x288xf32>,
    %10 = vector.extract_strided_slice %7 {offsets = [0, 0], sizes = [4, 288], strides = [1, 1]} : vector<4x384xf32> to vector<4x288xf32>
    %c4 = arith.constant 4 : index
    %c0_12 = arith.constant 0 : index
    %11 = vector.load %arg12[%c4, %c0_12] : memref<72x288xf32, #tpu.memory_space<vmem>>, vector<4x288xf32>
    tpu.vector_store %arg12[%c4, %c0_12], %10 {strides = array<i32>} : memref<72x288xf32, #tpu.memory_space<vmem>>, vector<4x288xf32>,
    %12 = vector.extract_strided_slice %3 {offsets = [0, 1], sizes = [4, 288], strides = [1, 1]} : vector<4x384xf32> to vector<4x288xf32>
    %c8 = arith.constant 8 : index
    %c0_13 = arith.constant 0 : index
    %13 = vector.load %arg12[%c8, %c0_13] : memref<72x288xf32, #tpu.memory_space<vmem>>, vector<4x288xf32>
    tpu.vector_store %arg12[%c8, %c0_13], %12 {strides = array<i32>} : memref<72x288xf32, #tpu.memory_space<vmem>>, vector<4x288xf32>,
    %14 = vector.extract_strided_slice %7 {offsets = [0, 1], sizes = [4, 288], strides = [1, 1]} : vector<4x384xf32> to vector<4x288xf32>
    %c12 = arith.constant 12 : index
    %c0_14 = arith.constant 0 : index
    %15 = vector.load %arg12[%c12, %c0_14] : memref<72x288xf32, #tpu.memory_space<vmem>>, vector<4x288xf32>
    tpu.vector_store %arg12[%c12, %c0_14], %14 {strides = array<i32>} : memref<72x288xf32, #tpu.memory_space<vmem>>, vector<4x288xf32>,
    %16 = vector.extract_strided_slice %3 {offsets = [0, 2], sizes = [4, 288], strides = [1, 1]} : vector<4x384xf32> to vector<4x288xf32>
    %c16 = arith.constant 16 : index
    %c0_15 = arith.constant 0 : index
    %17 = vector.load %arg12[%c16, %c0_15] : memref<72x288xf32, #tpu.memory_space<vmem>>, vector<4x288xf32>
    tpu.vector_store %arg12[%c16, %c0_15], %16 {strides = array<i32>} : memref<72x288xf32, #tpu.memory_space<vmem>>, vector<4x288xf32>,
    %18 = vector.extract_strided_slice %7 {offsets = [0, 2], sizes = [4, 288], strides = [1, 1]} : vector<4x384xf32> to vector<4x288xf32>
    %c20 = arith.constant 20 : index
    %c0_16 = arith.constant 0 : index
    %19 = vector.load %arg12[%c20, %c0_16] : memref<72x288xf32, #tpu.memory_space<vmem>>, vector<4x288xf32>
    tpu.vector_store %arg12[%c20, %c0_16], %18 {strides = array<i32>} : memref<72x288xf32, #tpu.memory_space<vmem>>, vector<4x288xf32>,
    %20 = vector.extract_strided_slice %3 {offsets = [0, 18], sizes = [4, 288], strides = [1, 1]} : vector<4x384xf32> to vector<4x288xf32>
    %c24 = arith.constant 24 : index
    %c0_17 = arith.constant 0 : index
    %21 = vector.load %arg12[%c24, %c0_17] : memref<72x288xf32, #tpu.memory_space<vmem>>, vector<4x288xf32>
    tpu.vector_store %arg12[%c24, %c0_17], %20 {strides = array<i32>} : memref<72x288xf32, #tpu.memory_space<vmem>>, vector<4x288xf32>,
    %22 = vector.extract_strided_slice %7 {offsets = [0, 18], sizes = [4, 288], strides = [1, 1]} : vector<4x384xf32> to vector<4x288xf32>
    %c28 = arith.constant 28 : index
    %c0_18 = arith.constant 0 : index
    %23 = vector.load %arg12[%c28, %c0_18] : memref<72x288xf32, #tpu.memory_space<vmem>>, vector<4x288xf32>
    tpu.vector_store %arg12[%c28, %c0_18], %22 {strides = array<i32>} : memref<72x288xf32, #tpu.memory_space<vmem>>, vector<4x288xf32>,
    %24 = vector.extract_strided_slice %3 {offsets = [0, 19], sizes = [4, 288], strides = [1, 1]} : vector<4x384xf32> to vector<4x288xf32>
    %c32 = arith.constant 32 : index
    %c0_19 = arith.constant 0 : index
    %25 = vector.load %arg12[%c32, %c0_19] : memref<72x288xf32, #tpu.memory_space<vmem>>, vector<4x288xf32>
    tpu.vector_store %arg12[%c32, %c0_19], %24 {strides = array<i32>} : memref<72x288xf32, #tpu.memory_space<vmem>>, vector<4x288xf32>,
    %26 = vector.extract_strided_slice %7 {offsets = [0, 19], sizes = [4, 288], strides = [1, 1]} : vector<4x384xf32> to vector<4x288xf32>
    %c36 = arith.constant 36 : index
    %c0_20 = arith.constant 0 : index
    %27 = vector.load %arg12[%c36, %c0_20] : memref<72x288xf32, #tpu.memory_space<vmem>>, vector<4x288xf32>
    tpu.vector_store %arg12[%c36, %c0_20], %26 {strides = array<i32>} : memref<72x288xf32, #tpu.memory_space<vmem>>, vector<4x288xf32>,
    %28 = vector.extract_strided_slice %3 {offsets = [0, 20], sizes = [4, 288], strides = [1, 1]} : vector<4x384xf32> to vector<4x288xf32>
    %c40 = arith.constant 40 : index
    %c0_21 = arith.constant 0 : index
    %29 = vector.load %arg12[%c40, %c0_21] : memref<72x288xf32, #tpu.memory_space<vmem>>, vector<4x288xf32>
    tpu.vector_store %arg12[%c40, %c0_21], %28 {strides = array<i32>} : memref<72x288xf32, #tpu.memory_space<vmem>>, vector<4x288xf32>,
    %30 = vector.extract_strided_slice %7 {offsets = [0, 20], sizes = [4, 288], strides = [1, 1]} : vector<4x384xf32> to vector<4x288xf32>
    %c44 = arith.constant 44 : index
    %c0_22 = arith.constant 0 : index
    %31 = vector.load %arg12[%c44, %c0_22] : memref<72x288xf32, #tpu.memory_space<vmem>>, vector<4x288xf32>
    tpu.vector_store %arg12[%c44, %c0_22], %30 {strides = array<i32>} : memref<72x288xf32, #tpu.memory_space<vmem>>, vector<4x288xf32>,
    %32 = vector.extract_strided_slice %3 {offsets = [0, 36], sizes = [4, 288], strides = [1, 1]} : vector<4x384xf32> to vector<4x288xf32>
    %c48 = arith.constant 48 : index
    %c0_23 = arith.constant 0 : index
    %33 = vector.load %arg12[%c48, %c0_23] : memref<72x288xf32, #tpu.memory_space<vmem>>, vector<4x288xf32>
    tpu.vector_store %arg12[%c48, %c0_23], %32 {strides = array<i32>} : memref<72x288xf32, #tpu.memory_space<vmem>>, vector<4x288xf32>,
    %34 = vector.extract_strided_slice %7 {offsets = [0, 36], sizes = [4, 288], strides = [1, 1]} : vector<4x384xf32> to vector<4x288xf32>
    %c52 = arith.constant 52 : index
    %c0_24 = arith.constant 0 : index
    %35 = vector.load %arg12[%c52, %c0_24] : memref<72x288xf32, #tpu.memory_space<vmem>>, vector<4x288xf32>
    tpu.vector_store %arg12[%c52, %c0_24], %34 {strides = array<i32>} : memref<72x288xf32, #tpu.memory_space<vmem>>, vector<4x288xf32>,
    %36 = vector.extract_strided_slice %3 {offsets = [0, 37], sizes = [4, 288], strides = [1, 1]} : vector<4x384xf32> to vector<4x288xf32>
    %c56 = arith.constant 56 : index
    %c0_25 = arith.constant 0 : index
    %37 = vector.load %arg12[%c56, %c0_25] : memref<72x288xf32, #tpu.memory_space<vmem>>, vector<4x288xf32>
    tpu.vector_store %arg12[%c56, %c0_25], %36 {strides = array<i32>} : memref<72x288xf32, #tpu.memory_space<vmem>>, vector<4x288xf32>,
    %38 = vector.extract_strided_slice %7 {offsets = [0, 37], sizes = [4, 288], strides = [1, 1]} : vector<4x384xf32> to vector<4x288xf32>
    %c60 = arith.constant 60 : index
    %c0_26 = arith.constant 0 : index
    %39 = vector.load %arg12[%c60, %c0_26] : memref<72x288xf32, #tpu.memory_space<vmem>>, vector<4x288xf32>
    tpu.vector_store %arg12[%c60, %c0_26], %38 {strides = array<i32>} : memref<72x288xf32, #tpu.memory_space<vmem>>, vector<4x288xf32>,
    %40 = vector.extract_strided_slice %3 {offsets = [0, 38], sizes = [4, 288], strides = [1, 1]} : vector<4x384xf32> to vector<4x288xf32>
    %c64 = arith.constant 64 : index
    %c0_27 = arith.constant 0 : index
    %41 = vector.load %arg12[%c64, %c0_27] : memref<72x288xf32, #tpu.memory_space<vmem>>, vector<4x288xf32>
    tpu.vector_store %arg12[%c64, %c0_27], %40 {strides = array<i32>} : memref<72x288xf32, #tpu.memory_space<vmem>>, vector<4x288xf32>,
    %42 = vector.extract_strided_slice %7 {offsets = [0, 38], sizes = [4, 288], strides = [1, 1]} : vector<4x384xf32> to vector<4x288xf32>
    %c68 = arith.constant 68 : index
    %c0_28 = arith.constant 0 : index
    %43 = vector.load %arg12[%c68, %c0_28] : memref<72x288xf32, #tpu.memory_space<vmem>>, vector<4x288xf32>
    tpu.vector_store %arg12[%c68, %c0_28], %42 {strides = array<i32>} : memref<72x288xf32, #tpu.memory_space<vmem>>, vector<4x288xf32>,
    %c0_29 = arith.constant 0 : index
    %c0_30 = arith.constant 0 : index
    %44 = vector.load %arg5[%c0_29, %c0_30] : memref<4x72xf32, #tpu.memory_space<vmem>>, vector<4x72xf32>
    %c0_31 = arith.constant 0 : index
    %c0_32 = arith.constant 0 : index
    %45 = vector.load %arg12[%c0_31, %c0_32] : memref<72x288xf32, #tpu.memory_space<vmem>>, vector<72x288xf32>
    %cst_33 = arith.constant dense<0.000000e+00> : vector<4x288xf32>
    %46 = tpu.matmul %44, %45, %cst_33 {dimension_numbers = #tpu.dot_dimension_numbers<[1], [0], [0], [1], [0, 0, 1, 1], [], []>, precision = #tpu.contract_precision<fp32>} : vector<4x72xf32>, vector<72x288xf32>, vector<4x288xf32> -> vector<4x288xf32>
    %c0_34 = arith.constant 0 : index
    %c0_35 = arith.constant 0 : index
    %47 = vector.load %arg6[%c0_34, %c0_35] : memref<4x1xf32, #tpu.memory_space<vmem>>, vector<4x1xf32>
    %48 = vector.broadcast %47 : vector<4x1xf32> to vector<4x288xf32>
    %49 = arith.addf %46, %48 : vector<4x288xf32>
    %cst_36 = arith.constant 0.000000e+00 : f32
    %50 = vector.broadcast %cst_36 : f32 to vector<4x288xf32>
    %51 = arith.maximumf %49, %50 : vector<4x288xf32>
    %c0_37 = arith.constant 0 : index
    %c0_38 = arith.constant 0 : index
    %52 = vector.load %arg9[%c0_37, %c0_38] : memref<288x384xf32, #tpu.memory_space<vmem>>, vector<288x384xf32>
    %cst_39 = arith.constant dense<0.000000e+00> : vector<4x384xf32>
    %53 = tpu.matmul %51, %52, %cst_39 {dimension_numbers = #tpu.dot_dimension_numbers<[1], [0], [0], [1], [0, 0, 1, 1], [], []>, precision = #tpu.contract_precision<fp32>} : vector<4x288xf32>, vector<288x384xf32>, vector<4x384xf32> -> vector<4x384xf32>
    %cst_40 = arith.constant 0.000000e+00 : f32
    %54 = vector.broadcast %cst_40 : f32 to vector<4x288xf32>
    %c36_41 = arith.constant 36 : index
    %c0_42 = arith.constant 0 : index
    %55 = vector.load %arg13[%c36_41, %c0_42] : memref<40x288xf32, #tpu.memory_space<vmem>>, vector<4x288xf32>
    tpu.vector_store %arg13[%c36_41, %c0_42], %54 {strides = array<i32>} : memref<40x288xf32, #tpu.memory_space<vmem>>, vector<4x288xf32>,
    %56 = vector.extract_strided_slice %53 {offsets = [0, 0], sizes = [4, 288], strides = [1, 1]} : vector<4x384xf32> to vector<4x288xf32>
    %c0_43 = arith.constant 0 : index
    %c0_44 = arith.constant 0 : index
    %57 = vector.load %arg13[%c0_43, %c0_44] : memref<40x288xf32, #tpu.memory_space<vmem>>, vector<4x288xf32>
    tpu.vector_store %arg13[%c0_43, %c0_44], %56 {strides = array<i32>} : memref<40x288xf32, #tpu.memory_space<vmem>>, vector<4x288xf32>,
    %58 = vector.extract_strided_slice %53 {offsets = [0, 1], sizes = [4, 288], strides = [1, 1]} : vector<4x384xf32> to vector<4x288xf32>
    %c4_45 = arith.constant 4 : index
    %c0_46 = arith.constant 0 : index
    %59 = vector.load %arg13[%c4_45, %c0_46] : memref<40x288xf32, #tpu.memory_space<vmem>>, vector<4x288xf32>
    tpu.vector_store %arg13[%c4_45, %c0_46], %58 {strides = array<i32>} : memref<40x288xf32, #tpu.memory_space<vmem>>, vector<4x288xf32>,
    %60 = vector.extract_strided_slice %53 {offsets = [0, 2], sizes = [4, 288], strides = [1, 1]} : vector<4x384xf32> to vector<4x288xf32>
    %c8_47 = arith.constant 8 : index
    %c0_48 = arith.constant 0 : index
    %61 = vector.load %arg13[%c8_47, %c0_48] : memref<40x288xf32, #tpu.memory_space<vmem>>, vector<4x288xf32>
    tpu.vector_store %arg13[%c8_47, %c0_48], %60 {strides = array<i32>} : memref<40x288xf32, #tpu.memory_space<vmem>>, vector<4x288xf32>,
    %62 = vector.extract_strided_slice %53 {offsets = [0, 18], sizes = [4, 288], strides = [1, 1]} : vector<4x384xf32> to vector<4x288xf32>
    %c12_49 = arith.constant 12 : index
    %c0_50 = arith.constant 0 : index
    %63 = vector.load %arg13[%c12_49, %c0_50] : memref<40x288xf32, #tpu.memory_space<vmem>>, vector<4x288xf32>
    tpu.vector_store %arg13[%c12_49, %c0_50], %62 {strides = array<i32>} : memref<40x288xf32, #tpu.memory_space<vmem>>, vector<4x288xf32>,
    %64 = vector.extract_strided_slice %53 {offsets = [0, 19], sizes = [4, 288], strides = [1, 1]} : vector<4x384xf32> to vector<4x288xf32>
    %c16_51 = arith.constant 16 : index
    %c0_52 = arith.constant 0 : index
    %65 = vector.load %arg13[%c16_51, %c0_52] : memref<40x288xf32, #tpu.memory_space<vmem>>, vector<4x288xf32>
    tpu.vector_store %arg13[%c16_51, %c0_52], %64 {strides = array<i32>} : memref<40x288xf32, #tpu.memory_space<vmem>>, vector<4x288xf32>,
    %66 = vector.extract_strided_slice %53 {offsets = [0, 20], sizes = [4, 288], strides = [1, 1]} : vector<4x384xf32> to vector<4x288xf32>
    %c20_53 = arith.constant 20 : index
    %c0_54 = arith.constant 0 : index
    %67 = vector.load %arg13[%c20_53, %c0_54] : memref<40x288xf32, #tpu.memory_space<vmem>>, vector<4x288xf32>
    tpu.vector_store %arg13[%c20_53, %c0_54], %66 {strides = array<i32>} : memref<40x288xf32, #tpu.memory_space<vmem>>, vector<4x288xf32>,
    %68 = vector.extract_strided_slice %53 {offsets = [0, 36], sizes = [4, 288], strides = [1, 1]} : vector<4x384xf32> to vector<4x288xf32>
    %c24_55 = arith.constant 24 : index
    %c0_56 = arith.constant 0 : index
    %69 = vector.load %arg13[%c24_55, %c0_56] : memref<40x288xf32, #tpu.memory_space<vmem>>, vector<4x288xf32>
    tpu.vector_store %arg13[%c24_55, %c0_56], %68 {strides = array<i32>} : memref<40x288xf32, #tpu.memory_space<vmem>>, vector<4x288xf32>,
    %70 = vector.extract_strided_slice %53 {offsets = [0, 37], sizes = [4, 288], strides = [1, 1]} : vector<4x384xf32> to vector<4x288xf32>
    %c28_57 = arith.constant 28 : index
    %c0_58 = arith.constant 0 : index
    %71 = vector.load %arg13[%c28_57, %c0_58] : memref<40x288xf32, #tpu.memory_space<vmem>>, vector<4x288xf32>
    tpu.vector_store %arg13[%c28_57, %c0_58], %70 {strides = array<i32>} : memref<40x288xf32, #tpu.memory_space<vmem>>, vector<4x288xf32>,
    %72 = vector.extract_strided_slice %53 {offsets = [0, 38], sizes = [4, 288], strides = [1, 1]} : vector<4x384xf32> to vector<4x288xf32>
    %c32_59 = arith.constant 32 : index
    %c0_60 = arith.constant 0 : index
    %73 = vector.load %arg13[%c32_59, %c0_60] : memref<40x288xf32, #tpu.memory_space<vmem>>, vector<4x288xf32>
    tpu.vector_store %arg13[%c32_59, %c0_60], %72 {strides = array<i32>} : memref<40x288xf32, #tpu.memory_space<vmem>>, vector<4x288xf32>,
    %c0_61 = arith.constant 0 : index
    %c0_62 = arith.constant 0 : index
    %74 = vector.load %arg7[%c0_61, %c0_62] : memref<4x40xf32, #tpu.memory_space<vmem>>, vector<4x40xf32>
    %c0_63 = arith.constant 0 : index
    %c0_64 = arith.constant 0 : index
    %75 = vector.load %arg13[%c0_63, %c0_64] : memref<40x288xf32, #tpu.memory_space<vmem>>, vector<40x288xf32>
    %cst_65 = arith.constant dense<0.000000e+00> : vector<4x288xf32>
    %76 = tpu.matmul %74, %75, %cst_65 {dimension_numbers = #tpu.dot_dimension_numbers<[1], [0], [0], [1], [0, 0, 1, 1], [], []>, precision = #tpu.contract_precision<fp32>} : vector<4x40xf32>, vector<40x288xf32>, vector<4x288xf32> -> vector<4x288xf32>
    %c0_66 = arith.constant 0 : index
    %c0_67 = arith.constant 0 : index
    %77 = vector.load %arg8[%c0_66, %c0_67] : memref<4x1xf32, #tpu.memory_space<vmem>>, vector<4x1xf32>
    %78 = vector.broadcast %77 : vector<4x1xf32> to vector<4x288xf32>
    %79 = arith.addf %76, %78 : vector<4x288xf32>
    %cst_68 = arith.constant 0.000000e+00 : f32
    %80 = vector.broadcast %cst_68 : f32 to vector<4x288xf32>
    %81 = arith.maximumf %79, %80 : vector<4x288xf32>
    %c0_69 = arith.constant 0 : index
    %c0_70 = arith.constant 0 : index
    %82 = vector.load %arg10[%c0_69, %c0_70] : memref<288x256xf32, #tpu.memory_space<vmem>>, vector<288x256xf32>
    %cst_71 = arith.constant dense<0.000000e+00> : vector<4x256xf32>
    %83 = tpu.matmul %81, %82, %cst_71 {dimension_numbers = #tpu.dot_dimension_numbers<[1], [0], [0], [1], [0, 0, 1, 1], [], []>, precision = #tpu.contract_precision<fp32>} : vector<4x288xf32>, vector<288x256xf32>, vector<4x256xf32> -> vector<4x256xf32>
    %84 = vector.shape_cast %83 : vector<4x256xf32> to vector<1x4x256xf32>
    %c0_72 = arith.constant 0 : index
    %c0_73 = arith.constant 0 : index
    %c0_74 = arith.constant 0 : index
    %85 = vector.load %arg11[%c0_72, %c0_73, %c0_74] : memref<1x4x256xf32, #tpu.memory_space<vmem>>, vector<1x4x256xf32>
    tpu.vector_store %arg11[%c0_72, %c0_73, %c0_74], %84 {strides = array<i32>} : memref<1x4x256xf32, #tpu.memory_space<vmem>>, vector<1x4x256xf32>,
    return
  }
  func.func @transform_0(%arg0: i32) -> (i32, i32, i32) {
    %c0_i32 = arith.constant 0 : i32
    %c0_i32_0 = arith.constant 0 : i32
    %c0_i32_1 = arith.constant 0 : i32
    return %arg0, %c0_i32, %c0_i32_0 : i32, i32, i32
  }
  func.func @transform_1(%arg0: i32) -> (i32, i32, i32) {
    %c0_i32 = arith.constant 0 : i32
    %c0_i32_0 = arith.constant 0 : i32
    %c0_i32_1 = arith.constant 0 : i32
    return %arg0, %c0_i32, %c0_i32_0 : i32, i32, i32
  }
  func.func @transform_2(%arg0: i32) -> (i32, i32) {
    %c0_i32 = arith.constant 0 : i32
    %c0_i32_0 = arith.constant 0 : i32
    %c0_i32_1 = arith.constant 0 : i32
    return %c0_i32, %c0_i32_0 : i32, i32
  }
  func.func @transform_3(%arg0: i32) -> (i32, i32) {
    %c0_i32 = arith.constant 0 : i32
    %c0_i32_0 = arith.constant 0 : i32
    %c0_i32_1 = arith.constant 0 : i32
    return %c0_i32, %c0_i32_0 : i32, i32
  }
  func.func @transform_4(%arg0: i32) -> (i32, i32) {
    %c0_i32 = arith.constant 0 : i32
    %c0_i32_0 = arith.constant 0 : i32
    %c0_i32_1 = arith.constant 0 : i32
    return %c0_i32, %c0_i32_0 : i32, i32
  }
  func.func @transform_5(%arg0: i32) -> (i32, i32) {
    %c0_i32 = arith.constant 0 : i32
    %c0_i32_0 = arith.constant 0 : i32
    %c0_i32_1 = arith.constant 0 : i32
    return %c0_i32, %c0_i32_0 : i32, i32
  }
  func.func @transform_6(%arg0: i32) -> (i32, i32) {
    %c0_i32 = arith.constant 0 : i32
    %c0_i32_0 = arith.constant 0 : i32
    %c0_i32_1 = arith.constant 0 : i32
    return %c0_i32, %c0_i32_0 : i32, i32
  }
  func.func @transform_7(%arg0: i32) -> (i32, i32) {
    %c0_i32 = arith.constant 0 : i32
    %c0_i32_0 = arith.constant 0 : i32
    %c0_i32_1 = arith.constant 0 : i32
    return %c0_i32, %c0_i32_0 : i32, i32
  }
  func.func @transform_8(%arg0: i32) -> (i32, i32) {
    %c0_i32 = arith.constant 0 : i32
    %c0_i32_0 = arith.constant 0 : i32
    %c0_i32_1 = arith.constant 0 : i32
    return %c0_i32, %c0_i32_0 : i32, i32
  }
  func.func @transform_9(%arg0: i32) -> (i32, i32) {
    %c0_i32 = arith.constant 0 : i32
    %c0_i32_0 = arith.constant 0 : i32
    %c0_i32_1 = arith.constant 0 : i32
    return %c0_i32, %c0_i32_0 : i32, i32
  }
  func.func @transform_10(%arg0: i32) -> (i32, i32, i32) {
    %c0_i32 = arith.constant 0 : i32
    %c0_i32_0 = arith.constant 0 : i32
    %c0_i32_1 = arith.constant 0 : i32
    return %arg0, %c0_i32, %c0_i32_0 : i32, i32, i32
  }
}

</mosaic_0001>

<bundles_post_ra>
// kernel: up_forward.1
= control target key start
LH: loop header
LB: loop body
LE: loop exit
PB: predicated region body
PF: predicated region fallthrough
CT: control target
= control target key end

     0   :  { %15 = vsyncpa [#allocation5], 0  ;;  %s20938_s0 = inlined_call_operand.vmem [shape: f32[2,4,64], index: 0, kind: input, shape index: {}]   ;;  %s20939_s1 = inlined_call_operand.vmem [shape: f32[2,4,256], index: 1, kind: input, shape index: {}]   ;;  %s20940_s2 = inlined_call_operand.vmem [shape: f32[64,384], index: 2, kind: input, shape index: {}]   ;;  %s20941_s3 = inlined_call_operand.hbm [shape: f32[256,384], index: 3, kind: input, shape index: {}]   ;;  %s20942_s4 = inlined_call_operand.vmem [shape: f32[4,72], index: 4, kind: input, shape index: {}]   ;;  %s20943_s5 = inlined_call_operand.vmem [shape: f32[4,1], index: 5, kind: input, shape index: {}]   ;;  %s20944_s6 = inlined_call_operand.vmem [shape: f32[4,40], index: 6, kind: input, shape index: {}]   ;;  %s20945_s7 = inlined_call_operand.vmem [shape: f32[4,1], index: 7, kind: input, shape index: {}]   ;;  %s20946_s8 = inlined_call_operand.hbm [shape: f32[288,384], index: 8, kind: input, shape index: {}]   ;;  %s20947_s9 = inlined_call_operand.hbm [shape: f32[288,256], index: 9, kind: input, shape index: {}]   ;;  %s20948_s10 = inlined_call_operand.vmem [shape: f32[2,4,256], index: 10, kind: output, shape index: {}]  }
   0x1   :  { %16 = vsyncpa [#allocation7], 0  ;;  %s15361_s13 = smov 0  }
   0x2 LB: > { %s15367_s14 = sadd.s32 4294967295, %s15285_s13   ;;  %p11909_p0 = scmp.ge.s32.totalorder %s15285_s13, 1  ;;  %s15285_s13 = sphi %s15361_s13, %s22_s13  }
   0x3   : > { %p273_p1 = scmp.lt.s32.totalorder %s15285_s13, 3  ;;  %p15152_p2 = scmp.eq.s32.totalorder %s15367_s14, 0 }
   0x4   : > { %s15287_s16 = smov [#allocation6]   ;;  %s15288_s18 = smov [#allocation4]  }
   0x5   : > { %p15372_p3 = pnand %p11909_p0, %p273_p1  ;;  %s313_s17 = sshll.u32 %s15287_s16, 4  ;;  %s15376_s17 = int_to_ptr.vmem [resolvable:$true] %s313_s17 }
   0x6   : > { %s288_s19 = sshll.u32 %s15288_s18, 4  ;;  %s15289_s21 = smov [#allocation8]   ;;  %s15380_s19 = int_to_ptr.vmem [resolvable:$true] %s288_s19 }
   0x7   : > { %p15142_p4 = pneg %p15372_p3  ;;  %s326_s22 = sshll.u32 %s15289_s21, 4  ;;  %s15388_s22 = int_to_ptr.vmem [resolvable:$true] %s326_s22 }
   0x8   : > { %s15187_s25 = scalar_lea.hbm %s20946_s8, 13824 }
   0x9   : > { %p15384_p5 = pnand %p15152_p2, %p15142_p4  ;;  %p15188_p6 = scmp.ne.s32.totalorder %s20946_s8, %s15187_s25 }
   0xa   : > { %p15194_p10 = scmp.lt.u32.totalorder %s15187_s25, %s20946_s8 }
   0xb   : > { %p15398_p7 = pneg %p15384_p5 }
   0xd   : > { %p15190_p8 = pnand %p15398_p7, %p15188_p6 }
   0xf   : > { %p15191_p9 = pneg %p15190_p8 }
  0x11   : > { %p15196_p11 = pnand %p15194_p10, %p15191_p9 }
  0x13   : > { %15199 = shalt.err (!%p15196_p11)
}
  0x14   : > { %s15200_s11 = scalar_lea.vmem %s15376_s17, 13824  ;;  %p15208_p1 = scmp.lt.s32.totalorder %s15376_s17, %s15376_s17 }
  0x15   : > { %p15201_p12 = scmp.ne.s32.totalorder %s15376_s17, %s15200_s11  ;;  %p15209_p4 = scmp.lt.s32.totalorder %s15200_s11, %s15200_s11 }
  0x17   : > { %p15203_p13 = pnand %p15201_p12, %p15398_p7  ;;  %p15210_p6 = por %p15209_p4, %p15208_p1 }
  0x19   : > { %p15204_p0 = pneg %p15203_p13 }
  0x1b   : > { %p15211_p8 = pnand %p15210_p6, %p15204_p0 }
  0x1d   : > { %15214 = shalt.err (!%p15211_p8)
}
  0x1e   : > { %s15290_s12 = smov 384   ;;  %s15291_s16 = smov 24  }
  0x1f   : > { %15148 = dma.hbm_to_vmem [thread:$0]  (!%p15384_p5), %s20946_s8, 13824, %s15376_s17, [#allocation7], %s15290_s12, %s15290_s12, %s15291_s16  }
  0x20   : > { %s15215_s25 = scalar_lea.hbm %s20941_s3, 12288 }
  0x21   : > { %p15216_p9 = scmp.ne.s32.totalorder %s20941_s3, %s15215_s25  ;;  %p15222_p12 = scmp.lt.u32.totalorder %s15215_s25, %s20941_s3 }
  0x23   : > { %p15218_p10 = pnand %p15216_p9, %p15398_p7 }
  0x25   : > { %p15219_p11 = pneg %p15218_p10 }
  0x27   : > { %p15224_p13 = pnand %p15222_p12, %p15219_p11 }
  0x29   : > { %15227 = shalt.err (!%p15224_p13)
}
  0x2a   : > { %s15228_s17 = scalar_lea.vmem %s15380_s19, 12288  ;;  %p15236_p6 = scmp.lt.s32.totalorder %s15380_s19, %s15380_s19 }
  0x2b   : > { %p15229_p0 = scmp.ne.s32.totalorder %s15380_s19, %s15228_s17  ;;  %p15237_p8 = scmp.lt.s32.totalorder %s15228_s17, %s15228_s17 }
  0x2d   : > { %p15231_p1 = pnand %p15229_p0, %p15398_p7  ;;  %p15238_p9 = por %p15237_p8, %p15236_p6 }
  0x2f   : > { %p15232_p4 = pneg %p15231_p1 }
  0x31   : > { %p15239_p10 = pnand %p15238_p9, %p15232_p4 }
  0x33   : > { %15242 = shalt.err (!%p15239_p10)
}
  0x34   : > { %15145 = dma.hbm_to_vmem [thread:$0]  (!%p15384_p5), %s20941_s3, 12288, %s15380_s19, [#allocation5], %s15290_s12, %s15290_s12, %s15291_s16  }
  0x35   : > { %s15243_s24 = scalar_lea.hbm %s20947_s9, 9216 }
  0x36   : > { %p15244_p11 = scmp.ne.s32.totalorder %s20947_s9, %s15243_s24  ;;  %p15250_p0 = scmp.lt.u32.totalorder %s15243_s24, %s20947_s9 }
  0x38   : > { %p15246_p12 = pnand %p15244_p11, %p15398_p7 }
  0x3a   : > { %p15247_p13 = pneg %p15246_p12 }
  0x3c   : > { %p15252_p1 = pnand %p15250_p0, %p15247_p13 }
  0x3e   : > { %15255 = shalt.err (!%p15252_p1)
}
  0x3f   : > { %s15256_s19 = scalar_lea.vmem %s15388_s22, 9216  ;;  %p15264_p9 = scmp.lt.s32.totalorder %s15388_s22, %s15388_s22 }
  0x40   : > { %p15257_p4 = scmp.ne.s32.totalorder %s15388_s22, %s15256_s19  ;;  %p15265_p10 = scmp.lt.s32.totalorder %s15256_s19, %s15256_s19 }
  0x42   : > { %p15259_p6 = pnand %p15257_p4, %p15398_p7  ;;  %p15266_p11 = por %p15265_p10, %p15264_p9 }
  0x44   : > { %p15260_p8 = pneg %p15259_p6 }
  0x46   : > { %p15267_p12 = pnand %p15266_p11, %p15260_p8 }
  0x48   : > { %15270 = shalt.err (!%p15267_p12)
}
  0x49   : > { %s15292_s12 = smov 256   ;;  %s15293_s16 = smov 16  }
  0x4a   : > { %15151 = dma.hbm_to_vmem [thread:$0]  (!%p15384_p5), %s20947_s9, 9216, %s15388_s22, [#allocation7], %s15292_s12, %s15292_s12, %s15293_s16  }
  0x4b   : > { %357 = sbr.rel (%p15372_p3) target bundleno = 2648 (0xa58), region = 60 }
  0x52   : > { %15276 = dma.done.wait (%p15152_p2), [#allocation5], 12288  }
  0x53   : > { %15278 = vsyncadd (%p15152_p2), [#allocation5], 4294955008 }
  0x54   : > { %15280 = dma.done.wait (%p15152_p2), [#allocation7], 23040  }
  0x55   : > { %15282 = vsyncadd (%p15152_p2), [#allocation7], 4294944256  ;;  %v423_v0 = vld [vmem:[#allocation4 + $0x8] sm:$0xff]  ;;  %v426_v1 = vld [vmem:[#allocation4 + $0x20] sm:$0xff]  ;;  %p407_p2 = scmp.lt.s32.totalorder %s15367_s14, 1  ;;  %vm2692_vm0 = vcmask 523264  }
  0x56   : > { %v472_v2 = vld [vmem:[#allocation4 + $0x190] sm:$0xff]  ;;  %v521_v3 = vand.u32 4294901760, %v423_v0  ;;  %v525_v4 = vand.u32 4294901760, %v426_v1  ;;  %v475_v5 = vld [vmem:[#allocation4 + $0x1a8] sm:$0xff]  ;;  %v422_v7 = vld [vmem:[#allocation4] sm:$0xff]  ;;  %vm15296_vm1 = vmmov 0  }
  0x57   : > { %v1854_v6 = vand.u32 4294901760, %v472_v2  ;;  %v425_v8 = vld [vmem:[#allocation4 + $0x18] sm:$0xff]  ;;  %v1857_v9 = vand.u32 4294901760, %v475_v5  ;;  %v523_v10 = vand.u32 4294901760, %v422_v7  ;;  %v424_v12 = vld [vmem:[#allocation4 + $0x10] sm:$0xff]  ;;  %v427_v13 = vld [vmem:[#allocation4 + $0x28] sm:$0xff] }
  0x58   : > { %v527_v11 = vand.u32 4294901760, %v425_v8  ;;  %v429_v14 = vld [vmem:[#allocation4 + $0x38] sm:$0xff]  ;;  %v15475_v15 = vpack.c.bf16 %v525_v4, %v521_v3  ;;  %v15477_v16 = vsub.f32 %v423_v0, %v521_v3  ;;  %v15479_v17 = vsub.f32 %v426_v1, %v525_v4  ;;  %v432_v19 = vld [vmem:[#allocation4 + $0x50] sm:$0xff]  ;;  %v478_v20 = vld [vmem:[#allocation4 + $0x1c0] sm:$0xff]  ;;  %s23614_s14 = smov (!%p407_p2, %s15367_s14), 1  ;;  %s15298_s21 = smov 127  }
  0x59   : > { %v15481_v18 = vsub.f32 %v472_v2, %v1854_v6  ;;  %v481_v21 = vld [vmem:[#allocation4 + $0x1d8] sm:$0xff]  ;;  %v15483_v22 = vpack.c.bf16 %v1857_v9, %v1854_v6  ;;  %v15485_v23 = vsub.f32 %v475_v5, %v1857_v9  ;;  %v15489_v25 = vsub.f32 %v422_v7, %v523_v10  ;;  %v428_v26 = vld [vmem:[#allocation4 + $0x30] sm:$0xff]  ;;  %v431_v31 = vld [vmem:[#allocation4 + $0x48] sm:$0xff]  ;;  %s11925_s15 = sshll.u32 %s23614_s14, 3  ;;  %s11918_s11 = sshll.u32 %s23614_s14, 2 }
  0x5a   : > { %21845 = vst [vmem:[#allocation11_spill] sm:$0xff] %v15475_v15  ;;  %21846 = vst [vmem:[#allocation12_spill] sm:$0xff] %v15477_v16  ;;  %v15487_v24 = vpack.c.bf16 %v527_v11, %v523_v10  ;;  %12912 = vmatprep.subr.bf16.mxu0 %v15475_v15  ;;  %v15492_v27 = vsub.f32 %v425_v8, %v527_v11  ;;  %v1806_v28 = vand.u32 4294901760, %v424_v12  ;;  %v1809_v29 = vand.u32 4294901760, %v427_v13  ;;  %v430_v36 = vld [vmem:[#allocation4 + $0x40] sm:$0xff]  ;;  %v433_v37 = vld [vmem:[#allocation4 + $0x58] sm:$0xff]  ;;  %s415_s28 = scalar_lea.vmem %s20939_s1, %s11925_s15  ;;  %s410_s16 = scalar_lea.vmem %s20938_s0, %s11918_s11 }
  0x5b   : > { %21847 = vst [vmem:[#allocation13_spill] sm:$0xff] %v15479_v17  ;;  %21848 = vst [vmem:[#allocation14_spill] sm:$0xff] %v15483_v22  ;;  %v529_v30 = vand.u32 4294901760, %v429_v14  ;;  %13296 = vmatprep.subr.bf16.mxu1 %v15483_v22  ;;  %v533_v32 = vand.u32 4294901760, %v432_v19  ;;  %v1860_v33 = vand.u32 4294901760, %v478_v20  ;;  %v1863_v34 = vand.u32 4294901760, %v481_v21 }
  0x5c   : > { %21849 = vst [vmem:[#allocation15_spill] sm:$0xff] %v15487_v24  ;;  %21850 = vst [vmem:[#allocation16_spill] sm:$0xff] %v15489_v25  ;;  %12914 = vmatpush1.bf16.msra.mxu0 %v15487_v24  ;;  %v531_v35 = vand.u32 4294901760, %v428_v26  ;;  %v15496_v38 = vpack.c.bf16 %v1809_v29, %v1806_v28  ;;  %v15498_v39 = vsub.f32 %v424_v12, %v1806_v28  ;;  %v435_v42 = vld [vmem:[#allocation4 + $0x68] sm:$0xff]  ;;  %v438_v43 = vld [vmem:[#allocation4 + $0x80] sm:$0xff]  ;;  %v535_v51 = vand.u32 4294901760, %v431_v31 }
  0x5d   : > { %21851 = vst [vmem:[#allocation17_spill] sm:$0xff] %v15492_v27  ;;  %v15500_v40 = vsub.f32 %v427_v13, %v1809_v29  ;;  %v15502_v41 = vsub.f32 %v429_v14, %v529_v30  ;;  %v484_v44 = vld [vmem:[#allocation4 + $0x1f0] sm:$0xff]  ;;  %v15504_v45 = vpack.c.bf16 %v533_v32, %v529_v30  ;;  %v15506_v46 = vsub.f32 %v432_v19, %v533_v32  ;;  %v487_v49 = vld [vmem:[#allocation4 + $0x208] sm:$0xff]  ;;  %v434_v58 = vld [vmem:[#allocation4 + $0x60] sm:$0xff]  ;;  %s15297_s11 = smov 126   ;;  %s15299_s23 = smov 110  }
  0x5e   : > { %21852 = vst [vmem:[#allocation18_spill] sm:$0xff] %v15496_v38  ;;  %v15508_v47 = vpack.c.bf16 %v1863_v34, %v1860_v33  ;;  %v15510_v48 = vsub.f32 %v478_v20, %v1860_v33  ;;  %13298 = vmatpush3.bf16.msra.mxu1 %v15496_v38  ;;  %v15513_v50 = vsub.f32 %v481_v21, %v1863_v34  ;;  %v1812_v53 = vand.u32 4294901760, %v430_v36  ;;  %v437_v59 = vld [vmem:[#allocation4 + $0x78] sm:$0xff]  ;;  %v436_v0 = vld [vmem:[#allocation4 + $0x70] sm:$0xff]  ;;  %v439_v1 = vld [vmem:[#allocation4 + $0x88] sm:$0xff]  ;;  %s15300_s24 = smov 109  }
  0x5f   : > { %21853 = vst [vmem:[#allocation19_spill] sm:$0xff] %v15500_v40  ;;  %21854 = vst [vmem:[#allocation20_spill] sm:$0xff] %v15502_v41  ;;  %v15515_v52 = vsub.f32 %v428_v26, %v531_v35  ;;  %12916 = vmatprep.subr.bf16.mxu0 %v15504_v45  ;;  %v1815_v54 = vand.u32 4294901760, %v433_v37  ;;  %v537_v55 = vand.u32 4294901760, %v435_v42  ;;  %v541_v56 = vand.u32 4294901760, %v438_v43  ;;  %v441_v2 = vld [vmem:[#allocation4 + $0x98] sm:$0xff] }
  0x60   : > { %21855 = vst [vmem:[#allocation21_spill] sm:$0xff] %v15504_v45  ;;  %21856 = vst [vmem:[#allocation22_spill] sm:$0xff] %v15506_v46  ;;  %13300 = vmatprep.subr.bf16.mxu1 %v15508_v47  ;;  %v1866_v57 = vand.u32 4294901760, %v484_v44  ;;  %v15519_v60 = vpack.c.bf16 %v535_v51, %v531_v35  ;;  %v15521_v61 = vsub.f32 %v431_v31, %v535_v51  ;;  %v1869_v63 = vand.u32 4294901760, %v487_v49  ;;  %v444_v7 = vld [vmem:[#allocation4 + $0xb0] sm:$0xff]  ;;  %v490_v8 = vld [vmem:[#allocation4 + $0x220] sm:$0xff] }
  0x61   : > { %21857 = vst [vmem:[#allocation23_spill] sm:$0xff] %v15508_v47  ;;  %21858 = vst [vmem:[#allocation24_spill] sm:$0xff] %v15510_v48  ;;  %v15523_v62 = vsub.f32 %v430_v36, %v1812_v53  ;;  %v15525_v3 = vpack.c.bf16 %v1815_v54, %v1812_v53  ;;  %v15527_v4 = vsub.f32 %v433_v37, %v1815_v54  ;;  %v493_v9 = vld [vmem:[#allocation4 + $0x238] sm:$0xff]  ;;  %v539_v14 = vand.u32 4294901760, %v434_v58  ;;  %v440_v31 = vld [vmem:[#allocation4 + $0x90] sm:$0xff]  ;;  %s15301_s25 = smov 108  }
  0x62   : > { %21859 = vst [vmem:[#allocation25_spill] sm:$0xff] %v15513_v50  ;;  %21860 = vst [vmem:[#allocation26_spill] sm:$0xff] %v15515_v52  ;;  %v15529_v5 = vpack.c.bf16 %v541_v56, %v537_v55  ;;  %v15531_v6 = vsub.f32 %v435_v42, %v537_v55  ;;  %12918 = vmatpush1.bf16.msra.mxu0 %v15519_v60  ;;  %v15534_v10 = vsub.f32 %v438_v43, %v541_v56  ;;  %v443_v36 = vld [vmem:[#allocation4 + $0xa8] sm:$0xff]  ;;  %v442_v37 = vld [vmem:[#allocation4 + $0xa0] sm:$0xff]  ;;  %vm3882_vm2 = vcmask 257024   ;;  %s15302_s26 = smov 92  }
  0x63   : > { %21861 = vst [vmem:[#allocation27_spill] sm:$0xff] %v15519_v60  ;;  %21862 = vst [vmem:[#allocation28_spill] sm:$0xff] %v15521_v61  ;;  %v15536_v11 = vpack.c.bf16 %v1869_v63, %v1866_v57  ;;  %v15538_v12 = vsub.f32 %v484_v44, %v1866_v57  ;;  %v15540_v13 = vsub.f32 %v487_v49, %v1869_v63  ;;  %13302 = vmatpush3.bf16.msra.mxu1 %v15525_v3  ;;  %v445_v42 = vld [vmem:[#allocation4 + $0xb8] sm:$0xff]  ;;  %v447_v53 = vld [vmem:[#allocation4 + $0xc8] sm:$0xff]  ;;  %s15303_s27 = smov 91   ;;  %s15304_s29 = smov 90  }
  0x64   : > { %21863 = vst [vmem:[#allocation29_spill] sm:$0xff] %v15523_v62  ;;  %21864 = vst [vmem:[#allocation30_spill] sm:$0xff] %v15525_v3  ;;  %12920 = vmatprep.subr.bf16.mxu0 %v15529_v5  ;;  %v543_v19 = vand.u32 4294901760, %v437_v59  ;;  %v1818_v20 = vand.u32 4294901760, %v436_v0  ;;  %v1821_v21 = vand.u32 4294901760, %v439_v1  ;;  %v545_v26 = vand.u32 4294901760, %v441_v2 }
  0x65   : > { %21865 = vst [vmem:[#allocation31_spill] sm:$0xff] %v15527_v4  ;;  %21866 = vst [vmem:[#allocation32_spill] sm:$0xff] %v15529_v5  ;;  %13304 = vmatprep.subr.bf16.mxu1 %v15536_v11  ;;  %v549_v28 = vand.u32 4294901760, %v444_v7  ;;  %v1872_v29 = vand.u32 4294901760, %v490_v8  ;;  %v1875_v30 = vand.u32 4294901760, %v493_v9  ;;  %v15547_v33 = vsub.f32 %v434_v58, %v539_v14  ;;  %v450_v54 = vld [vmem:[#allocation4 + $0xe0] sm:$0xff] }
  0x66   : > { %21867 = vst [vmem:[#allocation33_spill] sm:$0xff] %v15531_v6  ;;  %21868 = vst [vmem:[#allocation34_spill] sm:$0xff] %v15534_v10  ;;  %v15545_v32 = vpack.c.bf16 %v543_v19, %v539_v14  ;;  %v15549_v34 = vsub.f32 %v437_v59, %v543_v19  ;;  %v15551_v35 = vpack.c.bf16 %v1821_v21, %v1818_v20  ;;  %v496_v55 = vld [vmem:[#allocation4 + $0x250] sm:$0xff]  ;;  %v547_v59 = vand.u32 4294901760, %v440_v31  ;;  %v499_v14 = vld [vmem:[#allocation4 + $0x268] sm:$0xff] }
  0x67   : > { %21869 = vst [vmem:[#allocation35_spill] sm:$0xff] %v15536_v11  ;;  %21870 = vst [vmem:[#allocation36_spill] sm:$0xff] %v15538_v12  ;;  %v15553_v43 = vsub.f32 %v436_v0, %v1818_v20  ;;  %v15555_v44 = vsub.f32 %v439_v1, %v1821_v21  ;;  %v15557_v49 = vpack.c.bf16 %v549_v28, %v545_v26  ;;  %v551_v0 = vand.u32 4294901760, %v443_v36  ;;  %v453_v5 = vld [vmem:[#allocation4 + $0xf8] sm:$0xff]  ;;  %v456_v60 = vld [vmem:[#allocation4 + $0x110] sm:$0xff] }
  0x68   : > { %21871 = vst [vmem:[#allocation37_spill] sm:$0xff] %v15540_v13  ;;  %21872 = vst [vmem:[#allocation38_spill] sm:$0xff] %v15545_v32  ;;  %v15559_v51 = vsub.f32 %v441_v2, %v545_v26  ;;  %12922 = vmatpush1.bf16.msra.mxu0 %v15545_v32  ;;  %13306 = vmatpush3.bf16.msra.mxu1 %v15551_v35  ;;  %v15563_v56 = vsub.f32 %v444_v7, %v549_v28  ;;  %v1824_v1 = vand.u32 4294901760, %v442_v37  ;;  %v446_v26 = vld [vmem:[#allocation4 + $0xc0] sm:$0xff]  ;;  %v449_v28 = vld [vmem:[#allocation4 + $0xd8] sm:$0xff]  ;;  %vm3895_vm3 = vcmask 261124  }
  0x69   : > { %21873 = vst [vmem:[#allocation39_spill] sm:$0xff] %v15547_v33  ;;  %21874 = vst [vmem:[#allocation40_spill] sm:$0xff] %v15549_v34  ;;  %v15565_v57 = vpack.c.bf16 %v1875_v30, %v1872_v29  ;;  %v15567_v58 = vsub.f32 %v490_v8, %v1872_v29  ;;  %12924 = vmatprep.subr.bf16.mxu0 %v15557_v49  ;;  %v15570_v63 = vsub.f32 %v493_v9, %v1875_v30  ;;  %v448_v8 = vld [vmem:[#allocation4 + $0xd0] sm:$0xff]  ;;  %v454_v11 = vld [vmem:[#allocation4 + $0x100] sm:$0xff]  ;;  %vm3935_vm4 = vcmask 1031168  }
  0x6a   : > { %21875 = vst [vmem:[#allocation41_spill] sm:$0xff] %v15551_v35  ;;  %21876 = vst [vmem:[#allocation42_spill] sm:$0xff] %v15553_v43  ;;  %v1827_v2 = vand.u32 4294901760, %v445_v42  ;;  %v15573_v19 = vsub.f32 %v440_v31, %v547_v59  ;;  %v553_v20 = vand.u32 4294901760, %v447_v53  ;;  %v557_v7 = vand.u32 4294901760, %v450_v54  ;;  %v502_v35 = vld [vmem:[#allocation4 + $0x280] sm:$0xff] }
  0x6b   : > { %21877 = vst [vmem:[#allocation43_spill] sm:$0xff] %v15555_v44  ;;  %21878 = vst [vmem:[#allocation44_spill] sm:$0xff] %v15557_v49  ;;  %13308 = vmatprep.subr.bf16.mxu1 %v15565_v57  ;;  %v1878_v21 = vand.u32 4294901760, %v496_v55  ;;  %v15575_v29 = vpack.c.bf16 %v551_v0, %v547_v59  ;;  %v15577_v32 = vsub.f32 %v443_v36, %v551_v0  ;;  %v451_v49 = vld [vmem:[#allocation4 + $0xe8] sm:$0xff]  ;;  %v1881_v36 = vand.u32 4294901760, %v499_v14  ;;  %v457_v22 = vld [vmem:[#allocation4 + $0x118] sm:$0xff] }
  0x6c   : > { %21879 = vst [vmem:[#allocation45_spill] sm:$0xff] %v15559_v51  ;;  %21880 = vst [vmem:[#allocation46_spill] sm:$0xff] %v15563_v56  ;;  %v15579_v9 = vpack.c.bf16 %v1827_v2, %v1824_v1  ;;  %v15581_v30 = vsub.f32 %v442_v37, %v1824_v1  ;;  %v15583_v45 = vsub.f32 %v445_v42, %v1827_v2  ;;  %v555_v37 = vand.u32 4294901760, %v446_v26  ;;  %v517_v56 = vld [vmem:[#allocation4 + $0x2f8] sm:$0xff]  ;;  %v471_v33 = vld [vmem:[#allocation4 + $0x188] sm:$0xff] }
  0x6d   : > { %21881 = vst [vmem:[#allocation47_spill] sm:$0xff] %v15565_v57  ;;  %21882 = vst [vmem:[#allocation48_spill] sm:$0xff] %v15567_v58  ;;  %v15585_v31 = vpack.c.bf16 %v557_v7, %v553_v20  ;;  %v15587_v24 = vsub.f32 %v447_v53, %v553_v20  ;;  %v15589_v15 = vsub.f32 %v450_v54, %v557_v7  ;;  %12926 = vmatpush1.bf16.msra.mxu0 %v15575_v29  ;;  %v505_v53 = vld [vmem:[#allocation4 + $0x298] sm:$0xff]  ;;  %vm3964_vm5 = vcmask 900096  }
  0x6e   : > { %21883 = vst [vmem:[#allocation49_spill] sm:$0xff] %v15570_v63  ;;  %21884 = vst [vmem:[#allocation50_spill] sm:$0xff] %v15573_v19  ;;  %13310 = vmatpush3.bf16.msra.mxu1 %v15579_v9  ;;  %v15593_v59 = vsub.f32 %v496_v55, %v1878_v21  ;;  %v559_v0 = vand.u32 4294901760, %v449_v28  ;;  %v1830_v1 = vand.u32 4294901760, %v448_v8  ;;  %v1833_v42 = vand.u32 4294901760, %v451_v49  ;;  %v452_v55 = vld [vmem:[#allocation4 + $0xf0] sm:$0xff] }
  0x6f   : > { %21885 = vst [vmem:[#allocation51_spill] sm:$0xff] %v15575_v29  ;;  %21886 = vst [vmem:[#allocation52_spill] sm:$0xff] %v15577_v32  ;;  %12928 = vmatprep.subr.bf16.mxu0 %v15585_v31  ;;  %v561_v2 = vand.u32 4294901760, %v453_v5  ;;  %v565_v57 = vand.u32 4294901760, %v456_v60  ;;  %v15596_v54 = vpack.c.bf16 %v1881_v36, %v1878_v21  ;;  %v15598_v20 = vsub.f32 %v499_v14, %v1881_v36  ;;  %v459_v21 = vld [vmem:[#allocation4 + $0x128] sm:$0xff]  ;;  %v468_v32 = vld [vmem:[#allocation4 + $0x170] sm:$0xff] }
  0x70   : > { %21887 = vst [vmem:[#allocation53_spill] sm:$0xff] %v15579_v9  ;;  %21888 = vst [vmem:[#allocation54_spill] sm:$0xff] %v15581_v30  ;;  %v15600_v7 = vpack.c.bf16 %v559_v0, %v555_v37  ;;  %v15602_v29 = vsub.f32 %v446_v26, %v555_v37  ;;  %v455_v9 = vld [vmem:[#allocation4 + $0x108] sm:$0xff]  ;;  %v15604_v3 = vsub.f32 %v449_v28, %v559_v0  ;;  %v1884_v36 = vand.u32 4294901760, %v502_v35  ;;  %v514_v19 = vld [vmem:[#allocation4 + $0x2e0] sm:$0xff] }
  0x71   : > { %21889 = vst [vmem:[#allocation55_spill] sm:$0xff] %v15583_v45  ;;  %21890 = vst [vmem:[#allocation56_spill] sm:$0xff] %v15585_v31  ;;  %v15606_v31 = vpack.c.bf16 %v1833_v42, %v1830_v1  ;;  %v15608_v47 = vsub.f32 %v448_v8, %v1830_v1  ;;  %v15610_v38 = vsub.f32 %v451_v49, %v1833_v42  ;;  %13312 = vmatprep.subr.bf16.mxu1 %v15596_v54  ;;  %v473_v10 = vld [vmem:[#allocation4 + $0x198] sm:$0xff]  ;;  %vm3993_vm6 = vcmask 891904  }
  0x72   : > { %21891 = vst [vmem:[#allocation57_spill] sm:$0xff] %v15587_v24  ;;  %21892 = vst [vmem:[#allocation58_spill] sm:$0xff] %v15589_v15  ;;  %v462_v15 = vld [vmem:[#allocation4 + $0x140] sm:$0xff]  ;;  %12930 = vmatpush1.bf16.msra.mxu0 %v15600_v7  ;;  %v15615_v14 = vpack.c.bf16 %v565_v57, %v561_v2  ;;  %v15617_v26 = vsub.f32 %v453_v5, %v561_v2  ;;  %v15619_v28 = vsub.f32 %v456_v60, %v565_v57  ;;  %v508_v5 = vld [vmem:[#allocation4 + $0x2b0] sm:$0xff]  ;;  %vm4022_vm7 = vcmask 883712  }
  0x73   : > { %21893 = vst [vmem:[#allocation59_spill] sm:$0xff] %v15593_v59  ;;  %21894 = vst [vmem:[#allocation60_spill] sm:$0xff] %v15596_v54  ;;  %13314 = vmatpush3.bf16.msra.mxu1 %v15606_v31  ;;  %v1887_v8 = vand.u32 4294901760, %v505_v53  ;;  %v563_v49 = vand.u32 4294901760, %v452_v55  ;;  %v567_v37 = vand.u32 4294901760, %v455_v9  ;;  %v1836_v0 = vand.u32 4294901760, %v454_v11 }
  0x74   : > { %21895 = vst [vmem:[#allocation61_spill] sm:$0xff] %v15598_v20  ;;  %21896 = vst [vmem:[#allocation62_spill] sm:$0xff] %v15600_v7  ;;  %12932 = vmatprep.subr.bf16.mxu0 %v15615_v14  ;;  %v15623_v1 = vsub.f32 %v502_v35, %v1884_v36  ;;  %v1839_v42 = vand.u32 4294901760, %v457_v22  ;;  %v569_v7 = vand.u32 4294901760, %v459_v21  ;;  %v573_v54 = vand.u32 4294901760, %v462_v15  ;;  %v511_v2 = vld [vmem:[#allocation4 + $0x2c8] sm:$0xff] }
  0x75   : > { %21897 = vst [vmem:[#allocation63_spill] sm:$0xff] %v15602_v29  ;;  %21898 = vst [vmem:[#allocation64_spill] sm:$0xff] %v15604_v3  ;;  %v15625_v60 = vpack.c.bf16 %v1887_v8, %v1884_v36  ;;  %v15627_v57 = vsub.f32 %v505_v53, %v1887_v8  ;;  %v461_v3 = vld [vmem:[#allocation4 + $0x138] sm:$0xff]  ;;  %v460_v29 = vld [vmem:[#allocation4 + $0x130] sm:$0xff]  ;;  %v15638_v35 = vsub.f32 %v455_v9, %v567_v37  ;;  %vm4051_vm8 = vcmask 752640  }
  0x76   : > { %21899 = vst [vmem:[#allocation65_spill] sm:$0xff] %v15606_v31  ;;  %21900 = vst [vmem:[#allocation66_spill] sm:$0xff] %v15608_v47  ;;  %v15629_v31 = vpack.c.bf16 %v567_v37, %v563_v49  ;;  %v15642_v24 = vsub.f32 %v454_v11, %v1836_v0  ;;  %v15644_v36 = vsub.f32 %v457_v22, %v1839_v42  ;;  %v463_v53 = vld [vmem:[#allocation4 + $0x148] sm:$0xff]  ;;  %v465_v8 = vld [vmem:[#allocation4 + $0x158] sm:$0xff]  ;;  %v1890_v37 = vand.u32 4294901760, %v508_v5 }
  0x77   : > { %21901 = vst [vmem:[#allocation67_spill] sm:$0xff] %v15610_v38  ;;  %21902 = vst [vmem:[#allocation68_spill] sm:$0xff] %v15615_v14  ;;  %v15640_v14 = vpack.c.bf16 %v1839_v42, %v1836_v0  ;;  %13316 = vmatprep.subr.bf16.mxu1 %v15625_v60  ;;  %v15652_v9 = vsub.f32 %v462_v15, %v573_v54  ;;  %v1893_v11 = vand.u32 4294901760, %v511_v2  ;;  %v575_v0 = vand.u32 4294901760, %v461_v3  ;;  %v485_v61 = vld [vmem:[#allocation4 + $0x1f8] sm:$0xff] }
  0x78   : > { %21903 = vst [vmem:[#allocation69_spill] sm:$0xff] %v15617_v26  ;;  %21904 = vst [vmem:[#allocation70_spill] sm:$0xff] %v15619_v28  ;;  %v15631_v28 = vsub.f32 %v452_v55, %v563_v49  ;;  %v458_v26 = vld [vmem:[#allocation4 + $0x120] sm:$0xff]  ;;  %12934 = vmatpush1.bf16.msra.mxu0 %v15629_v31  ;;  %v15648_v55 = vpack.c.bf16 %v573_v54, %v569_v7  ;;  %v15650_v49 = vsub.f32 %v459_v21, %v569_v7  ;;  %vm4080_vm9 = vcmask 744448  }
  0x79   : > { %21905 = vst [vmem:[#allocation71_spill] sm:$0xff] %v15623_v1  ;;  %21906 = vst [vmem:[#allocation72_spill] sm:$0xff] %v15625_v60  ;;  %13318 = vmatpush3.bf16.msra.mxu1 %v15640_v14  ;;  %v571_v22 = vand.u32 4294901760, %v458_v26  ;;  %v1842_v42 = vand.u32 4294901760, %v460_v29  ;;  %v1845_v60 = vand.u32 4294901760, %v463_v53  ;;  %v15659_v7 = vpack.c.bf16 %v1893_v11, %v1890_v37 }
  0x7a   : > { %21907 = vst [vmem:[#allocation73_spill] sm:$0xff] %v15627_v57  ;;  %21908 = vst [vmem:[#allocation74_spill] sm:$0xff] %v15629_v31  ;;  %12936 = vmatprep.subr.bf16.mxu0 %v15648_v55  ;;  %v577_v31 = vand.u32 4294901760, %v465_v8  ;;  %v15661_v15 = vsub.f32 %v511_v2, %v1893_v11  ;;  %v474_v2 = vld [vmem:[#allocation4 + $0x1a0] sm:$0xff]  ;;  %vm3906_vm10 = vcmask 1039360   ;;  %vm4166_vm11 = vcmask 588800  }
  0x7b   : > { %21909 = vst [vmem:[#allocation75_spill] sm:$0xff] %v15631_v28  ;;  %21910 = vst [vmem:[#allocation76_spill] sm:$0xff] %v15638_v35  ;;  %v15656_v35 = vsub.f32 %v508_v5, %v1890_v37  ;;  %v581_v28 = vand.u32 4294901760, %v468_v32  ;;  %v15663_v54 = vpack.c.bf16 %v575_v0, %v571_v22  ;;  %v15665_v21 = vsub.f32 %v458_v26, %v571_v22  ;;  %v469_v37 = vld [vmem:[#allocation4 + $0x178] sm:$0xff] }
  0x7c   : > { %21911 = vst [vmem:[#allocation77_spill] sm:$0xff] %v15640_v14  ;;  %21912 = vst [vmem:[#allocation78_spill] sm:$0xff] %v15642_v24  ;;  %v464_v14 = vld [vmem:[#allocation4 + $0x150] sm:$0xff]  ;;  %v15667_v5 = vsub.f32 %v461_v3, %v575_v0  ;;  %v15671_v51 = vsub.f32 %v460_v29, %v1842_v42  ;;  %v15673_v34 = vsub.f32 %v463_v53, %v1845_v60  ;;  %13320 = vmatprep.subr.bf16.mxu1 %v15659_v7  ;;  %vm4109_vm12 = vcmask 736256  }
  0x7d   : > { %21913 = vst [vmem:[#allocation79_spill] sm:$0xff] %v15644_v36  ;;  %21914 = vst [vmem:[#allocation80_spill] sm:$0xff] %v15648_v55  ;;  %v466_v55 = vld [vmem:[#allocation4 + $0x160] sm:$0xff]  ;;  %12938 = vmatpush1.bf16.msra.mxu0 %v15663_v54  ;;  %v15677_v26 = vpack.c.bf16 %v581_v28, %v577_v31  ;;  %v15679_v11 = vsub.f32 %v465_v8, %v577_v31  ;;  %v15681_v22 = vsub.f32 %v468_v32, %v581_v28  ;;  %vm5504_vm13 = vcmask 261120  }
  0x7e   : > { %21915 = vst [vmem:[#allocation81_spill] sm:$0xff] %v15650_v49  ;;  %21916 = vst [vmem:[#allocation82_spill] sm:$0xff] %v15652_v9  ;;  %v467_v9 = vld [vmem:[#allocation4 + $0x168] sm:$0xff]  ;;  %v15669_v49 = vpack.c.bf16 %v1845_v60, %v1842_v42  ;;  %v1896_v3 = vand.u32 4294901760, %v514_v19  ;;  %v1899_v29 = vand.u32 4294901760, %v517_v56  ;;  %v579_v60 = vand.u32 4294901760, %v464_v14 }
  0x7f   : > { %21917 = vst [vmem:[#allocation83_spill] sm:$0xff] %v15656_v35  ;;  %21918 = vst [vmem:[#allocation84_spill] sm:$0xff] %v15659_v7  ;;  %v583_v53 = vand.u32 4294901760, %v467_v9  ;;  %v1848_v0 = vand.u32 4294901760, %v466_v55  ;;  %12940 = vmatprep.subr.bf16.mxu0 %v15677_v26  ;;  %v1851_v31 = vand.u32 4294901760, %v469_v37  ;;  %v585_v8 = vand.u32 4294901760, %v471_v33 }
  0x80   : > { %21919 = vst [vmem:[#allocation85_spill] sm:$0xff] %v15661_v15  ;;  %21920 = vst [vmem:[#allocation86_spill] sm:$0xff] %v15663_v54  ;;  %13322 = vmatpush3.bf16.msra.mxu1 %v15669_v49  ;;  %v15690_v42 = vsub.f32 %v514_v19, %v1896_v3  ;;  %v589_v32 = vand.u32 4294901760, %v474_v2  ;;  %v15692_v28 = vpack.c.bf16 %v1899_v29, %v1896_v3  ;;  %vm8828_vm14 = vcmask 326656  }
  0x81   : > { %21921 = vst [vmem:[#allocation87_spill] sm:$0xff] %v15665_v21  ;;  %21922 = vst [vmem:[#allocation88_spill] sm:$0xff] %v15667_v5  ;;  %v15694_v54 = vsub.f32 %v517_v56, %v1899_v29  ;;  %v15696_v7 = vpack.c.bf16 %v583_v53, %v579_v60  ;;  %v15700_v5 = vsub.f32 %v467_v9, %v583_v53  ;;  %v591_v53 = vand.u32 4294901760, %v473_v10 }
  0x82   : > { %21923 = vst [vmem:[#allocation89_spill] sm:$0xff] %v15669_v49  ;;  %21924 = vst [vmem:[#allocation90_spill] sm:$0xff] %v15671_v51  ;;  %v421_v49 = vld [vmem:[%s415_s28] sm:$0xff]  ;;  %v15702_v21 = vpack.c.bf16 %v1851_v31, %v1848_v0  ;;  %v15706_v19 = vsub.f32 %v469_v37, %v1851_v31  ;;  %13324 = vmatprep.subr.bf16.mxu1 %v15692_v28  ;;  %v15710_v56 = vpack.c.bf16 %v589_v32, %v585_v8 }
  0x83   : > { %21925 = vst [vmem:[#allocation91_spill] sm:$0xff] %v15673_v34  ;;  %21926 = vst [vmem:[#allocation92_spill] sm:$0xff] %v15677_v26  ;;  %v15704_v26 = vsub.f32 %v466_v55, %v1848_v0  ;;  %12942 = vmatpush1.bf16.msra.mxu0 %v15696_v7  ;;  %v15712_v3 = vsub.f32 %v471_v33, %v585_v8  ;;  %v15716_v29 = vand.u32 4294901760, %v421_v49  ;;  %v21037_v55 = vand.u32 4294901760, %v15481_v18 }
  0x84   : > { %21927 = vst [vmem:[#allocation93_spill] sm:$0xff] %v15679_v11  ;;  %21928 = vst [vmem:[#allocation94_spill] sm:$0xff] %v15681_v22  ;;  %v15698_v22 = vsub.f32 %v464_v14, %v579_v60  ;;  %v470_v11 = vld [vmem:[#allocation4 + $0x180] sm:$0xff]  ;;  %v15714_v14 = vsub.f32 %v474_v2, %v589_v32  ;;  %13326 = vmatpush3.bf16.msra.mxu1 %v15702_v21  ;;  %v519_v9 = vcombine.high %v421_v49, %v421_v49 }
  0x85   : > { %21929 = vst [vmem:[#allocation95_spill] sm:$0xff] %v15690_v42  ;;  %21930 = vst [vmem:[#allocation96_spill] sm:$0xff] %v15692_v28  ;;  %v21039_v37 = vand.u32 4294901760, %v15485_v23  ;;  %v587_v60 = vand.u32 4294901760, %v470_v11  ;;  %12944 = vmatprep.subr.bf16.mxu0 %v15710_v56  ;;  %v15723_v0 = vsub.f32 %v421_v49, %v15716_v29  ;;  %v21043_v33 = vand.u32 4294901760, %v15498_v39 }
  0x86   : > { %21931 = vst [vmem:[#allocation97_spill] sm:$0xff] %v15694_v54  ;;  %21932 = vst [vmem:[#allocation98_spill] sm:$0xff] %v15696_v7  ;;  %v15727_v31 = vand.u32 4294901760, %v519_v9  ;;  %v2033_v8 = vsub.f32 %v15481_v18, %v21037_v55  ;;  %v15739_v28 = vsub.f32 %v473_v10, %v591_v53 }
  0x87   : > { %21933 = vst [vmem:[#allocation99_spill] sm:$0xff] %v15698_v22  ;;  %21934 = vst [vmem:[#allocation100_spill] sm:$0xff] %v15700_v5  ;;  %v2040_v32 = vsub.f32 %v15485_v23, %v21039_v37  ;;  %v15735_v7 = vsub.f32 %v470_v11, %v587_v60  ;;  %v15737_v49 = vpack.c.bf16 %v591_v53, %v587_v60  ;;  %v15742_v2 = vand.u32 4294901760, %v15723_v0  ;;  %v479_v22 = vld [vmem:[#allocation4 + $0x1c8] sm:$0xff] }
  0x88   : > { %21935 = vst [vmem:[#allocation101_spill] sm:$0xff] %v15702_v21  ;;  %21936 = vst [vmem:[#allocation102_spill] sm:$0xff] %v15704_v26  ;;  %v480_v21 = vld [vmem:[#allocation4 + $0x1d0] sm:$0xff]  ;;  %v15748_v55 = vsub.f32 %v519_v9, %v15727_v31  ;;  %v21949_v11 = vand.u32 4294901760, %v15500_v40 }
  0x89   : > { %21937 = vst [vmem:[#allocation103_spill] sm:$0xff] %v15706_v19  ;;  %21938 = vst [vmem:[#allocation104_spill] sm:$0xff] %v15710_v56  ;;  %v477_v56 = vld [vmem:[#allocation4 + $0x1b8] sm:$0xff]  ;;  %v2041_v37 = vand.u32 4294901760, %v2040_v32  ;;  %12946 = vmatpush1.bf16.msra.mxu0 %v15737_v49  ;;  %v658_v10 = vsub.f32 %v15723_v0, %v15742_v2  ;;  %v476_v32 = vld [vmem:[#allocation4 + $0x1b0] sm:$0xff] }
  0x8a   : > { %21939 = vst [vmem:[#allocation105_spill] sm:$0xff] %v15712_v3  ;;  %21940 = vst [vmem:[#allocation106_spill] sm:$0xff] %v15714_v14  ;;  %v1921_v14 = vsub.f32 %v15498_v39, %v21043_v33  ;;  %v2034_v3 = vand.u32 4294901760, %v2033_v8  ;;  %v593_v53 = vand.u32 4294901760, %v477_v56  ;;  %v15757_v5 = vand.u32 4294901760, %v15748_v55 }
  0x8b   : > { %21941 = vst [vmem:[#allocation107_spill] sm:$0xff] %v15716_v29  ;;  %21942 = vst [vmem:[#allocation108_spill] sm:$0xff] %v15723_v0  ;;  %v21055_v8 = vand.u32 4294901760, %v15510_v48  ;;  %v15760_v29 = vand.u32 4294901760, %v658_v10  ;;  %v599_v10 = vand.u32 4294901760, %v479_v22 }
  0x8c   : > { %21943 = vst [vmem:[#allocation109_spill] sm:$0xff] %v15727_v31  ;;  %21944 = vst [vmem:[#allocation110_spill] sm:$0xff] %v15735_v7  ;;  %v1928_v7 = vsub.f32 %v15500_v40, %v21949_v11  ;;  %v1922_v60 = vand.u32 4294901760, %v1921_v14  ;;  %v13327_v33 = vpack.c.bf16 %v2041_v37, %v2034_v3  ;;  %v483_v14 = vld [vmem:[#allocation4 + $0x1e8] sm:$0xff]  ;;  %v21063_v3 = vand.u32 4294901760, %v15513_v50 }
  0x8d   : > { %21945 = vst [vmem:[#allocation111_spill] sm:$0xff] %v15737_v49  ;;  %21946 = vst [vmem:[#allocation112_spill] sm:$0xff] %v15739_v28  ;;  %v597_v28 = vand.u32 4294901760, %v480_v21  ;;  %v15764_v49 = vsub.f32 %v477_v56, %v593_v53  ;;  %v595_v37 = vand.u32 4294901760, %v476_v32  ;;  %v21065_v56 = vand.u32 4294901760, %v15523_v62 }
  0x8e   : > { %21947 = vst [vmem:[#allocation113_spill] sm:$0xff] %v15742_v2  ;;  %21948 = vst [vmem:[#allocation114_spill] sm:$0xff] %v15748_v55  ;;  %v1929_v9 = vand.u32 4294901760, %v1928_v7  ;;  %v652_v2 = vsub.f32 %v15748_v55, %v15757_v5  ;;  %13328 = vmatprep.subr.bf16.mxu1 %v13327_v33  ;;  %v2047_v7 = vsub.f32 %v15510_v48, %v21055_v8 }
  0x8f   : > { %21950 = vst [vmem:[#allocation115_spill] sm:$0xff] %v15757_v5  ;;  %v15762_v11 = vpack.c.bf16 %v597_v28, %v593_v53  ;;  %21952 = vst [vmem:[#allocation117_spill] sm:$0xff] %v15764_v49  ;;  %v15766_v6 = vsub.f32 %v480_v21, %v597_v28  ;;  %v486_v28 = vld [vmem:[#allocation4 + $0x200] sm:$0xff]  ;;  %v2054_v33 = vsub.f32 %v15513_v50, %v21063_v3 }
  0x90   : > { %v13329_v0 = vpack.c.bf16 %v1929_v9, %v1922_v60  ;;  %v653_v53 = vand.u32 4294901760, %v652_v2  ;;  %v601_v60 = vand.u32 4294901760, %v483_v14  ;;  %v482_v9 = vld [vmem:[#allocation4 + $0x1e0] sm:$0xff]  ;;  %v15780_v8 = vpack.c.bf16 %v599_v10, %v595_v37 }
  0x91   : > { %21951 = vst [vmem:[#allocation116_spill] sm:$0xff] %v15762_v11  ;;  %21953 = vst [vmem:[#allocation118_spill] sm:$0xff] %v15766_v6  ;;  %12948 = vmatprep.subr.bf16.mxu0 %v15762_v11  ;;  %v2048_v6 = vand.u32 4294901760, %v2047_v7  ;;  %v15782_v5 = vsub.f32 %v476_v32, %v595_v37  ;;  %v15784_v11 = vsub.f32 %v479_v22, %v599_v10  ;;  %v2055_v21 = vand.u32 4294901760, %v2054_v33  ;;  %v489_v33 = vld [vmem:[#allocation4 + $0x218] sm:$0xff] }
  0x92   : > { %21954 = vst [vmem:[#allocation119_spill] sm:$0xff] %v15780_v8  ;;  %v1935_v49 = vsub.f32 %v15523_v62, %v21065_v56  ;;  %1906 = vmatprep.mubr.f32.mxu1 %v653_v53  ;;  %v21957_v2 = vand.u32 4294901760, %v15527_v4  ;;  %v605_v55 = vand.u32 4294901760, %v486_v28  ;;  %v15792_v3 = vsub.f32 %v483_v14, %v601_v60  ;;  %654 = vmatprep.mubr.f32.mxu0 %v653_v53 }
  0x93   : > { %21955 = vst [vmem:[#allocation120_spill] sm:$0xff] %v15782_v5  ;;  %21956 = vst [vmem:[#allocation121_spill] sm:$0xff] %v15784_v11  ;;  %1912 = vmatmul.mubr.f32.vlgmr.msra.gmra.mrb[0].mxu1 %v15760_v29  ;;  %12950 = vmatpush1.bf16.msra.mxu0 %v15780_v8  ;;  %v21070_v32 = vand.u32 4294901760, %v15538_v12  ;;  %v21073_v37 = vand.u32 4294901760, %v15540_v13  ;;  %v603_v10 = vand.u32 4294901760, %v482_v9  ;;  %v13331_v56 = vpack.c.bf16 %v2055_v21, %v2048_v6 }
  0x94   : > { %v1942_v7 = vsub.f32 %v15527_v4, %v21957_v2  ;;  %21958 = vst [vmem:[#allocation122_spill] sm:$0xff] %v15792_v3  ;;  %v1936_v22 = vand.u32 4294901760, %v1935_v49  ;;  %13330 = vmatpush3.bf16.msra.mxu1 %v13329_v0  ;;  %v15798_v2 = vpack.c.bf16 %v605_v55, %v601_v60  ;;  %v15800_v14 = vsub.f32 %v486_v28, %v605_v55  ;;  %v492_v0 = vld [vmem:[#allocation4 + $0x230] sm:$0xff] }
  0x95   : > { %2142 = vmatprep.mubr.f32.mxu1 %v15727_v31  ;;  %v2061_v53 = vsub.f32 %v15538_v12, %v21070_v32  ;;  %v2068_v49 = vsub.f32 %v15540_v13, %v21073_v37  ;;  %v607_v8 = vand.u32 4294901760, %v485_v61  ;;  %v15809_v3 = vsub.f32 %v482_v9, %v603_v10  ;;  %13332 = vmatprep.subr.bf16.mxu1 %v13331_v56  ;;  %v488_v60 = vld [vmem:[#allocation4 + $0x210] sm:$0xff]  ;;  %v491_v37 = vld [vmem:[#allocation4 + $0x228] sm:$0xff] }
  0x96   : > { %v1943_v11 = vand.u32 4294901760, %v1942_v7  ;;  %21959 = vst [vmem:[#allocation123_spill] sm:$0xff] %v15798_v2  ;;  %21960 = vst [vmem:[#allocation124_spill] sm:$0xff] %v15800_v14  ;;  %12952 = vmatprep.subr.bf16.mxu0 %v15798_v2  ;;  %v21076_v55 = vand.u32 4294901760, %v15553_v43  ;;  %v21078_v21 = vand.u32 4294901760, %v15555_v44  ;;  %v609_v28 = vand.u32 4294901760, %v489_v33 }
  0x97   : > { %21961 = vst [vmem:[#allocation125_spill] sm:$0xff] %v15809_v3  ;;  %v2062_v7 = vand.u32 4294901760, %v2061_v53  ;;  %v2069_v32 = vand.u32 4294901760, %v2068_v49  ;;  %v15814_v14 = vpack.c.bf16 %v607_v8, %v603_v10  ;;  %v15816_v5 = vsub.f32 %v485_v61, %v607_v8  ;;  %v495_v53 = vld [vmem:[#allocation4 + $0x248] sm:$0xff] }
  0x98   : > { %v13333_v6 = vpack.c.bf16 %v1943_v11, %v1936_v22  ;;  %v1949_v56 = vsub.f32 %v15553_v43, %v21076_v55  ;;  %v1956_v11 = vsub.f32 %v15555_v44, %v21078_v21  ;;  %v613_v9 = vand.u32 4294901760, %v492_v0 }
  0x99   : > { %21962 = vst [vmem:[#allocation126_spill] sm:$0xff] %v15814_v14  ;;  %21963 = vst [vmem:[#allocation127_spill] sm:$0xff] %v15816_v5  ;;  %v15824_v22 = vsub.f32 %v489_v33, %v609_v28  ;;  %v13335_v2 = vpack.c.bf16 %v2069_v32, %v2062_v7  ;;  %12954 = vmatpush1.bf16.msra.mxu0 %v15814_v14  ;;  %v21082_v10 = vand.u32 4294901760, %v15567_v58  ;;  %v21084_v61 = vand.u32 4294901760, %v15570_v63  ;;  %v498_v14 = vld [vmem:[#allocation4 + $0x260] sm:$0xff] }
  0x9a   : > { %13334 = vmatpush3.bf16.msra.mxu1 %v13333_v6  ;;  %v611_v8 = vand.u32 4294901760, %v488_v60  ;;  %v1950_v49 = vand.u32 4294901760, %v1949_v56  ;;  %v1957_v6 = vand.u32 4294901760, %v1956_v11  ;;  %v15829_v55 = vpack.c.bf16 %v613_v9, %v609_v28  ;;  %v494_v56 = vld [vmem:[#allocation4 + $0x240] sm:$0xff] }
  0x9b   : > { %21964 = vst [vmem:[#allocation128_spill] sm:$0xff] %v15824_v22  ;;  %v15831_v5 = vsub.f32 %v492_v0, %v613_v9  ;;  %13336 = vmatprep.subr.bf16.mxu1 %v13335_v2  ;;  %v2075_v33 = vsub.f32 %v15567_v58, %v21082_v10  ;;  %v2082_v32 = vsub.f32 %v15570_v63, %v21084_v61  ;;  %v615_v7 = vand.u32 4294901760, %v491_v37 }
  0x9c   : > { %21965 = vst [vmem:[#allocation129_spill] sm:$0xff] %v15829_v55  ;;  %v15839_v21 = vsub.f32 %v488_v60, %v611_v8  ;;  %v13337_v22 = vpack.c.bf16 %v1957_v6, %v1950_v49  ;;  %12956 = vmatprep.subr.bf16.mxu0 %v15829_v55  ;;  %v21088_v28 = vand.u32 4294901760, %v15581_v30  ;;  %v21090_v0 = vand.u32 4294901760, %v15583_v45  ;;  %v497_v55 = vld [vmem:[#allocation4 + $0x258] sm:$0xff] }
  0x9d   : > { %21966 = vst [vmem:[#allocation130_spill] sm:$0xff] %v15831_v5  ;;  %v617_v2 = vand.u32 4294901760, %v495_v53  ;;  %v2076_v11 = vand.u32 4294901760, %v2075_v33  ;;  %v2083_v9 = vand.u32 4294901760, %v2082_v32  ;;  %v15844_v10 = vpack.c.bf16 %v615_v7, %v611_v8  ;;  %v501_v33 = vld [vmem:[#allocation4 + $0x278] sm:$0xff] }
  0x9e   : > { %21967 = vst [vmem:[#allocation131_spill] sm:$0xff] %v15839_v21  ;;  %v15846_v5 = vsub.f32 %v491_v37, %v615_v7  ;;  %13338 = vmatpush3.bf16.msra.mxu1 %v13337_v22  ;;  %v1963_v60 = vsub.f32 %v15581_v30, %v21088_v28  ;;  %v1970_v49 = vsub.f32 %v15583_v45, %v21090_v0  ;;  %v621_v6 = vand.u32 4294901760, %v498_v14 }
  0x9f   : > { %21968 = vst [vmem:[#allocation132_spill] sm:$0xff] %v15844_v10  ;;  %v15854_v61 = vsub.f32 %v495_v53, %v617_v2  ;;  %v13339_v21 = vpack.c.bf16 %v2083_v9, %v2076_v11  ;;  %12958 = vmatpush1.bf16.msra.mxu0 %v15844_v10  ;;  %v21094_v8 = vand.u32 4294901760, %v15593_v59  ;;  %v21096_v37 = vand.u32 4294901760, %v15598_v20  ;;  %v504_v10 = vld [vmem:[#allocation4 + $0x290] sm:$0xff] }
  0xa0   : > { %21969 = vst [vmem:[#allocation133_spill] sm:$0xff] %v15846_v5  ;;  %v619_v22 = vand.u32 4294901760, %v494_v56  ;;  %v1964_v32 = vand.u32 4294901760, %v1963_v60  ;;  %v1971_v7 = vand.u32 4294901760, %v1970_v49  ;;  %v15859_v28 = vpack.c.bf16 %v621_v6, %v617_v2  ;;  %v500_v60 = vld [vmem:[#allocation4 + $0x270] sm:$0xff] }
  0xa1   : > { %21970 = vst [vmem:[#allocation134_spill] sm:$0xff] %v15854_v61  ;;  %v15861_v5 = vsub.f32 %v498_v14, %v621_v6  ;;  %13340 = vmatprep.subr.bf16.mxu1 %v13339_v21  ;;  %v2089_v53 = vsub.f32 %v15593_v59, %v21094_v8  ;;  %v2096_v11 = vsub.f32 %v15598_v20, %v21096_v37  ;;  %v623_v9 = vand.u32 4294901760, %v497_v55 }
  0xa2   : > { %21971 = vst [vmem:[#allocation135_spill] sm:$0xff] %v15859_v28  ;;  %v15869_v0 = vsub.f32 %v494_v56, %v619_v22  ;;  %v13341_v61 = vpack.c.bf16 %v1971_v7, %v1964_v32  ;;  %12960 = vmatprep.subr.bf16.mxu0 %v15859_v28  ;;  %v21100_v2 = vand.u32 4294901760, %v15608_v47  ;;  %v21102_v14 = vand.u32 4294901760, %v15610_v38  ;;  %v503_v28 = vld [vmem:[#allocation4 + $0x288] sm:$0xff] }
  0xa3   : > { %21972 = vst [vmem:[#allocation136_spill] sm:$0xff] %v15861_v5  ;;  %v625_v21 = vand.u32 4294901760, %v501_v33  ;;  %v2090_v49 = vand.u32 4294901760, %v2089_v53  ;;  %v2097_v6 = vand.u32 4294901760, %v2096_v11  ;;  %v15874_v8 = vpack.c.bf16 %v623_v9, %v619_v22  ;;  %v507_v53 = vld [vmem:[#allocation4 + $0x2a8] sm:$0xff] }
  0xa4   : > { %21973 = vst [vmem:[#allocation137_spill] sm:$0xff] %v15869_v0  ;;  %v15876_v5 = vsub.f32 %v497_v55, %v623_v9  ;;  %13342 = vmatpush3.bf16.msra.mxu1 %v13341_v61  ;;  %v1977_v56 = vsub.f32 %v15608_v47, %v21100_v2  ;;  %v1984_v32 = vsub.f32 %v15610_v38, %v21102_v14  ;;  %v629_v7 = vand.u32 4294901760, %v504_v10 }
  0xa5   : > { %21974 = vst [vmem:[#allocation138_spill] sm:$0xff] %v15874_v8  ;;  %v15884_v37 = vsub.f32 %v501_v33, %v625_v21  ;;  %v13343_v0 = vpack.c.bf16 %v2097_v6, %v2090_v49  ;;  %12962 = vmatpush1.bf16.msra.mxu0 %v15874_v8  ;;  %v21106_v22 = vand.u32 4294901760, %v15623_v1  ;;  %v21108_v55 = vand.u32 4294901760, %v15627_v57  ;;  %v510_v8 = vld [vmem:[#allocation4 + $0x2c0] sm:$0xff] }
  0xa6   : > { %21975 = vst [vmem:[#allocation139_spill] sm:$0xff] %v15876_v5  ;;  %v627_v61 = vand.u32 4294901760, %v500_v60  ;;  %v1978_v11 = vand.u32 4294901760, %v1977_v56  ;;  %v1985_v9 = vand.u32 4294901760, %v1984_v32  ;;  %v15889_v2 = vpack.c.bf16 %v629_v7, %v625_v21  ;;  %v506_v56 = vld [vmem:[#allocation4 + $0x2a0] sm:$0xff] }
  0xa7   : > { %21976 = vst [vmem:[#allocation140_spill] sm:$0xff] %v15884_v37  ;;  %v15891_v5 = vsub.f32 %v504_v10, %v629_v7  ;;  %13344 = vmatprep.subr.bf16.mxu1 %v13343_v0  ;;  %v2103_v33 = vsub.f32 %v15623_v1, %v21106_v22  ;;  %v2110_v49 = vsub.f32 %v15627_v57, %v21108_v55  ;;  %v631_v6 = vand.u32 4294901760, %v503_v28 }
  0xa8   : > { %21977 = vst [vmem:[#allocation141_spill] sm:$0xff] %v15889_v2  ;;  %v15899_v14 = vsub.f32 %v500_v60, %v627_v61  ;;  %v13345_v37 = vpack.c.bf16 %v1985_v9, %v1978_v11  ;;  %12964 = vmatprep.subr.bf16.mxu0 %v15889_v2  ;;  %v21112_v21 = vand.u32 4294901760, %v15642_v24  ;;  %v21114_v10 = vand.u32 4294901760, %v15644_v36  ;;  %v509_v2 = vld [vmem:[#allocation4 + $0x2b8] sm:$0xff] }
  0xa9   : > { %21978 = vst [vmem:[#allocation142_spill] sm:$0xff] %v15891_v5  ;;  %v633_v0 = vand.u32 4294901760, %v507_v53  ;;  %v2104_v32 = vand.u32 4294901760, %v2103_v33  ;;  %v2111_v7 = vand.u32 4294901760, %v2110_v49  ;;  %v15904_v22 = vpack.c.bf16 %v631_v6, %v627_v61  ;;  %v513_v33 = vld [vmem:[#allocation4 + $0x2d8] sm:$0xff] }
  0xaa   : > { %21979 = vst [vmem:[#allocation143_spill] sm:$0xff] %v15899_v14  ;;  %v15906_v5 = vsub.f32 %v503_v28, %v631_v6  ;;  %13346 = vmatpush3.bf16.msra.mxu1 %v13345_v37  ;;  %v1991_v60 = vsub.f32 %v15642_v24, %v21112_v21  ;;  %v1998_v11 = vsub.f32 %v15644_v36, %v21114_v10  ;;  %v637_v9 = vand.u32 4294901760, %v510_v8 }
  0xab   : > { %21980 = vst [vmem:[#allocation144_spill] sm:$0xff] %v15904_v22  ;;  %v15914_v55 = vsub.f32 %v507_v53, %v633_v0  ;;  %v13347_v14 = vpack.c.bf16 %v2111_v7, %v2104_v32  ;;  %12966 = vmatpush1.bf16.msra.mxu0 %v15904_v22  ;;  %v21118_v61 = vand.u32 4294901760, %v15656_v35  ;;  %v21120_v28 = vand.u32 4294901760, %v15661_v15  ;;  %v516_v22 = vld [vmem:[#allocation4 + $0x2f0] sm:$0xff] }
  0xac   : > { %21981 = vst [vmem:[#allocation145_spill] sm:$0xff] %v15906_v5  ;;  %v635_v37 = vand.u32 4294901760, %v506_v56  ;;  %v1992_v49 = vand.u32 4294901760, %v1991_v60  ;;  %v1999_v6 = vand.u32 4294901760, %v1998_v11  ;;  %v15919_v21 = vpack.c.bf16 %v637_v9, %v633_v0  ;;  %v512_v60 = vld [vmem:[#allocation4 + $0x2d0] sm:$0xff] }
  0xad   : > { %21982 = vst [vmem:[#allocation146_spill] sm:$0xff] %v15914_v55  ;;  %v15921_v5 = vsub.f32 %v510_v8, %v637_v9  ;;  %13348 = vmatprep.subr.bf16.mxu1 %v13347_v14  ;;  %v2117_v53 = vsub.f32 %v15656_v35, %v21118_v61  ;;  %v2124_v32 = vsub.f32 %v15661_v15, %v21120_v28  ;;  %v639_v7 = vand.u32 4294901760, %v509_v2 }
  0xae   : > { %21983 = vst [vmem:[#allocation147_spill] sm:$0xff] %v15919_v21  ;;  %v15929_v10 = vsub.f32 %v506_v56, %v635_v37  ;;  %v13349_v55 = vpack.c.bf16 %v1999_v6, %v1992_v49  ;;  %12968 = vmatprep.subr.bf16.mxu0 %v15919_v21  ;;  %v21124_v0 = vand.u32 4294901760, %v15671_v51  ;;  %v21125_v8 = vand.u32 4294901760, %v15673_v34  ;;  %v515_v21 = vld [vmem:[#allocation4 + $0x2e8] sm:$0xff] }
  0xaf   : > { %21984 = vst [vmem:[#allocation148_spill] sm:$0xff] %v15921_v5  ;;  %v641_v14 = vand.u32 4294901760, %v513_v33  ;;  %v2118_v11 = vand.u32 4294901760, %v2117_v53  ;;  %v2125_v9 = vand.u32 4294901760, %v2124_v32  ;;  %v15934_v61 = vpack.c.bf16 %v639_v7, %v635_v37 }
  0xb0   : > { %21985 = vst [vmem:[#allocation149_spill] sm:$0xff] %v15929_v10  ;;  %v15936_v5 = vsub.f32 %v509_v2, %v639_v7  ;;  %13350 = vmatpush3.bf16.msra.mxu1 %v13349_v55  ;;  %v2005_v56 = vsub.f32 %v15671_v51, %v21124_v0  ;;  %v2012_v49 = vsub.f32 %v15673_v34, %v21125_v8  ;;  %v645_v6 = vand.u32 4294901760, %v516_v22 }
  0xb1   : > { %21986 = vst [vmem:[#allocation150_spill] sm:$0xff] %v15934_v61  ;;  %v15944_v28 = vsub.f32 %v513_v33, %v641_v14  ;;  %v13351_v10 = vpack.c.bf16 %v2125_v9, %v2118_v11  ;;  %12970 = vmatpush1.bf16.msra.mxu0 %v15934_v61  ;;  %v21128_v37 = vand.u32 4294901760, %v15690_v42  ;;  %v21130_v2 = vand.u32 4294901760, %v15694_v54 }
  0xb2   : > { %21987 = vst [vmem:[#allocation151_spill] sm:$0xff] %v15936_v5  ;;  %v643_v55 = vand.u32 4294901760, %v512_v60  ;;  %v2006_v53 = vand.u32 4294901760, %v2005_v56  ;;  %v2013_v32 = vand.u32 4294901760, %v2012_v49  ;;  %v15949_v7 = vpack.c.bf16 %v645_v6, %v641_v14 }
  0xb3   : > { %21988 = vst [vmem:[#allocation152_spill] sm:$0xff] %v15944_v28  ;;  %v15951_v0 = vsub.f32 %v516_v22, %v645_v6  ;;  %13352 = vmatprep.subr.bf16.mxu1 %v13351_v10  ;;  %v2131_v33 = vsub.f32 %v15690_v42, %v21128_v37  ;;  %v2138_v11 = vsub.f32 %v15694_v54, %v21130_v2  ;;  %v647_v9 = vand.u32 4294901760, %v515_v21 }
  0xb4   : > { %21989 = vst [vmem:[#allocation153_spill] sm:$0xff] %v15949_v7  ;;  %v15959_v8 = vsub.f32 %v512_v60, %v643_v55  ;;  %v13353_v61 = vpack.c.bf16 %v2013_v32, %v2006_v53  ;;  %12972 = vmatprep.subr.bf16.mxu0 %v15949_v7  ;;  %v21129_v14 = vand.u32 4294901760, %v15704_v26  ;;  %v21131_v22 = vand.u32 4294901760, %v15706_v19 }
  0xb5   : > { %21990 = vst [vmem:[#allocation154_spill] sm:$0xff] %v15951_v0  ;;  %v21132_v10 = vand.u32 4294901760, %v15477_v16  ;;  %v2132_v56 = vand.u32 4294901760, %v2131_v33  ;;  %v2139_v49 = vand.u32 4294901760, %v2138_v11  ;;  %v15965_v6 = vpack.c.bf16 %v647_v9, %v643_v55 }
  0xb6   : > { %21991 = vst [vmem:[#allocation155_spill] sm:$0xff] %v15959_v8  ;;  %v15967_v37 = vsub.f32 %v515_v21, %v647_v9  ;;  %13354 = vmatpush3.bf16.msra.mxu1 %v13353_v61  ;;  %v2019_v60 = vsub.f32 %v15704_v26, %v21129_v14  ;;  %v2026_v53 = vsub.f32 %v15706_v19, %v21131_v22  ;;  %v21133_v33 = vand.u32 4294901760, %v15479_v17 }
  0xb7   : > { %21992 = vst [vmem:[#allocation156_spill] sm:$0xff] %v15965_v6  ;;  %v669_v32 = vsub.f32 %v15477_v16, %v21132_v10  ;;  %v13355_v11 = vpack.c.bf16 %v2139_v49, %v2132_v56  ;;  %12974 = vmatpush1.bf16.msra.mxu0 %v15965_v6  ;;  %v13359_v21 = vpack.c.bf16 %v15485_v23, %v15481_v18  ;;  %v21136_v61 = vand.u32 4294901760, %v15489_v25 }
  0xb8   : > { %21993 = vst [vmem:[#allocation157_spill] sm:$0xff] %v15967_v37  ;;  %v21137_v55 = vand.u32 4294901760, %v15492_v27  ;;  %v2020_v9 = vand.u32 4294901760, %v2019_v60  ;;  %v2027_v14 = vand.u32 4294901760, %v2026_v53  ;;  %v681_v22 = vsub.f32 %v15479_v17, %v21133_v33 }
  0xb9   : > { %v670_v2 = vand.u32 4294901760, %v669_v32  ;;  %13356 = vmatprep.subr.bf16.mxu1 %v13355_v11  ;;  %v675_v56 = vsub.f32 %v15489_v25, %v21136_v61  ;;  %v13361_v10 = vpack.c.bf16 %v15500_v40, %v15498_v39  ;;  %v21141_v60 = vand.u32 4294901760, %v15502_v41 }
  0xba   : > { %v687_v49 = vsub.f32 %v15492_v27, %v21137_v55  ;;  %v13357_v53 = vpack.c.bf16 %v2027_v14, %v2020_v9  ;;  %v682_v32 = vand.u32 4294901760, %v681_v22  ;;  %660 = vmatmul.mubr.f32.vlgmr.msra.gmra.mrb[0].mxu0 %v15760_v29  ;;  %v21145_v33 = vand.u32 4294901760, %v15506_v46  ;;  %v21994_v22 = vld [vmem:[#allocation28_spill] sm:$0xff] }
  0xbb   : > { %v13363_v11 = vpack.c.bf16 %v15513_v50, %v15510_v48  ;;  %v676_v6 = vand.u32 4294901760, %v675_v56  ;;  %v693_v55 = vsub.f32 %v15502_v41, %v21141_v60  ;;  %v21147_v7 = vand.u32 4294901760, %v15515_v52  ;;  %1051 = vmatprep.mubr.f32.mxu0 %v15727_v31  ;;  %v21995_v48 = vld [vmem:[#allocation33_spill] sm:$0xff] }
  0xbc   : > { %v688_v61 = vand.u32 4294901760, %v687_v49  ;;  %13358 = vmatpush3.bf16.msra.mxu1 %v13357_v53  ;;  %v12975_v14 = vpack.c.bf16 %v682_v32, %v670_v2  ;;  %v705_v29 = vsub.f32 %v15506_v46, %v21145_v33  ;;  %v21149_v9 = vand.u32 4294901760, %v21994_v22  ;;  %v21996_v32 = vld [vmem:[#allocation34_spill] sm:$0xff] }
  0xbd   : > { %v13365_v56 = vpack.c.bf16 %v15527_v4, %v15523_v62  ;;  %13360 = vmatprep.subr.bf16.mxu1 %v13359_v21  ;;  %v694_v50 = vand.u32 4294901760, %v693_v55  ;;  %v699_v60 = vsub.f32 %v15515_v52, %v21147_v7  ;;  %v21152_v31 = vand.u32 4294901760, %v21995_v48  ;;  %v21997_v21 = vld [vmem:[#allocation107_spill] sm:$0xff] }
  0xbe   : > { %v12977_v49 = vpack.c.bf16 %v688_v61, %v676_v6  ;;  %12976 = vmatprep.subr.bf16.mxu0 %v12975_v14  ;;  %v706_v2 = vand.u32 4294901760, %v705_v29  ;;  %v711_v53 = vsub.f32 %v21994_v22, %v21149_v9  ;;  %v21153_v33 = vand.u32 4294901760, %v21996_v32  ;;  %v21998_v55 = vld [vmem:[#allocation39_spill] sm:$0xff]  ;;  %v21999_v29 = vld [vmem:[#allocation40_spill] sm:$0xff] }
  0xbf   : > { %v13367_v4 = vpack.c.bf16 %v15540_v13, %v15538_v12  ;;  %2144 = vmatmul.mubr.f32.vlgmr.msra.gmra.mrb[2].mxu1 %v21997_v21  ;;  %v700_v6 = vand.u32 4294901760, %v699_v60  ;;  %v717_v61 = vsub.f32 %v21995_v48, %v21152_v31  ;;  %v21156_v14 = vand.u32 4294901760, %v21998_v55  ;;  %v22002_v12 = vld [vmem:[#allocation46_spill] sm:$0xff] }
  0xc0   : > { %12978 = vmatpush1.bf16.msra.mxu0 %v12977_v49  ;;  %v21158_v7 = vand.u32 4294901760, %v21999_v29  ;;  %13362 = vmatpush3.bf16.msra.mxu1 %v13361_v10  ;;  %v12979_v62 = vpack.c.bf16 %v706_v2, %v694_v50  ;;  %v712_v9 = vand.u32 4294901760, %v711_v53  ;;  %v729_v40 = vsub.f32 %v21996_v32, %v21153_v33  ;;  %v22000_v49 = vld [vmem:[#allocation114_spill] sm:$0xff]  ;;  %v22001_v10 = vld [vmem:[#allocation45_spill] sm:$0xff] }
  0xc1   : > { %v13369_v13 = vpack.c.bf16 %v15555_v44, %v15553_v43  ;;  %2279 = vmatprep.mubr.f32.mxu1 %v22000_v49  ;;  %13364 = vmatprep.subr.bf16.mxu1 %v13363_v11  ;;  %v718_v60 = vand.u32 4294901760, %v717_v61  ;;  %v723_v31 = vsub.f32 %v21998_v55, %v21156_v14  ;;  %v21159_v2 = vand.u32 4294901760, %v22001_v10  ;;  %v22003_v43 = vld [vmem:[#allocation50_spill] sm:$0xff] }
  0xc2   : > { %v735_v50 = vsub.f32 %v21999_v29, %v21158_v7  ;;  %12980 = vmatprep.subr.bf16.mxu0 %v12979_v62  ;;  %v12981_v53 = vpack.c.bf16 %v712_v9, %v700_v6  ;;  %v730_v33 = vand.u32 4294901760, %v729_v40  ;;  %v21161_v21 = vand.u32 4294901760, %v22002_v12  ;;  %v22004_v62 = vld [vmem:[#allocation52_spill] sm:$0xff] }
  0xc3   : > { %v13371_v44 = vpack.c.bf16 %v15570_v63, %v15567_v58  ;;  %v724_v11 = vand.u32 4294901760, %v723_v31  ;;  %v741_v14 = vsub.f32 %v22001_v10, %v21159_v2  ;;  %v21163_v49 = vand.u32 4294901760, %v22003_v43  ;;  %v22005_v63 = vld [vmem:[#allocation57_spill] sm:$0xff] }
  0xc4   : > { %v736_v61 = vand.u32 4294901760, %v735_v50  ;;  %12982 = vmatpush1.bf16.msra.mxu0 %v12981_v53  ;;  %13366 = vmatpush3.bf16.msra.mxu1 %v13365_v56  ;;  %v12983_v7 = vpack.c.bf16 %v730_v33, %v718_v60  ;;  %v753_v40 = vsub.f32 %v22002_v12, %v21161_v21  ;;  %v21165_v9 = vand.u32 4294901760, %v22004_v62  ;;  %v22006_v60 = vld [vmem:[#allocation58_spill] sm:$0xff] }
  0xc5   : > { %v13373_v6 = vpack.c.bf16 %v15583_v45, %v15581_v30  ;;  %13368 = vmatprep.subr.bf16.mxu1 %v13367_v4  ;;  %v742_v50 = vand.u32 4294901760, %v741_v14  ;;  %v747_v2 = vsub.f32 %v22003_v43, %v21163_v49  ;;  %v21167_v53 = vand.u32 4294901760, %v22005_v63  ;;  %v22008_v49 = vld [vmem:[#allocation64_spill] sm:$0xff] }
  0xc6   : > { %v12985_v31 = vpack.c.bf16 %v736_v61, %v724_v11  ;;  %12984 = vmatprep.subr.bf16.mxu0 %v12983_v7  ;;  %v754_v33 = vand.u32 4294901760, %v753_v40  ;;  %v759_v56 = vsub.f32 %v22004_v62, %v21165_v9  ;;  %v21169_v21 = vand.u32 4294901760, %v22006_v60  ;;  %v22007_v11 = vld [vmem:[#allocation63_spill] sm:$0xff] }
  0xc7   : > { %v13375_v45 = vpack.c.bf16 %v15598_v20, %v15593_v59  ;;  %v748_v4 = vand.u32 4294901760, %v747_v2  ;;  %v765_v14 = vsub.f32 %v22005_v63, %v21167_v53  ;;  %v21171_v61 = vand.u32 4294901760, %v22007_v11  ;;  %v22010_v59 = vld [vmem:[#allocation70_spill] sm:$0xff] }
  0xc8   : > { %v21174_v30 = vand.u32 4294901760, %v22008_v49  ;;  %12986 = vmatpush1.bf16.msra.mxu0 %v12985_v31  ;;  %13370 = vmatpush3.bf16.msra.mxu1 %v13369_v13  ;;  %v12987_v7 = vpack.c.bf16 %v754_v33, %v742_v50  ;;  %v760_v40 = vand.u32 4294901760, %v759_v56  ;;  %v777_v9 = vsub.f32 %v22006_v60, %v21169_v21  ;;  %v22009_v13 = vld [vmem:[#allocation69_spill] sm:$0xff] }
  0xc9   : > { %v13377_v20 = vpack.c.bf16 %v15610_v38, %v15608_v47  ;;  %13372 = vmatprep.subr.bf16.mxu1 %v13371_v44  ;;  %v766_v2 = vand.u32 4294901760, %v765_v14  ;;  %v771_v53 = vsub.f32 %v22007_v11, %v21171_v61  ;;  %v21175_v50 = vand.u32 4294901760, %v22009_v13  ;;  %v22011_v47 = vld [vmem:[#allocation75_spill] sm:$0xff] }
  0xca   : > { %v783_v31 = vsub.f32 %v22008_v49, %v21174_v30  ;;  %12988 = vmatprep.subr.bf16.mxu0 %v12987_v7  ;;  %v12989_v33 = vpack.c.bf16 %v760_v40, %v748_v4  ;;  %v778_v56 = vand.u32 4294901760, %v777_v9  ;;  %v21177_v21 = vand.u32 4294901760, %v22010_v59  ;;  %v22012_v4 = vld [vmem:[#allocation76_spill] sm:$0xff] }
  0xcb   : > { %v13379_v38 = vpack.c.bf16 %v15627_v57, %v15623_v1  ;;  %v772_v44 = vand.u32 4294901760, %v771_v53  ;;  %v789_v61 = vsub.f32 %v22009_v13, %v21175_v50  ;;  %v21179_v58 = vand.u32 4294901760, %v22011_v47  ;;  %v22013_v57 = vld [vmem:[#allocation81_spill] sm:$0xff] }
  0xcc   : > { %v784_v14 = vand.u32 4294901760, %v783_v31  ;;  %12990 = vmatpush1.bf16.msra.mxu0 %v12989_v33  ;;  %13374 = vmatpush3.bf16.msra.mxu1 %v13373_v6  ;;  %v12991_v30 = vpack.c.bf16 %v778_v56, %v766_v2  ;;  %v801_v9 = vsub.f32 %v22010_v59, %v21177_v21  ;;  %v21181_v7 = vand.u32 4294901760, %v22012_v4  ;;  %v22014_v56 = vld [vmem:[#allocation82_spill] sm:$0xff] }
  0xcd   : > { %v13381_v40 = vpack.c.bf16 %v15644_v36, %v15642_v24  ;;  %13376 = vmatprep.subr.bf16.mxu1 %v13375_v45  ;;  %v790_v31 = vand.u32 4294901760, %v789_v61  ;;  %v795_v50 = vsub.f32 %v22011_v47, %v21179_v58  ;;  %v21183_v33 = vand.u32 4294901760, %v22013_v57  ;;  %v22016_v58 = vld [vmem:[#allocation88_spill] sm:$0xff] }
  0xce   : > { %v12993_v53 = vpack.c.bf16 %v784_v14, %v772_v44  ;;  %12992 = vmatprep.subr.bf16.mxu0 %v12991_v30  ;;  %v802_v6 = vand.u32 4294901760, %v801_v9  ;;  %v807_v2 = vsub.f32 %v22012_v4, %v21181_v7  ;;  %v21185_v21 = vand.u32 4294901760, %v22014_v56  ;;  %v22015_v44 = vld [vmem:[#allocation87_spill] sm:$0xff] }
  0xcf   : > { %v13383_v36 = vpack.c.bf16 %v15661_v15, %v15656_v35  ;;  %v796_v45 = vand.u32 4294901760, %v795_v50  ;;  %v813_v61 = vsub.f32 %v22013_v57, %v21183_v33  ;;  %v21187_v14 = vand.u32 4294901760, %v22015_v44  ;;  %v22018_v35 = vld [vmem:[#allocation94_spill] sm:$0xff] }
  0xd0   : > { %v21190_v24 = vand.u32 4294901760, %v22016_v58  ;;  %12994 = vmatpush1.bf16.msra.mxu0 %v12993_v53  ;;  %13378 = vmatpush3.bf16.msra.mxu1 %v13377_v20  ;;  %v12995_v30 = vpack.c.bf16 %v802_v6, %v790_v31  ;;  %v808_v9 = vand.u32 4294901760, %v807_v2  ;;  %v825_v7 = vsub.f32 %v22014_v56, %v21185_v21  ;;  %v22017_v20 = vld [vmem:[#allocation93_spill] sm:$0xff] }
  0xd1   : > { %v13385_v15 = vpack.c.bf16 %v15673_v34, %v15671_v51  ;;  %13380 = vmatprep.subr.bf16.mxu1 %v13379_v38  ;;  %v814_v50 = vand.u32 4294901760, %v813_v61  ;;  %v819_v33 = vsub.f32 %v22015_v44, %v21187_v14  ;;  %v21191_v31 = vand.u32 4294901760, %v22017_v20  ;;  %v22019_v51 = vld [vmem:[#allocation99_spill] sm:$0xff] }
  0xd2   : > { %v831_v53 = vsub.f32 %v22016_v58, %v21190_v24  ;;  %12996 = vmatprep.subr.bf16.mxu0 %v12995_v30  ;;  %v12997_v6 = vpack.c.bf16 %v808_v9, %v796_v45  ;;  %v826_v2 = vand.u32 4294901760, %v825_v7  ;;  %v21193_v21 = vand.u32 4294901760, %v22018_v35  ;;  %v22020_v45 = vld [vmem:[#allocation100_spill] sm:$0xff] }
  0xd3   : > { %v13387_v34 = vpack.c.bf16 %v15694_v54, %v15690_v42  ;;  %v820_v38 = vand.u32 4294901760, %v819_v33  ;;  %v837_v14 = vsub.f32 %v22017_v20, %v21191_v31  ;;  %v21197_v1 = vand.u32 4294901760, %v22019_v51  ;;  %v22021_v54 = vld [vmem:[#allocation105_spill] sm:$0xff]  ;;  %v22023_v42 = vld [vmem:[#allocation110_spill] sm:$0xff] }
  0xd4   : > { %v832_v61 = vand.u32 4294901760, %v831_v53  ;;  %12998 = vmatpush1.bf16.msra.mxu0 %v12997_v6  ;;  %13382 = vmatpush3.bf16.msra.mxu1 %v13381_v40  ;;  %v12999_v24 = vpack.c.bf16 %v826_v2, %v814_v50  ;;  %v849_v7 = vsub.f32 %v22018_v35, %v21193_v21  ;;  %v21198_v30 = vand.u32 4294901760, %v22020_v45  ;;  %v22022_v2 = vld [vmem:[#allocation106_spill] sm:$0xff] }
  0xd5   : > { %v13389_v9 = vpack.c.bf16 %v15706_v19, %v15704_v26  ;;  %13384 = vmatprep.subr.bf16.mxu1 %v13383_v36  ;;  %v838_v53 = vand.u32 4294901760, %v837_v14  ;;  %v843_v31 = vsub.f32 %v22019_v51, %v21197_v1  ;;  %v21200_v6 = vand.u32 4294901760, %v22021_v54  ;;  %v22024_v14 = vld [vmem:[#allocation112_spill] sm:$0xff] }
  0xd6   : > { %v13001_v33 = vpack.c.bf16 %v832_v61, %v820_v38  ;;  %13000 = vmatprep.subr.bf16.mxu0 %v12999_v24  ;;  %v850_v40 = vand.u32 4294901760, %v849_v7  ;;  %v855_v50 = vsub.f32 %v22020_v45, %v21198_v30  ;;  %v21201_v21 = vand.u32 4294901760, %v22022_v2  ;;  %v22025_v61 = vld [vmem:[#allocation117_spill] sm:$0xff] }
  0xd7   : > { %v21205_v35 = vand.u32 4294901760, %v22023_v42  ;;  %v844_v19 = vand.u32 4294901760, %v843_v31  ;;  %v861_v36 = vsub.f32 %v22021_v54, %v21200_v6  ;;  %v21206_v38 = vand.u32 4294901760, %v22024_v14 }
  0xd8   : > { %v21208_v1 = vand.u32 4294901760, %v22025_v61  ;;  %13002 = vmatpush1.bf16.msra.mxu0 %v13001_v33  ;;  %13386 = vmatpush3.bf16.msra.mxu1 %v13385_v15  ;;  %v13003_v24 = vpack.c.bf16 %v850_v40, %v838_v53  ;;  %v856_v7 = vand.u32 4294901760, %v855_v50  ;;  %v873_v30 = vsub.f32 %v22022_v2, %v21201_v21  ;;  %v22026_v33 = vld [vmem:[#allocation118_spill] sm:$0xff]  ;;  %v22027_v2 = vld [vmem:[#allocation120_spill] sm:$0xff] }
  0xd9   : > { %v867_v31 = vsub.f32 %v22023_v42, %v21205_v35  ;;  %13388 = vmatprep.subr.bf16.mxu1 %v13387_v34  ;;  %v862_v26 = vand.u32 4294901760, %v861_v36  ;;  %v879_v6 = vsub.f32 %v22024_v14, %v21206_v38  ;;  %v21209_v53 = vand.u32 4294901760, %v22026_v33  ;;  %v22028_v36 = vld [vmem:[#allocation121_spill] sm:$0xff] }
  0xda   : > { %v885_v15 = vsub.f32 %v22025_v61, %v21208_v1  ;;  %13004 = vmatprep.subr.bf16.mxu0 %v13003_v24  ;;  %v13005_v40 = vpack.c.bf16 %v856_v7, %v844_v19  ;;  %v874_v50 = vand.u32 4294901760, %v873_v30  ;;  %v21210_v54 = vand.u32 4294901760, %v22027_v2  ;;  %v22029_v19 = vld [vmem:[#allocation122_spill] sm:$0xff]  ;;  %v22030_v7 = vld [vmem:[#allocation124_spill] sm:$0xff] }
  0xdb   : > { %v868_v21 = vand.u32 4294901760, %v867_v31  ;;  %v880_v45 = vand.u32 4294901760, %v879_v6  ;;  %v897_v34 = vsub.f32 %v22026_v33, %v21209_v53  ;;  %v21211_v38 = vand.u32 4294901760, %v22028_v36  ;;  %v22031_v1 = vld [vmem:[#allocation14_spill] sm:$0xff] }
  0xdc   : > { %v886_v35 = vand.u32 4294901760, %v885_v15  ;;  %13006 = vmatpush1.bf16.msra.mxu0 %v13005_v40  ;;  %13390 = vmatpush3.bf16.msra.mxu1 %v13389_v9  ;;  %v13007_v14 = vpack.c.bf16 %v874_v50, %v862_v26  ;;  %v891_v24 = vsub.f32 %v22027_v2, %v21210_v54  ;;  %v21213_v30 = vand.u32 4294901760, %v22029_v19  ;;  %v22032_v54 = vld [vmem:[#allocation127_spill] sm:$0xff] }
  0xdd   : > { %v21215_v31 = vand.u32 4294901760, %v22030_v7  ;;  %13392 = vmatprep.subr.bf16.mxu1 %v22031_v1  ;;  %v13009_v6 = vpack.c.bf16 %v880_v45, %v868_v21  ;;  %v898_v15 = vand.u32 4294901760, %v897_v34  ;;  %v903_v53 = vsub.f32 %v22028_v36, %v21211_v38  ;;  %v22033_v21 = vld [vmem:[#allocation108_spill] sm:$0xff]  ;;  %v22035_v36 = vld [vmem:[#allocation18_spill] sm:$0xff] }
  0xde   : > { %v21218_v40 = vand.u32 4294901760, %v15809_v3  ;;  %13008 = vmatprep.subr.bf16.mxu0 %v13007_v14  ;;  %v892_v26 = vand.u32 4294901760, %v891_v24  ;;  %v909_v9 = vsub.f32 %v22029_v19, %v21213_v30  ;;  %v21219_v1 = vand.u32 4294901760, %v22032_v54  ;;  %v22034_v14 = vld [vmem:[#allocation128_spill] sm:$0xff] }
  0xdf   : > { %v921_v50 = vsub.f32 %v22030_v7, %v21215_v31  ;;  %2282 = vmatmul.mubr.f32.vlgmr.msra.gmra.mrb[4].mxu1 %v22033_v21  ;;  %v13011_v45 = vpack.c.bf16 %v898_v15, %v886_v35  ;;  %v904_v34 = vand.u32 4294901760, %v903_v53  ;;  %v21223_v24 = vand.u32 4294901760, %v22034_v14  ;;  %v22036_v7 = vld [vmem:[#allocation130_spill] sm:$0xff]  ;;  %v22037_v35 = vld [vmem:[#allocation23_spill] sm:$0xff] }
  0xe0   : > { %v915_v38 = vsub.f32 %v15809_v3, %v21218_v40  ;;  %13010 = vmatpush1.bf16.msra.mxu0 %v13009_v6  ;;  %13394 = vmatpush3.bf16.msra.mxu1 %v22035_v36  ;;  %v910_v30 = vand.u32 4294901760, %v909_v9  ;;  %v927_v31 = vsub.f32 %v22032_v54, %v21219_v1  ;;  %v21224_v2 = vand.u32 4294901760, %v22036_v7  ;;  %v22038_v6 = vld [vmem:[#allocation131_spill] sm:$0xff]  ;;  %v22039_v1 = vld [vmem:[#allocation133_spill] sm:$0xff] }
  0xe1   : > { %v922_v19 = vand.u32 4294901760, %v921_v50  ;;  %13012 = vmatprep.subr.bf16.mxu0 %v13011_v45  ;;  %13396 = vmatprep.subr.bf16.mxu1 %v22037_v35  ;;  %v13013_v53 = vpack.c.bf16 %v904_v34, %v892_v26  ;;  %v933_v40 = vsub.f32 %v22034_v14, %v21223_v24  ;;  %v21227_v21 = vand.u32 4294901760, %v22038_v6  ;;  %v22040_v3 = vld [vmem:[#allocation115_spill] sm:$0xff]  ;;  %v22041_v26 = vld [vmem:[#allocation134_spill] sm:$0xff]  ;;  %v22042_v24 = vld [vmem:[#allocation136_spill] sm:$0xff] }
  0xe2   : > { %v916_v15 = vand.u32 4294901760, %v915_v38  ;;  %v928_v9 = vand.u32 4294901760, %v927_v31  ;;  %v945_v50 = vsub.f32 %v22036_v7, %v21224_v2  ;;  %v21228_v54 = vand.u32 4294901760, %v22039_v1  ;;  %2386 = vmatprep.mubr.f32.mxu1 %v22040_v3  ;;  %v22044_v7 = vld [vmem:[#allocation137_spill] sm:$0xff] }
  0xe3   : > { %v13015_v36 = vpack.c.bf16 %v922_v19, %v910_v30  ;;  %v934_v45 = vand.u32 4294901760, %v933_v40  ;;  %v939_v38 = vsub.f32 %v22038_v6, %v21227_v21  ;;  %v21230_v34 = vand.u32 4294901760, %v22041_v26  ;;  %v22043_v19 = vld [vmem:[#allocation30_spill] sm:$0xff]  ;;  %v22045_v40 = vld [vmem:[#allocation35_spill] sm:$0xff] }
  0xe4   : > { %v21233_v35 = vand.u32 4294901760, %v22042_v24  ;;  %13014 = vmatpush1.bf16.msra.mxu0 %v13013_v53  ;;  %13398 = vmatpush3.bf16.msra.mxu1 %v22043_v19  ;;  %v13017_v30 = vpack.c.bf16 %v928_v9, %v916_v15  ;;  %v946_v31 = vand.u32 4294901760, %v945_v50  ;;  %v951_v2 = vsub.f32 %v22039_v1, %v21228_v54  ;;  %v22046_v15 = vld [vmem:[#allocation139_spill] sm:$0xff] }
  0xe5   : > { %v21235_v3 = vand.u32 4294901760, %v22044_v7  ;;  %13016 = vmatprep.subr.bf16.mxu0 %v13015_v36  ;;  %13400 = vmatprep.subr.bf16.mxu1 %v22045_v40  ;;  %v940_v14 = vand.u32 4294901760, %v939_v38  ;;  %v957_v21 = vsub.f32 %v22041_v26, %v21230_v34  ;;  %v21237_v9 = vand.u32 4294901760, %v22046_v15  ;;  %v22047_v36 = vld [vmem:[#allocation140_spill] sm:$0xff]  ;;  %v22048_v26 = vld [vmem:[#allocation142_spill] sm:$0xff] }
  0xe6   : > { %v969_v53 = vsub.f32 %v22042_v24, %v21233_v35  ;;  %v13019_v50 = vpack.c.bf16 %v946_v31, %v934_v45  ;;  %v952_v19 = vand.u32 4294901760, %v951_v2  ;;  %v21239_v1 = vand.u32 4294901760, %v22047_v36  ;;  %v22049_v35 = vld [vmem:[#allocation41_spill] sm:$0xff]  ;;  %v22050_v31 = vld [vmem:[#allocation143_spill] sm:$0xff] }
  0xe7   : > { %v963_v54 = vsub.f32 %v22044_v7, %v21235_v3  ;;  %v958_v40 = vand.u32 4294901760, %v957_v21  ;;  %v975_v34 = vsub.f32 %v22046_v15, %v21237_v9  ;;  %v21242_v6 = vand.u32 4294901760, %v22048_v26  ;;  %v22051_v21 = vld [vmem:[#allocation47_spill] sm:$0xff] }
  0xe8   : > { %v970_v38 = vand.u32 4294901760, %v969_v53  ;;  %13018 = vmatpush1.bf16.msra.mxu0 %v13017_v30  ;;  %13402 = vmatpush3.bf16.msra.mxu1 %v22049_v35  ;;  %v13021_v24 = vpack.c.bf16 %v952_v19, %v940_v14  ;;  %v981_v2 = vsub.f32 %v22047_v36, %v21239_v1  ;;  %v21243_v3 = vand.u32 4294901760, %v22050_v31  ;;  %v22052_v30 = vld [vmem:[#allocation145_spill] sm:$0xff]  ;;  %v22053_v14 = vld [vmem:[#allocation146_spill] sm:$0xff]  ;;  %v22054_v1 = vld [vmem:[#allocation148_spill] sm:$0xff] }
  0xe9   : > { %v964_v45 = vand.u32 4294901760, %v963_v54  ;;  %13020 = vmatprep.subr.bf16.mxu0 %v13019_v50  ;;  %13404 = vmatprep.subr.bf16.mxu1 %v22051_v21  ;;  %v976_v7 = vand.u32 4294901760, %v975_v34  ;;  %v993_v9 = vsub.f32 %v22048_v26, %v21242_v6  ;;  %v21244_v15 = vand.u32 4294901760, %v22052_v30  ;;  %v22056_v6 = vld [vmem:[#allocation53_spill] sm:$0xff] }
  0xea   : > { %v13023_v53 = vpack.c.bf16 %v970_v38, %v958_v40  ;;  %v982_v35 = vand.u32 4294901760, %v981_v2  ;;  %v987_v54 = vsub.f32 %v22050_v31, %v21243_v3  ;;  %v21246_v19 = vand.u32 4294901760, %v22053_v14  ;;  %v22055_v40 = vld [vmem:[#allocation149_spill] sm:$0xff] }
  0xeb   : > { %v21247_v36 = vand.u32 4294901760, %v22054_v1  ;;  %v13025_v50 = vpack.c.bf16 %v976_v7, %v964_v45  ;;  %v994_v33 = vand.u32 4294901760, %v993_v9  ;;  %v999_v34 = vsub.f32 %v22052_v30, %v21244_v15  ;;  %v22057_v9 = vld [vmem:[#allocation60_spill] sm:$0xff] }
  0xec   : > { %v21249_v38 = vand.u32 4294901760, %v22055_v40  ;;  %13022 = vmatpush1.bf16.msra.mxu0 %v13021_v24  ;;  %13406 = vmatpush3.bf16.msra.mxu1 %v22056_v6  ;;  %v988_v2 = vand.u32 4294901760, %v987_v54  ;;  %v1005_v3 = vsub.f32 %v22053_v14, %v21246_v19  ;;  %v21250_v7 = vand.u32 4294901760, %v15936_v5 }
  0xed   : > { %v1017_v21 = vsub.f32 %v22054_v1, %v21247_v36  ;;  %13024 = vmatprep.subr.bf16.mxu0 %v13023_v53  ;;  %13408 = vmatprep.subr.bf16.mxu1 %v22057_v9  ;;  %v13027_v45 = vpack.c.bf16 %v994_v33, %v982_v35  ;;  %v1000_v15 = vand.u32 4294901760, %v999_v34  ;;  %v21251_v54 = vand.u32 4294901760, %v15944_v28  ;;  %v22058_v34 = vld [vmem:[#allocation65_spill] sm:$0xff]  ;;  %v22103_v9 = vld [vmem:[#allocation36_spill] sm:$0xff] }
  0xee   : > { %v1011_v24 = vsub.f32 %v22055_v40, %v21249_v38  ;;  %v1006_v6 = vand.u32 4294901760, %v1005_v3  ;;  %v1023_v19 = vsub.f32 %v15936_v5, %v21250_v7  ;;  %v21252_v36 = vand.u32 4294901760, %v15951_v0 }
  0xef   : > { %v1018_v30 = vand.u32 4294901760, %v1017_v21  ;;  %v13029_v1 = vpack.c.bf16 %v1000_v15, %v988_v2  ;;  %v1029_v33 = vsub.f32 %v15944_v28, %v21251_v54  ;;  %v21253_v35 = vand.u32 4294901760, %v15959_v8  ;;  %v22059_v15 = vld [vmem:[#allocation72_spill] sm:$0xff] }
  0xf0   : > { %v1012_v53 = vand.u32 4294901760, %v1011_v24  ;;  %13026 = vmatpush1.bf16.msra.mxu0 %v13025_v50  ;;  %13410 = vmatpush3.bf16.msra.mxu1 %v22058_v34  ;;  %v1024_v3 = vand.u32 4294901760, %v1023_v19  ;;  %v1041_v21 = vsub.f32 %v15951_v0, %v21252_v36  ;;  %v21255_v7 = vand.u32 4294901760, %v15967_v37  ;;  %v22098_v34 = vld [vmem:[#allocation113_spill] sm:$0xff] }
  0xf1   : > { %v13031_v38 = vpack.c.bf16 %v1018_v30, %v1006_v6  ;;  %13028 = vmatprep.subr.bf16.mxu0 %v13027_v45  ;;  %13412 = vmatprep.subr.bf16.mxu1 %v22059_v15  ;;  %v1030_v2 = vand.u32 4294901760, %v1029_v33  ;;  %v1035_v24 = vsub.f32 %v15959_v8, %v21253_v35  ;;  %v13039_v50 = vpack.c.bf16 %v15479_v17, %v15477_v16  ;;  %v22060_v33 = vld [vmem:[#allocation77_spill] sm:$0xff]  ;;  %v22111_v16 = vld [vmem:[#allocation43_spill] sm:$0xff] }
  0xf2   : > { %v13033_v54 = vpack.c.bf16 %v1024_v3, %v1012_v53  ;;  %v1042_v6 = vand.u32 4294901760, %v1041_v21  ;;  %v1047_v30 = vsub.f32 %v15967_v37, %v21255_v7  ;;  %v13041_v19 = vpack.c.bf16 %v15492_v27, %v15489_v25  ;;  %v22061_v53 = vld [vmem:[#allocation84_spill] sm:$0xff]  ;;  %v22089_v27 = vld [vmem:[#allocation127_spill] sm:$0xff]  ;;  %v22107_v25 = vld [vmem:[#allocation109_spill] sm:$0xff] }
  0xf3   : > { %v13043_v45 = vpack.c.bf16 %v15506_v46, %v15502_v41  ;;  %v1036_v36 = vand.u32 4294901760, %v1035_v24  ;;  %v13045_v17 = vpack.c.bf16 %v21994_v22, %v15515_v52  ;;  %v13047_v21 = vpack.c.bf16 %v21996_v32, %v21995_v48  ;;  %v22075_v48 = vld [vmem:[#allocation31_spill] sm:$0xff]  ;;  %v22081_v46 = vld [vmem:[#allocation106_spill] sm:$0xff]  ;;  %v22087_v41 = vld [vmem:[#allocation124_spill] sm:$0xff] }
  0xf4   : > { %13030 = vmatpush1.bf16.msra.mxu0 %v13029_v1  ;;  %13414 = vmatpush3.bf16.msra.mxu1 %v22060_v33  ;;  %v1048_v35 = vand.u32 4294901760, %v1047_v30  ;;  %v13035_v3 = vpack.c.bf16 %v1042_v6, %v1030_v2  ;;  %v13049_v7 = vpack.c.bf16 %v21999_v29, %v21998_v55  ;;  %v13051_v1 = vpack.c.bf16 %v22002_v12, %v22001_v10  ;;  %v22063_v29 = vld [vmem:[#allocation96_spill] sm:$0xff]  ;;  %v22079_v2 = vld [vmem:[#allocation101_spill] sm:$0xff] }
  0xf5   : > { %13032 = vmatprep.subr.bf16.mxu0 %v13031_v38  ;;  %13416 = vmatprep.subr.bf16.mxu1 %v22061_v53  ;;  %v13053_v24 = vpack.c.bf16 %v22004_v62, %v22003_v43  ;;  %v22062_v38 = vld [vmem:[#allocation89_spill] sm:$0xff]  ;;  %v22064_v12 = vand.u32 4294901760, %v15481_v18  ;;  %v22065_v62 = vand.u32 4294901760, %v15485_v23  ;;  %v22066_v30 = vand.u32 4294901760, %v15498_v39  ;;  %v22069_v6 = vld [vmem:[#allocation24_spill] sm:$0xff]  ;;  %v22077_v39 = vld [vmem:[#allocation94_spill] sm:$0xff] }
  0xf6   : > { %v13037_v22 = vpack.c.bf16 %v1048_v35, %v1036_v36  ;;  %v22067_v36 = vld [vmem:[#allocation19_spill] sm:$0xff]  ;;  %v22070_v55 = vand.u32 4294901760, %v22069_v6  ;;  %v22071_v18 = vld [vmem:[#allocation25_spill] sm:$0xff]  ;;  %v22094_v53 = vld [vmem:[#allocation134_spill] sm:$0xff]  ;;  %v22112_v15 = vand.u32 4294901760, %v22111_v16 }
  0xf7   : > { %v13423_v43 = vpack.c.bf16 %v22065_v62, %v22064_v12  ;;  %v22068_v35 = vand.u32 4294901760, %v22067_v36  ;;  %v22072_v32 = vand.u32 4294901760, %v22071_v18  ;;  %v22073_v12 = vld [vmem:[#allocation29_spill] sm:$0xff]  ;;  %v22082_v18 = vld [vmem:[#allocation112_spill] sm:$0xff]  ;;  %v22086_v36 = vld [vmem:[#allocation122_spill] sm:$0xff] }
  0xf8   : > { %13034 = vmatpush1.bf16.msra.mxu0 %v13033_v54  ;;  %13418 = vmatpush3.bf16.msra.mxu1 %v22062_v38  ;;  %v22074_v62 = vand.u32 4294901760, %v22073_v12  ;;  %v22076_v54 = vand.u32 4294901760, %v22075_v48  ;;  %v22084_v48 = vld [vmem:[#allocation120_spill] sm:$0xff]  ;;  %v22093_v38 = vld [vmem:[#allocation133_spill] sm:$0xff] }
  0xf9   : > { %13036 = vmatprep.subr.bf16.mxu0 %v13035_v3  ;;  %13420 = vmatprep.subr.bf16.mxu1 %v22063_v29  ;;  %v13425_v10 = vpack.c.bf16 %v22068_v35, %v22066_v30  ;;  %v13427_v23 = vpack.c.bf16 %v22072_v32, %v22070_v55  ;;  %v22078_v30 = vld [vmem:[#allocation100_spill] sm:$0xff]  ;;  %v22080_v3 = vld [vmem:[#allocation105_spill] sm:$0xff]  ;;  %v22083_v55 = vld [vmem:[#allocation118_spill] sm:$0xff] }
  0xfa   : > { %v13429_v52 = vpack.c.bf16 %v22076_v54, %v22074_v62  ;;  %v22085_v54 = vld [vmem:[#allocation121_spill] sm:$0xff]  ;;  %v22092_v29 = vld [vmem:[#allocation131_spill] sm:$0xff]  ;;  %v22095_v33 = vld [vmem:[#allocation136_spill] sm:$0xff] }
  0xfb   : > { %v22099_v62 = vld [vmem:[#allocation107_spill] sm:$0xff]  ;;  %v22102_v6 = vld [vmem:[#allocation148_spill] sm:$0xff]  ;;  %v22105_v35 = vld [vmem:[#allocation37_spill] sm:$0xff] }
  0xfc   : > { %13038 = vmatpush1.bf16.msra.mxu0 %v13037_v22  ;;  %13422 = vmatpush3.bf16.msra.mxu1 %v22079_v2  ;;  %v22091_v2 = vld [vmem:[#allocation130_spill] sm:$0xff]  ;;  %v22106_v22 = vand.u32 4294901760, %v22105_v35  ;;  %v22115_v32 = vld [vmem:[#allocation49_spill] sm:$0xff] }
  0xfd   : > { %13040 = vmatprep.subr.bf16.mxu0 %v13039_v50  ;;  %13424 = vmatprep.subr.bf16.mxu1 %v13423_v43  ;;  %v22096_v50 = vld [vmem:[#allocation137_spill] sm:$0xff]  ;;  %v22097_v43 = vld [vmem:[#allocation139_spill] sm:$0xff] }
  0xfe   : > { %v22123_v16 = vld [vmem:[#allocation61_spill] sm:$0xff] }
  0xff   : > { %2390 = vmatmul.mubr.f32.vlgmr.msra.gmra.mrb[6].mxu1 %v22098_v34  ;;  %1053 = vmatmul.mubr.f32.vlgmr.msra.gmra.mrb[0].mxu0 %v22099_v62  ;;  %v22104_v34 = vand.u32 4294901760, %v22103_v9  ;;  %v22116_v9 = vand.u32 4294901760, %v22115_v32  ;;  %v22127_v32 = vld [vmem:[#allocation67_spill] sm:$0xff] }
 0x100   : > { %13042 = vmatpush1.bf16.msra.mxu0 %v13041_v19  ;;  %13426 = vmatpush3.bf16.msra.mxu1 %v13425_v10  ;;  %v22108_v19 = vld [vmem:[#allocation114_spill] sm:$0xff] }
 0x101   : > { %13044 = vmatprep.subr.bf16.mxu0 %v13043_v45  ;;  %13428 = vmatprep.subr.bf16.mxu1 %v13427_v23  ;;  %v13431_v31 = vpack.c.bf16 %v22106_v22, %v22104_v34  ;;  %v22109_v10 = vld [vmem:[#allocation42_spill] sm:$0xff]  ;;  %v22113_v45 = vld [vmem:[#allocation48_spill] sm:$0xff]  ;;  %v22119_v22 = vld [vmem:[#allocation55_spill] sm:$0xff] }
 0x102   : > { %2556 = vmatprep.mubr.f32.mxu1 %v22107_v25  ;;  %1253 = vmatprep.mubr.f32.mxu0 %v22108_v19  ;;  %v22110_v12 = vand.u32 4294901760, %v22109_v10  ;;  %v22114_v23 = vand.u32 4294901760, %v22113_v45  ;;  %v22117_v34 = vld [vmem:[#allocation54_spill] sm:$0xff]  ;;  %v22120_v19 = vand.u32 4294901760, %v22119_v22  ;;  %v22134_v22 = vpack.c.bf16 %v22008_v49, %v22007_v11 }
 0x103   : > { %v22118_v35 = vand.u32 4294901760, %v22117_v34 }
 0x104   : > { %13046 = vmatpush1.bf16.msra.mxu0 %v13045_v17  ;;  %13430 = vmatpush3.bf16.msra.mxu1 %v13429_v52  ;;  %v13433_v28 = vpack.c.bf16 %v22112_v15, %v22110_v12  ;;  %v13435_v8 = vpack.c.bf16 %v22116_v9, %v22114_v23  ;;  %v22121_v52 = vld [vmem:[#allocation59_spill] sm:$0xff]  ;;  %v22124_v15 = vand.u32 4294901760, %v22123_v16  ;;  %v22128_v12 = vand.u32 4294901760, %v22127_v32  ;;  %v22132_v9 = vld [vmem:[#allocation73_spill] sm:$0xff] }
 0x105   : > { %13048 = vmatprep.subr.bf16.mxu0 %v13047_v21  ;;  %13432 = vmatprep.subr.bf16.mxu1 %v13431_v31  ;;  %v13437_v17 = vpack.c.bf16 %v22120_v19, %v22118_v35  ;;  %v22122_v10 = vand.u32 4294901760, %v22121_v52  ;;  %v21276_v31 = vmov 0.0   ;;  %v22133_v34 = vand.u32 4294901760, %v22132_v9 }
 0x106   : > { %8682 = vst [vmem:[#allocation3 + $0x60] sm:$0xf0] %v21276_v31  ;;  %8683 = vst [vmem:[#allocation3 + $0x68] sm:$0xf0] %v21276_v31  ;;  %v22139_v16 = vpack.c.bf16 %v22010_v59, %v22009_v13 }
 0x107   : > { %v13439_v21 = vpack.c.bf16 %v22124_v15, %v22122_v10  ;;  %v22140_v15 = vld [vmem:[#allocation83_spill] sm:$0xff] }
 0x108   : > { %13050 = vmatpush1.bf16.msra.mxu0 %v13049_v7  ;;  %13434 = vmatpush3.bf16.msra.mxu1 %v13433_v28  ;;  %v22125_v28 = vld [vmem:[#allocation66_spill] sm:$0xff] }
 0x109   : > { %13052 = vmatprep.subr.bf16.mxu0 %v13051_v1  ;;  %13436 = vmatprep.subr.bf16.mxu1 %v13435_v8  ;;  %v22126_v7 = vand.u32 4294901760, %v22125_v28  ;;  %v22129_v8 = vpack.c.bf16 %v22006_v60, %v22005_v63  ;;  %v22130_v1 = vld [vmem:[#allocation71_spill] sm:$0xff]  ;;  %v22142_v28 = vld [vmem:[#allocation85_spill] sm:$0xff] }
 0x10a   : > { %v22131_v23 = vand.u32 4294901760, %v22130_v1  ;;  %v22147_v1 = vld [vmem:[#allocation91_spill] sm:$0xff] }
 0x10b   : > { %v13441_v45 = vpack.c.bf16 %v22128_v12, %v22126_v7  ;;  %v22143_v7 = vand.u32 4294901760, %v22142_v28  ;;  %v22144_v12 = vpack.c.bf16 %v22012_v4, %v22011_v47 }
 0x10c   : > { %13054 = vmatpush1.bf16.msra.mxu0 %v13053_v24  ;;  %13438 = vmatpush3.bf16.msra.mxu1 %v13437_v17  ;;  %v13443_v35 = vpack.c.bf16 %v22133_v34, %v22131_v23  ;;  %v22135_v24 = vld [vmem:[#allocation78_spill] sm:$0xff]  ;;  %v22137_v17 = vld [vmem:[#allocation79_spill] sm:$0xff]  ;;  %v22148_v23 = vand.u32 4294901760, %v22147_v1  ;;  %v22149_v34 = vpack.c.bf16 %v22014_v56, %v22013_v57 }
 0x10d   : > { %13056 = vmatprep.subr.bf16.mxu0 %v22129_v8  ;;  %13440 = vmatprep.subr.bf16.mxu1 %v13439_v21  ;;  %v22136_v19 = vand.u32 4294901760, %v22135_v24  ;;  %v22138_v52 = vand.u32 4294901760, %v22137_v17  ;;  %v22141_v21 = vand.u32 4294901760, %v22140_v15  ;;  %v22152_v24 = vld [vmem:[#allocation97_spill] sm:$0xff]  ;;  %v22157_v15 = vld [vmem:[#allocation103_spill] sm:$0xff]  ;;  %v22164_v1 = vld [vmem:[#allocation18_spill] sm:$0xff] }
 0x10f   : > { %v13445_v10 = vpack.c.bf16 %v22138_v52, %v22136_v19  ;;  %v13447_v32 = vpack.c.bf16 %v22143_v7, %v22141_v21  ;;  %v22153_v19 = vand.u32 4294901760, %v22152_v24  ;;  %v22154_v52 = vpack.c.bf16 %v22016_v58, %v22015_v44  ;;  %v22170_v24 = vld [vmem:[#allocation35_spill] sm:$0xff] }
 0x110   : > { %13058 = vmatpush1.bf16.msra.mxu0 %v22134_v22  ;;  %13442 = vmatpush3.bf16.msra.mxu1 %v13441_v45  ;;  %v22145_v45 = vld [vmem:[#allocation90_spill] sm:$0xff]  ;;  %v22158_v21 = vand.u32 4294901760, %v22157_v15  ;;  %v22159_v7 = vpack.c.bf16 %v22077_v39, %v22017_v20  ;;  %v22176_v15 = vld [vmem:[#allocation47_spill] sm:$0xff] }
 0x111   : > { %13060 = vmatprep.subr.bf16.mxu0 %v22139_v16  ;;  %13444 = vmatprep.subr.bf16.mxu1 %v13443_v35  ;;  %v22146_v8 = vand.u32 4294901760, %v22145_v45  ;;  %v22150_v35 = vld [vmem:[#allocation95_spill] sm:$0xff]  ;;  %v22162_v45 = vld [vmem:[#allocation14_spill] sm:$0xff] }
 0x112   : > { %v22151_v22 = vand.u32 4294901760, %v22150_v35  ;;  %v22168_v35 = vld [vmem:[#allocation30_spill] sm:$0xff] }
 0x113   : > { %v13449_v9 = vpack.c.bf16 %v22148_v23, %v22146_v8  ;;  %v22163_v8 = vpack.c.bf16 %v22082_v18, %v22023_v42  ;;  %v22165_v23 = vpack.c.bf16 %v22083_v55, %v22025_v61  ;;  %v22210_v55 = vld [vmem:[#allocation115_spill] sm:$0xff]  ;;  %v22213_v42 = vld [vmem:[#allocation32_spill] sm:$0xff] }
 0x114   : > { %13062 = vmatpush1.bf16.msra.mxu0 %v22144_v12  ;;  %13446 = vmatpush3.bf16.msra.mxu1 %v13445_v10  ;;  %v13451_v17 = vpack.c.bf16 %v22153_v19, %v22151_v22  ;;  %v22155_v10 = vld [vmem:[#allocation102_spill] sm:$0xff]  ;;  %v22161_v12 = vpack.c.bf16 %v22081_v46, %v22080_v3  ;;  %v22169_v22 = vpack.c.bf16 %v22087_v41, %v22086_v36  ;;  %v22171_v19 = vld [vmem:[#allocation125_spill] sm:$0xff]  ;;  %v22212_v61 = vld [vmem:[#allocation27_spill] sm:$0xff] }
 0x115   : > { %13064 = vmatprep.subr.bf16.mxu0 %v22149_v34  ;;  %13448 = vmatprep.subr.bf16.mxu1 %v13447_v32  ;;  %v22156_v16 = vand.u32 4294901760, %v22155_v10  ;;  %v22160_v32 = vpack.c.bf16 %v22078_v30, %v22019_v51  ;;  %v22167_v34 = vpack.c.bf16 %v22085_v54, %v22084_v48  ;;  %v22174_v10 = vld [vmem:[#allocation128_spill] sm:$0xff]  ;;  %v22205_v41 = vld [vmem:[#allocation21_spill] sm:$0xff] }
 0x117   : > { %v13453_v28 = vpack.c.bf16 %v22158_v21, %v22156_v16  ;;  %v22175_v16 = vpack.c.bf16 %v22091_v2, %v22174_v10  ;;  %v22177_v21 = vpack.c.bf16 %v22093_v38, %v22092_v29  ;;  %v22196_v38 = vld [vmem:[#allocation96_spill] sm:$0xff]  ;;  %v22200_v29 = vld [vmem:[#allocation11_spill] sm:$0xff] }
 0x118   : > { %13066 = vmatpush1.bf16.msra.mxu0 %v22154_v52  ;;  %13450 = vmatpush3.bf16.msra.mxu1 %v13449_v9  ;;  %v22166_v9 = vld [vmem:[#allocation23_spill] sm:$0xff]  ;;  %v22173_v52 = vld [vmem:[#allocation41_spill] sm:$0xff] }
 0x119   : > { %13068 = vmatprep.subr.bf16.mxu0 %v22159_v7  ;;  %13452 = vmatprep.subr.bf16.mxu1 %v13451_v17  ;;  %v22172_v17 = vpack.c.bf16 %v22089_v27, %v22171_v19  ;;  %v22179_v7 = vpack.c.bf16 %v22095_v33, %v22094_v53  ;;  %v22194_v33 = vld [vmem:[#allocation152_spill] sm:$0xff]  ;;  %v22202_v19 = vld [vmem:[#allocation15_spill] sm:$0xff] }
 0x11a   : > { %v22195_v53 = vpack.c.bf16 %v15951_v0, %v22194_v33 }
 0x11c   : > { %13070 = vmatpush1.bf16.msra.mxu0 %v22160_v32  ;;  %13454 = vmatpush3.bf16.msra.mxu1 %v13453_v28  ;;  %v22178_v28 = vld [vmem:[#allocation53_spill] sm:$0xff]  ;;  %v22180_v32 = vld [vmem:[#allocation60_spill] sm:$0xff] }
 0x11d   : > { %13072 = vmatprep.subr.bf16.mxu0 %v22161_v12  ;;  %13456 = vmatprep.subr.bf16.mxu1 %v22162_v45  ;;  %v22181_v12 = vpack.c.bf16 %v22097_v43, %v22096_v50  ;;  %v22182_v45 = vld [vmem:[#allocation65_spill] sm:$0xff] }
 0x11e   : > { %v2684_v43 = vld [vmem:[%s20940_s2 + $0x80] sm:$0xff] }
 0x11f   : > { %2558 = vmatmul.mubr.f32.vlgmr.msra.gmra.mrb[8].mxu1 %v22099_v62 }
 0x120   : > { %13074 = vmatpush1.bf16.msra.mxu0 %v22163_v8  ;;  %13458 = vmatpush3.bf16.msra.mxu1 %v22164_v1  ;;  %v22183_v8 = vld [vmem:[#allocation140_spill] sm:$0xff] }
 0x121   : > { %13076 = vmatprep.subr.bf16.mxu0 %v22165_v23  ;;  %13460 = vmatprep.subr.bf16.mxu1 %v22166_v9  ;;  %v22184_v1 = vpack.c.bf16 %v22048_v26, %v22183_v8  ;;  %v22185_v23 = vld [vmem:[#allocation72_spill] sm:$0xff]  ;;  %v2669_v9 = vld [vmem:[%s20940_s2 + $0x8] sm:$0xff]  ;;  %v22192_v8 = vpack.c.bf16 %v15936_v5, %v22055_v40 }
 0x122   : > { %2660 = vmatprep.mubr.f32.mxu1 %v22107_v25  ;;  %v2681_v26 = vld [vmem:[%s20940_s2 + $0x68] sm:$0xff] }
 0x123   : > { %v2712_v40 = vand.u32 4294901760, %v2681_v26 }
 0x124   : > { %13078 = vmatpush1.bf16.msra.mxu0 %v22167_v34  ;;  %13462 = vmatpush3.bf16.msra.mxu1 %v22168_v35  ;;  %v2672_v34 = vld [vmem:[%s20940_s2 + $0x20] sm:$0xff] }
 0x125   : > { %13080 = vmatprep.subr.bf16.mxu0 %v22169_v22  ;;  %13464 = vmatprep.subr.bf16.mxu1 %v22170_v24  ;;  %v2668_v35 = vld [vmem:[%s20940_s2] sm:$0xff]  ;;  %v2671_v22 = vld [vmem:[%s20940_s2 + $0x18] sm:$0xff] }
 0x126   : > { %v2675_v24 = vld [vmem:[%s20940_s2 + $0x38] sm:$0xff] }
 0x127   : > { %v2704_v31 = vand.u32 4294901760, %v2675_v24 }
 0x128   : > { %13082 = vmatpush1.bf16.msra.mxu0 %v22172_v17  ;;  %13466 = vmatpush3.bf16.msra.mxu1 %v22173_v52  ;;  %v22186_v17 = vld [vmem:[#allocation145_spill] sm:$0xff]  ;;  %v22187_v52 = vld [vmem:[#allocation143_spill] sm:$0xff] }
 0x129   : > { %13084 = vmatprep.subr.bf16.mxu0 %v22175_v16  ;;  %13468 = vmatprep.subr.bf16.mxu1 %v22176_v15  ;;  %v22188_v16 = vpack.c.bf16 %v22186_v17, %v22187_v52  ;;  %v22189_v15 = vld [vmem:[#allocation77_spill] sm:$0xff] }
 0x12c   : > { %13086 = vmatpush1.bf16.msra.mxu0 %v22177_v21  ;;  %13470 = vmatpush3.bf16.msra.mxu1 %v22178_v28  ;;  %v2696_v21 = vand.u32 4294901760, %v2669_v9  ;;  %v2678_v28 = vld [vmem:[%s20940_s2 + $0x50] sm:$0xff] }
 0x12d   : > { %13088 = vmatprep.subr.bf16.mxu0 %v22179_v7  ;;  %13472 = vmatprep.subr.bf16.mxu1 %v22180_v32  ;;  %v2674_v7 = vld [vmem:[%s20940_s2 + $0x30] sm:$0xff]  ;;  %v2677_v32 = vld [vmem:[%s20940_s2 + $0x48] sm:$0xff]  ;;  %v2708_v17 = vand.u32 4294901760, %v2678_v28 }
 0x12e   : > { %v2706_v52 = vand.u32 4294901760, %v2674_v7 }
 0x130   : > { %13090 = vmatpush1.bf16.msra.mxu0 %v22181_v12  ;;  %13474 = vmatpush3.bf16.msra.mxu1 %v22182_v45  ;;  %v22190_v12 = vpack.c.bf16 %v22102_v6, %v22053_v14  ;;  %v22191_v45 = vld [vmem:[#allocation84_spill] sm:$0xff]  ;;  %v22193_v6 = vld [vmem:[#allocation89_spill] sm:$0xff]  ;;  %v2710_v14 = vand.u32 4294901760, %v2677_v32  ;;  %v16574_v33 = vsub.f32 %v2674_v7, %v2706_v52 }
 0x131   : > { %13092 = vmatprep.subr.bf16.mxu0 %v22184_v1  ;;  %13476 = vmatprep.subr.bf16.mxu1 %v22185_v23  ;;  %v2700_v1 = vand.u32 4294901760, %v2672_v34  ;;  %v2698_v23 = vand.u32 4294901760, %v2668_v35 }
 0x132   : > { %v16572_v0 = vpack.c.bf16 %v2710_v14, %v2706_v52  ;;  %v2686_v52 = vld [vmem:[%s20940_s2 + $0x90] sm:$0xff] }
 0x133   : > { %v16543_v5 = vpack.c.bf16 %v2700_v1, %v2696_v21 }
 0x134   : > { %13094 = vmatpush1.bf16.msra.mxu0 %v22188_v16  ;;  %13478 = vmatpush3.bf16.msra.mxu1 %v22189_v15  ;;  %v2702_v16 = vand.u32 4294901760, %v2671_v22  ;;  %v2667_v15 = vld [vmem:[%s410_s16] sm:$0xf] }
 0x135   : > { %13096 = vmatprep.subr.bf16.mxu0 %v22190_v12  ;;  %13480 = vmatprep.subr.bf16.mxu1 %v22191_v45  ;;  %v16532_v12 = vsub.f32 %v2669_v9, %v2696_v21  ;;  %v16534_v45 = vsub.f32 %v2672_v34, %v2700_v1  ;;  %v2694_v50 = vsel %vm2692_vm0, %v2667_v15, 0  ;;  %v16551_v34 = vsub.f32 %v2675_v24, %v2704_v31  ;;  %v2680_v15 = vld [vmem:[%s20940_s2 + $0x60] sm:$0xff]  ;;  %v22197_v24 = vld [vmem:[#allocation155_spill] sm:$0xff] }
 0x136   : > { %v16549_v9 = vsub.f32 %v2671_v22, %v2702_v16  ;;  %v16561_v21 = vsub.f32 %v2678_v28, %v2708_v17  ;;  %v2716_v1 = vand.u32 4294901760, %v2684_v43  ;;  %v16566_v22 = vand.u32 4294901760, %v2694_v50 }
 0x138   : > { %13098 = vmatpush1.bf16.msra.mxu0 %v22192_v8  ;;  %13482 = vmatpush3.bf16.msra.mxu1 %v22193_v6  ;;  %v16545_v8 = vpack.c.bf16 %v2702_v16, %v2698_v23  ;;  %v16547_v6 = vsub.f32 %v2668_v35, %v2698_v23  ;;  %v2687_v35 = vld [vmem:[%s20940_s2 + $0x98] sm:$0xff]  ;;  %v22198_v23 = vpack.c.bf16 %v15967_v37, %v22197_v24  ;;  %v22199_v16 = vld [vmem:[#allocation101_spill] sm:$0xff]  ;;  %v22208_v54 = vand.u32 4294901760, %v16549_v9 }
 0x139   : > { %13100 = vmatprep.subr.bf16.mxu0 %v22195_v53  ;;  %13484 = vmatprep.subr.bf16.mxu1 %v22196_v38  ;;  %v2683_v53 = vld [vmem:[%s20940_s2 + $0x78] sm:$0xff]  ;;  %v16559_v38 = vpack.c.bf16 %v2708_v17, %v2704_v31  ;;  %v2690_v31 = vld [vmem:[%s20940_s2 + $0xb0] sm:$0xff]  ;;  %v16583_v37 = vsub.f32 %v2677_v32, %v2710_v14  ;;  %v2720_v7 = vand.u32 4294901760, %v2687_v35  ;;  %v2689_v17 = vld [vmem:[%s20940_s2 + $0xa8] sm:$0xff]  ;;  %v16598_v32 = vpack.c.bf16 %v2716_v1, %v2712_v40 }
 0x13a   : > { %v2718_v24 = vand.u32 4294901760, %v2683_v53  ;;  %v2724_v2 = vand.u32 4294901760, %v2690_v31  ;;  %v16601_v10 = vsub.f32 %v2694_v50, %v16566_v22  ;;  %v16606_v28 = vsub.f32 %v2684_v43, %v2716_v1 }
 0x13b   : > { %v22203_v14 = vand.u32 4294901760, %v16532_v12  ;;  %v2726_v43 = vand.u32 4294901760, %v2689_v17  ;;  %v22206_v1 = vmov 0.0   ;;  %v22207_v36 = vand.u32 4294901760, %v16547_v6 }
 0x13c   : > { %13102 = vmatpush1.bf16.msra.mxu0 %v22198_v23  ;;  %13486 = vmatpush3.bf16.msra.mxu1 %v22199_v16  ;;  %v16585_v23 = vsub.f32 %v2681_v26, %v2712_v40  ;;  %v2714_v16 = vand.u32 4294901760, %v2680_v15  ;;  %v22201_v26 = vld [vmem:[#allocation108_spill] sm:$0xff]  ;;  %v22204_v40 = vand.u32 4294901760, %v16534_v45  ;;  %v16649_v46 = vsub.f32 %v2690_v31, %v2724_v2  ;;  %8684 = vst.msk [vmem:[#allocation3 + $0x70] sm:$0xf0] %vm3895_vm3, %v22206_v1 }
 0x13d   : > { %13104 = vmatprep.subr.bf16.mxu0 %v22200_v29  ;;  %13488 = vmatprep.subr.bf16.mxu1 %v16543_v5  ;;  %v2722_v29 = vand.u32 4294901760, %v2686_v52  ;;  %v22215_v31 = vand.u32 4294901760, %v16583_v37 }
 0x13e   : > { %v16616_v50 = vpack.c.bf16 %v2718_v24, %v2714_v16  ;;  %v16618_v27 = vsub.f32 %v2680_v15, %v2714_v16  ;;  %v16634_v15 = vand.u32 4294901760, %v16601_v10  ;;  %v21306_v16 = vand.u32 4294901760, %v16606_v28 }
 0x13f   : > { %2662 = vmatmul.mubr.f32.vlgmr.msra.gmra.mrb[10].mxu1 %v22099_v62  ;;  %1256 = vmatmul.mubr.f32.vlgmr.msra.gmra.mrb[0].mxu0 %v22201_v26  ;;  %v2791_v62 = vsub.f32 %v16532_v12, %v22203_v14  ;;  %v2803_v26 = vsub.f32 %v16534_v45, %v22204_v40  ;;  %v2797_v14 = vsub.f32 %v16547_v6, %v22207_v36  ;;  %v22216_v36 = vld [vmem:[#allocation38_spill] sm:$0xff] }
 0x140   : > { %13106 = vmatpush1.bf16.msra.mxu0 %v22202_v19  ;;  %13490 = vmatpush1.bf16.msra.mxu1 %v16545_v8  ;;  %v16620_v19 = vsub.f32 %v2683_v53, %v2718_v24  ;;  %v2809_v40 = vsub.f32 %v16549_v9, %v22208_v54  ;;  %v22211_v53 = vand.u32 4294901760, %v16561_v21  ;;  %v16643_v54 = vpack.c.bf16 %v2724_v2, %v2720_v7 }
 0x141   : > { %13108 = vmatprep.subr.bf16.mxu0 %v22205_v41  ;;  %13492 = vmatprep.subr.bf16.mxu1 %v16559_v38  ;;  %v22209_v41 = vand.u32 4294901760, %v16551_v34  ;;  %v2804_v18 = vand.u32 4294901760, %v2803_v26  ;;  %v2798_v3 = vand.u32 4294901760, %v2797_v14  ;;  %v22214_v26 = vand.u32 4294901760, %v16574_v33 }
 0x142   : > { %2776 = vmatprep.mubr.f32.mxu1 %v22206_v1  ;;  %1393 = vmatprep.mubr.f32.mxu0 %v22210_v55  ;;  %v2827_v24 = vsub.f32 %v16561_v21, %v22211_v53  ;;  %v2792_v55 = vand.u32 4294901760, %v2791_v62  ;;  %v16651_v53 = vpack.c.bf16 %v2726_v43, %v2722_v29  ;;  %v2810_v30 = vand.u32 4294901760, %v2809_v40  ;;  %v22217_v40 = vld [vmem:[#allocation44_spill] sm:$0xff] }
 0x143   : > { %v2815_v48 = vsub.f32 %v16551_v34, %v22209_v41  ;;  %v16645_v41 = vsub.f32 %v2687_v35, %v2720_v7  ;;  %v2780_v62 = vsub.f32 %v16601_v10, %v16634_v15  ;;  %v2821_v2 = vsub.f32 %v16574_v33, %v22214_v26 }
 0x144   : > { %13110 = vmatpush1.bf16.msra.mxu0 %v22212_v61  ;;  %13494 = vmatpush1.bf16.msra.mxu1 %v16572_v0  ;;  %v16655_v61 = vsub.f32 %v2686_v52, %v2722_v29  ;;  %v2828_v7 = vand.u32 4294901760, %v2827_v24  ;;  %v16667_v29 = vsub.f32 %v2689_v17, %v2726_v43  ;;  %v13503_v52 = vpack.c.bf16 %v2804_v18, %v2792_v55 }
 0x145   : > { %13112 = vmatprep.subr.bf16.mxu0 %v22213_v42  ;;  %13496 = vmatprep.subr.bf16.mxu1 %v16598_v32  ;;  %v2816_v35 = vand.u32 4294901760, %v2815_v48  ;;  %v2833_v42 = vsub.f32 %v16583_v37, %v22215_v31  ;;  %v22218_v24 = vand.u32 4294901760, %v16585_v23  ;;  %v2851_v31 = vsub.f32 %v16606_v28, %v21306_v16 }
 0x146   : > { %v13505_v43 = vpack.c.bf16 %v2810_v30, %v2798_v3  ;;  %v16681_v55 = vand.u32 4294901760, %v2780_v62  ;;  %v2822_v48 = vand.u32 4294901760, %v2821_v2  ;;  %v22222_v16 = vand.u32 4294901760, %v16620_v19  ;;  %v22223_v30 = vld [vmem:[#allocation56_spill] sm:$0xff] }
 0x147   : > { %v2839_v26 = vsub.f32 %v16585_v23, %v22218_v24  ;;  %v13507_v14 = vpack.c.bf16 %v2828_v7, %v2816_v35  ;;  %v22221_v24 = vand.u32 4294901760, %v16618_v27  ;;  %v2852_v35 = vand.u32 4294901760, %v2851_v31 }
 0x148   : > { %13114 = vmatpush1.bf16.msra.mxu0 %v22216_v36  ;;  %13498 = vmatpush1.bf16.msra.mxu1 %v16616_v50  ;;  %22219 = vst [vmem:[#allocation57_spill] sm:$0xff] %v16681_v55  ;;  %v22220_v36 = vld [vmem:[#allocation51_spill] sm:$0xff]  ;;  %v2857_v17 = vsub.f32 %v16620_v19, %v22222_v16  ;;  %v22224_v62 = vand.u32 4294901760, %v16645_v41  ;;  %v22225_v2 = vand.u32 4294901760, %v16649_v46  ;;  %v22228_v31 = vand.u32 4294901760, %v16667_v29 }
 0x149   : > { %13116 = vmatprep.subr.bf16.mxu0 %v22217_v40  ;;  %13500 = vmatprep.subr.bf16.mxu1 %v16643_v54  ;;  %v2834_v40 = vand.u32 4294901760, %v2833_v42  ;;  %v2845_v51 = vsub.f32 %v16618_v27, %v22221_v24  ;;  %v2840_v42 = vand.u32 4294901760, %v2839_v26 }
 0x14a   : > { %v2863_v7 = vsub.f32 %v16645_v41, %v22224_v62  ;;  %v2875_v24 = vsub.f32 %v16649_v46, %v22225_v2  ;;  %v2858_v18 = vand.u32 4294901760, %v2857_v17  ;;  %v2881_v62 = vsub.f32 %v16667_v29, %v22228_v31 }
 0x14b   : > { %v13509_v16 = vpack.c.bf16 %v2834_v40, %v2822_v48  ;;  %v2846_v3 = vand.u32 4294901760, %v2845_v51  ;;  %v13511_v2 = vpack.c.bf16 %v2852_v35, %v2840_v42  ;;  %v22230_v48 = vld [vmem:[#allocation74_spill] sm:$0xff]  ;;  %v13519_v42 = vpack.c.bf16 %v16534_v45, %v16532_v12 }
 0x14c   : > { %13118 = vmatpush1.bf16.msra.mxu0 %v22220_v36  ;;  %13502 = vmatpush1.bf16.msra.mxu1 %v16651_v53  ;;  %v22226_v36 = vld [vmem:[#allocation62_spill] sm:$0xff]  ;;  %v2864_v39 = vand.u32 4294901760, %v2863_v7  ;;  %v2882_v17 = vand.u32 4294901760, %v2881_v62  ;;  %v13525_v7 = vpack.c.bf16 %v16583_v37, %v16574_v33  ;;  %v13529_v62 = vpack.c.bf16 %v16620_v19, %v16618_v27 }
 0x14d   : > { %13120 = vmatprep.subr.bf16.mxu0 %v22223_v30  ;;  %13504 = vmatprep.subr.bf16.mxu1 %v13503_v52  ;;  %v22227_v52 = vand.u32 4294901760, %v16655_v61  ;;  %v22229_v30 = vld [vmem:[#allocation68_spill] sm:$0xff]  ;;  %v13513_v51 = vpack.c.bf16 %v2858_v18, %v2846_v3  ;;  %v22234_v35 = vld [vmem:[#allocation98_spill] sm:$0xff]  ;;  %v13521_v18 = vpack.c.bf16 %v16549_v9, %v16547_v6 }
 0x14e   : > { %v22235_v3 = vld [vmem:[#allocation104_spill] sm:$0xff] }
 0x14f   : > { %2782 = vmatmul.mubr.f32.vlgmr.msra.gmra.mrb[12].mxu1 %v16681_v55  ;;  %v2869_v26 = vsub.f32 %v16655_v61, %v22227_v52  ;;  %v2876_v55 = vand.u32 4294901760, %v2875_v24  ;;  %v22237_v24 = vld [vmem:[#allocation116_spill] sm:$0xff] }
 0x150   : > { %13122 = vmatpush1.bf16.msra.mxu0 %v22226_v36  ;;  %13506 = vmatpush1.bf16.msra.mxu1 %v13505_v43  ;;  %v22231_v43 = vld [vmem:[#allocation80_spill] sm:$0xff]  ;;  %v22232_v36 = vld [vmem:[#allocation86_spill] sm:$0xff] }
 0x151   : > { %13124 = vmatprep.subr.bf16.mxu0 %v22229_v30  ;;  %13508 = vmatprep.subr.bf16.mxu1 %v13507_v14  ;;  %v2870_v40 = vand.u32 4294901760, %v2869_v26  ;;  %v13515_v52 = vpack.c.bf16 %v2876_v55, %v2864_v39  ;;  %v22233_v14 = vld [vmem:[#allocation92_spill] sm:$0xff]  ;;  %v13523_v39 = vpack.c.bf16 %v16561_v21, %v16551_v34  ;;  %v22236_v55 = vld [vmem:[#allocation111_spill] sm:$0xff] }
 0x152   : > { %2932 = vmatprep.mubr.f32.mxu1 %v22206_v1  ;;  %v22238_v26 = vld [vmem:[#allocation119_spill] sm:$0xff] }
 0x153   : > { %v13517_v31 = vpack.c.bf16 %v2882_v17, %v2870_v40 }
 0x154   : > { %13126 = vmatpush1.bf16.msra.mxu0 %v22230_v48  ;;  %13510 = vmatpush1.bf16.msra.mxu1 %v13509_v16  ;;  %v13527_v16 = vpack.c.bf16 %v16606_v28, %v16585_v23 }
 0x155   : > { %13128 = vmatprep.subr.bf16.mxu0 %v22231_v43  ;;  %13512 = vmatprep.subr.bf16.mxu1 %v13511_v2  ;;  %v22239_v2 = vld [vmem:[#allocation123_spill] sm:$0xff] }
 0x158   : > { %13130 = vmatpush1.bf16.msra.mxu0 %v22232_v36  ;;  %13514 = vmatpush1.bf16.msra.mxu1 %v13513_v51  ;;  %v13531_v51 = vpack.c.bf16 %v16649_v46, %v16645_v41 }
 0x159   : > { %13132 = vmatprep.subr.bf16.mxu0 %v22233_v14  ;;  %13516 = vmatprep.subr.bf16.mxu1 %v13515_v52  ;;  %v22240_v52 = vld [vmem:[#allocation126_spill] sm:$0xff] }
 0x15c   : > { %13134 = vmatpush1.bf16.msra.mxu0 %v22234_v35  ;;  %13518 = vmatpush1.bf16.msra.mxu1 %v13517_v31  ;;  %v13533_v31 = vpack.c.bf16 %v16667_v29, %v16655_v61  ;;  %v22269_v35 = vld [vmem:[#allocation113_spill] sm:$0xff] }
 0x15d   : > { %13136 = vmatprep.subr.bf16.mxu0 %v22235_v3  ;;  %13520 = vmatprep.subr.bf16.mxu1 %v13519_v42  ;;  %v22261_v3 = vand.u32 4294901760, %v16547_v6  ;;  %v22270_v6 = vld [vmem:[#allocation26_spill] sm:$0xff] }
 0x15f   : > { %2934 = vmatmul.mubr.f32.vlgmr.msra.gmra.mrb[12].mxu1 %v16566_v22 }
 0x160   : > { %13138 = vmatpush1.bf16.msra.mxu0 %v22236_v55  ;;  %13522 = vmatpush1.bf16.msra.mxu1 %v13521_v18  ;;  %v22241_v18 = vld [vmem:[#allocation129_spill] sm:$0xff] }
 0x161   : > { %13140 = vmatprep.subr.bf16.mxu0 %v22237_v24  ;;  %13524 = vmatprep.subr.bf16.mxu1 %v13523_v39  ;;  %v22242_v39 = vld [vmem:[#allocation132_spill] sm:$0xff]  ;;  %v22259_v24 = vld [vmem:[#allocation17_spill] sm:$0xff] }
 0x162   : > { %3036 = vmatprep.mubr.f32.mxu1 %v22206_v1 }
 0x164   : > { %13142 = vmatpush1.bf16.msra.mxu0 %v22238_v26  ;;  %13526 = vmatpush1.bf16.msra.mxu1 %v13525_v7  ;;  %v22243_v7 = vld [vmem:[#allocation135_spill] sm:$0xff] }
 0x165   : > { %13144 = vmatprep.subr.bf16.mxu0 %v22239_v2  ;;  %13528 = vmatprep.subr.bf16.mxu1 %v13527_v16  ;;  %v22244_v16 = vld [vmem:[#allocation138_spill] sm:$0xff]  ;;  %v22256_v2 = vld [vmem:[#allocation156_spill] sm:$0xff] }
 0x166   : > { %v11959_v40 = vpop.f32.mrb[0].mxu1 }
 0x167   : > { %v11960_v17 = vpop.f32.mrb[1].mxu1 }
 0x168   : > { %13146 = vmatpush1.bf16.msra.mxu0 %v22240_v52  ;;  %13530 = vmatpush1.bf16.msra.mxu1 %v13529_v62  ;;  %v16739_v42 = vadd.f32 %v11960_v17, %v11959_v40  ;;  %v22245_v62 = vld [vmem:[#allocation141_spill] sm:$0xff]  ;;  %v22247_v40 = vld [vmem:[#allocation147_spill] sm:$0xff]  ;;  %v22248_v17 = vld [vmem:[#allocation150_spill] sm:$0xff]  ;;  %v22255_v52 = vand.u32 4294901760, %v16534_v45 }
 0x169   : > { %13148 = vmatprep.subr.bf16.mxu0 %v22241_v18  ;;  %13532 = vmatprep.subr.bf16.mxu1 %v13531_v51  ;;  %v22246_v51 = vld [vmem:[#allocation144_spill] sm:$0xff]  ;;  %v22265_v45 = vld [vmem:[#allocation22_spill] sm:$0xff] }
 0x16c   : > { %13150 = vmatpush1.bf16.msra.mxu0 %v22242_v39  ;;  %13534 = vmatpush1.bf16.msra.mxu1 %v13533_v31  ;;  %v22249_v31 = vld [vmem:[#allocation153_spill] sm:$0xff] }
 0x16d   : > { %13152 = vmatprep.subr.bf16.mxu0 %v22243_v7  ;;  %13536 = vmatprep.subr.bf16.mxu1 %v16543_v5  ;;  %v22252_v7 = vld [vmem:[#allocation13_spill] sm:$0xff] }
 0x16e   : > { %v22253_v39 = vand.u32 4294901760, %v22252_v7 }
 0x16f   : > { %3039 = vmatmul.mubr.f32.vlgmr.msra.gmra.mrb[12].mxu1 %v16601_v10 }
 0x170   : > { %13154 = vmatpush1.bf16.msra.mxu0 %v22244_v16  ;;  %13538 = vmatpush1.bf16.msra.mxu1 %v16545_v8 }
 0x171   : > { %13156 = vmatprep.subr.bf16.mxu0 %v22245_v62  ;;  %13540 = vmatprep.subr.bf16.mxu1 %v16559_v38  ;;  %v22250_v62 = vld [vmem:[#allocation12_spill] sm:$0xff] }
 0x172   : > { %3125 = vmatprep.mubr.f32.mxu1 %v22206_v1  ;;  %v22251_v16 = vand.u32 4294901760, %v22250_v62  ;;  %v22262_v62 = vand.u32 4294901760, %v16549_v9  ;;  %v22271_v9 = vand.u32 4294901760, %v22270_v6  ;;  %v22290_v6 = vld [vmem:[#allocation46_spill] sm:$0xff] }
 0x174   : > { %13158 = vmatpush1.bf16.msra.mxu0 %v22246_v51  ;;  %13542 = vmatpush1.bf16.msra.mxu1 %v16572_v0  ;;  %v13167_v18 = vpack.c.bf16 %v22253_v39, %v22251_v16  ;;  %v22254_v51 = vand.u32 4294901760, %v16532_v12  ;;  %v13553_v7 = vpack.c.bf16 %v22262_v62, %v22261_v3  ;;  %v22263_v12 = vld [vmem:[#allocation20_spill] sm:$0xff] }
 0x175   : > { %13160 = vmatprep.subr.bf16.mxu0 %v22247_v40  ;;  %13544 = vmatprep.subr.bf16.mxu1 %v16598_v32  ;;  %v22264_v39 = vand.u32 4294901760, %v22263_v12  ;;  %v22272_v3 = vld [vmem:[#allocation28_spill] sm:$0xff] }
 0x176   : > { %v13551_v40 = vpack.c.bf16 %v22255_v52, %v22254_v51  ;;  %v22266_v52 = vand.u32 4294901760, %v22265_v45  ;;  %v22267_v51 = vand.u32 4294901760, %v16551_v34  ;;  %v22276_v34 = vld [vmem:[#allocation33_spill] sm:$0xff] }
 0x178   : > { %13162 = vmatpush1.bf16.msra.mxu0 %v22248_v17  ;;  %13546 = vmatpush1.bf16.msra.mxu1 %v16616_v50  ;;  %v22257_v17 = vld [vmem:[#allocation16_spill] sm:$0xff]  ;;  %v13171_v16 = vpack.c.bf16 %v22266_v52, %v22264_v39 }
 0x179   : > { %13164 = vmatprep.subr.bf16.mxu0 %v22249_v31  ;;  %13548 = vmatprep.subr.bf16.mxu1 %v16643_v54  ;;  %v22258_v26 = vand.u32 4294901760, %v22257_v17  ;;  %v22260_v31 = vand.u32 4294901760, %v22259_v24  ;;  %v22273_v24 = vand.u32 4294901760, %v22272_v3  ;;  %v22284_v39 = vld [vmem:[#allocation40_spill] sm:$0xff] }
 0x17a   : > { %v22285_v45 = vand.u32 4294901760, %v22284_v39 }
 0x17b   : > { %v13169_v55 = vpack.c.bf16 %v22260_v31, %v22258_v26  ;;  %v13173_v26 = vpack.c.bf16 %v22273_v24, %v22271_v9  ;;  %v22291_v9 = vand.u32 4294901760, %v22290_v6  ;;  %v22292_v24 = vand.u32 4294901760, %v16645_v41 }
 0x17c   : > { %13166 = vmatpush1.bf16.msra.mxu0 %v22256_v2  ;;  %13550 = vmatpush1.bf16.msra.mxu1 %v16651_v53  ;;  %v22268_v2 = vand.u32 4294901760, %v16561_v21  ;;  %v22277_v21 = vand.u32 4294901760, %v22276_v34  ;;  %v22301_v41 = vand.u32 4294901760, %v22006_v60  ;;  %v22307_v60 = vand.u32 4294901760, %v22012_v4 }
 0x17d   : > { %13168 = vmatprep.subr.bf16.mxu0 %v13167_v18  ;;  %13552 = vmatprep.subr.bf16.mxu1 %v13551_v40  ;;  %v22274_v18 = vand.u32 4294901760, %v16574_v33  ;;  %v22275_v40 = vand.u32 4294901760, %v16583_v37  ;;  %v22282_v37 = vld [vmem:[#allocation39_spill] sm:$0xff]  ;;  %v22311_v4 = vand.u32 4294901760, %v22016_v58 }
 0x17e   : > { %v13555_v17 = vpack.c.bf16 %v22268_v2, %v22267_v51  ;;  %v22278_v2 = vld [vmem:[#allocation34_spill] sm:$0xff]  ;;  %v22283_v33 = vand.u32 4294901760, %v22282_v37  ;;  %v22287_v51 = vand.u32 4294901760, %v16620_v19  ;;  %v22315_v58 = vld [vmem:[#allocation99_spill] sm:$0xff] }
 0x17f   : > { %1397 = vmatmul.mubr.f32.vlgmr.msra.gmra.mrb[0].mxu0 %v22269_v35  ;;  %3129 = vmatmul.mubr.f32.vlgmr.msra.gmra.mrb[12].mxu1 %v16634_v15  ;;  %v13557_v31 = vpack.c.bf16 %v22275_v40, %v22274_v18  ;;  %v22279_v35 = vand.u32 4294901760, %v22278_v2  ;;  %v22294_v40 = vld [vmem:[#allocation50_spill] sm:$0xff]  ;;  %v22299_v2 = vand.u32 4294901760, %v16667_v29  ;;  %v22305_v29 = vand.u32 4294901760, %v22010_v59 }
 0x180   : > { %13170 = vmatpush1.bf16.msra.mxu0 %v13169_v55  ;;  %13554 = vmatpush1.bf16.msra.mxu1 %v13553_v7  ;;  %v22280_v55 = vand.u32 4294901760, %v16585_v23  ;;  %v22281_v7 = vand.u32 4294901760, %v16606_v28  ;;  %v13177_v52 = vpack.c.bf16 %v22285_v45, %v22283_v33  ;;  %v22288_v28 = vld [vmem:[#allocation45_spill] sm:$0xff] }
 0x181   : > { %13172 = vmatprep.subr.bf16.mxu0 %v13171_v16  ;;  %13556 = vmatprep.subr.bf16.mxu1 %v13555_v17  ;;  %v13175_v62 = vpack.c.bf16 %v22279_v35, %v22277_v21  ;;  %v22286_v16 = vand.u32 4294901760, %v16618_v27  ;;  %v22289_v23 = vand.u32 4294901760, %v22288_v28  ;;  %v22296_v27 = vld [vmem:[#allocation52_spill] sm:$0xff]  ;;  %v22298_v21 = vand.u32 4294901760, %v16655_v61 }
 0x182   : > { %v13559_v12 = vpack.c.bf16 %v22281_v7, %v22280_v55  ;;  %3247 = vmatprep.mubr.f32.mxu1 %v22206_v1  ;;  %1660 = vmatprep.mubr.f32.mxu0 %v22107_v25  ;;  %v22297_v34 = vand.u32 4294901760, %v22296_v27  ;;  %v22302_v55 = vand.u32 4294901760, %v22007_v11  ;;  %v22303_v7 = vand.u32 4294901760, %v22008_v49 }
 0x183   : > { %v13561_v17 = vpack.c.bf16 %v22287_v51, %v22286_v16  ;;  %v13179_v3 = vpack.c.bf16 %v22291_v9, %v22289_v23  ;;  %v13565_v35 = vpack.c.bf16 %v22299_v2, %v22298_v21  ;;  %v22304_v61 = vand.u32 4294901760, %v22009_v13  ;;  %v22319_v23 = vld [vmem:[#allocation105_spill] sm:$0xff]  ;;  %v22321_v9 = vld [vmem:[#allocation106_spill] sm:$0xff] }
 0x184   : > { %13174 = vmatpush1.bf16.msra.mxu0 %v13173_v26  ;;  %13558 = vmatpush1.bf16.msra.mxu1 %v13557_v31  ;;  %v22293_v26 = vand.u32 4294901760, %v16649_v46  ;;  %v22295_v31 = vand.u32 4294901760, %v22294_v40  ;;  %v22309_v49 = vand.u32 4294901760, %v22014_v56  ;;  %v22313_v56 = vld [vmem:[#allocation94_spill] sm:$0xff]  ;;  %v22320_v6 = vand.u32 4294901760, %v22319_v23 }
 0x185   : > { %13176 = vmatprep.subr.bf16.mxu0 %v13175_v62  ;;  %13560 = vmatprep.subr.bf16.mxu1 %v13559_v12  ;;  %v22300_v62 = vand.u32 4294901760, %v22005_v63  ;;  %v13185_v12 = vpack.c.bf16 %v22303_v7, %v22302_v55  ;;  %v13187_v37 = vpack.c.bf16 %v22305_v29, %v22304_v61  ;;  %v22306_v63 = vand.u32 4294901760, %v22011_v47 }
 0x186   : > { %v13563_v18 = vpack.c.bf16 %v22293_v26, %v22292_v24  ;;  %v13181_v19 = vpack.c.bf16 %v22297_v34, %v22295_v31  ;;  %v22310_v47 = vand.u32 4294901760, %v22015_v44  ;;  %v22325_v31 = vld [vmem:[#allocation112_spill] sm:$0xff] }
 0x187   : > { %v13183_v46 = vpack.c.bf16 %v22301_v41, %v22300_v62  ;;  %v13189_v11 = vpack.c.bf16 %v22307_v60, %v22306_v63  ;;  %v22326_v27 = vand.u32 4294901760, %v22325_v31  ;;  %v22327_v62 = vld [vmem:[#allocation117_spill] sm:$0xff]  ;;  %v2691_v63 = vld [vmem:[%s20940_s2 + $0xb8] sm:$0xff] }
 0x188   : > { %13178 = vmatpush1.bf16.msra.mxu0 %v13177_v52  ;;  %13562 = vmatpush1.bf16.msra.mxu1 %v13561_v17  ;;  %v2670_v52 = vld [vmem:[%s20940_s2 + $0x10] sm:$0xff]  ;;  %v22328_v41 = vand.u32 4294901760, %v22327_v62 }
 0x189   : > { %13180 = vmatprep.subr.bf16.mxu0 %v13179_v3  ;;  %13564 = vmatprep.subr.bf16.mxu1 %v13563_v18  ;;  %v3344_v17 = vand.u32 4294901760, %v2670_v52  ;;  %v22322_v3 = vand.u32 4294901760, %v22321_v9 }
 0x18b   : > { %v13199_v24 = vpack.c.bf16 %v22322_v3, %v22320_v6  ;;  %v16889_v26 = vsub.f32 %v2670_v52, %v3344_v17  ;;  %v22339_v52 = vld [vmem:[#allocation125_spill] sm:$0xff] }
 0x18c   : > { %13182 = vmatpush1.bf16.msra.mxu0 %v13181_v19  ;;  %13566 = vmatpush1.bf16.msra.mxu1 %v13565_v35  ;;  %v21331_v35 = vmov 0.0|0.0  }
 0x18d   : > { %13184 = vmatprep.subr.bf16.mxu0 %v13183_v46  ;;  %13568 = vmatprep.subr.bf16.mxu1 %v16543_v5  ;;  %v22308_v5 = vand.u32 4294901760, %v22013_v57  ;;  %v22312_v57 = vand.u32 4294901760, %v22017_v20  ;;  %v22317_v20 = vld [vmem:[#allocation100_spill] sm:$0xff]  ;;  %v22329_v46 = vld [vmem:[#allocation118_spill] sm:$0xff]  ;;  %v3429_v60 = vand.u32 4294901760, %v16889_v26 }
 0x18e   : > { %v22318_v16 = vand.u32 4294901760, %v22317_v20  ;;  %v22330_v55 = vand.u32 4294901760, %v22329_v46 }
 0x18f   : > { %3249 = vmatmul.mubr.f32.vlgmr.msra.gmra.mrb[12].mxu1 %v16566_v22  ;;  %v13191_v13 = vpack.c.bf16 %v22309_v49, %v22308_v5  ;;  %v22331_v5 = vld [vmem:[#allocation120_spill] sm:$0xff] }
 0x190   : > { %13186 = vmatpush1.bf16.msra.mxu0 %v13185_v12  ;;  %13570 = vmatpush1.bf16.msra.mxu1 %v16545_v8  ;;  %v13193_v8 = vpack.c.bf16 %v22311_v4, %v22310_v47  ;;  %v13203_v7 = vpack.c.bf16 %v22330_v55, %v22328_v41  ;;  %v2685_v12 = vld [vmem:[%s20940_s2 + $0x88] sm:$0xff]  ;;  %v22332_v49 = vand.u32 4294901760, %v22331_v5 }
 0x191   : > { %13188 = vmatprep.subr.bf16.mxu0 %v13187_v37  ;;  %13572 = vmatprep.subr.bf16.mxu1 %v16559_v38  ;;  %v22314_v38 = vand.u32 4294901760, %v22313_v56  ;;  %v2688_v37 = vld [vmem:[%s20940_s2 + $0xa0] sm:$0xff]  ;;  %v3359_v4 = vand.u32 4294901760, %v2685_v12  ;;  %v22337_v56 = vld [vmem:[#allocation124_spill] sm:$0xff] }
 0x192   : > { %v11994_v59 = vpop.f32.mrb[2].mxu1  ;;  %3335 = vmatprep.mubr.f32.mxu1 %v22206_v1 }
 0x193   : > { %v11995_v33 = vpop.f32.mrb[3].mxu1  ;;  %v13195_v45 = vpack.c.bf16 %v22314_v38, %v22312_v57  ;;  %v22338_v38 = vand.u32 4294901760, %v22337_v56 }
 0x194   : > { %v11996_v39 = vadd.f32 %v11995_v33, %v11994_v59  ;;  %13190 = vmatpush1.bf16.msra.mxu0 %v13189_v11  ;;  %13574 = vmatpush1.bf16.msra.mxu1 %v16572_v0  ;;  %v2673_v0 = vld [vmem:[%s20940_s2 + $0x28] sm:$0xff] }
 0x195   : > { %13192 = vmatprep.subr.bf16.mxu0 %v13191_v13  ;;  %13576 = vmatprep.subr.bf16.mxu1 %v16598_v32  ;;  %v22316_v32 = vand.u32 4294901760, %v22315_v58  ;;  %v3347_v28 = vand.u32 4294901760, %v2673_v0  ;;  %v22333_v13 = vld [vmem:[#allocation121_spill] sm:$0xff]  ;;  %v22341_v58 = vld [vmem:[#allocation127_spill] sm:$0xff] }
 0x196   : > { %v16871_v44 = vadd.f32 %v11996_v39, %v16739_v42  ;;  %v2676_v42 = vld [vmem:[%s20940_s2 + $0x40] sm:$0xff]  ;;  %v22334_v59 = vand.u32 4294901760, %v22333_v13 }
 0x197   : > { %v13197_v51 = vpack.c.bf16 %v22318_v16, %v22316_v32  ;;  %v16891_v18 = vsub.f32 %v2673_v0, %v3347_v28  ;;  %v16898_v19 = vpack.c.bf16 %v3347_v28, %v3344_v17  ;;  %v3350_v21 = vand.u32 4294901760, %v2676_v42 }
 0x198   : > { %13194 = vmatpush1.bf16.msra.mxu0 %v13193_v8  ;;  %13578 = vmatpush1.bf16.msra.mxu1 %v16616_v50  ;;  %v2679_v50 = vld [vmem:[%s20940_s2 + $0x58] sm:$0xff]  ;;  %v13205_v33 = vpack.c.bf16 %v22334_v59, %v22332_v49  ;;  %v22335_v8 = vld [vmem:[#allocation122_spill] sm:$0xff]  ;;  %v22340_v0 = vand.u32 4294901760, %v22339_v52  ;;  %v22342_v32 = vand.u32 4294901760, %v22341_v58  ;;  %v3362_v16 = vand.u32 4294901760, %v2688_v37 }
 0x199   : > { %13196 = vmatprep.subr.bf16.mxu0 %v13195_v45  ;;  %13580 = vmatprep.subr.bf16.mxu1 %v16643_v54  ;;  %v22323_v54 = vld [vmem:[#allocation110_spill] sm:$0xff]  ;;  %v3353_v2 = vand.u32 4294901760, %v2679_v50  ;;  %v16911_v61 = vsub.f32 %v2676_v42, %v3350_v21  ;;  %v3436_v11 = vand.u32 4294901760, %v16891_v18  ;;  %v22336_v57 = vand.u32 4294901760, %v22335_v8  ;;  %v22343_v42 = vld [vmem:[#allocation128_spill] sm:$0xff] }
 0x19a   : > { %v22324_v40 = vand.u32 4294901760, %v22323_v54  ;;  %v13209_v20 = vpack.c.bf16 %v22342_v32, %v22340_v0  ;;  %v3430_v17 = vsub.f32 %v16889_v26, %v3429_v60  ;;  %v22345_v54 = vld [vmem:[#allocation130_spill] sm:$0xff] }
 0x19b   : > { %v16914_v29 = vsub.f32 %v2679_v50, %v3353_v2  ;;  %v16929_v39 = vpack.c.bf16 %v3353_v2, %v3350_v21  ;;  %v13207_v45 = vpack.c.bf16 %v22338_v38, %v22336_v57  ;;  %v3437_v28 = vsub.f32 %v16891_v18, %v3436_v11  ;;  %v22349_v21 = vld [vmem:[#allocation133_spill] sm:$0xff]  ;;  %v22351_v59 = vld [vmem:[#allocation134_spill] sm:$0xff]  ;;  %v22357_v38 = vld [vmem:[#allocation139_spill] sm:$0xff] }
 0x19c   : > { %13198 = vmatpush1.bf16.msra.mxu0 %v13197_v51  ;;  %13582 = vmatpush1.bf16.msra.mxu1 %v16651_v53  ;;  %v13201_v34 = vpack.c.bf16 %v22326_v27, %v22324_v40  ;;  %v2682_v53 = vld [vmem:[%s20940_s2 + $0x70] sm:$0xff]  ;;  %v3365_v51 = vand.u32 4294901760, %v2691_v63  ;;  %v3443_v23 = vand.u32 4294901760, %v16911_v61  ;;  %v22344_v50 = vand.u32 4294901760, %v22343_v42  ;;  %v22355_v57 = vld [vmem:[#allocation137_spill] sm:$0xff] }
 0x19d   : > { %13200 = vmatprep.subr.bf16.mxu0 %v13199_v24  ;;  %13583 = vmatprep.subr.bf16.mxu1 %v21331_v35  ;;  %v3356_v47 = vand.u32 4294901760, %v2682_v53  ;;  %v3450_v6 = vand.u32 4294901760, %v16914_v29  ;;  %v16955_v24 = vsub.f32 %v2685_v12, %v3359_v4  ;;  %v22346_v40 = vand.u32 4294901760, %v22345_v54  ;;  %v22347_v27 = vld [vmem:[#allocation131_spill] sm:$0xff]  ;;  %v22363_v54 = vld [vmem:[#allocation57_spill] sm:$0xff] }
 0x19e   : > { %v22350_v2 = vand.u32 4294901760, %v22349_v21  ;;  %v16966_v41 = vpack.c.bf16 %v3365_v51, %v3362_v16  ;;  %v3431_v46 = vand.u32 4294901760, %v3430_v17  ;;  %v3438_v55 = vand.u32 4294901760, %v3437_v28  ;;  %v22361_v28 = vld [vmem:[#allocation142_spill] sm:$0xff] }
 0x19f   : > { %3337 = vmatmul.mubr.f32.vlgmr.msra.gmra.mrb[12].mxu1 %v16566_v22  ;;  %v16951_v9 = vpack.c.bf16 %v3359_v4, %v3356_v47  ;;  %v16953_v3 = vsub.f32 %v2682_v53, %v3356_v47  ;;  %v13211_v31 = vpack.c.bf16 %v22346_v40, %v22344_v50  ;;  %v3451_v53 = vsub.f32 %v16914_v29, %v3450_v6  ;;  %v22353_v47 = vld [vmem:[#allocation136_spill] sm:$0xff]  ;;  %v22364_v40 = vld [vmem:[#allocation143_spill] sm:$0xff] }
 0x1a0   : > { %13202 = vmatpush1.bf16.msra.mxu0 %v13201_v34  ;;  %13585 = vmatpush3.bf16.msra.mxu1 %v16898_v19  ;;  %v22348_v34 = vand.u32 4294901760, %v22347_v27  ;;  %v16975_v12 = vsub.f32 %v2688_v37, %v3362_v16  ;;  %v16977_v5 = vsub.f32 %v2691_v63, %v3365_v51  ;;  %v3464_v13 = vand.u32 4294901760, %v16955_v24  ;;  %v22359_v51 = vld [vmem:[#allocation140_spill] sm:$0xff]  ;;  %v22366_v27 = vld [vmem:[#allocation145_spill] sm:$0xff] }
 0x1a1   : > { %13204 = vmatprep.subr.bf16.mxu0 %v13203_v7  ;;  %13586 = vmatprep.subr.bf16.mxu1 %v21331_v35  ;;  %v3444_v7 = vsub.f32 %v16911_v61, %v3443_v23  ;;  %v3457_v49 = vand.u32 4294901760, %v16953_v3  ;;  %v22354_v4 = vand.u32 4294901760, %v22353_v47  ;;  %v22356_v56 = vand.u32 4294901760, %v22355_v57 }
 0x1a2   : > { %12543 = vmatprep.mubr.msk.f32.mxu1 %vm15296_vm1, %v22206_v1  ;;  %v13213_v62 = vpack.c.bf16 %v22350_v2, %v22348_v34  ;;  %v13596_v52 = vpack.c.bf16 %v3438_v55, %v3431_v46  ;;  %v3452_v0 = vand.u32 4294901760, %v3451_v53  ;;  %v3465_v32 = vsub.f32 %v16955_v24, %v3464_v13  ;;  %v22368_v53 = vld [vmem:[#allocation146_spill] sm:$0xff] }
 0x1a3   : > { %v3445_v63 = vand.u32 4294901760, %v3444_v7  ;;  %v3458_v58 = vsub.f32 %v16953_v3, %v3457_v49  ;;  %v3478_v16 = vand.u32 4294901760, %v16977_v5  ;;  %v22360_v17 = vand.u32 4294901760, %v22359_v51  ;;  %v22376_v51 = vld [vmem:[#allocation152_spill] sm:$0xff] }
 0x1a4   : > { %13206 = vmatpush1.bf16.msra.mxu0 %v13205_v33  ;;  %13588 = vmatpush3.bf16.msra.mxu1 %v16929_v39  ;;  %v22352_v33 = vand.u32 4294901760, %v22351_v59  ;;  %v22362_v42 = vand.u32 4294901760, %v22361_v28  ;;  %v22367_v34 = vand.u32 4294901760, %v22366_v27  ;;  %v3466_v46 = vand.u32 4294901760, %v3465_v32  ;;  %v22378_v28 = vld [vmem:[#allocation154_spill] sm:$0xff]  ;;  %v22382_v27 = vld [vmem:[#allocation157_spill] sm:$0xff] }
 0x1a5   : > { %13208 = vmatprep.subr.bf16.mxu0 %v13207_v45  ;;  %13589 = vmatprep.subr.bf16.mxu1 %v21331_v35  ;;  %v22358_v45 = vand.u32 4294901760, %v22357_v38  ;;  %v13599_v2 = vpack.c.bf16 %v3452_v0, %v3445_v63  ;;  %v3479_v7 = vsub.f32 %v16977_v5, %v3478_v16  ;;  %v22369_v59 = vand.u32 4294901760, %v22368_v53  ;;  %v22387_v53 = vld [vmem:[#allocation21_spill] sm:$0xff] }
 0x1a6   : > { %v13215_v8 = vpack.c.bf16 %v22354_v4, %v22352_v33  ;;  %v13219_v50 = vpack.c.bf16 %v22362_v42, %v22360_v17  ;;  %v22370_v33 = vld [vmem:[#allocation148_spill] sm:$0xff]  ;;  %v22377_v17 = vand.u32 4294901760, %v22376_v51  ;;  %v22379_v42 = vand.u32 4294901760, %v22378_v28 }
 0x1a7   : > { %v13217_v37 = vpack.c.bf16 %v22358_v45, %v22356_v56  ;;  %v22371_v47 = vand.u32 4294901760, %v22370_v33  ;;  %v22372_v56 = vld [vmem:[#allocation149_spill] sm:$0xff]  ;;  %v22374_v45 = vld [vmem:[#allocation151_spill] sm:$0xff]  ;;  %v3480_v32 = vand.u32 4294901760, %v3479_v7  ;;  %v13611_v7 = vpack.c.bf16 %v16914_v29, %v16911_v61  ;;  %v22401_v61 = vld [vmem:[#allocation126_spill] sm:$0xff] }
 0x1a8   : > { %13210 = vmatpush1.bf16.msra.mxu0 %v13209_v20  ;;  %13591 = vmatpush3.bf16.msra.mxu1 %v16951_v9  ;;  %v3471_v20 = vand.u32 4294901760, %v16975_v12  ;;  %v22373_v38 = vand.u32 4294901760, %v22372_v56  ;;  %v13614_v33 = vpack.c.bf16 %v16955_v24, %v16953_v3  ;;  %v22393_v56 = vld [vmem:[#allocation56_spill] sm:$0xff]  ;;  %v22406_v3 = vld [vmem:[#allocation141_spill] sm:$0xff] }
 0x1a9   : > { %13212 = vmatprep.subr.bf16.mxu0 %v13211_v31  ;;  %13592 = vmatprep.subr.bf16.mxu1 %v21331_v35  ;;  %v22365_v31 = vand.u32 4294901760, %v22364_v40  ;;  %v13223_v4 = vpack.c.bf16 %v22371_v47, %v22369_v59  ;;  %v22380_v40 = vld [vmem:[#allocation155_spill] sm:$0xff]  ;;  %v22389_v47 = vld [vmem:[#allocation32_spill] sm:$0xff] }
 0x1aa   : > { %v3472_v55 = vsub.f32 %v16975_v12, %v3471_v20  ;;  %v22388_v59 = vld [vmem:[#allocation27_spill] sm:$0xff]  ;;  %v13641_v29 = vpack.c.bf16 %v3478_v16, %v3471_v20  ;;  %v22410_v16 = vld [vmem:[#allocation153_spill] sm:$0xff] }
 0x1ab   : > { %v13221_v21 = vpack.c.bf16 %v22367_v34, %v22365_v31  ;;  %v22381_v31 = vand.u32 4294901760, %v22380_v40  ;;  %v22383_v34 = vand.u32 4294901760, %v22382_v27 }
 0x1ac   : > { %13214 = vmatpush1.bf16.msra.mxu0 %v13213_v62  ;;  %13594 = vmatpush3.bf16.msra.mxu1 %v16966_v41  ;;  %v3459_v62 = vand.u32 4294901760, %v3458_v58  ;;  %v3473_v58 = vand.u32 4294901760, %v3472_v55  ;;  %v22386_v55 = vld [vmem:[#allocation15_spill] sm:$0xff] }
 0x1ad   : > { %13216 = vmatprep.subr.bf16.mxu0 %v13215_v8  ;;  %13595 = vmatprep.subr.bf16.mxu1 %v21331_v35 }
 0x1ae   : > { %v13602_v0 = vpack.c.bf16 %v3466_v46, %v3459_v62  ;;  %v13608_v62 = vpack.c.bf16 %v16891_v18, %v16889_v26  ;;  %v22384_v46 = vld [vmem:[#allocation11_spill] sm:$0xff] }
 0x1af   : > { %12544 = vmatmul.mubr.f32.vlgmr.msra.gmra.mrb[14].mxu1 %v22363_v54  ;;  %v22399_v26 = vld [vmem:[#allocation119_spill] sm:$0xff] }
 0x1b0   : > { %13218 = vmatpush1.bf16.msra.mxu0 %v13217_v37  ;;  %13597 = vmatpush3.bf16.msra.mxu1 %v13596_v52  ;;  %v22375_v37 = vand.u32 4294901760, %v22374_v45  ;;  %v22400_v18 = vld [vmem:[#allocation123_spill] sm:$0xff] }
 0x1b1   : > { %13220 = vmatprep.subr.bf16.mxu0 %v13219_v50  ;;  %13598 = vmatprep.subr.bf16.mxu1 %v21331_v35  ;;  %v13227_v50 = vpack.c.bf16 %v22379_v42, %v22377_v17 }
 0x1b2   : > { %v12029_v8 = vpop.f32.mrb[4].mxu1  ;;  %12562 = vmatprep.mubr.msk.f32.mxu1 %vm15296_vm1, %v22206_v1  ;;  %v13225_v52 = vpack.c.bf16 %v22375_v37, %v22373_v38  ;;  %v22394_v38 = vld [vmem:[#allocation62_spill] sm:$0xff] }
 0x1b3   : > { %v12030_v57 = vpop.f32.mrb[5].mxu1 }
 0x1b4   : > { %v12031_v63 = vadd.f32 %v12030_v57, %v12029_v8  ;;  %13222 = vmatpush1.bf16.msra.mxu0 %v13221_v21  ;;  %13600 = vmatpush3.bf16.msra.mxu1 %v13599_v2  ;;  %v13229_v21 = vpack.c.bf16 %v22383_v34, %v22381_v31  ;;  %v13605_v2 = vpack.c.bf16 %v3480_v32, %v3473_v58  ;;  %v22391_v57 = vld [vmem:[#allocation44_spill] sm:$0xff] }
 0x1b5   : > { %13224 = vmatprep.subr.bf16.mxu0 %v13223_v4  ;;  %13601 = vmatprep.subr.bf16.mxu1 %v21331_v35  ;;  %v22390_v4 = vld [vmem:[#allocation38_spill] sm:$0xff]  ;;  %v13617_v8 = vpack.c.bf16 %v16977_v5, %v16975_v12 }
 0x1b6   : > { %v2284_v54 = vadd.f32 %v12031_v63, %v16871_v44  ;;  %v22385_v44 = vld [vmem:[#allocation107_spill] sm:$0xff]  ;;  %v22398_v63 = vld [vmem:[#allocation116_spill] sm:$0xff] }
 0x1b8   : > { %13226 = vmatpush1.bf16.msra.mxu0 %v13225_v52  ;;  %13603 = vmatpush3.bf16.msra.mxu1 %v13602_v0  ;;  %v22411_v0 = vld [vmem:[#allocation156_spill] sm:$0xff] }
 0x1b9   : > { %13228 = vmatprep.subr.bf16.mxu0 %v13227_v50  ;;  %13604 = vmatprep.subr.bf16.mxu1 %v21331_v35 }
 0x1bc   : > { %13230 = vmatpush1.bf16.msra.mxu0 %v13229_v21  ;;  %13606 = vmatpush3.bf16.msra.mxu1 %v13605_v2 }
 0x1bd   : > { %13232 = vmatprep.subr.bf16.mxu0 %v22384_v46  ;;  %13607 = vmatprep.subr.bf16.mxu1 %v21331_v35 }
 0x1bf   : > { %1662 = vmatmul.mubr.f32.vlgmr.msra.gmra.mrb[0].mxu0 %v22385_v44  ;;  %12563 = vmatmul.mubr.f32.vlgmr.msra.gmra.mrb[14].mxu1 %v16566_v22 }
 0x1c0   : > { %13234 = vmatpush1.bf16.msra.mxu0 %v22386_v55  ;;  %13609 = vmatpush3.bf16.msra.mxu1 %v13608_v62 }
 0x1c1   : > { %13236 = vmatprep.subr.bf16.mxu0 %v22387_v53  ;;  %13610 = vmatprep.subr.bf16.mxu1 %v21331_v35 }
 0x1c2   : > { %12581 = vmatprep.mubr.msk.f32.mxu1 %vm15296_vm1, %v22206_v1  ;;  %1797 = vmatprep.mubr.f32.mxu0 %v22107_v25  ;;  %v22392_v25 = vld [vmem:[#allocation51_spill] sm:$0xff] }
 0x1c4   : > { %13238 = vmatpush1.bf16.msra.mxu0 %v22388_v59  ;;  %13612 = vmatpush3.bf16.msra.mxu1 %v13611_v7 }
 0x1c5   : > { %13240 = vmatprep.subr.bf16.mxu0 %v22389_v47  ;;  %13613 = vmatprep.subr.bf16.mxu1 %v21331_v35 }
 0x1c8   : > { %13242 = vmatpush1.bf16.msra.mxu0 %v22390_v4  ;;  %13615 = vmatpush3.bf16.msra.mxu1 %v13614_v33 }
 0x1c9   : > { %13244 = vmatprep.subr.bf16.mxu0 %v22391_v57  ;;  %13616 = vmatprep.subr.bf16.mxu1 %v21331_v35 }
 0x1cc   : > { %13246 = vmatpush1.bf16.msra.mxu0 %v22392_v25  ;;  %13618 = vmatpush3.bf16.msra.mxu1 %v13617_v8 }
 0x1cd   : > { %13248 = vmatprep.subr.bf16.mxu0 %v22393_v56  ;;  %13619 = vmatprep.subr.bf16.mxu1 %v21331_v35 }
 0x1cf   : > { %12582 = vmatmul.mubr.f32.vlgmr.msra.gmra.mrb[14].mxu1 %v16601_v10 }
 0x1d0   : > { %13250 = vmatpush1.bf16.msra.mxu0 %v22394_v38  ;;  %13621 = vmatpush3.bf16.msra.mxu1 %v16898_v19 }
 0x1d1   : > { %13252 = vmatprep.subr.bf16.mxu0 %v22229_v30  ;;  %13622 = vmatprep.subr.bf16.mxu1 %v21331_v35  ;;  %v22395_v30 = vld [vmem:[#allocation98_spill] sm:$0xff] }
 0x1d2   : > { %v12064_v45 = vpop.f32.mrb[6].mxu1  ;;  %12600 = vmatprep.mubr.msk.f32.mxu1 %vm15296_vm1, %v22206_v1 }
 0x1d3   : > { %v12065_v37 = vpop.f32.mrb[7].mxu1 }
 0x1d4   : > { %v12066_v52 = vadd.f32 %v12065_v37, %v12064_v45  ;;  %13254 = vmatpush1.bf16.msra.mxu0 %v22230_v48  ;;  %13624 = vmatpush3.bf16.msra.mxu1 %v16929_v39  ;;  %v13632_v48 = vpack.c.bf16 %v3436_v11, %v3429_v60  ;;  %v22402_v60 = vld [vmem:[#allocation129_spill] sm:$0xff]  ;;  %v22403_v11 = vld [vmem:[#allocation132_spill] sm:$0xff] }
 0x1d5   : > { %13256 = vmatprep.subr.bf16.mxu0 %v22231_v43  ;;  %13625 = vmatprep.subr.bf16.mxu1 %v21331_v35  ;;  %v22396_v43 = vld [vmem:[#allocation104_spill] sm:$0xff] }
 0x1d6   : > { %v2392_v10 = vadd.f32 %v12066_v52, %v2284_v54 }
 0x1d8   : > { %13258 = vmatpush1.bf16.msra.mxu0 %v22232_v36  ;;  %13627 = vmatpush3.bf16.msra.mxu1 %v16951_v9  ;;  %v22397_v36 = vld [vmem:[#allocation111_spill] sm:$0xff] }
 0x1d9   : > { %13260 = vmatprep.subr.bf16.mxu0 %v22233_v14  ;;  %13628 = vmatprep.subr.bf16.mxu1 %v21331_v35  ;;  %v13635_v14 = vpack.c.bf16 %v3450_v6, %v3443_v23  ;;  %v22404_v23 = vld [vmem:[#allocation135_spill] sm:$0xff]  ;;  %v22405_v6 = vld [vmem:[#allocation138_spill] sm:$0xff] }
 0x1dc   : > { %13262 = vmatpush1.bf16.msra.mxu0 %v22395_v30  ;;  %13630 = vmatpush3.bf16.msra.mxu1 %v16966_v41 }
 0x1dd   : > { %13264 = vmatprep.subr.bf16.mxu0 %v22396_v43  ;;  %13631 = vmatprep.subr.bf16.mxu1 %v21331_v35 }
 0x1df   : > { %12601 = vmatmul.mubr.f32.vlgmr.msra.gmra.mrb[14].mxu1 %v16634_v15  ;;  %v13638_v15 = vpack.c.bf16 %v3464_v13, %v3457_v49  ;;  %v22407_v49 = vld [vmem:[#allocation144_spill] sm:$0xff]  ;;  %v22408_v13 = vld [vmem:[#allocation147_spill] sm:$0xff] }
 0x1e0   : > { %13266 = vmatpush1.bf16.msra.mxu0 %v22397_v36  ;;  %13633 = vmatpush3.bf16.msra.mxu1 %v13632_v48 }
 0x1e1   : > { %13268 = vmatprep.subr.bf16.mxu0 %v22398_v63  ;;  %13634 = vmatprep.subr.bf16.mxu1 %v21331_v35 }
 0x1e2   : > { %12619 = vmatprep.mubr.msk.f32.mxu1 %vm15296_vm1, %v22206_v1 }
 0x1e4   : > { %13270 = vmatpush1.bf16.msra.mxu0 %v22399_v26  ;;  %13636 = vmatpush3.bf16.msra.mxu1 %v13635_v14 }
 0x1e5   : > { %13272 = vmatprep.subr.bf16.mxu0 %v22400_v18  ;;  %13637 = vmatprep.subr.bf16.mxu1 %v21331_v35 }
 0x1e8   : > { %13274 = vmatpush1.bf16.msra.mxu0 %v22401_v61  ;;  %13639 = vmatpush3.bf16.msra.mxu1 %v13638_v15 }
 0x1e9   : > { %13276 = vmatprep.subr.bf16.mxu0 %v22402_v60  ;;  %13640 = vmatprep.subr.bf16.mxu1 %v21331_v35 }
 0x1ec   : > { %13278 = vmatpush1.bf16.msra.mxu0 %v22403_v11  ;;  %13642 = vmatpush3.bf16.msra.mxu1 %v13641_v29 }
 0x1ed   : > { %13280 = vmatprep.subr.bf16.mxu0 %v22404_v23  ;;  %13643 = vmatprep.subr.bf16.mxu1 %v21331_v35 }
 0x1ef   : > { %12620 = vmatmul.mubr.f32.vlgmr.msra.gmra.mrb[14].mxu1 %v16566_v22 }
 0x1f0   : > { %13282 = vmatpush1.bf16.msra.mxu0 %v22405_v6  ;;  %13645 = vmatpush3.bf16.msra.mxu1 %v16898_v19  ;;  %v22409_v19 = vld [vmem:[#allocation150_spill] sm:$0xff] }
 0x1f1   : > { %13284 = vmatprep.subr.bf16.mxu0 %v22406_v3  ;;  %13646 = vmatprep.subr.bf16.mxu1 %v21331_v35 }
 0x1f2   : > { %v12099_v24 = vpop.f32.mrb[8].mxu1  ;;  %12638 = vmatprep.mubr.msk.f32.mxu1 %vm15296_vm1, %v22206_v1 }
 0x1f3   : > { %v12100_v12 = vpop.f32.mrb[9].mxu1 }
 0x1f4   : > { %v12101_v5 = vadd.f32 %v12100_v12, %v12099_v24  ;;  %13286 = vmatpush1.bf16.msra.mxu0 %v22407_v49  ;;  %13648 = vmatpush3.bf16.msra.mxu1 %v16929_v39 }
 0x1f5   : > { %13288 = vmatprep.subr.bf16.mxu0 %v22408_v13  ;;  %13649 = vmatprep.subr.bf16.mxu1 %v21331_v35 }
 0x1f6   : > { %v2560_v20 = vadd.f32 %v12101_v5, %v2392_v10 }
 0x1f8   : > { %13290 = vmatpush1.bf16.msra.mxu0 %v22409_v19  ;;  %13651 = vmatpush3.bf16.msra.mxu1 %v16951_v9 }
 0x1f9   : > { %13292 = vmatprep.subr.bf16.mxu0 %v22410_v16  ;;  %13652 = vmatprep.subr.bf16.mxu1 %v21331_v35 }
 0x1fc   : > { %13294 = vmatpush1.bf16.msra.mxu0 %v22411_v0  ;;  %13654 = vmatpush3.bf16.msra.mxu1 %v16966_v41 }
 0x1fd   : > { %13751 = vmatprep.subr.bf16.mxu1 %v21331_v35 }
 0x1ff   : > { %1799 = vmatmul.mubr.f32.vlgmr.msra.gmra.mrb[0].mxu0 %v22385_v44  ;;  %12639 = vmatmul.mubr.f32.vlgmr.msra.gmra.mrb[14].mxu1 %v16566_v22 }
 0x200   : > { %12659 = vmatprep.mubr.msk.f32.mxu1 %vm15296_vm1, %v22206_v1  ;;  %4252 = vmatprep.mubr.f32.mxu0 %v22206_v1 }
 0x212   : > { %v12134_v39 = vpop.f32.mrb[10].mxu1 }
 0x213   : > { %v12135_v9 = vpop.f32.mrb[11].mxu1 }
 0x214   : > { %v12136_v58 = vadd.f32 %v12135_v9, %v12134_v39  ;;  %v4132_v39 = vld [vmem:[%s20942_s4] sm:$0xf] }
 0x216   : > { %v2664_v32 = vadd.f32 %v12136_v58, %v2560_v20 }
 0x218   : > { %3933 = vrot.lane.b32.xlu1 %v2664_v32, %s15297_s11  ;;  %3904 = vrot.lane.b32.xlu0 %v2664_v32, %s15298_s21  ;;  %3883 = vst.msk [vmem:[#allocation2 + $0x10] sm:$0xf] %vm3882_vm2, %v2664_v32 }
 0x21c   : > { %3962 = vrot.lane.b32.xlu1 %v2664_v32, %s15299_s23 }
 0x220   : > { %3991 = vrot.lane.b32.xlu1 %v2664_v32, %s15300_s24 }
 0x224   : > { %4020 = vrot.lane.b32.xlu1 %v2664_v32, %s15301_s25 }
 0x228   : > { %4049 = vrot.lane.b32.xlu1 %v2664_v32, %s15302_s26 }
 0x22c   : > { %4078 = vrot.lane.b32.xlu1 %v2664_v32, %s15303_s27 }
 0x230   : > { %4107 = vrot.lane.b32.xlu1 %v2664_v32, %s15304_s29 }
 0x272   : > { %v3338_v22 = vpop.f32.mrb[12].mxu1 }
 0x273   : > { %v17148_v41 = vrot.slane %v3338_v22, 4  ;;  %v3340_v51 = vpop.f32.mrb[13].mxu1 }
 0x274   : > { %v3888_v17 = vrot.slane %v3340_v51, 4  ;;  %v4168_v51 = vsel %vm4166_vm11, %v4132_v39, 0 }
 0x275   : > { %3893 = vst [vmem:[#allocation2] sm:$0xf0] %v17148_v41  ;;  %3915 = vrot.lane.b32.xlu1 %v17148_v41, %s15298_s21 }
 0x276   : > { %3894 = vst [vmem:[#allocation2 + $0x8] sm:$0xf0] %v3888_v17  ;;  %3946 = vrot.lane.b32.xlu0 %v3888_v17, %s15297_s11 }
 0x279   : > { %3944 = vrot.lane.b32.xlu1 %v17148_v41, %s15297_s11 }
 0x27a   : > { %3975 = vrot.lane.b32.xlu0 %v3888_v17, %s15299_s23 }
 0x27d   : > { %3973 = vrot.lane.b32.xlu1 %v17148_v41, %s15299_s23 }
 0x27e   : > { %4004 = vrot.lane.b32.xlu0 %v3888_v17, %s15300_s24 }
 0x281   : > { %4002 = vrot.lane.b32.xlu1 %v17148_v41, %s15300_s24 }
 0x282   : > { %4033 = vrot.lane.b32.xlu0 %v3888_v17, %s15301_s25 }
 0x285   : > { %4031 = vrot.lane.b32.xlu1 %v17148_v41, %s15301_s25 }
 0x286   : > { %4062 = vrot.lane.b32.xlu0 %v3888_v17, %s15302_s26 }
 0x289   : > { %4060 = vrot.lane.b32.xlu1 %v17148_v41, %s15302_s26 }
 0x28a   : > { %v17168_v28 = vpop.permute.xlu1 %3933  ;;  %4091 = vrot.lane.b32.xlu0 %v3888_v17, %s15303_s27  ;;  %v17171_v42 = vpop.permute.xlu0 %3904 }
 0x28b   : > { %3943 = vst.msk [vmem:[#allocation2 + $0x40] sm:$0xf] %vm3882_vm2, %v17168_v28  ;;  %3914 = vst.msk [vmem:[#allocation2 + $0x28] sm:$0xf] %vm3882_vm2, %v17171_v42 }
 0x28d   : > { %4089 = vrot.lane.b32.xlu1 %v17148_v41, %s15303_s27 }
 0x28e   : > { %v17179_v50 = vpop.permute.xlu1 %3962  ;;  %4120 = vrot.lane.b32.xlu0 %v3888_v17, %s15304_s29 }
 0x28f   : > { %3972 = vst.msk [vmem:[#allocation2 + $0x58] sm:$0xf] %vm3882_vm2, %v17179_v50 }
 0x291   : > { %3917 = vrot.lane.b32.xlu1 %v3888_v17, %s15298_s21 }
 0x292   : > { %v17185_v54 = vpop.permute.xlu1 %3991 }
 0x293   : > { %4001 = vst.msk [vmem:[#allocation2 + $0x70] sm:$0xf] %vm3882_vm2, %v17185_v54 }
 0x296   : > { %v17189_v40 = vpop.permute.xlu1 %4020 }
 0x297   : > { %4030 = vst.msk [vmem:[#allocation2 + $0x88] sm:$0xf] %vm3882_vm2, %v17189_v40 }
 0x29a   : > { %v17193_v31 = vpop.permute.xlu1 %4049 }
 0x29b   : > { %4059 = vst.msk [vmem:[#allocation2 + $0xa0] sm:$0xf] %vm3882_vm2, %v17193_v31 }
 0x29e   : > { %v17197_v27 = vpop.permute.xlu1 %4078 }
 0x29f   : > { %4088 = vst.msk [vmem:[#allocation2 + $0xb8] sm:$0xf] %vm3882_vm2, %v17197_v27 }
 0x2a2   : > { %v17201_v34 = vpop.permute.xlu1 %4107 }
 0x2a3   : > { %4117 = vst.msk [vmem:[#allocation2 + $0xd0] sm:$0xf] %vm3882_vm2, %v17201_v34 }
 0x2d2   : > { %v17205_v21 = vpop.f32.mrb[0].mxu0  ;;  %v3876_v2 = vpop.f32.mrb[14].mxu1 }
 0x2d3   : > { %3880 = vst [vmem:[#allocation2] sm:$0xf] %v17205_v21  ;;  %v3889_v62 = vrot.slane %v3876_v2, 4  ;;  %v12640_v46 = vpop.f32.mrb[15].mxu1  ;;  %3900 = vrot.lane.b32.xlu0 %v17205_v21, %s15298_s21  ;;  %v1802_v44 = vpop.f32.mrb[1].mxu0 }
 0x2d4   : > { %3881 = vst [vmem:[#allocation2 + $0x8] sm:$0xf] %v1802_v44 }
 0x2d5   : > { %3896 = vst.msk [vmem:[#allocation2 + $0x10] sm:$0xf0] %vm3895_vm3, %v3889_v62  ;;  %3919 = vrot.lane.b32.xlu1 %v3889_v62, %s15298_s21 }
 0x2d7   : > { %3929 = vrot.lane.b32.xlu0 %v17205_v21, %s15297_s11 }
 0x2d9   : > { %3948 = vrot.lane.b32.xlu1 %v3889_v62, %s15297_s11 }
 0x2db   : > { %3958 = vrot.lane.b32.xlu0 %v17205_v21, %s15299_s23 }
 0x2dc   : > { %v4135_v23 = vld [vmem:[#allocation2 + $0x10] sm:$0xff] }
 0x2dd   : > { %3977 = vrot.lane.b32.xlu1 %v3889_v62, %s15299_s23  ;;  %v4844_v12 = vand.u32 4294901760, %v4135_v23 }
 0x2df   : > { %3987 = vrot.lane.b32.xlu0 %v17205_v21, %s15300_s24 }
 0x2e1   : > { %4006 = vrot.lane.b32.xlu1 %v3889_v62, %s15300_s24 }
 0x2e3   : > { %4016 = vrot.lane.b32.xlu0 %v17205_v21, %s15301_s25 }
 0x2e5   : > { %4035 = vrot.lane.b32.xlu1 %v3889_v62, %s15301_s25 }
 0x2e7   : > { %v3916_v55 = vpop.permute.xlu1 %3915  ;;  %4045 = vrot.lane.b32.xlu0 %v17205_v21, %s15302_s26 }
 0x2e8   : > { %v3947_v7 = vpop.permute.xlu0 %3946 }
 0x2e9   : > { %4064 = vrot.lane.b32.xlu1 %v3889_v62, %s15302_s26 }
 0x2eb   : > { %v3945_v53 = vpop.permute.xlu1 %3944  ;;  %4074 = vrot.lane.b32.xlu0 %v17205_v21, %s15303_s27 }
 0x2ec   : > { %v3950_v59 = vsel %vm3935_vm4, %v3945_v53, %v3947_v7  ;;  %v3976_v33 = vpop.permute.xlu0 %3975  ;;  %v17304_v53 = vld [vmem:[#allocation2] sm:$0xff] }
 0x2ed   : > { %3955 = vst [vmem:[#allocation2 + $0x30] sm:$0xf0] %v3950_v59  ;;  %4093 = vrot.lane.b32.xlu1 %v3889_v62, %s15303_s27  ;;  %v17306_v59 = vsub.f32 %v4135_v23, %v4844_v12 }
 0x2ef   : > { %v3974_v47 = vpop.permute.xlu1 %3973  ;;  %3902 = vrot.lane.b32.xlu0 %v1802_v44, %s15298_s21 }
 0x2f0   : > { %v3979_v4 = vsel %vm3964_vm5, %v3974_v47, %v3976_v33  ;;  %v4005_v8 = vpop.permute.xlu0 %4004 }
 0x2f1   : > { %3984 = vst [vmem:[#allocation2 + $0x48] sm:$0xf0] %v3979_v4  ;;  %4122 = vrot.lane.b32.xlu1 %v3889_v62, %s15304_s29  ;;  %v17293_v62 = vand.u32 4294901760, %v4168_v51 }
 0x2f3   : > { %v4003_v57 = vpop.permute.xlu1 %4002  ;;  %3931 = vrot.lane.b32.xlu0 %v1802_v44, %s15297_s11 }
 0x2f4   : > { %v4008_v25 = vsel %vm3993_vm6, %v4003_v57, %v4005_v8  ;;  %v17236_v56 = vpop.permute.xlu0 %4033 }
 0x2f5   : > { %4013 = vst [vmem:[#allocation2 + $0x60] sm:$0xf0] %v4008_v25  ;;  %4118 = vrot.lane.b32.xlu1 %v17148_v41, %s15304_s29 }
 0x2f7   : > { %v4032_v38 = vpop.permute.xlu1 %4031  ;;  %3960 = vrot.lane.b32.xlu0 %v1802_v44, %s15299_s23 }
 0x2f8   : > { %v4037_v45 = vsel %vm4022_vm7, %v4032_v38, %v17236_v56  ;;  %v17243_v37 = vpop.permute.xlu0 %4062 }
 0x2f9   : > { %4042 = vst [vmem:[#allocation2 + $0x78] sm:$0xf0] %v4037_v45 }
 0x2fb   : > { %v4061_v52 = vpop.permute.xlu1 %4060  ;;  %3989 = vrot.lane.b32.xlu0 %v1802_v44, %s15300_s24 }
 0x2fc   : > { %v4066_v10 = vsel %vm4051_vm8, %v4061_v52, %v17243_v37  ;;  %v17248_v30 = vpop.permute.xlu0 %4091 }
 0x2fd   : > { %4071 = vst [vmem:[#allocation2 + $0x90] sm:$0xf0] %v4066_v10 }
 0x2ff   : > { %v4090_v48 = vpop.permute.xlu1 %4089  ;;  %4018 = vrot.lane.b32.xlu0 %v1802_v44, %s15301_s25 }
 0x300   : > { %v4095_v43 = vsel %vm4080_vm9, %v4090_v48, %v17248_v30  ;;  %v17259_v63 = vpop.permute.xlu0 %4120 }
 0x301   : > { %4100 = vst [vmem:[#allocation2 + $0xa8] sm:$0xf0] %v4095_v43 }
 0x303   : > { %v3918_v36 = vpop.permute.xlu1 %3917  ;;  %4047 = vrot.lane.b32.xlu0 %v1802_v44, %s15302_s26 }
 0x304   : > { %v3921_v14 = vsel %vm3906_vm10, %v3916_v55, %v3918_v36 }
 0x305   : > { %3926 = vst [vmem:[#allocation2 + $0x18] sm:$0xf0] %v3921_v14  ;;  %v21321_v14 = vand.u32 4294901760, %v17306_v59 }
 0x307   : > { %4076 = vrot.lane.b32.xlu0 %v1802_v44, %s15303_s27 }
 0x30b   : > { %4105 = vrot.lane.b32.xlu0 %v1802_v44, %s15304_s29 }
 0x30f   : > { %4103 = vrot.lane.b32.xlu0 %v17205_v21, %s15304_s29 }
 0x345   : > { %v17261_v26 = vpop.permute.xlu0 %3900 }
 0x347   : > { %v3920_v15 = vpop.permute.xlu1 %3919 }
 0x348   : > { %v3922_v18 = vsel %vm3906_vm10, %v3918_v36, %v3920_v15  ;;  %3928 = vst.msk [vmem:[#allocation2 + $0x28] sm:$0xf0] %vm3895_vm3, %v3920_v15 }
 0x349   : > { %3927 = vst [vmem:[#allocation2 + $0x20] sm:$0xf0] %v3922_v18  ;;  %v17265_v61 = vpop.permute.xlu0 %3929 }
 0x34b   : > { %v3949_v29 = vpop.permute.xlu1 %3948 }
 0x34c   : > { %v3951_v60 = vsel %vm3935_vm4, %v3947_v7, %v3949_v29  ;;  %3957 = vst.msk [vmem:[#allocation2 + $0x40] sm:$0xf0] %vm3895_vm3, %v3949_v29  ;;  %v17302_v7 = vld [vmem:[#allocation2 + $0x8] sm:$0xff] }
 0x34d   : > { %3956 = vst [vmem:[#allocation2 + $0x38] sm:$0xf0] %v3951_v60  ;;  %v17269_v11 = vpop.permute.xlu0 %3958  ;;  %v4170_v45 = vand.u32 4294901760, %v17302_v7 }
 0x34f   : > { %v3978_v6 = vpop.permute.xlu1 %3977  ;;  %v4138_v3 = vld [vmem:[#allocation2 + $0x28] sm:$0xff]  ;;  %v17341_v60 = vsub.f32 %v17302_v7, %v4170_v45 }
 0x350   : > { %v3980_v24 = vsel %vm3964_vm5, %v3976_v33, %v3978_v6  ;;  %3986 = vst.msk [vmem:[#allocation2 + $0x58] sm:$0xf0] %vm3895_vm3, %v3978_v6  ;;  %v4847_v5 = vand.u32 4294901760, %v4138_v3 }
 0x351   : > { %3985 = vst [vmem:[#allocation2 + $0x50] sm:$0xf0] %v3980_v24  ;;  %v17273_v49 = vpop.permute.xlu0 %3987 }
 0x352   : > { %v17275_v13 = vpack.c.bf16 %v4847_v5, %v4844_v12  ;;  %v17308_v33 = vsub.f32 %v4138_v3, %v4847_v5 }
 0x353   : > { %v4007_v20 = vpop.permute.xlu1 %4006  ;;  %v4141_v0 = vld [vmem:[#allocation2 + $0x40] sm:$0xff] }
 0x354   : > { %v4009_v19 = vsel %vm3993_vm6, %v4005_v8, %v4007_v20  ;;  %4015 = vst.msk [vmem:[#allocation2 + $0x70] sm:$0xf0] %vm3895_vm3, %v4007_v20  ;;  %13753 = vmatpush3.bf16.msra.mxu1 %v17275_v13  ;;  %v4850_v22 = vand.u32 4294901760, %v4141_v0  ;;  %v17311_v8 = vsub.f32 %v4168_v51, %v17293_v62  ;;  %v21317_v15 = vand.u32 4294901760, %v17308_v33 }
 0x355   : > { %4014 = vst [vmem:[#allocation2 + $0x68] sm:$0xf0] %v4009_v19  ;;  %v17280_v16 = vpop.permute.xlu0 %4016  ;;  %13754 = vmatprep.subr.bf16.mxu1 %v21331_v35  ;;  %v4931_v19 = vsub.f32 %v17306_v59, %v21321_v14  ;;  %v21310_v51 = vand.u32 4294901760, %v17341_v60 }
 0x356   : > { %v17327_v36 = vand.u32 4294901760, %v17311_v8 }
 0x357   : > { %v4036_v9 = vpop.permute.xlu1 %4035  ;;  %v4144_v58 = vld [vmem:[#allocation2 + $0x58] sm:$0xff] }
 0x358   : > { %v4038_v32 = vsel %vm4022_vm7, %v17236_v56, %v4036_v9  ;;  %4044 = vst.msk [vmem:[#allocation2 + $0x88] sm:$0xf0] %vm3895_vm3, %v4036_v9  ;;  %v4853_v41 = vand.u32 4294901760, %v4144_v58  ;;  %v4256_v20 = vsub.f32 %v17311_v8, %v17327_v36 }
 0x359   : > { %4043 = vst [vmem:[#allocation2 + $0x80] sm:$0xf0] %v4038_v32  ;;  %v17289_v17 = vpop.permute.xlu0 %4045  ;;  %v4160_v32 = vld [vmem:[%s20943_s5] sm:$0xf] }
 0x35a   : > { %v17291_v21 = vpack.c.bf16 %v4853_v41, %v4850_v22  ;;  %v17331_v18 = vsub.f32 %v4144_v58, %v4853_v41 }
 0x35b   : > { %v4065_v2 = vpop.permute.xlu1 %4064  ;;  %v4147_v55 = vld [vmem:[#allocation2 + $0x70] sm:$0xff] }
 0x35c   : > { %v4067_v46 = vsel %vm4051_vm8, %v17243_v37, %v4065_v2  ;;  %4073 = vst.msk [vmem:[#allocation2 + $0xa0] sm:$0xf0] %vm3895_vm3, %v4065_v2  ;;  %13756 = vmatpush3.bf16.msra.mxu1 %v17291_v21  ;;  %v4856_v25 = vand.u32 4294901760, %v4147_v55  ;;  %v4172_v37 = vand.u32 4294901760, %v17304_v53  ;;  %22412 = vst [vmem:[#allocation58_spill] sm:$0xff] %v17331_v18  ;;  %v21315_v58 = vand.u32 4294901760, %v17331_v18 }
 0x35d   : > { %4072 = vst [vmem:[#allocation2 + $0x98] sm:$0xf0] %v4067_v46  ;;  %v17299_v44 = vpop.permute.xlu0 %4074  ;;  %13757 = vmatprep.subr.bf16.mxu1 %v21331_v35 }
 0x35e   : > { %v17346_v23 = vsub.f32 %v17304_v53, %v4172_v37 }
 0x35f   : > { %v4094_v47 = vpop.permute.xlu1 %4093  ;;  %v4150_v4 = vld [vmem:[#allocation2 + $0x88] sm:$0xff] }
 0x360   : > { %v4096_v57 = vsel %vm4080_vm9, %v17248_v30, %v4094_v47  ;;  %4102 = vst.msk [vmem:[#allocation2 + $0xb8] sm:$0xf0] %vm3895_vm3, %v4094_v47  ;;  %v4859_v56 = vand.u32 4294901760, %v4150_v4  ;;  %v17324_v30 = vsub.f32 %v4141_v0, %v4850_v22  ;;  %v4938_v0 = vsub.f32 %v17308_v33, %v21317_v15 }
 0x361   : > { %4101 = vst [vmem:[#allocation2 + $0xb0] sm:$0xf0] %v4096_v57  ;;  %v3903_v38 = vpop.permute.xlu0 %3902  ;;  %v17369_v22 = vsub.f32 %v4147_v55, %v4856_v25  ;;  %v21309_v2 = vand.u32 4294901760, %v17346_v23  ;;  %v15305_v55 = vmov 0  }
 0x362   : > { %v3907_v52 = vsel %vm3906_vm10, %v17261_v26, %v3903_v38  ;;  %v3908_v10 = vsel %vm3906_vm10, %v3903_v38, %v17171_v42  ;;  %v17322_v48 = vpack.c.bf16 %v4859_v56, %v4856_v25  ;;  %v17348_v6 = vsub.f32 %v4150_v4, %v4859_v56  ;;  %15185 = vset.pattern.permute.xlu0 %v15305_v55 }
 0x363   : > { %3912 = vst [vmem:[#allocation2 + $0x18] sm:$0xf] %v3907_v52  ;;  %3913 = vst [vmem:[#allocation2 + $0x20] sm:$0xf] %v3908_v10  ;;  %v4123_v43 = vpop.permute.xlu1 %4122  ;;  %v4153_v29 = vld [vmem:[#allocation2 + $0xa0] sm:$0xff]  ;;  %v17380_v10 = vand.u32 4294901760, %v4256_v20  ;;  %4163 = vperm.xlu0 %15185, %v4160_v32  }
 0x364   : > { %v4125_v26 = vsel %vm4109_vm12, %v17259_v63, %v4123_v43  ;;  %4131 = vst.msk [vmem:[#allocation2 + $0xd0] sm:$0xf0] %vm3895_vm3, %v4123_v43  ;;  %13759 = vmatpush3.bf16.msra.mxu1 %v17322_v48  ;;  %v4862_v39 = vand.u32 4294901760, %v4153_v29  ;;  %v21313_v56 = vand.u32 4294901760, %v17348_v6  ;;  %v4932_v43 = vand.u32 4294901760, %v4931_v19 }
 0x365   : > { %4130 = vst [vmem:[#allocation2 + $0xc8] sm:$0xf0] %v4125_v26  ;;  %v3932_v42 = vpop.permute.xlu0 %3931  ;;  %13760 = vmatprep.subr.bf16.mxu1 %v21331_v35  ;;  %v21314_v20 = vand.u32 4294901760, %v17369_v22 }
 0x366   : > { %v3936_v3 = vsel %vm3935_vm4, %v17265_v61, %v3932_v42  ;;  %v3937_v24 = vsel %vm3935_vm4, %v3932_v42, %v17168_v28  ;;  %v21316_v61 = vand.u32 4294901760, %v17324_v30  ;;  %v4952_v42 = vsub.f32 %v17331_v18, %v21315_v58 }
 0x367   : > { %3941 = vst [vmem:[#allocation2 + $0x30] sm:$0xf] %v3936_v3  ;;  %3942 = vst [vmem:[#allocation2 + $0x38] sm:$0xf] %v3937_v24  ;;  %v4119_v12 = vpop.permute.xlu1 %4118  ;;  %v4156_v5 = vld [vmem:[#allocation2 + $0xb8] sm:$0xff]  ;;  %v17391_v3 = vsub.f32 %v4153_v29, %v4862_v39  ;;  %v4966_v7 = vsub.f32 %v17348_v6, %v21313_v56  ;;  %v4959_v32 = vsub.f32 %v17369_v22, %v21314_v20  ;;  %v17522_v20 = vld [vmem:[#allocation6 + $0x20] sm:$0xff] }
 0x368   : > { %v4124_v28 = vsel %vm4109_vm12, %v4119_v12, %v17259_v63  ;;  %v4865_v9 = vand.u32 4294901760, %v4156_v5  ;;  %v4945_v26 = vsub.f32 %v17324_v30, %v21316_v61  ;;  %22419 = vst [vmem:[#allocation81_spill] sm:$0xff] %v17522_v20 }
 0x369   : > { %4129 = vst [vmem:[#allocation2 + $0xc0] sm:$0xf0] %v4124_v28  ;;  %v3961_v41 = vpop.permute.xlu0 %3960  ;;  %v17421_v28 = vsub.f32 %v17346_v23, %v21309_v2 }
 0x36a   : > { %v3965_v46 = vsel %vm3964_vm5, %v17269_v11, %v3961_v41  ;;  %v3966_v63 = vsel %vm3964_vm5, %v3961_v41, %v17179_v50  ;;  %v17377_v47 = vpack.c.bf16 %v4865_v9, %v4862_v39  ;;  %v4137_v4 = vld [vmem:[#allocation2 + $0x20] sm:$0xff]  ;;  %v4136_v57 = vld [vmem:[#allocation2 + $0x18] sm:$0xff]  ;;  %v17383_v50 = vsub.f32 %v4156_v5, %v4865_v9 }
 0x36b   : > { %3970 = vst [vmem:[#allocation2 + $0x48] sm:$0xf] %v3965_v46  ;;  %3971 = vst [vmem:[#allocation2 + $0x50] sm:$0xf] %v3966_v63  ;;  %v4174_v25 = vand.u32 4294901760, %v4137_v4  ;;  %v4176_v38 = vand.u32 4294901760, %v4136_v57  ;;  %v17432_v46 = vsub.f32 %v17341_v60, %v21310_v51 }
 0x36c   : > { %v4159_v52 = vld [vmem:[#allocation2 + $0xd0] sm:$0xff]  ;;  %13762 = vmatpush3.bf16.msra.mxu1 %v17377_v47  ;;  %v4939_v11 = vand.u32 4294901760, %v4938_v0  ;;  %v4946_v9 = vand.u32 4294901760, %v4945_v26  ;;  %v21312_v41 = vand.u32 4294901760, %v17391_v3 }
 0x36d   : > { %v3990_v24 = vpop.permute.xlu0 %3989  ;;  %v17395_v12 = vpack.c.bf16 %v4174_v25, %v4170_v45  ;;  %12657 = vmatprep.subr.mxu1 %v22206_v1  ;;  %v17400_v5 = vpack.c.bf16 %v4176_v38, %v4172_v37  ;;  %v17407_v0 = vand.u32 4294901760, %v4159_v52  ;;  %v4953_v45 = vand.u32 4294901760, %v4952_v42 }
 0x36e   : > { %v3994_v19 = vsel %vm3993_vm6, %v17273_v49, %v3990_v24  ;;  %v3995_v29 = vsel %vm3993_vm6, %v3990_v24, %v17185_v54  ;;  %v13764_v53 = vpack.c.bf16 %v4939_v11, %v4932_v43  ;;  %v4140_v49 = vld [vmem:[#allocation2 + $0x38] sm:$0xff]  ;;  %v17415_v37 = vld [vmem:[#allocation2 + $0x30] sm:$0xff]  ;;  %v21311_v54 = vand.u32 4294901760, %v17383_v50 }
 0x36f   : > { %22413 = vst [vmem:[#allocation63_spill] sm:$0xff] %v17395_v12  ;;  %22414 = vst [vmem:[#allocation64_spill] sm:$0xff] %v17400_v5  ;;  %13656 = vmatprep.subr.bf16.mxu0 %v17395_v12  ;;  %v17435_v63 = vsub.f32 %v4159_v52, %v17407_v0  ;;  %v4967_v42 = vand.u32 4294901760, %v4966_v7  ;;  %v4178_v24 = vand.u32 4294901760, %v4140_v49  ;;  %v17447_v2 = vsub.f32 %v4136_v57, %v4176_v38  ;;  %v17639_v12 = vld [vmem:[#allocation6 + $0x48] sm:$0xff] }
 0x370   : > { %3999 = vst [vmem:[#allocation2 + $0x60] sm:$0xf] %v3994_v19  ;;  %4000 = vst [vmem:[#allocation2 + $0x68] sm:$0xf] %v3995_v29  ;;  %13658 = vmatpush1.bf16.msra.mxu0 %v17400_v5  ;;  %12658 = vmatpush3.msra.mxu1 %v17407_v0  ;;  %v4180_v19 = vand.u32 4294901760, %v17415_v37  ;;  %v4980_v7 = vsub.f32 %v17383_v50, %v21311_v54  ;;  %v4973_v51 = vsub.f32 %v17391_v3, %v21312_v41 }
 0x371   : > { %13763 = vmatprep.subr.bf16.mxu1 %v21331_v35  ;;  %v4019_v39 = vpop.permute.xlu0 %4018  ;;  %12660 = vmatmul.mubr.f32.vlgmr.msra.gmra.mrb[16].mxu1 %v17380_v10  ;;  %v21320_v54 = vand.u32 4294901760, %v17435_v63  ;;  %22443 = vst [vmem:[#allocation37_spill] sm:$0xff] %v17639_v12 }
 0x372   : > { %v4023_v55 = vsel %vm4022_vm7, %v17280_v16, %v4019_v39  ;;  %v4024_v43 = vsel %vm4022_vm7, %v4019_v39, %v17189_v40  ;;  %13765 = vmatpush3.bf16.msra.mxu1 %v13764_v53  ;;  %v4143_v11 = vld [vmem:[#allocation2 + $0x50] sm:$0xff]  ;;  %v4142_v26 = vld [vmem:[#allocation2 + $0x48] sm:$0xff]  ;;  %12680 = vmatprep.mubr.msk.f32.mxu1 %vm15296_vm1, %v22206_v1  ;;  %v17445_v16 = vsub.f32 %v4137_v4, %v4174_v25  ;;  %v4974_v56 = vand.u32 4294901760, %v4973_v51 }
 0x373   : > { %4028 = vst [vmem:[#allocation2 + $0x78] sm:$0xf] %v4023_v55  ;;  %4029 = vst [vmem:[#allocation2 + $0x80] sm:$0xf] %v4024_v43  ;;  %13766 = vmatprep.subr.bf16.mxu1 %v21331_v35  ;;  %v4182_v52 = vand.u32 4294901760, %v4143_v11  ;;  %v4184_v29 = vand.u32 4294901760, %v4142_v26  ;;  %v13767_v40 = vpack.c.bf16 %v4953_v45, %v4946_v9 }
 0x374   : > { %v4960_v43 = vand.u32 4294901760, %v4959_v32 }
 0x375   : > { %v4048_v53 = vpop.permute.xlu0 %4047  ;;  %v17452_v39 = vpack.c.bf16 %v4182_v52, %v4178_v24  ;;  %v17454_v55 = vpack.c.bf16 %v4184_v29, %v4180_v19 }
 0x376   : > { %v4052_v4 = vsel %vm4051_vm8, %v17289_v17, %v4048_v53  ;;  %v4053_v57 = vsel %vm4051_vm8, %v4048_v53, %v17193_v31  ;;  %13768 = vmatpush3.bf16.msra.mxu1 %v13767_v40  ;;  %v13770_v45 = vpack.c.bf16 %v4967_v42, %v4960_v43  ;;  %v13776_v17 = vpack.c.bf16 %v17308_v33, %v17306_v59 }
 0x377   : > { %22415 = vst [vmem:[#allocation69_spill] sm:$0xff] %v17452_v39  ;;  %22416 = vst [vmem:[#allocation70_spill] sm:$0xff] %v17454_v55  ;;  %13660 = vmatprep.subr.bf16.mxu0 %v17452_v39  ;;  %13769 = vmatprep.subr.bf16.mxu1 %v21331_v35  ;;  %v4146_v9 = vld [vmem:[#allocation2 + $0x68] sm:$0xff]  ;;  %v4145_v32 = vld [vmem:[#allocation2 + $0x60] sm:$0xff]  ;;  %v17472_v40 = vsub.f32 %v4143_v11, %v4182_v52  ;;  %v4981_v53 = vand.u32 4294901760, %v4980_v7  ;;  %v17477_v42 = vsub.f32 %v4140_v49, %v4178_v24 }
 0x378   : > { %4057 = vst [vmem:[#allocation2 + $0x90] sm:$0xf] %v4052_v4  ;;  %4058 = vst [vmem:[#allocation2 + $0x98] sm:$0xf] %v4053_v57  ;;  %13662 = vmatpush1.bf16.msra.mxu0 %v17454_v55  ;;  %v21318_v4 = vand.u32 4294901760, %v17445_v16  ;;  %v21319_v57 = vand.u32 4294901760, %v17447_v2  ;;  %v17479_v43 = vsub.f32 %v4142_v26, %v4184_v29  ;;  %v17488_v49 = vsub.f32 %v17415_v37, %v4180_v19 }
 0x379   : > { %v4077_v41 = vpop.permute.xlu0 %4076  ;;  %v4186_v58 = vand.u32 4294901760, %v4146_v9  ;;  %v4188_v15 = vand.u32 4294901760, %v4145_v32  ;;  %v13773_v24 = vpack.c.bf16 %v4981_v53, %v4974_v56  ;;  %v17505_v19 = vld [vmem:[#allocation6 + $0x8] sm:$0xff] }
 0x37a   : > { %v4081_v11 = vsel %vm4080_vm9, %v17299_v44, %v4077_v41  ;;  %v4082_v52 = vsel %vm4080_vm9, %v4077_v41, %v17197_v27  ;;  %13771 = vmatpush3.bf16.msra.mxu1 %v13770_v45  ;;  %v4149_v7 = vld [vmem:[#allocation2 + $0x80] sm:$0xff]  ;;  %v4148_v61 = vld [vmem:[#allocation2 + $0x78] sm:$0xff]  ;;  %v4987_v44 = vsub.f32 %v17435_v63, %v21320_v54  ;;  %v17497_v27 = vsub.f32 %v17445_v16, %v21318_v4 }
 0x37b   : > { %4086 = vst [vmem:[#allocation2 + $0xa8] sm:$0xf] %v4081_v11  ;;  %4087 = vst [vmem:[#allocation2 + $0xb0] sm:$0xf] %v4082_v52  ;;  %13772 = vmatprep.subr.bf16.mxu1 %v21331_v35  ;;  %v4190_v51 = vand.u32 4294901760, %v4149_v7  ;;  %v4192_v26 = vand.u32 4294901760, %v4148_v61  ;;  %v17502_v37 = vsub.f32 %v17447_v2, %v21319_v57  ;;  %v17517_v4 = vsub.f32 %v4146_v9, %v4186_v58 }
 0x37c   : > { %v21322_v41 = vand.u32 4294901760, %v17472_v40  ;;  %v17519_v57 = vsub.f32 %v4145_v32, %v4188_v15  ;;  %v21323_v14 = vand.u32 4294901760, %v17479_v43 }
 0x37d   : > { %v4106_v29 = vpop.permute.xlu0 %4105  ;;  %v17507_v45 = vpack.c.bf16 %v4190_v51, %v4186_v58  ;;  %v17509_v11 = vsub.f32 %v4149_v7, %v4190_v51  ;;  %v17511_v56 = vpack.c.bf16 %v4192_v26, %v4188_v15  ;;  %v17513_v53 = vsub.f32 %v4148_v61, %v4192_v26 }
 0x37e   : > { %v4111_v52 = vsel %vm4109_vm12, %v4106_v29, %v17201_v34  ;;  %13774 = vmatpush3.bf16.msra.mxu1 %v13773_v24  ;;  %v4988_v61 = vand.u32 4294901760, %v4987_v44  ;;  %v21324_v7 = vand.u32 4294901760, %v17477_v42  ;;  %v4303_v32 = vsub.f32 %v17472_v40, %v21322_v41 }
 0x37f   : > { %22417 = vst [vmem:[#allocation75_spill] sm:$0xff] %v17507_v45  ;;  %22418 = vst [vmem:[#allocation76_spill] sm:$0xff] %v17511_v56  ;;  %v4152_v54 = vld [vmem:[#allocation2 + $0x98] sm:$0xff]  ;;  %13664 = vmatprep.subr.bf16.mxu0 %v17507_v45  ;;  %12678 = vmatprep.subr.mxu1 %v22206_v1  ;;  %v4151_v9 = vld [vmem:[#allocation2 + $0x90] sm:$0xff]  ;;  %v4280_v24 = vand.u32 4294901760, %v17497_v27  ;;  %v4309_v41 = vsub.f32 %v17479_v43, %v21323_v14  ;;  %v22421_v51 = vand.u32 4294901760, %v17509_v11 }
 0x380   : > { %4116 = vst [vmem:[#allocation2 + $0xc8] sm:$0xf] %v4111_v52  ;;  %13666 = vmatpush1.bf16.msra.mxu0 %v17511_v56  ;;  %v4194_v15 = vand.u32 4294901760, %v4152_v54  ;;  %v4286_v52 = vand.u32 4294901760, %v17502_v37  ;;  %v4196_v37 = vand.u32 4294901760, %v4151_v9  ;;  %v22426_v55 = vand.u32 4294901760, %v17517_v4 }
 0x381   : > { %v4104_v44 = vpop.permute.xlu0 %4103  ;;  %v4327_v26 = vsub.f32 %v17509_v11, %v22421_v51  ;;  %v4310_v45 = vand.u32 4294901760, %v4309_v41  ;;  %v22428_v41 = vpack.c.bf16 %v17331_v18, %v17324_v30  ;;  %v17602_v18 = vld [vmem:[#allocation6 + $0x18] sm:$0xff] }
 0x382   : > { %v4110_v38 = vsel %vm4109_vm12, %v4104_v44, %v4106_v29  ;;  %12679 = vmatpush3.msra.mxu1 %v4988_v61  ;;  %v4155_v25 = vld [vmem:[#allocation2 + $0xb0] sm:$0xff]  ;;  %v4154_v31 = vld [vmem:[#allocation2 + $0xa8] sm:$0xff]  ;;  %v4291_v29 = vsub.f32 %v17477_v42, %v21324_v7  ;;  %v17554_v61 = vsub.f32 %v4152_v54, %v4194_v15  ;;  %v4304_v44 = vand.u32 4294901760, %v4303_v32  ;;  %22432 = vst [vmem:[#allocation93_spill] sm:$0xff] %v17602_v18 }
 0x383   : > { %4115 = vst [vmem:[#allocation2 + $0xc0] sm:$0xf] %v4110_v38  ;;  %13775 = vmatprep.subr.bf16.mxu1 %v21331_v35  ;;  %12681 = vmatmul.mubr.f32.vlgmr.msra.gmra.mrb[16].mxu1 %v17293_v62  ;;  %v4198_v27 = vand.u32 4294901760, %v4155_v25  ;;  %v4200_v58 = vand.u32 4294901760, %v4154_v31  ;;  %v22420_v38 = vand.u32 4294901760, %v17488_v49 }
 0x384   : > { %13777 = vmatpush3.bf16.msra.mxu1 %v13776_v17  ;;  %12701 = vmatprep.mubr.msk.f32.mxu1 %vm15296_vm1, %v22206_v1  ;;  %v22424_v17 = vand.u32 4294901760, %v17513_v53 }
 0x385   : > { %v4297_v14 = vsub.f32 %v17488_v49, %v22420_v38  ;;  %v17564_v34 = vpack.c.bf16 %v4198_v27, %v4194_v15  ;;  %v17566_v7 = vsub.f32 %v4155_v25, %v4198_v27  ;;  %13778 = vmatprep.subr.bf16.mxu1 %v21331_v35  ;;  %v17569_v54 = vpack.c.bf16 %v4200_v58, %v4196_v37  ;;  %v17574_v38 = vld [vmem:[#allocation6] sm:$0xff] }
 0x386   : > { %v4333_v32 = vsub.f32 %v17513_v53, %v22424_v17  ;;  %22425 = vst [vmem:[#allocation88_spill] sm:$0xff] %v17574_v38  ;;  %v17576_v56 = vsub.f32 %v4154_v31, %v4200_v58  ;;  %v4315_v15 = vsub.f32 %v17517_v4, %v22426_v55  ;;  %v22427_v25 = vand.u32 4294901760, %v17519_v57 }
 0x387   : > { %22422 = vst [vmem:[#allocation82_spill] sm:$0xff] %v17564_v34  ;;  %22423 = vst [vmem:[#allocation87_spill] sm:$0xff] %v17569_v54  ;;  %v4158_v51 = vld [vmem:[#allocation2 + $0xc8] sm:$0xff]  ;;  %13668 = vmatprep.subr.bf16.mxu0 %v17564_v34  ;;  %v17585_v35 = vsub.f32 %v4151_v9, %v4196_v37  ;;  %v4292_v17 = vand.u32 4294901760, %v4291_v29  ;;  %v22429_v55 = vand.u32 4294901760, %v17432_v46  ;;  %v4298_v34 = vand.u32 4294901760, %v4297_v14 }
 0x388   : > { %v4321_v27 = vsub.f32 %v17519_v57, %v22427_v25  ;;  %v17587_v39 = vand.u32 4294901760, %v4158_v51  ;;  %13670 = vmatpush1.bf16.msra.mxu0 %v17569_v54  ;;  %13780 = vmatpush3.bf16.msra.mxu1 %v22428_v41  ;;  %v22430_v25 = vand.u32 4294901760, %v17421_v28  ;;  %v21346_v9 = vand.u32 4294901760, %v17574_v38  ;;  %v17605_v14 = vld [vmem:[#allocation6 + $0x38] sm:$0xff] }
 0x389   : > { %v13671_v58 = vpack.c.bf16 %v4280_v24, %v22429_v55  ;;  %v22431_v37 = vmov 0.0|0.0   ;;  %v13675_v29 = vpack.c.bf16 %v4304_v44, %v4292_v17  ;;  %v4328_v31 = vand.u32 4294901760, %v4327_v26  ;;  %22433 = vst [vmem:[#allocation19_spill] sm:$0xff] %v17605_v14  ;;  %v17616_v17 = vld [vmem:[#allocation6 + $0x50] sm:$0xff] }
 0x38a   : > { %v13673_v5 = vpack.c.bf16 %v4286_v52, %v22430_v25  ;;  %4203 = vmatprep.subr.mxu0 %v17587_v39  ;;  %13781 = vmatprep.subr.bf16.mxu1 %v22431_v37  ;;  %v4334_v54 = vand.u32 4294901760, %v4333_v32  ;;  %v4157_v41 = vld [vmem:[#allocation2 + $0xc0] sm:$0xff]  ;;  %v13677_v46 = vpack.c.bf16 %v4310_v45, %v4298_v34  ;;  %v4316_v24 = vand.u32 4294901760, %v4315_v15  ;;  %22435 = vst [vmem:[#allocation24_spill] sm:$0xff] %v17616_v17 }
 0x38b   : > { %v4322_v55 = vand.u32 4294901760, %v4321_v27  ;;  %v17607_v52 = vand.u32 4294901760, %v4157_v41  ;;  %v22434_v25 = vand.u32 4294901760, %v17566_v7  ;;  %v17614_v32 = vsub.f32 %v4158_v51, %v17587_v39  ;;  %v17618_v45 = vld [vmem:[#allocation6 + $0x30] sm:$0xff] }
 0x38c   : > { %22436 = vst [vmem:[#allocation25_spill] sm:$0xff] %v17618_v45  ;;  %v22437_v34 = vpack.c.bf16 %v17348_v6, %v17369_v22  ;;  %v22438_v15 = vand.u32 4294901760, %v17505_v19  ;;  %v17637_v28 = vsub.f32 %v17574_v38, %v21346_v9  ;;  %v22445_v9 = vand.u32 4294901760, %v17576_v56 }
 0x38d   : > { %v4351_v44 = vsub.f32 %v17566_v7, %v22434_v25  ;;  %v22440_v25 = vand.u32 4294901760, %v17522_v20  ;;  %4205 = vmatpush1.msra.mxu0 %v17607_v52 }
 0x38e   : > { %13783 = vmatpush3.bf16.msra.mxu1 %v22437_v34  ;;  %v17626_v27 = vsub.f32 %v17505_v19, %v22438_v15  ;;  %22442 = vst [vmem:[#allocation36_spill] sm:$0xff] %v17637_v28  ;;  %v13679_v34 = vpack.c.bf16 %v4328_v31, %v4316_v24  ;;  %v17643_v15 = vpack.c.bf16 %v4334_v54, %v4322_v55  ;;  %v22446_v31 = vand.u32 4294901760, %v17602_v18  ;;  %v17676_v24 = vld [vmem:[#allocation6 + $0x60] sm:$0xff]  ;;  %v17678_v55 = vld [vmem:[#allocation6 + $0x78] sm:$0xff] }
 0x38f   : > { %v17631_v26 = vsub.f32 %v17522_v20, %v22440_v25  ;;  %13784 = vmatprep.subr.bf16.mxu1 %v22431_v37  ;;  %13672 = vmatprep.subr.bf16.mxu0 %v13671_v58  ;;  %v17655_v28 = vsub.f32 %v17576_v56, %v22445_v9  ;;  %v4352_v58 = vand.u32 4294901760, %v4351_v44  ;;  %v22449_v9 = vand.u32 4294901760, %v17605_v14  ;;  %v17728_v20 = vld [vmem:[#allocation6 + $0xc8] sm:$0xff] }
 0x390   : > { %22439 = vst [vmem:[#allocation29_spill] sm:$0xff] %v17626_v27  ;;  %v22444_v27 = vand.u32 4294901760, %v17554_v61  ;;  %4258 = vmatmul.mubr.f32.vlgmr.msra.gmra.mrb[2].mxu0 %v17380_v10  ;;  %v17660_v54 = vsub.f32 %v17602_v18, %v22446_v31  ;;  %v22448_v10 = vand.u32 4294901760, %v17585_v35  ;;  %v17719_v18 = vld [vmem:[#allocation6 + $0xa8] sm:$0xff] }
 0x391   : > { %22441 = vst [vmem:[#allocation31_spill] sm:$0xff] %v17631_v26  ;;  %v17649_v26 = vld [vmem:[#allocation6 + $0x68] sm:$0xff]  ;;  %13674 = vmatpush1.bf16.msra.mxu0 %v13673_v5  ;;  %4418 = vmatprep.mubr.f32.mxu0 %v22206_v1  ;;  %v17673_v38 = vsub.f32 %v17605_v14, %v22449_v9  ;;  %v22451_v5 = vpack.c.bf16 %v17383_v50, %v17391_v3  ;;  %v22454_v9 = vand.u32 4294901760, %v17618_v45  ;;  %v17695_v14 = vld [vmem:[#allocation6 + $0x98] sm:$0xff] }
 0x392   : > { %v4339_v25 = vsub.f32 %v17554_v61, %v22444_v27  ;;  %22447 = vst [vmem:[#allocation109_spill] sm:$0xff] %v17660_v54  ;;  %v17664_v27 = vld [vmem:[#allocation6 + $0x80] sm:$0xff]  ;;  %v4345_v51 = vsub.f32 %v17585_v35, %v22448_v10  ;;  %13676 = vmatprep.subr.bf16.mxu0 %v13675_v29  ;;  %v22452_v10 = vand.u32 4294901760, %v17616_v17  ;;  %v17697_v29 = vld [vmem:[#allocation6 + $0xb0] sm:$0xff] }
 0x393   : > { %22450 = vst [vmem:[#allocation114_spill] sm:$0xff] %v17673_v38  ;;  %13786 = vmatpush3.bf16.msra.mxu1 %v22451_v5  ;;  %v17692_v31 = vsub.f32 %v17618_v45, %v22454_v9  ;;  %22456 = vst [vmem:[#allocation48_spill] sm:$0xff] %v17697_v29  ;;  %v17700_v5 = vsub.f32 %v4157_v41, %v17607_v52  ;;  %v21360_v9 = vand.u32 4294901760, %v17664_v27  ;;  %v4358_v38 = vand.u32 4294901760, %v17655_v28  ;;  %v17732_v41 = vld [vmem:[#allocation6 + $0xc0] sm:$0xff] }
 0x394   : > { %v17687_v54 = vsub.f32 %v17616_v17, %v22452_v10  ;;  %12699 = vmatprep.subr.mxu1 %v22206_v1  ;;  %v4340_v44 = vand.u32 4294901760, %v4339_v25  ;;  %v22457_v10 = vand.u32 4294901760, %v17639_v12  ;;  %v22459_v45 = vand.u32 4294901760, %v17649_v26 }
 0x395   : > { %22455 = vst [vmem:[#allocation43_spill] sm:$0xff] %v17692_v31  ;;  %v17709_v31 = vld [vmem:[#allocation6 + $0x90] sm:$0xff]  ;;  %v21363_v25 = vand.u32 4294901760, %v17678_v55  ;;  %13678 = vmatpush1.bf16.msra.mxu0 %v13677_v46  ;;  %v22462_v46 = vand.u32 4294901760, %v17614_v32  ;;  %v21369_v28 = vand.u32 4294901760, %v17719_v18 }
 0x396   : > { %22453 = vst [vmem:[#allocation42_spill] sm:$0xff] %v17687_v54  ;;  %v17706_v54 = vsub.f32 %v17639_v12, %v22457_v10  ;;  %v17715_v17 = vsub.f32 %v17649_v26, %v22459_v45  ;;  %v13683_v10 = vpack.c.bf16 %v4352_v58, %v4340_v44  ;;  %v17730_v45 = vld [vmem:[#allocation6 + $0xe0] sm:$0xff]  ;;  %13680 = vmatprep.subr.bf16.mxu0 %v13679_v34  ;;  %v22463_v44 = vand.u32 4294901760, %v17676_v24 }
 0x397   : > { %12700 = vmatpush3.msra.mxu1 %v17435_v63  ;;  %v4363_v58 = vsub.f32 %v17614_v32, %v22462_v46  ;;  %v17746_v12 = vsub.f32 %v17678_v55, %v21363_v25  ;;  %v22466_v46 = vand.u32 4294901760, %v17695_v14 }
 0x398   : > { %22458 = vst [vmem:[#allocation49_spill] sm:$0xff] %v17706_v54  ;;  %22460 = vst [vmem:[#allocation54_spill] sm:$0xff] %v17715_v17  ;;  %v17724_v54 = vsub.f32 %v17664_v27, %v21360_v9  ;;  %v17741_v9 = vsub.f32 %v17676_v24, %v22463_v44  ;;  %13787 = vmatprep.subr.bf16.mxu1 %v22431_v37  ;;  %12702 = vmatmul.mubr.f32.vlgmr.msra.gmra.mrb[16].mxu1 %v17311_v8  ;;  %v5542_v17 = vand.u32 4294901760, %v17732_v41 }
 0x399   : > { %22465 = vst [vmem:[#allocation61_spill] sm:$0xff] %v17746_v12  ;;  %v17757_v44 = vsub.f32 %v17695_v14, %v22466_v46  ;;  %13789 = vmatpush3.bf16.msra.mxu1 %v17275_v13  ;;  %12722 = vmatprep.mubr.msk.f32.mxu1 %vm15296_vm1, %v22206_v1  ;;  %v22470_v12 = vand.u32 4294901760, %v17709_v31  ;;  %v21371_v46 = vand.u32 4294901760, %v17728_v20 }
 0x39a   : > { %22461 = vst [vmem:[#allocation55_spill] sm:$0xff] %v17724_v54  ;;  %22464 = vst [vmem:[#allocation59_spill] sm:$0xff] %v17741_v9  ;;  %v17749_v54 = vld [vmem:[#allocation6 + $0xd8] sm:$0xff]  ;;  %v22468_v9 = vand.u32 4294901760, %v17697_v29  ;;  %13682 = vmatpush1.bf16.msra.mxu0 %v17643_v15  ;;  %13790 = vmatprep.subr.bf16.mxu1 %v22431_v37 }
 0x39b   : > { %22467 = vst [vmem:[#allocation66_spill] sm:$0xff] %v17757_v44  ;;  %v17771_v34 = vsub.f32 %v17709_v31, %v22470_v12  ;;  %v21373_v44 = vand.u32 4294901760, %v17730_v45  ;;  %13684 = vmatprep.subr.bf16.mxu0 %v13683_v10  ;;  %v17787_v12 = vsub.f32 %v17728_v20, %v21371_v46 }
 0x39c   : > { %v17762_v25 = vsub.f32 %v17697_v29, %v22468_v9  ;;  %v4346_v9 = vand.u32 4294901760, %v4345_v51  ;;  %v5546_v29 = vand.u32 4294901760, %v17749_v54  ;;  %v17797_v51 = vsub.f32 %v17732_v41, %v5542_v17 }
 0x39d   : > { %22471 = vst [vmem:[#allocation71_spill] sm:$0xff] %v17771_v34  ;;  %22473 = vst [vmem:[#allocation78_spill] sm:$0xff] %v17787_v12  ;;  %v17792_v15 = vsub.f32 %v17730_v45, %v21373_v44  ;;  %13792 = vmatpush3.bf16.msra.mxu1 %v17291_v21  ;;  %v4364_v12 = vand.u32 4294901760, %v4363_v58  ;;  %v13693_v58 = vpack.c.bf16 %v17479_v43, %v17488_v49 }
 0x39e   : > { %22469 = vst [vmem:[#allocation67_spill] sm:$0xff] %v17762_v25  ;;  %v17781_v25 = vsub.f32 %v17719_v18, %v21369_v28  ;;  %22475 = vst [vmem:[#allocation83_spill] sm:$0xff] %v17797_v51  ;;  %v13685_v28 = vpack.c.bf16 %v4358_v38, %v4346_v9  ;;  %v17805_v46 = vsub.f32 %v17749_v54, %v5546_v29  ;;  %13793 = vmatprep.subr.bf16.mxu1 %v22431_v37  ;;  %v5435_v54 = vld [vmem:[#allocation6 + $0x138] sm:$0xff] }
 0x39f   : > { %22474 = vst [vmem:[#allocation79_spill] sm:$0xff] %v17792_v15  ;;  %v13687_v38 = vpack.c.bf16 %v17445_v16, %v17341_v60  ;;  %v22478_v9 = vand.u32 4294901760, %v17306_v59  ;;  %v22480_v59 = vand.u32 4294901760, %v17324_v30  ;;  %v22485_v30 = vld [vmem:[#allocation63_spill] sm:$0xff] }
 0x3a0   : > { %22472 = vst [vmem:[#allocation73_spill] sm:$0xff] %v17781_v25  ;;  %v22476_v25 = vand.u32 4294901760, %v17700_v5  ;;  %22477 = vst [vmem:[#allocation85_spill] sm:$0xff] %v17805_v46  ;;  %13686 = vmatpush1.bf16.msra.mxu0 %v13685_v28  ;;  %v13691_v28 = vpack.c.bf16 %v17472_v40, %v17477_v42 }
 0x3a1   : > { %4365 = vmatprep.subr.mxu0 %v4364_v12  ;;  %13795 = vmatpush3.bf16.msra.mxu1 %v17322_v48  ;;  %v22479_v12 = vand.u32 4294901760, %v17308_v33  ;;  %v22481_v33 = vld [vmem:[#allocation58_spill] sm:$0xff] }
 0x3a2   : > { %v4369_v10 = vsub.f32 %v17700_v5, %v22476_v25  ;;  %v13689_v25 = vpack.c.bf16 %v17447_v2, %v17346_v23  ;;  %13796 = vmatprep.subr.bf16.mxu1 %v22431_v37 }
 0x3a4   : > { %v4370_v44 = vand.u32 4294901760, %v4369_v10  ;;  %v13800_v10 = vpack.c.bf16 %v22479_v12, %v22478_v9  ;;  %v22483_v9 = vand.u32 4294901760, %v17369_v22  ;;  %v22484_v12 = vand.u32 4294901760, %v17348_v6  ;;  %v22489_v6 = vld [vmem:[#allocation69_spill] sm:$0xff]  ;;  %v22490_v22 = vld [vmem:[#allocation70_spill] sm:$0xff] }
 0x3a5   : > { %13798 = vmatpush3.bf16.msra.mxu1 %v17377_v47 }
 0x3a6   : > { %4371 = vmatpush1.msra.mxu0 %v4370_v44  ;;  %12720 = vmatprep.subr.mxu1 %v22206_v1  ;;  %v13695_v44 = vpack.c.bf16 %v17509_v11, %v17517_v4 }
 0x3a7   : > { %13688 = vmatprep.subr.bf16.mxu0 %v13687_v38  ;;  %4420 = vmatmul.mubr.f32.vlgmr.msra.gmra.mrb[2].mxu0 %v17293_v62  ;;  %v13697_v38 = vpack.c.bf16 %v17513_v53, %v17519_v57 }
 0x3a8   : > { %13690 = vmatpush1.bf16.msra.mxu0 %v13689_v25  ;;  %4526 = vmatprep.mubr.f32.mxu0 %v22206_v1  ;;  %v13699_v25 = vpack.c.bf16 %v17566_v7, %v17554_v61 }
 0x3a9   : > { %13692 = vmatprep.subr.bf16.mxu0 %v13691_v28  ;;  %12721 = vmatpush3.msra.mxu1 %v17407_v0  ;;  %v22482_v28 = vand.u32 4294901760, %v22481_v33  ;;  %v22488_v33 = vld [vmem:[#allocation64_spill] sm:$0xff] }
 0x3aa   : > { %13799 = vmatprep.subr.bf16.mxu1 %v22431_v37  ;;  %12723 = vmatmul.mubr.f32.vlgmr.msra.gmra.mrb[16].mxu1 %v17327_v36 }
 0x3ab   : > { %13801 = vmatpush3.bf16.msra.mxu1 %v13800_v10  ;;  %12743 = vmatprep.mubr.msk.f32.mxu1 %vm15296_vm1, %v22206_v1  ;;  %v13806_v10 = vpack.c.bf16 %v22484_v12, %v22483_v9  ;;  %v22498_v9 = vand.u32 4294901760, %v17346_v23  ;;  %v22499_v12 = vand.u32 4294901760, %v17447_v2  ;;  %v22502_v23 = vand.u32 4294901760, %v17488_v49 }
 0x3ac   : > { %13694 = vmatpush1.bf16.msra.mxu0 %v13693_v58  ;;  %13802 = vmatprep.subr.bf16.mxu1 %v22431_v37  ;;  %v13803_v58 = vpack.c.bf16 %v22482_v28, %v22480_v59  ;;  %v22491_v28 = vld [vmem:[#allocation75_spill] sm:$0xff]  ;;  %v22503_v2 = vand.u32 4294901760, %v17479_v43  ;;  %v22508_v43 = vand.u32 4294901760, %v17554_v61 }
 0x3ad   : > { %13696 = vmatprep.subr.bf16.mxu0 %v13695_v44  ;;  %v13701_v44 = vpack.c.bf16 %v17576_v56, %v17585_v35 }
 0x3af   : > { %13804 = vmatpush3.bf16.msra.mxu1 %v13803_v58  ;;  %v22495_v58 = vld [vmem:[#allocation87_spill] sm:$0xff] }
 0x3b0   : > { %13698 = vmatpush1.bf16.msra.mxu0 %v13697_v38  ;;  %13805 = vmatprep.subr.bf16.mxu1 %v22431_v37  ;;  %v22486_v38 = vand.u32 4294901760, %v17391_v3  ;;  %v22494_v3 = vld [vmem:[#allocation82_spill] sm:$0xff] }
 0x3b1   : > { %13700 = vmatprep.subr.bf16.mxu0 %v13699_v25  ;;  %v22487_v25 = vand.u32 4294901760, %v17383_v50  ;;  %v22493_v50 = vld [vmem:[#allocation76_spill] sm:$0xff] }
 0x3b3   : > { %13807 = vmatpush3.bf16.msra.mxu1 %v13806_v10  ;;  %v13809_v59 = vpack.c.bf16 %v22487_v25, %v22486_v38  ;;  %v22500_v10 = vand.u32 4294901760, %v17477_v42  ;;  %v22505_v42 = vand.u32 4294901760, %v17509_v11  ;;  %v22509_v25 = vand.u32 4294901760, %v17566_v7 }
 0x3b4   : > { %13702 = vmatpush1.bf16.msra.mxu0 %v13701_v44  ;;  %13808 = vmatprep.subr.bf16.mxu1 %v22431_v37 }
 0x3b5   : > { %4476 = vmatprep.subr.mxu0 %v17614_v32 }
 0x3b7   : > { %13810 = vmatpush3.bf16.msra.mxu1 %v13809_v59  ;;  %v13731_v59 = vpack.c.bf16 %v22509_v25, %v22508_v43  ;;  %v5432_v25 = vld [vmem:[#allocation6 + $0x120] sm:$0xff] }
 0x3b8   : > { %4479 = vmatpush1.msra.mxu0 %v17700_v5  ;;  %12741 = vmatprep.subr.mxu1 %v22206_v1 }
 0x3b9   : > { %13704 = vmatprep.subr.bf16.mxu0 %v22485_v30  ;;  %4529 = vmatmul.mubr.f32.vlgmr.msra.gmra.mrb[2].mxu0 %v17311_v8  ;;  %v22492_v8 = vand.u32 4294901760, %v17435_v63  ;;  %v22497_v63 = vand.u32 4294901760, %v17445_v16  ;;  %v13725_v16 = vpack.c.bf16 %v22503_v2, %v22502_v23 }
 0x3ba   : > { %13706 = vmatpush1.bf16.msra.mxu0 %v22488_v33  ;;  %4617 = vmatprep.mubr.f32.mxu0 %v22206_v1 }
 0x3bb   : > { %13708 = vmatprep.subr.bf16.mxu0 %v22489_v6  ;;  %12742 = vmatpush3.msra.mxu1 %v22492_v8  ;;  %v22525_v8 = vld [vmem:[#allocation24_spill] sm:$0xff] }
 0x3bc   : > { %13811 = vmatprep.subr.bf16.mxu1 %v22431_v37  ;;  %12744 = vmatmul.mubr.f32.vlgmr.msra.gmra.mrb[16].mxu1 %v17293_v62 }
 0x3bd   : > { %13813 = vmatpush3.bf16.msra.mxu1 %v17275_v13  ;;  %12764 = vmatprep.mubr.msk.f32.mxu1 %vm15296_vm1, %v22206_v1  ;;  %v22496_v13 = vand.u32 4294901760, %v17341_v60 }
 0x3be   : > { %13710 = vmatpush1.bf16.msra.mxu0 %v22490_v22  ;;  %13814 = vmatprep.subr.bf16.mxu1 %v22431_v37 }
 0x3bf   : > { %13712 = vmatprep.subr.bf16.mxu0 %v22491_v28  ;;  %v13719_v44 = vpack.c.bf16 %v22497_v63, %v22496_v13 }
 0x3c1   : > { %13816 = vmatpush3.bf16.msra.mxu1 %v17291_v21  ;;  %v13721_v21 = vpack.c.bf16 %v22499_v12, %v22498_v9  ;;  %v22534_v9 = vand.u32 4294901760, %v17664_v27  ;;  %v22544_v27 = vand.u32 4294901760, %v17719_v18  ;;  %v5427_v18 = vld [vmem:[#allocation6 + $0xf8] sm:$0xff] }
 0x3c2   : > { %13714 = vmatpush1.bf16.msra.mxu0 %v22493_v50  ;;  %13817 = vmatprep.subr.bf16.mxu1 %v22431_v37 }
 0x3c3   : > { %13716 = vmatprep.subr.bf16.mxu0 %v22494_v3 }
 0x3c5   : > { %13819 = vmatpush3.bf16.msra.mxu1 %v17322_v48  ;;  %v22501_v48 = vand.u32 4294901760, %v17472_v40  ;;  %v22507_v40 = vand.u32 4294901760, %v17513_v53  ;;  %v22513_v53 = vand.u32 4294901760, %v17700_v5 }
 0x3c6   : > { %13718 = vmatpush1.bf16.msra.mxu0 %v22495_v58  ;;  %13820 = vmatprep.subr.bf16.mxu1 %v22431_v37 }
 0x3c7   : > { %4568 = vmatprep.subr.mxu0 %v17587_v39  ;;  %v13723_v60 = vpack.c.bf16 %v22501_v48, %v22500_v10  ;;  %v22539_v10 = vand.u32 4294901760, %v17695_v14  ;;  %v22540_v48 = vld [vmem:[#allocation48_spill] sm:$0xff]  ;;  %v18004_v14 = vpack.c.bf16 %v5546_v29, %v5542_v17 }
 0x3c8   : > { %v5493_v17 = vld [vmem:[#allocation6 + $0x308] sm:$0xff] }
 0x3c9   : > { %13822 = vmatpush3.bf16.msra.mxu1 %v17377_v47  ;;  %v22506_v47 = vand.u32 4294901760, %v17519_v57  ;;  %v22512_v57 = vand.u32 4294901760, %v17614_v32  ;;  %v22518_v32 = vld [vmem:[#allocation88_spill] sm:$0xff]  ;;  %22549 = vst [vmem:[#allocation30_spill] sm:$0xff] %v18004_v14 }
 0x3ca   : > { %4570 = vmatpush1.msra.mxu0 %v17607_v52  ;;  %12762 = vmatprep.subr.mxu1 %v22206_v1  ;;  %v22519_v5 = vand.u32 4294901760, %v22518_v32 }
 0x3cb   : > { %13720 = vmatprep.subr.bf16.mxu0 %v13719_v44  ;;  %4621 = vmatmul.mubr.f32.vlgmr.msra.gmra.mrb[2].mxu0 %v17327_v36  ;;  %v22504_v36 = vand.u32 4294901760, %v17517_v4  ;;  %v13729_v49 = vpack.c.bf16 %v22507_v40, %v22506_v47  ;;  %v22510_v4 = vand.u32 4294901760, %v17585_v35  ;;  %v22514_v35 = vand.u32 4294901760, %v17505_v19  ;;  %v5433_v47 = vld [vmem:[#allocation6 + $0x128] sm:$0xff]  ;;  %v5436_v40 = vld [vmem:[#allocation6 + $0x140] sm:$0xff] }
 0x3cc   : > { %13722 = vmatpush1.bf16.msra.mxu0 %v13721_v21  ;;  %4745 = vmatprep.mubr.f32.mxu0 %v22206_v1  ;;  %v22533_v44 = vand.u32 4294901760, %v17649_v26  ;;  %v22543_v26 = vand.u32 4294901760, %v17709_v31  ;;  %v5430_v31 = vld [vmem:[#allocation6 + $0x110] sm:$0xff]  ;;  %v5556_v43 = vand.u32 4294901760, %v5433_v47  ;;  %v5560_v41 = vand.u32 4294901760, %v5436_v40 }
 0x3cd   : > { %13724 = vmatprep.subr.bf16.mxu0 %v13723_v60  ;;  %v13727_v38 = vpack.c.bf16 %v22505_v42, %v22504_v36  ;;  %12763 = vmatpush3.msra.mxu1 %v17407_v0  ;;  %v22511_v0 = vand.u32 4294901760, %v17576_v56  ;;  %v22515_v56 = vld [vmem:[#allocation81_spill] sm:$0xff]  ;;  %v22541_v60 = vand.u32 4294901760, %v22540_v48  ;;  %v5552_v42 = vand.u32 4294901760, %v5430_v31  ;;  %v5499_v48 = vld [vmem:[#allocation6 + $0x338] sm:$0xff] }
 0x3ce   : > { %12765 = vmatmul.mubr.f32.vlgmr.msra.gmra.mrb[16].mxu1 %v17293_v62  ;;  %v22516_v7 = vand.u32 4294901760, %v22515_v56  ;;  %v17969_v12 = vpack.c.bf16 %v22534_v9, %v22533_v44  ;;  %v17990_v2 = vpack.c.bf16 %v22544_v27, %v22543_v26  ;;  %v5426_v36 = vld [vmem:[#allocation6 + $0xf0] sm:$0xff]  ;;  %v18022_v32 = vsub.f32 %v5433_v47, %v5556_v43  ;;  %v5441_v44 = vld [vmem:[#allocation6 + $0x168] sm:$0xff] }
 0x3cf   : > { %6864 = vmatprep.mubr.f32.mxu1 %v22206_v1  ;;  %v13733_v11 = vpack.c.bf16 %v22511_v0, %v22510_v4  ;;  %v17983_v23 = vpack.c.bf16 %v22541_v60, %v22539_v10  ;;  %v18012_v4 = vsub.f32 %v5430_v31, %v5552_v42  ;;  %v5502_v60 = vld [vmem:[#allocation6 + $0x350] sm:$0xff]  ;;  %v5501_v31 = vld [vmem:[#allocation6 + $0x348] sm:$0xff]  ;;  %v6800_v47 = vand.u32 4294901760, %v5499_v48 }
 0x3d0   : > { %13726 = vmatpush1.bf16.msra.mxu0 %v13725_v16  ;;  %v17940_v61 = vpack.c.bf16 %v22516_v7, %v22514_v35  ;;  %22535 = vst [vmem:[#allocation102_spill] sm:$0xff] %v17969_v12  ;;  %22545 = vst [vmem:[#allocation18_spill] sm:$0xff] %v17990_v2  ;;  %v18020_v7 = vpack.c.bf16 %v5560_v41, %v5556_v43  ;;  %v5498_v26 = vld [vmem:[#allocation6 + $0x330] sm:$0xff]  ;;  %v5445_v43 = vld [vmem:[#allocation6 + $0x188] sm:$0xff] }
 0x3d1   : > { %13728 = vmatprep.subr.bf16.mxu0 %v13727_v38  ;;  %22542 = vst [vmem:[#allocation14_spill] sm:$0xff] %v17983_v23  ;;  %v5550_v38 = vand.u32 4294901760, %v5426_v36  ;;  %22552 = vst [vmem:[#allocation47_spill] sm:$0xff] %v18012_v4 }
 0x3d2   : > { %22517 = vst [vmem:[#allocation90_spill] sm:$0xff] %v17940_v61  ;;  %22556 = vst [vmem:[#allocation72_spill] sm:$0xff] %v18020_v7 }
 0x3d3   : > { %v18014_v0 = vsub.f32 %v5426_v36, %v5550_v38  ;;  %22557 = vst [vmem:[#allocation77_spill] sm:$0xff] %v18022_v32 }
 0x3d4   : > { %13730 = vmatpush1.bf16.msra.mxu0 %v13729_v49 }
 0x3d5   : > { %13732 = vmatprep.subr.bf16.mxu0 %v13731_v59  ;;  %22553 = vst [vmem:[#allocation53_spill] sm:$0xff] %v18014_v0 }
 0x3d8   : > { %13734 = vmatpush1.bf16.msra.mxu0 %v13733_v11  ;;  %v5496_v11 = vld [vmem:[#allocation6 + $0x320] sm:$0xff] }
 0x3d9   : > { %4694 = vmatprep.subr.mxu0 %v22512_v57  ;;  %v5492_v57 = vld [vmem:[#allocation6 + $0x300] sm:$0xff] }
 0x3dc   : > { %4698 = vmatpush1.msra.mxu0 %v22513_v53  ;;  %v5495_v53 = vld [vmem:[#allocation6 + $0x318] sm:$0xff] }
 0x3dd   : > { %13736 = vmatprep.subr.bf16.mxu0 %v22485_v30  ;;  %4747 = vmatmul.mubr.f32.vlgmr.msra.gmra.mrb[2].mxu0 %v17293_v62  ;;  %v22520_v30 = vld [vmem:[#allocation93_spill] sm:$0xff] }
 0x3de   : > { %13738 = vmatpush1.bf16.msra.mxu0 %v22488_v33  ;;  %4835 = vmatprep.mubr.f32.mxu0 %v22206_v1  ;;  %v22521_v33 = vand.u32 4294901760, %v22520_v30  ;;  %v18025_v30 = vsub.f32 %v5436_v40, %v5560_v41  ;;  %v6804_v40 = vand.u32 4294901760, %v5502_v60 }
 0x3df   : > { %13740 = vmatprep.subr.bf16.mxu0 %v22489_v6 }
 0x3e0   : > { %v17946_v6 = vpack.c.bf16 %v22521_v33, %v22519_v5  ;;  %v5439_v5 = vld [vmem:[#allocation6 + $0x158] sm:$0xff]  ;;  %22558 = vst [vmem:[#allocation84_spill] sm:$0xff] %v18025_v30  ;;  %v5558_v33 = vand.u32 4294901760, %v5432_v25 }
 0x3e2   : > { %13742 = vmatpush1.bf16.msra.mxu0 %v22490_v22  ;;  %22522 = vst [vmem:[#allocation91_spill] sm:$0xff] %v17946_v6  ;;  %v22523_v22 = vld [vmem:[#allocation19_spill] sm:$0xff] }
 0x3e3   : > { %13744 = vmatprep.subr.bf16.mxu0 %v22491_v28  ;;  %v22524_v28 = vand.u32 4294901760, %v22523_v22  ;;  %v5562_v22 = vand.u32 4294901760, %v5435_v54 }
 0x3e5   : > { %v18029_v9 = vpack.c.bf16 %v5562_v22, %v5558_v33 }
 0x3e6   : > { %13746 = vmatpush1.bf16.msra.mxu0 %v22493_v50  ;;  %v22526_v50 = vand.u32 4294901760, %v22525_v8  ;;  %v5442_v8 = vld [vmem:[#allocation6 + $0x170] sm:$0xff] }
 0x3e7   : > { %13748 = vmatprep.subr.bf16.mxu0 %v22494_v3  ;;  %22559 = vst [vmem:[#allocation89_spill] sm:$0xff] %v18029_v9 }
 0x3e8   : > { %v17952_v3 = vpack.c.bf16 %v22526_v50, %v22524_v28  ;;  %v6792_v28 = vand.u32 4294901760, %v5493_v17  ;;  %v6796_v50 = vand.u32 4294901760, %v5496_v11 }
 0x3ea   : > { %13750 = vmatpush1.bf16.msra.mxu0 %v22495_v58  ;;  %22527 = vst [vmem:[#allocation95_spill] sm:$0xff] %v17952_v3  ;;  %v22530_v58 = vld [vmem:[#allocation37_spill] sm:$0xff]  ;;  %v18035_v10 = vsub.f32 %v5493_v17, %v6792_v28  ;;  %v18037_v27 = vpack.c.bf16 %v6796_v50, %v6792_v28  ;;  %v6806_v17 = vand.u32 4294901760, %v5501_v31  ;;  %v18064_v28 = vsub.f32 %v5499_v48, %v6800_v47 }
 0x3eb   : > { %4786 = vmatprep.subr.mxu0 %v17587_v39  ;;  %v22528_v39 = vld [vmem:[#allocation25_spill] sm:$0xff]  ;;  %v22531_v13 = vand.u32 4294901760, %v22530_v58  ;;  %v5564_v58 = vand.u32 4294901760, %v5439_v5 }
 0x3ec   : > { %v22529_v19 = vand.u32 4294901760, %v22528_v39  ;;  %v6794_v39 = vand.u32 4294901760, %v5492_v57  ;;  %22562 = vst [vmem:[#allocation108_spill] sm:$0xff] %v18035_v10  ;;  %22563 = vst [vmem:[#allocation115_spill] sm:$0xff] %v18037_v27  ;;  %14208 = vmatprep.subr.bf16.mxu1 %v18037_v27 }
 0x3ed   : > { %22575 = vst [vmem:[#allocation113_spill] sm:$0xff] %v18064_v28 }
 0x3ee   : > { %4788 = vmatpush1.msra.mxu0 %v17607_v52  ;;  %v17962_v63 = vpack.c.bf16 %v22531_v13, %v22529_v19  ;;  %v22537_v52 = vand.u32 4294901760, %v17678_v55  ;;  %v22547_v55 = vand.u32 4294901760, %v17730_v45  ;;  %v5429_v45 = vld [vmem:[#allocation6 + $0x108] sm:$0xff]  ;;  %v6798_v19 = vand.u32 4294901760, %v5495_v53  ;;  %v5438_v13 = vld [vmem:[#allocation6 + $0x150] sm:$0xff] }
 0x3ef   : > { %4837 = vmatmul.mubr.f32.vlgmr.msra.gmra.mrb[2].mxu0 %v17293_v62  ;;  %13824 = vmatprep.subr.bf16.mxu0 %v17940_v61  ;;  %v22536_v62 = vand.u32 4294901760, %v17676_v24  ;;  %v22546_v24 = vand.u32 4294901760, %v17728_v20  ;;  %v5548_v20 = vand.u32 4294901760, %v5427_v18  ;;  %v5554_v49 = vand.u32 4294901760, %v5429_v45 }
 0x3f0   : > { %13826 = vmatpush1.bf16.msra.mxu0 %v17946_v6  ;;  %22532 = vst [vmem:[#allocation97_spill] sm:$0xff] %v17962_v63  ;;  %v18045_v36 = vsub.f32 %v5495_v53, %v6798_v19  ;;  %v5447_v53 = vld [vmem:[#allocation6 + $0x198] sm:$0xff] }
 0x3f1   : > { %13828 = vmatprep.subr.bf16.mxu0 %v17952_v3  ;;  %v17976_v21 = vpack.c.bf16 %v22537_v52, %v22536_v62  ;;  %v17997_v16 = vpack.c.bf16 %v22547_v55, %v22546_v24  ;;  %v18008_v29 = vpack.c.bf16 %v5552_v42, %v5548_v20  ;;  %v18010_v59 = vsub.f32 %v5427_v18, %v5548_v20 }
 0x3f2   : > { %v18016_v35 = vpack.c.bf16 %v5554_v49, %v5550_v38  ;;  %v18018_v56 = vsub.f32 %v5429_v45, %v5554_v49  ;;  %v18031_v62 = vsub.f32 %v5432_v25, %v5558_v33  ;;  %v18033_v52 = vsub.f32 %v5435_v54, %v5562_v22  ;;  %22567 = vst [vmem:[#allocation86_spill] sm:$0xff] %v18045_v36 }
 0x3f3   : > { %22538 = vst [vmem:[#allocation103_spill] sm:$0xff] %v17976_v21  ;;  %22548 = vst [vmem:[#allocation23_spill] sm:$0xff] %v17997_v16  ;;  %v18039_v24 = vsub.f32 %v5496_v11, %v6796_v50  ;;  %v18041_v55 = vpack.c.bf16 %v6798_v19, %v6794_v39  ;;  %v18043_v18 = vsub.f32 %v5492_v57, %v6794_v39  ;;  %v5568_v20 = vand.u32 4294901760, %v5442_v8  ;;  %v5448_v11 = vld [vmem:[#allocation6 + $0x1a0] sm:$0xff]  ;;  %v5446_v50 = vld [vmem:[#allocation6 + $0x190] sm:$0xff] }
 0x3f4   : > { %13830 = vmatpush1.bf16.msra.mxu0 %v17962_v63  ;;  %22550 = vst [vmem:[#allocation35_spill] sm:$0xff] %v18008_v29  ;;  %22551 = vst [vmem:[#allocation41_spill] sm:$0xff] %v18010_v59  ;;  %v18047_v42 = vsub.f32 %v5439_v5, %v5564_v58  ;;  %v5566_v45 = vand.u32 4294901760, %v5438_v13  ;;  %v5570_v38 = vand.u32 4294901760, %v5441_v44  ;;  %v6802_v49 = vand.u32 4294901760, %v5498_v26  ;;  %v5444_v57 = vld [vmem:[#allocation6 + $0x180] sm:$0xff] }
 0x3f5   : > { %13832 = vmatprep.subr.bf16.mxu0 %v17969_v12  ;;  %22554 = vst [vmem:[#allocation60_spill] sm:$0xff] %v18016_v35  ;;  %22555 = vst [vmem:[#allocation65_spill] sm:$0xff] %v18018_v56  ;;  %14210 = vmatpush1.bf16.msra.mxu1 %v18041_v55  ;;  %v18052_v41 = vpack.c.bf16 %v5568_v20, %v5564_v58  ;;  %v18054_v25 = vsub.f32 %v5442_v8, %v5568_v20  ;;  %v5449_v39 = vld [vmem:[#allocation6 + $0x1a8] sm:$0xff]  ;;  %v5576_v20 = vand.u32 4294901760, %v5448_v11 }
 0x3f6   : > { %22560 = vst [vmem:[#allocation96_spill] sm:$0xff] %v18031_v62  ;;  %22561 = vst [vmem:[#allocation101_spill] sm:$0xff] %v18033_v52  ;;  %v18056_v54 = vsub.f32 %v5438_v13, %v5566_v45  ;;  %v18058_v5 = vpack.c.bf16 %v5570_v38, %v5566_v45  ;;  %v18060_v33 = vsub.f32 %v5441_v44, %v5570_v38  ;;  %v5572_v44 = vand.u32 4294901760, %v5445_v43 }
 0x3f7   : > { %22564 = vst [vmem:[#allocation68_spill] sm:$0xff] %v18039_v24  ;;  %22565 = vst [vmem:[#allocation74_spill] sm:$0xff] %v18041_v55  ;;  %v18062_v22 = vpack.c.bf16 %v6804_v40, %v6800_v47  ;;  %v18067_v8 = vsub.f32 %v5502_v60, %v6804_v40  ;;  %v18069_v19 = vpack.c.bf16 %v6806_v17, %v6802_v49  ;;  %v5574_v48 = vand.u32 4294901760, %v5444_v57  ;;  %v5451_v60 = vld [vmem:[#allocation6 + $0x1b8] sm:$0xff] }
 0x3f8   : > { %13834 = vmatpush1.bf16.msra.mxu0 %v17976_v21  ;;  %22566 = vst [vmem:[#allocation80_spill] sm:$0xff] %v18043_v18  ;;  %22568 = vst [vmem:[#allocation92_spill] sm:$0xff] %v18047_v42  ;;  %v18071_v58 = vsub.f32 %v5498_v26, %v6802_v49  ;;  %v18073_v13 = vsub.f32 %v5501_v31, %v6806_v17  ;;  %v5578_v45 = vand.u32 4294901760, %v5447_v53  ;;  %v7384_v38 = vand.u32 4294901760, %v5446_v50  ;;  %v5454_v49 = vld [vmem:[#allocation6 + $0x1d0] sm:$0xff] }
 0x3f9   : > { %13836 = vmatprep.subr.bf16.mxu0 %v17983_v23  ;;  %22569 = vst [vmem:[#allocation12_spill] sm:$0xff] %v18052_v41  ;;  %22570 = vst [vmem:[#allocation13_spill] sm:$0xff] %v18054_v25  ;;  %14212 = vmatprep.subr.bf16.mxu1 %v18062_v22  ;;  %v7387_v47 = vand.u32 4294901760, %v5449_v39  ;;  %v18078_v40 = vpack.c.bf16 %v5576_v20, %v5572_v44  ;;  %v18080_v55 = vsub.f32 %v5445_v43, %v5572_v44  ;;  %v5450_v17 = vld [vmem:[#allocation6 + $0x1b0] sm:$0xff] }
 0x3fa   : > { %22571 = vst [vmem:[#allocation16_spill] sm:$0xff] %v18056_v54  ;;  %22572 = vst [vmem:[#allocation17_spill] sm:$0xff] %v18058_v5  ;;  %14214 = vmatpush1.bf16.msra.mxu1 %v18069_v19  ;;  %v18082_v26 = vsub.f32 %v5448_v11, %v5576_v20  ;;  %v18084_v31 = vpack.c.bf16 %v5578_v45, %v5574_v48  ;;  %v18086_v27 = vsub.f32 %v5444_v57, %v5574_v48  ;;  %v5457_v57 = vld [vmem:[#allocation6 + $0x1e8] sm:$0xff] }
 0x3fb   : > { %22573 = vst [vmem:[#allocation20_spill] sm:$0xff] %v18060_v33  ;;  %22574 = vst [vmem:[#allocation22_spill] sm:$0xff] %v18062_v22  ;;  %v5453_v22 = vld [vmem:[#allocation6 + $0x1c8] sm:$0xff]  ;;  %v5580_v43 = vand.u32 4294901760, %v5451_v60  ;;  %v5584_v11 = vand.u32 4294901760, %v5454_v49  ;;  %v5582_v44 = vand.u32 4294901760, %v5450_v17 }
 0x3fc   : > { %13838 = vmatpush1.bf16.msra.mxu0 %v17990_v2  ;;  %22576 = vst [vmem:[#allocation26_spill] sm:$0xff] %v18067_v8  ;;  %22577 = vst [vmem:[#allocation28_spill] sm:$0xff] %v18069_v19  ;;  %v18092_v19 = vsub.f32 %v5446_v50, %v7384_v38  ;;  %v18095_v8 = vsub.f32 %v5449_v39, %v7387_v47  ;;  %v5586_v20 = vand.u32 4294901760, %v5453_v22  ;;  %v5456_v39 = vld [vmem:[#allocation6 + $0x1e0] sm:$0xff]  ;;  %v5588_v18 = vand.u32 4294901760, %v5457_v57 }
 0x3fd   : > { %13840 = vmatprep.subr.bf16.mxu0 %v17997_v16  ;;  %22578 = vst [vmem:[#allocation33_spill] sm:$0xff] %v18071_v58  ;;  %22579 = vst [vmem:[#allocation34_spill] sm:$0xff] %v18073_v13  ;;  %v18088_v13 = vsub.f32 %v5447_v53, %v5578_v45  ;;  %v18090_v58 = vpack.c.bf16 %v7387_v47, %v7384_v38  ;;  %v18099_v48 = vpack.c.bf16 %v5584_v11, %v5580_v43  ;;  %v5460_v38 = vld [vmem:[#allocation6 + $0x200] sm:$0xff]  ;;  %v5459_v47 = vld [vmem:[#allocation6 + $0x1f8] sm:$0xff] }
 0x3fe   : > { %22580 = vst [vmem:[#allocation39_spill] sm:$0xff] %v18078_v40  ;;  %22581 = vst [vmem:[#allocation40_spill] sm:$0xff] %v18080_v55  ;;  %v18101_v53 = vsub.f32 %v5451_v60, %v5580_v43  ;;  %v18103_v45 = vsub.f32 %v5454_v49, %v5584_v11  ;;  %v18105_v50 = vpack.c.bf16 %v5586_v20, %v5582_v44  ;;  %v5592_v24 = vand.u32 4294901760, %v5460_v38  ;;  %v5463_v43 = vld [vmem:[#allocation6 + $0x218] sm:$0xff] }
 0x3ff   : > { %22582 = vst [vmem:[#allocation45_spill] sm:$0xff] %v18082_v26  ;;  %22583 = vst [vmem:[#allocation46_spill] sm:$0xff] %v18084_v31  ;;  %14256 = vmatprep.subr.bf16.mxu1 %v18090_v58  ;;  %v18107_v28 = vsub.f32 %v5450_v17, %v5582_v44  ;;  %v18109_v36 = vsub.f32 %v5453_v22, %v5586_v20  ;;  %v5590_v10 = vand.u32 4294901760, %v5456_v39  ;;  %v5594_v60 = vand.u32 4294901760, %v5459_v47  ;;  %v5466_v17 = vld [vmem:[#allocation6 + $0x230] sm:$0xff]  ;;  %v5465_v44 = vld [vmem:[#allocation6 + $0x228] sm:$0xff] }
 0x400   : > { %13842 = vmatpush1.bf16.msra.mxu0 %v18004_v14  ;;  %22584 = vst [vmem:[#allocation50_spill] sm:$0xff] %v18086_v27  ;;  %22585 = vst [vmem:[#allocation52_spill] sm:$0xff] %v18088_v13  ;;  %v18113_v49 = vpack.c.bf16 %v5592_v24, %v5588_v18  ;;  %v18115_v11 = vsub.f32 %v5457_v57, %v5588_v18  ;;  %v18117_v1 = vsub.f32 %v5460_v38, %v5592_v24  ;;  %v5462_v22 = vld [vmem:[#allocation6 + $0x210] sm:$0xff]  ;;  %v5469_v57 = vld [vmem:[#allocation6 + $0x248] sm:$0xff] }
 0x401   : > { %13844 = vmatprep.subr.bf16.mxu0 %v18008_v29  ;;  %22586 = vst [vmem:[#allocation94_spill] sm:$0xff] %v18090_v58  ;;  %22587 = vst [vmem:[#allocation99_spill] sm:$0xff] %v18092_v19  ;;  %v18121_v20 = vsub.f32 %v5456_v39, %v5590_v10  ;;  %v5600_v37 = vand.u32 4294901760, %v5466_v17  ;;  %v5602_v18 = vand.u32 4294901760, %v5465_v44  ;;  %v5468_v39 = vld [vmem:[#allocation6 + $0x240] sm:$0xff]  ;;  %v21467_v15 = vand.u32 4294901760, %v18092_v19 }
 0x402   : > { %22588 = vst [vmem:[#allocation100_spill] sm:$0xff] %v18095_v8  ;;  %22589 = vst [vmem:[#allocation105_spill] sm:$0xff] %v18099_v48 }
 0x403   : > { %22590 = vst [vmem:[#allocation106_spill] sm:$0xff] %v18101_v53  ;;  %22591 = vst [vmem:[#allocation110_spill] sm:$0xff] %v18103_v45 }
 0x404   : > { %13846 = vmatpush1.bf16.msra.mxu0 %v18016_v35  ;;  %22592 = vst [vmem:[#allocation112_spill] sm:$0xff] %v18105_v50  ;;  %22593 = vst [vmem:[#allocation117_spill] sm:$0xff] %v18107_v28 }
 0x405   : > { %13848 = vmatprep.subr.bf16.mxu0 %v18020_v7  ;;  %22594 = vst [vmem:[#allocation118_spill] sm:$0xff] %v18109_v36  ;;  %22595 = vst [vmem:[#allocation120_spill] sm:$0xff] %v18113_v49  ;;  %v5606_v7 = vand.u32 4294901760, %v5468_v39 }
 0x406   : > { %22596 = vst [vmem:[#allocation121_spill] sm:$0xff] %v18115_v11  ;;  %22597 = vst [vmem:[#allocation122_spill] sm:$0xff] %v18117_v1 }
 0x407   : > { %22599 = vst [vmem:[#allocation125_spill] sm:$0xff] %v18121_v20 }
 0x408   : > { %13850 = vmatpush1.bf16.msra.mxu0 %v18029_v9 }
 0x409   : > { %13852 = vmatprep.subr.bf16.mxu0 %v18052_v41 }
 0x40c   : > { %13854 = vmatpush1.bf16.msra.mxu0 %v18058_v5  ;;  %v18131_v5 = vsub.f32 %v5466_v17, %v5600_v37 }
 0x40d   : > { %13856 = vmatprep.subr.bf16.mxu0 %v18078_v40  ;;  %v5598_v40 = vand.u32 4294901760, %v5462_v22 }
 0x40e   : > { %22603 = vst [vmem:[#allocation131_spill] sm:$0xff] %v18131_v5 }
 0x40f   : > { %v18133_v41 = vpack.c.bf16 %v5602_v18, %v5598_v40 }
 0x410   : > { %13858 = vmatpush1.bf16.msra.mxu0 %v18084_v31  ;;  %v18119_v31 = vpack.c.bf16 %v5594_v60, %v5590_v10  ;;  %v5472_v10 = vld [vmem:[#allocation6 + $0x260] sm:$0xff] }
 0x411   : > { %13860 = vmatprep.subr.bf16.mxu0 %v18099_v48  ;;  %v18123_v48 = vsub.f32 %v5459_v47, %v5594_v60  ;;  %22604 = vst [vmem:[#allocation133_spill] sm:$0xff] %v18133_v41  ;;  %v5471_v47 = vld [vmem:[#allocation6 + $0x258] sm:$0xff]  ;;  %v18135_v60 = vsub.f32 %v5462_v22, %v5598_v40  ;;  %v5608_v9 = vand.u32 4294901760, %v5472_v10  ;;  %v5478_v40 = vld [vmem:[#allocation6 + $0x290] sm:$0xff] }
 0x412   : > { %22598 = vst [vmem:[#allocation124_spill] sm:$0xff] %v18119_v31  ;;  %v5474_v22 = vld [vmem:[#allocation6 + $0x270] sm:$0xff]  ;;  %v5616_v14 = vand.u32 4294901760, %v5478_v40 }
 0x413   : > { %22600 = vst [vmem:[#allocation127_spill] sm:$0xff] %v18123_v48  ;;  %22605 = vst [vmem:[#allocation134_spill] sm:$0xff] %v18135_v60  ;;  %v18145_v35 = vsub.f32 %v5472_v10, %v5608_v9  ;;  %v5614_v16 = vand.u32 4294901760, %v5474_v22 }
 0x414   : > { %13862 = vmatpush1.bf16.msra.mxu0 %v18105_v50  ;;  %v5596_v50 = vand.u32 4294901760, %v5463_v43  ;;  %v18159_v2 = vsub.f32 %v5478_v40, %v5616_v14 }
 0x415   : > { %13864 = vmatprep.subr.bf16.mxu0 %v18113_v49  ;;  %v18137_v49 = vsub.f32 %v5465_v44, %v5602_v18  ;;  %22609 = vst [vmem:[#allocation140_spill] sm:$0xff] %v18145_v35  ;;  %v5477_v44 = vld [vmem:[#allocation6 + $0x288] sm:$0xff]  ;;  %v18149_v18 = vsub.f32 %v5468_v39, %v5606_v7  ;;  %v5480_v39 = vld [vmem:[#allocation6 + $0x2a0] sm:$0xff]  ;;  %v5470_v35 = vld [vmem:[#allocation6 + $0x250] sm:$0xff] }
 0x416   : > { %v18127_v24 = vpack.c.bf16 %v5600_v37, %v5596_v50  ;;  %v18129_v38 = vsub.f32 %v5463_v43, %v5596_v50  ;;  %v5610_v50 = vand.u32 4294901760, %v5471_v47  ;;  %v5475_v43 = vld [vmem:[#allocation6 + $0x278] sm:$0xff]  ;;  %22615 = vst [vmem:[#allocation148_spill] sm:$0xff] %v18159_v2  ;;  %v5622_v12 = vand.u32 4294901760, %v5480_v39 }
 0x417   : > { %22606 = vst [vmem:[#allocation136_spill] sm:$0xff] %v18137_v49  ;;  %22611 = vst [vmem:[#allocation57_spill] sm:$0xff] %v18149_v18 }
 0x418   : > { %13866 = vmatpush1.bf16.msra.mxu0 %v18119_v31  ;;  %22601 = vst [vmem:[#allocation128_spill] sm:$0xff] %v18127_v24  ;;  %22602 = vst [vmem:[#allocation130_spill] sm:$0xff] %v18129_v38  ;;  %v5604_v31 = vand.u32 4294901760, %v5469_v57  ;;  %v18147_v29 = vpack.c.bf16 %v5610_v50, %v5606_v7  ;;  %v5484_v7 = vld [vmem:[#allocation6 + $0x2c0] sm:$0xff]  ;;  %v5425_v38 = vld [vmem:[#allocation6 + $0xe8] sm:$0xff] }
 0x419   : > { %13868 = vmatprep.subr.bf16.mxu0 %v18127_v24  ;;  %v18151_v24 = vsub.f32 %v5471_v47, %v5610_v50  ;;  %v5483_v47 = vld [vmem:[#allocation6 + $0x2b8] sm:$0xff]  ;;  %v18163_v50 = vsub.f32 %v5474_v22, %v5614_v16  ;;  %v5624_v21 = vand.u32 4294901760, %v5484_v7  ;;  %v5486_v22 = vld [vmem:[#allocation6 + $0x2d0] sm:$0xff] }
 0x41a   : > { %v18141_v37 = vpack.c.bf16 %v5608_v9, %v5604_v31  ;;  %v18143_v17 = vsub.f32 %v5469_v57, %v5604_v31  ;;  %22610 = vst [vmem:[#allocation142_spill] sm:$0xff] %v18147_v29  ;;  %v5618_v31 = vand.u32 4294901760, %v5477_v44  ;;  %v5481_v57 = vld [vmem:[#allocation6 + $0x2a8] sm:$0xff]  ;;  %v5630_v61 = vand.u32 4294901760, %v5486_v22 }
 0x41b   : > { %22612 = vst [vmem:[#allocation143_spill] sm:$0xff] %v18151_v24  ;;  %22617 = vst [vmem:[#allocation151_spill] sm:$0xff] %v18163_v50  ;;  %v18173_v63 = vsub.f32 %v5484_v7, %v5624_v21  ;;  %v5419_v50 = vld [vmem:[#allocation6 + $0xb8] sm:$0xff] }
 0x41c   : > { %13870 = vmatpush1.bf16.msra.mxu0 %v18133_v41  ;;  %22607 = vst [vmem:[#allocation137_spill] sm:$0xff] %v18141_v37  ;;  %22608 = vst [vmem:[#allocation139_spill] sm:$0xff] %v18143_v17  ;;  %v5612_v41 = vand.u32 4294901760, %v5475_v43  ;;  %v18161_v23 = vpack.c.bf16 %v5618_v31, %v5614_v16  ;;  %v5490_v16 = vld [vmem:[#allocation6 + $0x2f0] sm:$0xff]  ;;  %v5473_v17 = vld [vmem:[#allocation6 + $0x268] sm:$0xff] }
 0x41d   : > { %13872 = vmatprep.subr.bf16.mxu0 %v18141_v37  ;;  %v18165_v37 = vsub.f32 %v5477_v44, %v5618_v31  ;;  %22621 = vst [vmem:[#allocation157_spill] sm:$0xff] %v18173_v63  ;;  %v5489_v44 = vld [vmem:[#allocation6 + $0x2e8] sm:$0xff]  ;;  %v18177_v31 = vsub.f32 %v5480_v39, %v5622_v12  ;;  %v5632_v6 = vand.u32 4294901760, %v5490_v16 }
 0x41e   : > { %v18155_v9 = vpack.c.bf16 %v5616_v14, %v5612_v41  ;;  %v18157_v10 = vsub.f32 %v5475_v43, %v5612_v41  ;;  %22616 = vst [vmem:[#allocation149_spill] sm:$0xff] %v18161_v23  ;;  %v5626_v41 = vand.u32 4294901760, %v5483_v47  ;;  %v5487_v43 = vld [vmem:[#allocation6 + $0x2d8] sm:$0xff] }
 0x41f   : > { %22618 = vst [vmem:[#allocation152_spill] sm:$0xff] %v18165_v37  ;;  %22623 = vst [vmem:[#allocation107_spill] sm:$0xff] %v18177_v31  ;;  %v18187_v7 = vsub.f32 %v5490_v16, %v5632_v6  ;;  %v5458_v31 = vld [vmem:[#allocation6 + $0x1f0] sm:$0xff]  ;;  %v5416_v37 = vld [vmem:[#allocation6 + $0xa0] sm:$0xff] }
 0x420   : > { %13874 = vmatpush1.bf16.msra.mxu0 %v18147_v29  ;;  %22613 = vst [vmem:[#allocation145_spill] sm:$0xff] %v18155_v9  ;;  %22614 = vst [vmem:[#allocation146_spill] sm:$0xff] %v18157_v10  ;;  %v5620_v29 = vand.u32 4294901760, %v5481_v57  ;;  %v18175_v3 = vpack.c.bf16 %v5626_v41, %v5622_v12  ;;  %v18191_v12 = vsub.f32 %v5486_v22, %v5630_v61 }
 0x421   : > { %13876 = vmatprep.subr.bf16.mxu0 %v18155_v9  ;;  %v18179_v9 = vsub.f32 %v5483_v47, %v5626_v41  ;;  %22627 = vst [vmem:[#allocation32_spill] sm:$0xff] %v18187_v7  ;;  %v22631_v47 = vld [vmem:[#allocation29_spill] sm:$0xff] }
 0x422   : > { %v18169_v14 = vpack.c.bf16 %v5624_v21, %v5620_v29  ;;  %v18171_v40 = vsub.f32 %v5481_v57, %v5620_v29  ;;  %22622 = vst [vmem:[#allocation11_spill] sm:$0xff] %v18175_v3  ;;  %v5634_v29 = vand.u32 4294901760, %v5489_v44  ;;  %22629 = vst [vmem:[#allocation44_spill] sm:$0xff] %v18191_v12  ;;  %v21460_v41 = vand.u32 4294901760, %v22631_v47  ;;  %v5407_v12 = vld [vmem:[#allocation6 + $0x58] sm:$0xff] }
 0x423   : > { %22624 = vst [vmem:[#allocation15_spill] sm:$0xff] %v18179_v9 }
 0x424   : > { %13878 = vmatpush1.bf16.msra.mxu0 %v18161_v23  ;;  %22619 = vst [vmem:[#allocation154_spill] sm:$0xff] %v18169_v14  ;;  %22620 = vst [vmem:[#allocation155_spill] sm:$0xff] %v18171_v40  ;;  %v5628_v23 = vand.u32 4294901760, %v5487_v43  ;;  %v18189_v58 = vpack.c.bf16 %v5634_v29, %v5630_v61  ;;  %v18193_v39 = vsub.f32 %v5489_v44, %v5634_v29 }
 0x425   : > { %13880 = vmatprep.subr.bf16.mxu0 %v18169_v14 }
 0x426   : > { %v18183_v57 = vpack.c.bf16 %v5632_v6, %v5628_v23  ;;  %v18185_v21 = vsub.f32 %v5487_v43, %v5628_v23  ;;  %22628 = vst [vmem:[#allocation38_spill] sm:$0xff] %v18189_v58  ;;  %22630 = vst [vmem:[#allocation51_spill] sm:$0xff] %v18193_v39  ;;  %v21471_v23 = vand.u32 4294901760, %v18095_v8  ;;  %v5656_v6 = vsub.f32 %v22631_v47, %v21460_v41  ;;  %v5398_v41 = vld [vmem:[#allocation6 + $0x10] sm:$0xff]  ;;  %v5401_v47 = vld [vmem:[#allocation6 + $0x28] sm:$0xff] }
 0x427   : > { %v7563_v43 = vsub.f32 %v18092_v19, %v21467_v15  ;;  %v5452_v39 = vld [vmem:[#allocation6 + $0x1c0] sm:$0xff]  ;;  %v7336_v7 = vand.u32 4294901760, %v5398_v41  ;;  %v7339_v15 = vand.u32 4294901760, %v5401_v47  ;;  %v22702_v19 = vld [vmem:[#allocation122_spill] sm:$0xff] }
 0x428   : > { %13882 = vmatpush1.bf16.msra.mxu0 %v18175_v3  ;;  %22625 = vst [vmem:[#allocation21_spill] sm:$0xff] %v18183_v57  ;;  %22626 = vst [vmem:[#allocation27_spill] sm:$0xff] %v18185_v21  ;;  %v22632_v3 = vld [vmem:[#allocation31_spill] sm:$0xff]  ;;  %v7570_v16 = vsub.f32 %v18095_v8, %v21471_v23  ;;  %v5657_v22 = vand.u32 4294901760, %v5656_v6  ;;  %v7390_v21 = vand.u32 4294901760, %v5452_v39  ;;  %v5461_v23 = vld [vmem:[#allocation6 + $0x208] sm:$0xff]  ;;  %v18483_v8 = vpop.permute.xlu0 %4163 }
 0x429   : > { %13884 = vmatprep.subr.bf16.mxu0 %v18183_v57  ;;  %v21463_v14 = vand.u32 4294901760, %v22632_v3  ;;  %v7564_v29 = vand.u32 4294901760, %v7563_v43  ;;  %v5410_v6 = vld [vmem:[#allocation6 + $0x70] sm:$0xff]  ;;  %v7345_v43 = vand.u32 4294901760, %v5407_v12  ;;  %v18219_v63 = vsub.f32 %v5401_v47, %v7339_v15 }
 0x42a   : > { %v7348_v2 = vand.u32 4294901760, %v5410_v6  ;;  %v18223_v49 = vsub.f32 %v5452_v39, %v7390_v21  ;;  %v7411_v39 = vand.u32 4294901760, %v5473_v17 }
 0x42b   : > { %v5668_v61 = vsub.f32 %v22632_v3, %v21463_v14  ;;  %v5455_v14 = vld [vmem:[#allocation6 + $0x1d8] sm:$0xff]  ;;  %v5404_v3 = vld [vmem:[#allocation6 + $0x40] sm:$0xff]  ;;  %22636 = vst [vmem:[#allocation104_spill] sm:$0xff] %v18219_v63 }
 0x42c   : > { %13886 = vmatpush1.bf16.msra.mxu0 %v18189_v58  ;;  %v7571_v58 = vand.u32 4294901760, %v7570_v16  ;;  %v7393_v9 = vand.u32 4294901760, %v5455_v14  ;;  %v5413_v16 = vld [vmem:[#allocation6 + $0x88] sm:$0xff]  ;;  %22638 = vst [vmem:[#allocation116_spill] sm:$0xff] %v18223_v49 }
 0x42d   : > { %v5669_v44 = vand.u32 4294901760, %v5668_v61  ;;  %v7342_v61 = vand.u32 4294901760, %v5404_v3  ;;  %v7351_v10 = vand.u32 4294901760, %v5413_v16 }
 0x42e   : > { %v18213_v34 = vpack.c.bf16 %v7571_v58, %v7564_v29  ;;  %v5467_v58 = vld [vmem:[#allocation6 + $0x238] sm:$0xff]  ;;  %v18215_v29 = vpack.c.bf16 %v7339_v15, %v7336_v7  ;;  %v18221_v40 = vpack.c.bf16 %v7393_v9, %v7390_v21  ;;  %v18225_v60 = vsub.f32 %v5455_v14, %v7393_v9  ;;  %v5476_v9 = vld [vmem:[#allocation6 + $0x280] sm:$0xff] }
 0x42f   : > { %v13887_v57 = vpack.c.bf16 %v5669_v44, %v5657_v22  ;;  %v5464_v22 = vld [vmem:[#allocation6 + $0x220] sm:$0xff]  ;;  %v7396_v44 = vand.u32 4294901760, %v5458_v31  ;;  %v7405_v18 = vand.u32 4294901760, %v5467_v58  ;;  %v18227_v5 = vpack.c.bf16 %v7345_v43, %v7342_v61  ;;  %v5479_v14 = vld [vmem:[#allocation6 + $0x298] sm:$0xff] }
 0x430   : > { %22633 = vst [vmem:[#allocation56_spill] sm:$0xff] %v18213_v34  ;;  %22634 = vst [vmem:[#allocation62_spill] sm:$0xff] %v18215_v29  ;;  %v18217_v34 = vsub.f32 %v5398_v41, %v7336_v7  ;;  %v7402_v24 = vand.u32 4294901760, %v5464_v22  ;;  %v18229_v7 = vsub.f32 %v5404_v3, %v7342_v61  ;;  %v18231_v15 = vsub.f32 %v5407_v12, %v7345_v43  ;;  %v5422_v29 = vld [vmem:[#allocation6 + $0xd0] sm:$0xff] }
 0x431   : > { %13888 = vmatprep.subr.bf16.mxu0 %v13887_v57  ;;  %v7399_v57 = vand.u32 4294901760, %v5461_v23  ;;  %22637 = vst [vmem:[#allocation111_spill] sm:$0xff] %v18221_v40  ;;  %22639 = vst [vmem:[#allocation119_spill] sm:$0xff] %v18225_v60  ;;  %v7354_v41 = vand.u32 4294901760, %v5416_v37  ;;  %v7357_v40 = vand.u32 4294901760, %v5419_v50  ;;  %v18235_v48 = vsub.f32 %v5458_v31, %v7396_v44 }
 0x432   : > { %22635 = vst [vmem:[#allocation98_spill] sm:$0xff] %v18217_v34  ;;  %22640 = vst [vmem:[#allocation123_spill] sm:$0xff] %v18227_v5  ;;  %v7408_v21 = vand.u32 4294901760, %v5470_v35  ;;  %v18239_v1 = vpack.c.bf16 %v7351_v10, %v7348_v2  ;;  %v18241_v3 = vsub.f32 %v5410_v6, %v7348_v2  ;;  %v18243_v12 = vsub.f32 %v5413_v16, %v7351_v10  ;;  %v5482_v2 = vld [vmem:[#allocation6 + $0x2b0] sm:$0xff]  ;;  %v5485_v6 = vld [vmem:[#allocation6 + $0x2c8] sm:$0xff] }
 0x433   : > { %22641 = vst [vmem:[#allocation126_spill] sm:$0xff] %v18229_v7  ;;  %22642 = vst [vmem:[#allocation129_spill] sm:$0xff] %v18231_v15  ;;  %v18233_v47 = vpack.c.bf16 %v7399_v57, %v7396_v44  ;;  %v18237_v20 = vsub.f32 %v5461_v23, %v7399_v57  ;;  %v18245_v61 = vpack.c.bf16 %v7405_v18, %v7402_v24  ;;  %v7360_v31 = vand.u32 4294901760, %v5422_v29  ;;  %v5428_v23 = vld [vmem:[#allocation6 + $0x100] sm:$0xff]  ;;  %v5431_v57 = vld [vmem:[#allocation6 + $0x118] sm:$0xff] }
 0x434   : > { %22644 = vst [vmem:[#allocation135_spill] sm:$0xff] %v18235_v48  ;;  %22646 = vst [vmem:[#allocation141_spill] sm:$0xff] %v18239_v1  ;;  %v18247_v43 = vsub.f32 %v5464_v22, %v7402_v24  ;;  %v7363_v44 = vand.u32 4294901760, %v5425_v38  ;;  %v18253_v48 = vsub.f32 %v5416_v37, %v7354_v41  ;;  %v7414_v5 = vand.u32 4294901760, %v5476_v9 }
 0x435   : > { %22643 = vst [vmem:[#allocation132_spill] sm:$0xff] %v18233_v47  ;;  %22645 = vst [vmem:[#allocation138_spill] sm:$0xff] %v18237_v20  ;;  %v18249_v47 = vsub.f32 %v5467_v58, %v7405_v18  ;;  %v18251_v20 = vpack.c.bf16 %v7357_v40, %v7354_v41  ;;  %v7417_v1 = vand.u32 4294901760, %v5479_v14  ;;  %v18255_v10 = vsub.f32 %v5419_v50, %v7357_v40 }
 0x436   : > { %22647 = vst [vmem:[#allocation144_spill] sm:$0xff] %v18245_v61  ;;  %22648 = vst [vmem:[#allocation147_spill] sm:$0xff] %v18247_v43  ;;  %v18257_v16 = vpack.c.bf16 %v7411_v39, %v7408_v21  ;;  %v18259_v24 = vsub.f32 %v5470_v35, %v7408_v21  ;;  %v18261_v18 = vsub.f32 %v5473_v17, %v7411_v39  ;;  %v7366_v22 = vand.u32 4294901760, %v5428_v23  ;;  %v5437_v43 = vld [vmem:[#allocation6 + $0x148] sm:$0xff] }
 0x437   : > { %22649 = vst [vmem:[#allocation150_spill] sm:$0xff] %v18249_v47  ;;  %22650 = vst [vmem:[#allocation153_spill] sm:$0xff] %v18251_v20  ;;  %v7369_v58 = vand.u32 4294901760, %v5431_v57  ;;  %v5434_v47 = vld [vmem:[#allocation6 + $0x130] sm:$0xff]  ;;  %v21506_v20 = vand.u32 4294901760, %v17797_v51  ;;  %v21508_v37 = vand.u32 4294901760, %v17805_v46  ;;  %v18265_v41 = vpack.c.bf16 %v7363_v44, %v7360_v31 }
 0x438   : > { %22651 = vst [vmem:[#allocation156_spill] sm:$0xff] %v18253_v48  ;;  %22652 = vst [vmem:[#allocation58_spill] sm:$0xff] %v18255_v10  ;;  %v18267_v48 = vsub.f32 %v5422_v29, %v7360_v31  ;;  %v7420_v50 = vand.u32 4294901760, %v5482_v2  ;;  %v7423_v40 = vand.u32 4294901760, %v5485_v6  ;;  %v18269_v10 = vsub.f32 %v5425_v38, %v7363_v44  ;;  %v5488_v38 = vld [vmem:[#allocation6 + $0x2e0] sm:$0xff] }
 0x439   : > { %22653 = vst [vmem:[#allocation63_spill] sm:$0xff] %v18257_v16  ;;  %22654 = vst [vmem:[#allocation64_spill] sm:$0xff] %v18259_v24  ;;  %v18271_v35 = vpack.c.bf16 %v7417_v1, %v7414_v5  ;;  %v5758_v17 = vsub.f32 %v17797_v51, %v21506_v20  ;;  %v5770_v21 = vsub.f32 %v17805_v46, %v21508_v37  ;;  %v7372_v29 = vand.u32 4294901760, %v5434_v47 }
 0x43a   : > { %22655 = vst [vmem:[#allocation69_spill] sm:$0xff] %v18261_v18  ;;  %22656 = vst [vmem:[#allocation70_spill] sm:$0xff] %v18265_v41  ;;  %v18279_v39 = vsub.f32 %v5476_v9, %v7414_v5  ;;  %v18281_v18 = vsub.f32 %v5479_v14, %v7417_v1  ;;  %v7375_v31 = vand.u32 4294901760, %v5437_v43  ;;  %v21509_v24 = vand.u32 4294901760, %v18010_v59  ;;  %v5491_v5 = vld [vmem:[#allocation6 + $0x2f8] sm:$0xff] }
 0x43b   : > { %22657 = vst [vmem:[#allocation75_spill] sm:$0xff] %v18267_v48  ;;  %22658 = vst [vmem:[#allocation76_spill] sm:$0xff] %v18269_v10  ;;  %v18283_v48 = vpack.c.bf16 %v7369_v58, %v7366_v22  ;;  %v5759_v44 = vand.u32 4294901760, %v5758_v17  ;;  %v5771_v10 = vand.u32 4294901760, %v5770_v21  ;;  %v18288_v20 = vsub.f32 %v5431_v57, %v7369_v58  ;;  %v5440_v57 = vld [vmem:[#allocation6 + $0x160] sm:$0xff] }
 0x43c   : > { %22659 = vst [vmem:[#allocation82_spill] sm:$0xff] %v18271_v35  ;;  %22660 = vst [vmem:[#allocation87_spill] sm:$0xff] %v18279_v39  ;;  %v18286_v35 = vsub.f32 %v5428_v23, %v7366_v22  ;;  %v18290_v41 = vpack.c.bf16 %v7423_v40, %v7420_v50  ;;  %v18292_v37 = vsub.f32 %v5482_v2, %v7420_v50  ;;  %v21515_v17 = vand.u32 4294901760, %v18012_v4  ;;  %v22670_v50 = vld [vmem:[#allocation36_spill] sm:$0xff] }
 0x43d   : > { %22661 = vst [vmem:[#allocation81_spill] sm:$0xff] %v18281_v18  ;;  %22662 = vst [vmem:[#allocation88_spill] sm:$0xff] %v18283_v48  ;;  %v18294_v1 = vsub.f32 %v5485_v6, %v7423_v40  ;;  %v18296_v9 = vpack.c.bf16 %v5771_v10, %v5759_v44  ;;  %v5776_v14 = vsub.f32 %v18010_v59, %v21509_v24  ;;  %v7426_v23 = vand.u32 4294901760, %v5488_v38  ;;  %v5443_v24 = vld [vmem:[#allocation6 + $0x178] sm:$0xff] }
 0x43e   : > { %22663 = vst [vmem:[#allocation93_spill] sm:$0xff] %v18286_v35  ;;  %22664 = vst [vmem:[#allocation19_spill] sm:$0xff] %v18288_v20  ;;  %v18302_v21 = vpack.c.bf16 %v7375_v31, %v7372_v29  ;;  %v21518_v22 = vand.u32 4294901760, %v18014_v0  ;;  %v21520_v2 = vand.u32 4294901760, %v18018_v56  ;;  %v7429_v58 = vand.u32 4294901760, %v5491_v5  ;;  %v22818_v59 = vld [vmem:[#allocation150_spill] sm:$0xff] }
 0x43f   : > { %22665 = vst [vmem:[#allocation24_spill] sm:$0xff] %v18290_v41  ;;  %22666 = vst [vmem:[#allocation25_spill] sm:$0xff] %v18292_v37  ;;  %v5777_v40 = vand.u32 4294901760, %v5776_v14  ;;  %v5788_v10 = vsub.f32 %v18012_v4, %v21515_v17  ;;  %v18310_v44 = vsub.f32 %v5434_v47, %v7372_v29  ;;  %v7378_v14 = vand.u32 4294901760, %v5440_v57 }
 0x440   : > { %22667 = vst [vmem:[#allocation37_spill] sm:$0xff] %v18294_v1  ;;  %22668 = vst [vmem:[#allocation48_spill] sm:$0xff] %v18296_v9  ;;  %v22672_v9 = vld [vmem:[#allocation109_spill] sm:$0xff]  ;;  %v5794_v48 = vsub.f32 %v18018_v56, %v21520_v2  ;;  %v18319_v1 = vsub.f32 %v5437_v43, %v7375_v31  ;;  %v21522_v41 = vand.u32 4294901760, %v18022_v32  ;;  %v7381_v20 = vand.u32 4294901760, %v5443_v24  ;;  %v22832_v4 = vld [vmem:[#allocation64_spill] sm:$0xff] }
 0x441   : > { %22669 = vst [vmem:[#allocation158_spill] sm:$0xff] %v18302_v21  ;;  %22671 = vst [vmem:[#allocation159_spill] sm:$0xff] %v18310_v44  ;;  %v5782_v21 = vsub.f32 %v18014_v0, %v21518_v22  ;;  %v5789_v37 = vand.u32 4294901760, %v5788_v10  ;;  %v18324_v44 = vpack.c.bf16 %v7429_v58, %v7426_v23  ;;  %v22675_v22 = vand.u32 4294901760, %v22670_v50 }
 0x442   : > { %22673 = vst [vmem:[#allocation160_spill] sm:$0xff] %v18319_v1  ;;  %v5795_v17 = vand.u32 4294901760, %v5794_v48  ;;  %v22677_v43 = vand.u32 4294901760, %v22672_v9  ;;  %v5800_v48 = vsub.f32 %v18022_v32, %v21522_v41  ;;  %v18340_v47 = vsub.f32 %v5488_v38, %v7426_v23 }
 0x443   : > { %v5783_v29 = vand.u32 4294901760, %v5782_v21  ;;  %22674 = vst [vmem:[#allocation161_spill] sm:$0xff] %v18324_v44  ;;  %v5662_v35 = vsub.f32 %v22670_v50, %v22675_v22  ;;  %v18329_v2 = vpack.c.bf16 %v5789_v37, %v5777_v40  ;;  %v21528_v21 = vand.u32 4294901760, %v18025_v30  ;;  %v22687_v44 = vld [vmem:[#allocation43_spill] sm:$0xff] }
 0x444   : > { %v5674_v31 = vsub.f32 %v22672_v9, %v22677_v43  ;;  %22679 = vst [vmem:[#allocation164_spill] sm:$0xff] %v18340_v47  ;;  %v18342_v6 = vsub.f32 %v5491_v5, %v7429_v58  ;;  %v21532_v22 = vand.u32 4294901760, %v18031_v62  ;;  %v21535_v37 = vand.u32 4294901760, %v18033_v52 }
 0x445   : > { %22676 = vst [vmem:[#allocation162_spill] sm:$0xff] %v18329_v2  ;;  %v18334_v10 = vpack.c.bf16 %v5795_v17, %v5783_v29  ;;  %v22681_v40 = vand.u32 4294901760, %v18217_v34  ;;  %v22682_v17 = vand.u32 4294901760, %v18219_v63  ;;  %v5801_v9 = vand.u32 4294901760, %v5800_v48 }
 0x446   : > { %22680 = vst [vmem:[#allocation165_spill] sm:$0xff] %v18342_v6  ;;  %v5812_v38 = vsub.f32 %v18025_v30, %v21528_v21  ;;  %v18355_v23 = vpack.c.bf16 %v7381_v20, %v7378_v14  ;;  %v18357_v5 = vsub.f32 %v5440_v57, %v7378_v14  ;;  %v5806_v58 = vsub.f32 %v18031_v62, %v21532_v22  ;;  %v22689_v6 = vld [vmem:[#allocation49_spill] sm:$0xff] }
 0x447   : > { %22678 = vst [vmem:[#allocation163_spill] sm:$0xff] %v18334_v10  ;;  %v7451_v43 = vsub.f32 %v18217_v34, %v22681_v40  ;;  %v7458_v29 = vsub.f32 %v18219_v63, %v22682_v17  ;;  %v5818_v40 = vsub.f32 %v18033_v52, %v21535_v37  ;;  %v5663_v41 = vand.u32 4294901760, %v5662_v35  ;;  %v22685_v17 = vld [vmem:[#allocation114_spill] sm:$0xff]  ;;  %v22816_v30 = vld [vmem:[#allocation73_spill] sm:$0xff] }
 0x448   : > { %22683 = vst [vmem:[#allocation166_spill] sm:$0xff] %v18355_v23  ;;  %22684 = vst [vmem:[#allocation167_spill] sm:$0xff] %v18357_v5  ;;  %v5675_v50 = vand.u32 4294901760, %v5674_v31  ;;  %v21541_v48 = vand.u32 4294901760, %v22685_v17  ;;  %v5813_v63 = vand.u32 4294901760, %v5812_v38  ;;  %v22686_v34 = vld [vmem:[#allocation42_spill] sm:$0xff]  ;;  %v18378_v38 = vsub.f32 %v5443_v24, %v7381_v20 }
 0x449   : > { %v21539_v10 = vand.u32 4294901760, %v22686_v34  ;;  %v5807_v21 = vand.u32 4294901760, %v5806_v58  ;;  %v5819_v2 = vand.u32 4294901760, %v5818_v40  ;;  %v21538_v57 = vand.u32 4294901760, %v18047_v42  ;;  %v22810_v0 = vld [vmem:[#allocation158_spill] sm:$0xff] }
 0x44a   : > { %v7452_v14 = vand.u32 4294901760, %v7451_v43  ;;  %v7459_v23 = vand.u32 4294901760, %v7458_v29  ;;  %v21542_v5 = vand.u32 4294901760, %v22687_v44  ;;  %v18369_v22 = vpack.c.bf16 %v5813_v63, %v5801_v9  ;;  %22691 = vst [vmem:[#allocation170_spill] sm:$0xff] %v18378_v38  ;;  %v22717_v38 = vld [vmem:[#allocation139_spill] sm:$0xff] }
 0x44b   : > { %v21544_v47 = vand.u32 4294901760, %v22689_v6  ;;  %v18372_v37 = vpack.c.bf16 %v5819_v2, %v5807_v21  ;;  %v5824_v35 = vsub.f32 %v18047_v42, %v21538_v57  ;;  %v21536_v31 = vand.u32 4294901760, %v18054_v25  ;;  %v22799_v42 = vld [vmem:[#allocation67_spill] sm:$0xff] }
 0x44c   : > { %22688 = vst [vmem:[#allocation168_spill] sm:$0xff] %v18369_v22  ;;  %v18380_v58 = vpack.c.bf16 %v5675_v50, %v5663_v41  ;;  %v21537_v43 = vand.u32 4294901760, %v18056_v54  ;;  %v21540_v29 = vand.u32 4294901760, %v18060_v33  ;;  %v5680_v63 = vsub.f32 %v22685_v17, %v21541_v48 }
 0x44d   : > { %22690 = vst [vmem:[#allocation169_spill] sm:$0xff] %v18372_v37  ;;  %v5692_v9 = vsub.f32 %v22686_v34, %v21539_v10  ;;  %v5825_v2 = vand.u32 4294901760, %v5824_v35  ;;  %v5836_v20 = vsub.f32 %v18054_v25, %v21536_v31  ;;  %v18393_v24 = vpack.c.bf16 %v7459_v23, %v7452_v14  ;;  %v22710_v37 = vld [vmem:[#allocation136_spill] sm:$0xff] }
 0x44e   : > { %22692 = vst [vmem:[#allocation171_spill] sm:$0xff] %v18380_v58  ;;  %v5830_v50 = vsub.f32 %v18056_v54, %v21537_v43  ;;  %v5842_v21 = vsub.f32 %v18060_v33, %v21540_v29  ;;  %v18405_v40 = vsub.f32 %v22687_v44, %v21542_v5  ;;  %v18410_v23 = vsub.f32 %v22689_v6, %v21544_v47 }
 0x44f   : > { %22693 = vst [vmem:[#allocation172_spill] sm:$0xff] %v18393_v24  ;;  %v21547_v14 = vand.u32 4294901760, %v18225_v60  ;;  %v5837_v35 = vand.u32 4294901760, %v5836_v20  ;;  %v21549_v31 = vand.u32 4294901760, %v18229_v7  ;;  %v21546_v10 = vand.u32 4294901760, %v18080_v55  ;;  %v22829_v46 = vld [vmem:[#allocation166_spill] sm:$0xff] }
 0x450   : > { %v5831_v43 = vand.u32 4294901760, %v5830_v50  ;;  %v5843_v57 = vand.u32 4294901760, %v5842_v21  ;;  %v5681_v29 = vand.u32 4294901760, %v5680_v63  ;;  %v5693_v48 = vand.u32 4294901760, %v5692_v9 }
 0x451   : > { %v18416_v5 = vpack.c.bf16 %v5837_v35, %v5825_v2  ;;  %v22695_v44 = vand.u32 4294901760, %v18223_v49  ;;  %v5848_v20 = vsub.f32 %v18080_v55, %v21546_v10  ;;  %v21548_v50 = vand.u32 4294901760, %v18082_v26 }
 0x452   : > { %v18423_v6 = vpack.c.bf16 %v5843_v57, %v5831_v43  ;;  %v18433_v9 = vsub.f32 %v18225_v60, %v21547_v14  ;;  %v21551_v2 = vand.u32 4294901760, %v18086_v27  ;;  %v5699_v57 = vand.u32 4294901760, %v18410_v23 }
 0x453   : > { %22694 = vst [vmem:[#allocation173_spill] sm:$0xff] %v18416_v5  ;;  %v18421_v47 = vsub.f32 %v18223_v49, %v22695_v44  ;;  %v21553_v44 = vand.u32 4294901760, %v18088_v13  ;;  %v5849_v43 = vand.u32 4294901760, %v5848_v20  ;;  %v5860_v21 = vsub.f32 %v18082_v26, %v21548_v50  ;;  %v22787_v26 = vld [vmem:[#allocation25_spill] sm:$0xff] }
 0x454   : > { %22696 = vst [vmem:[#allocation174_spill] sm:$0xff] %v18423_v6  ;;  %v18446_v10 = vsub.f32 %v18229_v7, %v21549_v31  ;;  %v5854_v14 = vsub.f32 %v18086_v27, %v21551_v2  ;;  %v21560_v20 = vand.u32 4294901760, %v18101_v53  ;;  %v21565_v50 = vand.u32 4294901760, %v18103_v45  ;;  %v22707_v6 = vld [vmem:[#allocation130_spill] sm:$0xff]  ;;  %v22766_v27 = vld [vmem:[#allocation87_spill] sm:$0xff] }
 0x455   : > { %v5866_v23 = vsub.f32 %v18088_v13, %v21553_v44  ;;  %v5861_v63 = vand.u32 4294901760, %v5860_v21  ;;  %v21568_v35 = vand.u32 4294901760, %v18107_v28  ;;  %v22697_v31 = vand.u32 4294901760, %v18231_v15  ;;  %v22767_v13 = vld [vmem:[#allocation81_spill] sm:$0xff] }
 0x456   : > { %v5855_v2 = vand.u32 4294901760, %v5854_v14  ;;  %v5872_v44 = vsub.f32 %v18101_v53, %v21560_v20  ;;  %v5884_v21 = vsub.f32 %v18103_v45, %v21565_v50  ;;  %v22699_v60 = vand.u32 4294901760, %v18109_v36  ;;  %v22764_v53 = vld [vmem:[#allocation66_spill] sm:$0xff] }
 0x457   : > { %v18461_v34 = vsub.f32 %v18231_v15, %v22697_v31  ;;  %v5867_v17 = vand.u32 4294901760, %v5866_v23  ;;  %v18466_v7 = vpack.c.bf16 %v5861_v63, %v5849_v43  ;;  %v5878_v41 = vsub.f32 %v18107_v28, %v21568_v35 }
 0x458   : > { %v5890_v31 = vsub.f32 %v18109_v36, %v22699_v60  ;;  %v18477_v14 = vpack.c.bf16 %v5693_v48, %v5681_v29  ;;  %v5873_v15 = vand.u32 4294901760, %v5872_v44  ;;  %v21569_v63 = vand.u32 4294901760, %v18115_v11  ;;  %v22703_v48 = vld [vmem:[#allocation125_spill] sm:$0xff] }
 0x459   : > { %22698 = vst [vmem:[#allocation175_spill] sm:$0xff] %v18466_v7  ;;  %v18479_v23 = vpack.c.bf16 %v5867_v17, %v5855_v2  ;;  %v5885_v43 = vand.u32 4294901760, %v5884_v21  ;;  %v5879_v20 = vand.u32 4294901760, %v5878_v41  ;;  %v21570_v50 = vand.u32 4294901760, %v22702_v19  ;;  %v22704_v17 = vld [vmem:[#allocation127_spill] sm:$0xff] }
 0x45a   : > { %22700 = vst [vmem:[#allocation176_spill] sm:$0xff] %v18477_v14  ;;  %v5891_v49 = vand.u32 4294901760, %v5890_v31  ;;  %v5896_v60 = vsub.f32 %v18115_v11, %v21569_v63  ;;  %v21571_v29 = vand.u32 4294901760, %v22703_v48  ;;  %v21572_v2 = vand.u32 4294901760, %v22704_v17  ;;  %v22796_v11 = vld [vmem:[#allocation24_spill] sm:$0xff] }
 0x45b   : > { %22701 = vst [vmem:[#allocation177_spill] sm:$0xff] %v18479_v23  ;;  %v18492_v23 = vpack.c.bf16 %v5885_v43, %v5873_v15  ;;  %v5908_v21 = vsub.f32 %v22702_v19, %v21570_v50  ;;  %v21573_v44 = vand.u32 4294901760, %v22707_v6  ;;  %v22708_v43 = vld [vmem:[#allocation131_spill] sm:$0xff]  ;;  %v21577_v22 = vand.u32 4294901760, %v22710_v37 }
 0x45c   : > { %v18494_v41 = vpack.c.bf16 %v5891_v49, %v5879_v20  ;;  %v5897_v35 = vand.u32 4294901760, %v5896_v60  ;;  %v5902_v63 = vsub.f32 %v22703_v48, %v21571_v29  ;;  %v5914_v7 = vsub.f32 %v22704_v17, %v21572_v2 }
 0x45d   : > { %22705 = vst [vmem:[#allocation178_spill] sm:$0xff] %v18492_v23  ;;  %v5909_v20 = vand.u32 4294901760, %v5908_v21  ;;  %v22709_v23 = vld [vmem:[#allocation134_spill] sm:$0xff]  ;;  %v5920_v29 = vsub.f32 %v22707_v6, %v21573_v44  ;;  %v5938_v44 = vsub.f32 %v22710_v37, %v21577_v22  ;;  %v22720_v22 = vld [vmem:[#allocation57_spill] sm:$0xff]  ;;  %v22781_v48 = vand.u32 4294901760, %v22766_v27 }
 0x45e   : > { %22706 = vst [vmem:[#allocation179_spill] sm:$0xff] %v18494_v41  ;;  %v21574_v41 = vand.u32 4294901760, %v22708_v43  ;;  %v21575_v50 = vand.u32 4294901760, %v22709_v23  ;;  %v5903_v5 = vand.u32 4294901760, %v5902_v63  ;;  %v5915_v60 = vand.u32 4294901760, %v5914_v7 }
 0x45f   : > { %v18513_v2 = vpack.c.bf16 %v5909_v20, %v5897_v35  ;;  %v5921_v24 = vand.u32 4294901760, %v5920_v29  ;;  %v21580_v63 = vand.u32 4294901760, %v22717_v38  ;;  %v21584_v1 = vand.u32 4294901760, %v22720_v22  ;;  %v22726_v29 = vld [vmem:[#allocation148_spill] sm:$0xff] }
 0x460   : > { %v5926_v21 = vsub.f32 %v22709_v23, %v21575_v50  ;;  %v18522_v7 = vpack.c.bf16 %v5915_v60, %v5903_v5  ;;  %v5939_v50 = vand.u32 4294901760, %v5938_v44  ;;  %v22718_v5 = vld [vmem:[#allocation140_spill] sm:$0xff]  ;;  %v22782_v6 = vand.u32 4294901760, %v22767_v13 }
 0x461   : > { %22711 = vst [vmem:[#allocation180_spill] sm:$0xff] %v18513_v2  ;;  %v21583_v60 = vand.u32 4294901760, %v22718_v5  ;;  %v5944_v44 = vsub.f32 %v22717_v38, %v21580_v63  ;;  %v22741_v38 = vld [vmem:[#allocation61_spill] sm:$0xff]  ;;  %v22798_v55 = vand.u32 4294901760, %v22764_v53 }
 0x462   : > { %22713 = vst [vmem:[#allocation181_spill] sm:$0xff] %v18522_v7  ;;  %v5927_v2 = vand.u32 4294901760, %v5926_v21  ;;  %v18753_v17 = vpack.c.bf16 %v22782_v6, %v22781_v48  ;;  %v22790_v6 = vld [vmem:[#allocation88_spill] sm:$0xff] }
 0x463   : > { %v22791_v48 = vld [vmem:[#allocation160_spill] sm:$0xff] }
 0x464   : > { %v22805_v62 = vand.u32 4294901760, %v22791_v48 }
 0x4a1   : > { %v5389_v31 = vpop.f32.mrb[16].mxu1 }
 0x4a2   : > { %v15001_v15 = vadd.f32 %v5389_v31, %v18483_v8  ;;  %v12766_v49 = vpop.f32.mrb[17].mxu1  ;;  %v5932_v31 = vsub.f32 %v22708_v43, %v21574_v41 }
 0x4a3   : > { %v22712_v49 = vld [vmem:[#allocation54_spill] sm:$0xff] }
 0x4a4   : > { %v5395_v14 = vmax.f32 %v15001_v15, 0.0  ;;  %v22714_v15 = vand.u32 4294901760, %v18405_v40  ;;  %v5933_v41 = vand.u32 4294901760, %v5932_v31  ;;  %v5956_v31 = vsub.f32 %v22718_v5, %v21583_v60 }
 0x4a6   : > { %v5506_v35 = vsel %vm5504_vm13, %v5395_v14, 0  ;;  %v18530_v20 = vpack.c.bf16 %v5699_v57, %v22714_v15  ;;  %v18537_v7 = vpack.c.bf16 %v5933_v41, %v5921_v24  ;;  %v22721_v14 = vld [vmem:[#allocation143_spill] sm:$0xff]  ;;  %v18544_v57 = vpack.c.bf16 %v5939_v50, %v5927_v2  ;;  %v22724_v50 = vld [vmem:[#allocation146_spill] sm:$0xff] }
 0x4a7   : > { %v18532_v58 = vand.u32 4294901760, %v5506_v35  ;;  %v21585_v18 = vand.u32 4294901760, %v22721_v14  ;;  %v7473_v24 = vand.u32 4294901760, %v18461_v34  ;;  %v5950_v41 = vsub.f32 %v22720_v22, %v21584_v1  ;;  %v22727_v1 = vld [vmem:[#allocation151_spill] sm:$0xff] }
 0x4a8   : > { %22715 = vst [vmem:[#allocation182_spill] sm:$0xff] %v18530_v20  ;;  %22719 = vst [vmem:[#allocation184_spill] sm:$0xff] %v18537_v7  ;;  %v21589_v2 = vand.u32 4294901760, %v22724_v50  ;;  %v5945_v15 = vand.u32 4294901760, %v5944_v44  ;;  %v5957_v63 = vand.u32 4294901760, %v5956_v31  ;;  %v21596_v7 = vand.u32 4294901760, %v22727_v1 }
 0x4a9   : > { %22716 = vst [vmem:[#allocation183_spill] sm:$0xff] %v18532_v58  ;;  %v18542_v40 = vsub.f32 %v5506_v35, %v18532_v58  ;;  %22723 = vst [vmem:[#allocation186_spill] sm:$0xff] %v18544_v57  ;;  %v5962_v21 = vsub.f32 %v22721_v14, %v21585_v18  ;;  %v21593_v58 = vand.u32 4294901760, %v22726_v29  ;;  %v5951_v60 = vand.u32 4294901760, %v5950_v41  ;;  %v22729_v31 = vld [vmem:[#allocation152_spill] sm:$0xff]  ;;  %v22730_v22 = vld [vmem:[#allocation55_spill] sm:$0xff] }
 0x4aa   : > { %v5968_v34 = vsub.f32 %v22724_v50, %v21589_v2  ;;  %v18570_v20 = vpack.c.bf16 %v5957_v63, %v5945_v15  ;;  %v21601_v14 = vand.u32 4294901760, %v22729_v31  ;;  %v5974_v2 = vsub.f32 %v22727_v1, %v21596_v7  ;;  %v22745_v7 = vld [vmem:[#allocation27_spill] sm:$0xff] }
 0x4ab   : > { %22722 = vst [vmem:[#allocation185_spill] sm:$0xff] %v18542_v40  ;;  %v18561_v35 = vand.u32 4294901760, %v18542_v40  ;;  %v5963_v57 = vand.u32 4294901760, %v5962_v21  ;;  %v5980_v44 = vsub.f32 %v22726_v29, %v21593_v58  ;;  %v22733_v63 = vand.u32 4294901760, %v22712_v49  ;;  %v22740_v29 = vld [vmem:[#allocation62_spill] sm:$0xff] }
 0x4ac   : > { %22728 = vst [vmem:[#allocation188_spill] sm:$0xff] %v18570_v20  ;;  %v5969_v5 = vand.u32 4294901760, %v5968_v34  ;;  %v5986_v58 = vsub.f32 %v22729_v31, %v21601_v14  ;;  %v5975_v41 = vand.u32 4294901760, %v5974_v2  ;;  %v22735_v34 = vld [vmem:[#allocation157_spill] sm:$0xff] }
 0x4ad   : > { %22725 = vst [vmem:[#allocation187_spill] sm:$0xff] %v18561_v35  ;;  %v6868_v18 = vsub.f32 %v18542_v40, %v18561_v35  ;;  %v18577_v21 = vpack.c.bf16 %v5963_v57, %v5951_v60  ;;  %v18587_v15 = vsub.f32 %v22712_v49, %v22733_v63  ;;  %v5981_v35 = vand.u32 4294901760, %v5980_v44  ;;  %v22734_v60 = vld [vmem:[#allocation155_spill] sm:$0xff] }
 0x4ae   : > { %v21603_v57 = vand.u32 4294901760, %v22734_v60  ;;  %v21607_v40 = vand.u32 4294901760, %v22735_v34  ;;  %v5987_v63 = vand.u32 4294901760, %v5986_v58  ;;  %v22739_v49 = vld [vmem:[#allocation15_spill] sm:$0xff] }
 0x4af   : > { %22731 = vst [vmem:[#allocation189_spill] sm:$0xff] %v18577_v21  ;;  %v18582_v50 = vand.u32 4294901760, %v6868_v18  ;;  %v22736_v21 = vld [vmem:[#allocation107_spill] sm:$0xff]  ;;  %v18597_v1 = vpack.c.bf16 %v5981_v35, %v5969_v5  ;;  %v21610_v44 = vand.u32 4294901760, %v22739_v49 }
 0x4b0   : > { %v22737_v18 = vld [vmem:[#allocation59_spill] sm:$0xff]  ;;  %v5992_v2 = vsub.f32 %v22734_v60, %v21603_v57  ;;  %v6004_v20 = vsub.f32 %v22735_v34, %v21607_v40  ;;  %v18612_v58 = vpack.c.bf16 %v5987_v63, %v5975_v41  ;;  %v22747_v40 = vld [vmem:[#allocation44_spill] sm:$0xff] }
 0x4b1   : > { %22732 = vst [vmem:[#allocation190_spill] sm:$0xff] %v18582_v50  ;;  %6870 = vmatmul.mubr.f32.vlgmr.msra.gmra.mrb[18].mxu1 %v18582_v50  ;;  %22738 = vst [vmem:[#allocation59_spill] sm:$0xff] %v18597_v1  ;;  %v22742_v50 = vand.u32 4294901760, %v22736_v21  ;;  %v22743_v35 = vld [vmem:[#allocation111_spill] sm:$0xff]  ;;  %v6010_v14 = vsub.f32 %v22739_v49, %v21610_v44  ;;  %v22746_v1 = vld [vmem:[#allocation32_spill] sm:$0xff]  ;;  %v21617_v34 = vand.u32 4294901760, %v22747_v40 }
 0x4b2   : > { %14258 = vmatpush3.bf16.msra.mxu1 %v22740_v29  ;;  %22744 = vst [vmem:[#allocation191_spill] sm:$0xff] %v18612_v58  ;;  %v21611_v29 = vand.u32 4294901760, %v22745_v7  ;;  %v21613_v57 = vand.u32 4294901760, %v22746_v1  ;;  %v5993_v60 = vand.u32 4294901760, %v5992_v2  ;;  %v6005_v31 = vand.u32 4294901760, %v6004_v20  ;;  %v22748_v63 = vld [vmem:[#allocation51_spill] sm:$0xff] }
 0x4b3   : > { %v5998_v5 = vsub.f32 %v22736_v21, %v22742_v50  ;;  %14260 = vmatprep.subr.bf16.mxu1 %v22743_v35  ;;  %v6011_v37 = vand.u32 4294901760, %v6010_v14  ;;  %v22749_v35 = vld [vmem:[#allocation123_spill] sm:$0xff]  ;;  %v22750_v58 = vand.u32 4294901760, %v22730_v22 }
 0x4b4   : > { %v6016_v50 = vsub.f32 %v22745_v7, %v21611_v29  ;;  %v6028_v41 = vsub.f32 %v22746_v1, %v21613_v57  ;;  %v22751_v2 = vld [vmem:[#allocation135_spill] sm:$0xff]  ;;  %v18634_v14 = vpack.c.bf16 %v6005_v31, %v5993_v60  ;;  %v6022_v29 = vsub.f32 %v22747_v40, %v21617_v34  ;;  %v22752_v7 = vld [vmem:[#allocation132_spill] sm:$0xff]  ;;  %v22757_v34 = vld [vmem:[#allocation138_spill] sm:$0xff] }
 0x4b5   : > { %v5999_v39 = vand.u32 4294901760, %v5998_v5  ;;  %v18631_v20 = vsub.f32 %v22730_v22, %v22750_v58  ;;  %v22754_v58 = vand.u32 4294901760, %v18421_v47  ;;  %v22755_v5 = vand.u32 4294901760, %v18433_v9  ;;  %v22759_v9 = vld [vmem:[#allocation141_spill] sm:$0xff]  ;;  %22783 = vst [vmem:[#allocation138_spill] sm:$0xff] %v18753_v17  ;;  %v22809_v21 = vld [vmem:[#allocation167_spill] sm:$0xff] }
 0x4b6   : > { %14262 = vmatpush3.bf16.msra.mxu1 %v22749_v35  ;;  %v6017_v44 = vand.u32 4294901760, %v6016_v50  ;;  %v6029_v1 = vand.u32 4294901760, %v6028_v41  ;;  %v22753_v35 = vand.u32 4294901760, %v22748_v63  ;;  %v22756_v60 = vand.u32 4294901760, %v18446_v10 }
 0x4b7   : > { %14264 = vmatprep.subr.bf16.mxu1 %v22752_v7  ;;  %v18640_v57 = vpack.c.bf16 %v6011_v37, %v5999_v39  ;;  %v18649_v31 = vpack.c.bf16 %v22755_v5, %v22754_v58  ;;  %v21618_v7 = vand.u32 4294901760, %v22757_v34  ;;  %v6023_v39 = vand.u32 4294901760, %v6022_v29 }
 0x4b8   : > { %v6034_v49 = vsub.f32 %v22748_v63, %v22753_v35  ;;  %v18653_v22 = vpack.c.bf16 %v7473_v24, %v22756_v60  ;;  %v5705_v37 = vand.u32 4294901760, %v18587_v15  ;;  %v22758_v50 = vand.u32 4294901760, %v22737_v18 }
 0x4b9   : > { %v18662_v35 = vpack.c.bf16 %v6029_v1, %v6017_v44  ;;  %v5717_v5 = vand.u32 4294901760, %v18631_v20  ;;  %v22760_v10 = vand.u32 4294901760, %v22741_v38  ;;  %v22761_v29 = vand.u32 4294901760, %v22751_v2 }
 0x4ba   : > { %v18660_v41 = vsub.f32 %v22737_v18, %v22758_v50  ;;  %v6035_v47 = vand.u32 4294901760, %v6034_v49  ;;  %14266 = vmatpush3.bf16.msra.mxu1 %v22759_v9  ;;  %v22762_v50 = vld [vmem:[#allocation153_spill] sm:$0xff]  ;;  %v22763_v60 = vand.u32 4294901760, %v18241_v3  ;;  %v18788_v17 = vsub.f32 %v22764_v53, %v22798_v55 }
 0x4bb   : > { %v18669_v24 = vsub.f32 %v22741_v38, %v22760_v10  ;;  %v18674_v15 = vsub.f32 %v22751_v2, %v22761_v29  ;;  %14268 = vmatprep.subr.bf16.mxu1 %v18245_v61  ;;  %v18740_v36 = vpack.c.bf16 %v5717_v5, %v5705_v37  ;;  %v22823_v40 = vand.u32 4294901760, %v22809_v21  ;;  %v22847_v38 = vld [vmem:[#allocation76_spill] sm:$0xff] }
 0x4bc   : > { %v18678_v1 = vpack.c.bf16 %v6035_v47, %v6023_v39  ;;  %v18697_v47 = vsub.f32 %v22757_v34, %v21618_v7  ;;  %v18716_v20 = vsub.f32 %v18241_v3, %v22763_v60  ;;  %v22770_v39 = vld [vmem:[#allocation70_spill] sm:$0xff]  ;;  %v22772_v7 = vld [vmem:[#allocation19_spill] sm:$0xff]  ;;  %v22797_v60 = vand.u32 4294901760, %v18243_v12 }
 0x4bd   : > { %v22785_v37 = vand.u32 4294901760, %v22772_v7 }
 0x4be   : > { %14270 = vmatpush3.bf16.msra.mxu1 %v22762_v50  ;;  %v7599_v50 = vand.u32 4294901760, %v18697_v47 }
 0x4bf   : > { %14272 = vmatprep.subr.bf16.mxu1 %v18257_v16 }
 0x4c2   : > { %v4838_v44 = vpop.f32.mrb[2].mxu0  ;;  %14274 = vmatpush3.bf16.msra.mxu1 %v22770_v39  ;;  %v22838_v39 = vld [vmem:[#allocation56_spill] sm:$0xff] }
 0x4c3   : > { %v14999_v29 = vadd.f32 %v4838_v44, %v18483_v8  ;;  %v4840_v58 = vpop.f32.mrb[3].mxu0 }
 0x4c4   : > { %v15000_v49 = vadd.f32 %v4840_v58, %v18483_v8  ;;  %v22771_v8 = vld [vmem:[#allocation93_spill] sm:$0xff]  ;;  %v22789_v58 = vld [vmem:[#allocation159_spill] sm:$0xff] }
 0x4c5   : > { %v5393_v45 = vmax.f32 %v14999_v29, 0.0  ;;  %v22775_v29 = vld [vmem:[#allocation82_spill] sm:$0xff]  ;;  %v22784_v44 = vand.u32 4294901760, %v22771_v8 }
 0x4c6   : > { %v5394_v19 = vmax.f32 %v15000_v49, 0.0  ;;  %14276 = vmatprep.subr.bf16.mxu1 %v22775_v29  ;;  %v22788_v49 = vld [vmem:[#allocation37_spill] sm:$0xff]  ;;  %v22826_v29 = vld [vmem:[#allocation58_spill] sm:$0xff] }
 0x4c7   : > { %v18737_v43 = vand.u32 4294901760, %v5393_v45  ;;  %v18759_v5 = vpack.c.bf16 %v22785_v37, %v22784_v44  ;;  %14278 = vmatpush3.bf16.msra.mxu1 %v22790_v6  ;;  %v22801_v37 = vand.u32 4294901760, %v22787_v26  ;;  %v22802_v33 = vand.u32 4294901760, %v22788_v49  ;;  %v22807_v44 = vld [vmem:[#allocation164_spill] sm:$0xff]  ;;  %v22808_v6 = vld [vmem:[#allocation165_spill] sm:$0xff] }
 0x4c8   : > { %v18746_v10 = vand.u32 4294901760, %v5394_v19  ;;  %14280 = vmatprep.subr.bf16.mxu1 %v22796_v11  ;;  %v22815_v11 = vand.u32 4294901760, %v22799_v42  ;;  %v22821_v56 = vand.u32 4294901760, %v22808_v6 }
 0x4c9   : > { %22786 = vst [vmem:[#allocation87_spill] sm:$0xff] %v18759_v5  ;;  %v18762_v23 = vsub.f32 %v5393_v45, %v18737_v43  ;;  %v22800_v45 = vld [vmem:[#allocation71_spill] sm:$0xff]  ;;  %v18799_v25 = vpack.c.bf16 %v22802_v33, %v22801_v37  ;;  %v22811_v37 = vld [vmem:[#allocation170_spill] sm:$0xff] }
 0x4ca   : > { %22780 = vst [vmem:[#allocation135_spill] sm:$0xff] %v18746_v10  ;;  %v18768_v28 = vsub.f32 %v5394_v19, %v18746_v10  ;;  %v18783_v19 = vsub.f32 %v18243_v12, %v22797_v60  ;;  %v22804_v60 = vand.u32 4294901760, %v22789_v58  ;;  %v5740_v32 = vsub.f32 %v22799_v42, %v22815_v11  ;;  %v22846_v42 = vld [vmem:[#allocation75_spill] sm:$0xff] }
 0x4cb   : > { %v18777_v5 = vand.u32 4294901760, %v18762_v23  ;;  %22803 = vst [vmem:[#allocation93_spill] sm:$0xff] %v18799_v25  ;;  %14282 = vmatpush3.bf16.msra.mxu1 %v22810_v0  ;;  %v22817_v0 = vld [vmem:[#allocation147_spill] sm:$0xff]  ;;  %v22819_v25 = vld [vmem:[#allocation156_spill] sm:$0xff]  ;;  %v22824_v63 = vand.u32 4294901760, %v22811_v37  ;;  %v21688_v53 = vand.u32 4294901760, %v22846_v42 }
 0x4cc   : > { %v18792_v54 = vand.u32 4294901760, %v18768_v28  ;;  %v18805_v52 = vpack.c.bf16 %v22805_v62, %v22804_v60  ;;  %v22820_v62 = vand.u32 4294901760, %v22807_v44  ;;  %v22837_v61 = vand.u32 4294901760, %v22819_v25 }
 0x4cd   : > { %22795 = vst [vmem:[#allocation81_spill] sm:$0xff] %v18777_v5  ;;  %v5645_v55 = vsub.f32 %v18762_v23, %v18777_v5  ;;  %v18838_v11 = vpack.c.bf16 %v22824_v63, %v22823_v40  ;;  %v22830_v40 = vand.u32 4294901760, %v22817_v0 }
 0x4ce   : > { %22806 = vst [vmem:[#allocation19_spill] sm:$0xff] %v18805_v52  ;;  %v5639_v33 = vsub.f32 %v18768_v28, %v18792_v54  ;;  %v22814_v52 = vld [vmem:[#allocation161_spill] sm:$0xff]  ;;  %v18832_v60 = vpack.c.bf16 %v22821_v56, %v22820_v62  ;;  %v7480_v56 = vand.u32 4294901760, %v18716_v20  ;;  %v7487_v62 = vand.u32 4294901760, %v18783_v19 }
 0x4cf   : > { %14284 = vmatprep.subr.bf16.mxu1 %v22814_v52  ;;  %22825 = vst [vmem:[#allocation37_spill] sm:$0xff] %v18838_v11  ;;  %v5646_v5 = vand.u32 4294901760, %v5645_v55  ;;  %v22827_v52 = vld [vmem:[#allocation78_spill] sm:$0xff]  ;;  %v7605_v63 = vsub.f32 %v22817_v0, %v22830_v40  ;;  %v22831_v55 = vand.u32 4294901760, %v22818_v59  ;;  %v22833_v11 = vld [vmem:[#allocation69_spill] sm:$0xff]  ;;  %v5741_v20 = vand.u32 4294901760, %v5740_v32 }
 0x4d0   : > { %v5640_v51 = vand.u32 4294901760, %v5639_v33  ;;  %22822 = vst [vmem:[#allocation25_spill] sm:$0xff] %v18832_v60  ;;  %v22828_v33 = vld [vmem:[#allocation79_spill] sm:$0xff]  ;;  %14286 = vmatpush3.bf16.msra.mxu1 %v22829_v46  ;;  %v5729_v60 = vand.u32 4294901760, %v18788_v17  ;;  %v22836_v19 = vand.u32 4294901760, %v22816_v30  ;;  %v22840_v32 = vand.u32 4294901760, %v22827_v52 }
 0x4d1   : > { %v7612_v16 = vsub.f32 %v22818_v59, %v22831_v55  ;;  %v22834_v46 = vld [vmem:[#allocation171_spill] sm:$0xff]  ;;  %v7493_v55 = vsub.f32 %v22819_v25, %v22837_v61  ;;  %14288 = vmatprep.subr.bf16.mxu1 %v22838_v39  ;;  %v22843_v61 = vand.u32 4294901760, %v18660_v41  ;;  %v22844_v39 = vand.u32 4294901760, %v18669_v24 }
 0x4d2   : > { %5641 = vmatprep.mubr.f32.mxu0 %v5640_v51  ;;  %7436 = vmatprep.mubr.f32.mxu1 %v5640_v51  ;;  %v22835_v51 = vand.u32 4294901760, %v22800_v45  ;;  %v5746_v40 = vsub.f32 %v22816_v30, %v22836_v19  ;;  %v5752_v9 = vsub.f32 %v22827_v52, %v22840_v32  ;;  %v22842_v19 = vld [vmem:[#allocation172_spill] sm:$0xff]  ;;  %v22845_v30 = vand.u32 4294901760, %v18674_v15  ;;  %v22851_v15 = vld [vmem:[#allocation182_spill] sm:$0xff] }
 0x4d3   : > { %5647 = vmatmul.mubr.f32.vlgmr.msra.gmra.mrb[4].mxu0 %v5646_v5  ;;  %7442 = vmatmul.mubr.f32.vlgmr.msra.gmra.mrb[20].mxu1 %v5646_v5  ;;  %v13897_v5 = vpack.c.bf16 %v22844_v39, %v22843_v61  ;;  %v22848_v52 = vld [vmem:[#allocation176_spill] sm:$0xff]  ;;  %v22850_v24 = vand.u32 4294901760, %v22833_v11 }
 0x4d4   : > { %13890 = vmatpush1.bf16.msra.mxu0 %v22834_v46  ;;  %6038 = vmatprep.mubr.f32.mxu0 %v18746_v10  ;;  %v5734_v17 = vsub.f32 %v22800_v45, %v22835_v51  ;;  %v22839_v46 = vand.u32 4294901760, %v22826_v29  ;;  %v22841_v51 = vand.u32 4294901760, %v22828_v33  ;;  %v5747_v32 = vand.u32 4294901760, %v5746_v40 }
 0x4d5   : > { %14290 = vmatpush3.bf16.msra.mxu1 %v22842_v19  ;;  %7672 = vmatprep.mubr.f32.mxu1 %v18746_v10  ;;  %v7613_v19 = vand.u32 4294901760, %v7612_v16  ;;  %v22849_v10 = vand.u32 4294901760, %v22832_v4  ;;  %v7626_v61 = vsub.f32 %v22833_v11, %v22850_v24  ;;  %v22852_v24 = vand.u32 4294901760, %v22847_v38 }
 0x4d6   : > { %v7500_v47 = vsub.f32 %v22826_v29, %v22839_v46  ;;  %v5764_v45 = vsub.f32 %v22828_v33, %v22841_v51  ;;  %v14295_v46 = vpack.c.bf16 %v7599_v50, %v22845_v30  ;;  %13892 = vmatprep.subr.bf16.mxu0 %v22848_v52  ;;  %14292 = vmatprep.subr.bf16.mxu1 %v18649_v31  ;;  %v7606_v51 = vand.u32 4294901760, %v7605_v63 }
 0x4d7   : > { %v7619_v41 = vsub.f32 %v22832_v4, %v22849_v10  ;;  %v14297_v30 = vpack.c.bf16 %v7487_v62, %v7480_v56  ;;  %v13899_v50 = vpack.c.bf16 %v5741_v20, %v5729_v60  ;;  %v5735_v39 = vand.u32 4294901760, %v5734_v17 }
 0x4d8   : > { %13894 = vmatpush1.bf16.msra.mxu0 %v22851_v15  ;;  %v7494_v52 = vand.u32 4294901760, %v7493_v55  ;;  %v7501_v31 = vand.u32 4294901760, %v7500_v47  ;;  %v5753_v63 = vand.u32 4294901760, %v5752_v9  ;;  %v5765_v16 = vand.u32 4294901760, %v5764_v45 }
 0x4d9   : > { %13896 = vmatprep.subr.bf16.mxu0 %v18740_v36  ;;  %14294 = vmatpush3.bf16.msra.mxu1 %v18653_v22  ;;  %v7507_v10 = vsub.f32 %v22846_v42, %v21688_v53  ;;  %v7514_v15 = vsub.f32 %v22847_v38, %v22852_v24  ;;  %v22853_v60 = vand.u32 4294901760, %v22766_v27  ;;  %v22854_v36 = vand.u32 4294901760, %v22767_v13 }
 0x4da   : > { %14296 = vmatprep.subr.bf16.mxu1 %v14295_v46  ;;  %v14299_v9 = vpack.c.bf16 %v7613_v19, %v7606_v51  ;;  %v7620_v45 = vand.u32 4294901760, %v7619_v41  ;;  %v7627_v22 = vand.u32 4294901760, %v7626_v61  ;;  %v13901_v47 = vpack.c.bf16 %v5747_v32, %v5735_v39 }
 0x4db   : > { %v7633_v56 = vsub.f32 %v22766_v27, %v22853_v60  ;;  %v7640_v62 = vsub.f32 %v22767_v13, %v22854_v36  ;;  %v14301_v20 = vpack.c.bf16 %v7501_v31, %v7494_v52  ;;  %v13903_v17 = vpack.c.bf16 %v5765_v16, %v5753_v63 }
 0x4dc   : > { %13898 = vmatpush1.bf16.msra.mxu0 %v13897_v5  ;;  %v22855_v40 = vand.u32 4294901760, %v22771_v8  ;;  %v22856_v24 = vand.u32 4294901760, %v22772_v7  ;;  %v7508_v53 = vand.u32 4294901760, %v7507_v10  ;;  %v7515_v36 = vand.u32 4294901760, %v7514_v15 }
 0x4dd   : > { %13900 = vmatprep.subr.bf16.mxu0 %v13899_v50  ;;  %14298 = vmatpush3.bf16.msra.mxu1 %v14297_v30  ;;  %v7634_v46 = vand.u32 4294901760, %v7633_v56  ;;  %v7641_v51 = vand.u32 4294901760, %v7640_v62  ;;  %v14303_v19 = vpack.c.bf16 %v7627_v22, %v7620_v45  ;;  %v22857_v5 = vand.u32 4294901760, %v22787_v26  ;;  %v22863_v22 = vld [vmem:[#allocation48_spill] sm:$0xff] }
 0x4de   : > { %v7521_v55 = vsub.f32 %v22771_v8, %v22855_v40  ;;  %v7528_v60 = vsub.f32 %v22772_v7, %v22856_v24  ;;  %14300 = vmatprep.subr.bf16.mxu1 %v14299_v9  ;;  %v22858_v41 = vand.u32 4294901760, %v22788_v49  ;;  %v14305_v30 = vpack.c.bf16 %v7515_v36, %v7508_v53 }
 0x4df   : > { %v7647_v32 = vsub.f32 %v22787_v26, %v22857_v5  ;;  %v14307_v52 = vpack.c.bf16 %v7641_v51, %v7634_v46  ;;  %v22859_v31 = vand.u32 4294901760, %v22789_v58  ;;  %v22860_v16 = vand.u32 4294901760, %v22791_v48  ;;  %v22867_v5 = vld [vmem:[#allocation163_spill] sm:$0xff] }
 0x4e0   : > { %v7654_v61 = vsub.f32 %v22788_v49, %v22858_v41  ;;  %13902 = vmatpush1.bf16.msra.mxu0 %v13901_v47  ;;  %v7522_v50 = vand.u32 4294901760, %v7521_v55  ;;  %v7529_v39 = vand.u32 4294901760, %v7528_v60  ;;  %v22861_v62 = vand.u32 4294901760, %v22807_v44  ;;  %v22864_v47 = vld [vmem:[#allocation162_spill] sm:$0xff] }
 0x4e1   : > { %13904 = vmatprep.subr.bf16.mxu0 %v13903_v17  ;;  %14302 = vmatpush3.bf16.msra.mxu1 %v14301_v20  ;;  %v7535_v63 = vsub.f32 %v22789_v58, %v22859_v31  ;;  %v7542_v10 = vsub.f32 %v22791_v48, %v22860_v16  ;;  %v7648_v15 = vand.u32 4294901760, %v7647_v32  ;;  %v22862_v45 = vand.u32 4294901760, %v22808_v6  ;;  %v22868_v32 = vld [vmem:[#allocation168_spill] sm:$0xff]  ;;  %v22870_v31 = vld [vmem:[#allocation173_spill] sm:$0xff]  ;;  %v22872_v16 = vld [vmem:[#allocation175_spill] sm:$0xff] }
 0x4e2   : > { %14304 = vmatprep.subr.bf16.mxu1 %v14303_v19  ;;  %v7655_v56 = vand.u32 4294901760, %v7654_v61  ;;  %v7661_v9 = vsub.f32 %v22807_v44, %v22861_v62  ;;  %v14309_v20 = vpack.c.bf16 %v7529_v39, %v7522_v50  ;;  %v22865_v55 = vand.u32 4294901760, %v22809_v21  ;;  %v22875_v62 = vld [vmem:[#allocation100_spill] sm:$0xff] }
 0x4e3   : > { %v7668_v53 = vsub.f32 %v22808_v6, %v22862_v45  ;;  %v7536_v17 = vand.u32 4294901760, %v7535_v63  ;;  %v7543_v40 = vand.u32 4294901760, %v7542_v10  ;;  %v22866_v60 = vand.u32 4294901760, %v22811_v37  ;;  %v22873_v10 = vld [vmem:[#allocation98_spill] sm:$0xff] }
 0x4e4   : > { %13906 = vmatpush1.bf16.msra.mxu0 %v22863_v22  ;;  %v7549_v24 = vsub.f32 %v22809_v21, %v22865_v55  ;;  %v14311_v46 = vpack.c.bf16 %v7655_v56, %v7648_v15  ;;  %v7662_v51 = vand.u32 4294901760, %v7661_v9  ;;  %v22874_v15 = vld [vmem:[#allocation104_spill] sm:$0xff]  ;;  %v22876_v9 = vld [vmem:[#allocation99_spill] sm:$0xff]  ;;  %v22883_v55 = vld [vmem:[#allocation129_spill] sm:$0xff] }
 0x4e5   : > { %13908 = vmatprep.subr.bf16.mxu0 %v22864_v47  ;;  %14306 = vmatpush3.bf16.msra.mxu1 %v14305_v30  ;;  %v7556_v36 = vsub.f32 %v22811_v37, %v22866_v60  ;;  %v7669_v19 = vand.u32 4294901760, %v7668_v53  ;;  %v14313_v41 = vpack.c.bf16 %v7543_v40, %v7536_v17  ;;  %v22869_v30 = vld [vmem:[#allocation169_spill] sm:$0xff]  ;;  %v14321_v56 = vpack.c.bf16 %v22874_v15, %v22873_v10  ;;  %v22878_v53 = vld [vmem:[#allocation116_spill] sm:$0xff]  ;;  %v22879_v22 = vld [vmem:[#allocation119_spill] sm:$0xff] }
 0x4e6   : > { %14308 = vmatprep.subr.bf16.mxu1 %v14307_v52  ;;  %v7550_v61 = vand.u32 4294901760, %v7549_v24  ;;  %v22871_v52 = vld [vmem:[#allocation174_spill] sm:$0xff]  ;;  %v22877_v45 = vpack.c.bf16 %v22875_v62, %v22876_v9  ;;  %v14323_v47 = vpack.c.bf16 %v22879_v22, %v22878_v53  ;;  %v14327_v60 = vpack.c.bf16 %v22757_v34, %v22751_v2 }
 0x4e7   : > { %v7557_v50 = vand.u32 4294901760, %v7556_v36  ;;  %v14315_v39 = vpack.c.bf16 %v7669_v19, %v7662_v51  ;;  %v22881_v17 = vld [vmem:[#allocation178_spill] sm:$0xff]  ;;  %v22884_v36 = vld [vmem:[#allocation179_spill] sm:$0xff]  ;;  %v14329_v51 = vpack.c.bf16 %v18243_v12, %v18241_v3  ;;  %v14331_v19 = vpack.c.bf16 %v22818_v59, %v22817_v0 }
 0x4e8   : > { %13910 = vmatpush1.bf16.msra.mxu0 %v22867_v5  ;;  %v22882_v40 = vld [vmem:[#allocation126_spill] sm:$0xff]  ;;  %v22886_v5 = vld [vmem:[#allocation181_spill] sm:$0xff] }
 0x4e9   : > { %13912 = vmatprep.subr.bf16.mxu0 %v22868_v32  ;;  %14310 = vmatpush3.bf16.msra.mxu1 %v14309_v20  ;;  %v14317_v63 = vpack.c.bf16 %v7557_v50, %v7550_v61  ;;  %v22880_v20 = vld [vmem:[#allocation177_spill] sm:$0xff]  ;;  %v14325_v24 = vpack.c.bf16 %v22883_v55, %v22882_v40  ;;  %v22887_v32 = vld [vmem:[#allocation184_spill] sm:$0xff]  ;;  %v14335_v61 = vpack.c.bf16 %v22833_v11, %v22832_v4  ;;  %v22888_v50 = vld [vmem:[#allocation186_spill] sm:$0xff] }
 0x4ea   : > { %14312 = vmatprep.subr.bf16.mxu1 %v14311_v46  ;;  %v22885_v46 = vld [vmem:[#allocation180_spill] sm:$0xff] }
 0x4ec   : > { %13914 = vmatpush1.bf16.msra.mxu0 %v22869_v30  ;;  %v14337_v30 = vpack.c.bf16 %v22847_v38, %v22846_v42 }
 0x4ed   : > { %13916 = vmatprep.subr.bf16.mxu0 %v22870_v31  ;;  %14314 = vmatpush3.bf16.msra.mxu1 %v14313_v41  ;;  %v14333_v41 = vpack.c.bf16 %v22826_v29, %v22819_v25  ;;  %v14339_v31 = vpack.c.bf16 %v22767_v13, %v22766_v27  ;;  %v14345_v27 = vpack.c.bf16 %v22791_v48, %v22789_v58  ;;  %v22896_v58 = vld [vmem:[#allocation109_spill] sm:$0xff]  ;;  %v22897_v48 = vld [vmem:[#allocation114_spill] sm:$0xff] }
 0x4ee   : > { %14316 = vmatprep.subr.bf16.mxu1 %v14315_v39  ;;  %v22889_v39 = vld [vmem:[#allocation188_spill] sm:$0xff]  ;;  %v14347_v13 = vpack.c.bf16 %v22808_v6, %v22807_v44  ;;  %v22898_v6 = vld [vmem:[#allocation42_spill] sm:$0xff] }
 0x4ef   : > { %v13955_v44 = vpack.c.bf16 %v22898_v6, %v22897_v48 }
 0x4f0   : > { %13918 = vmatpush1.bf16.msra.mxu0 %v22871_v52  ;;  %v22891_v52 = vld [vmem:[#allocation59_spill] sm:$0xff] }
 0x4f1   : > { %13920 = vmatprep.subr.bf16.mxu0 %v22872_v16  ;;  %14318 = vmatpush3.bf16.msra.mxu1 %v14317_v63  ;;  %v22890_v63 = vld [vmem:[#allocation189_spill] sm:$0xff]  ;;  %v14341_v16 = vpack.c.bf16 %v22772_v7, %v22771_v8  ;;  %v22894_v8 = vld [vmem:[#allocation31_spill] sm:$0xff] }
 0x4f2   : > { %14320 = vmatprep.subr.bf16.mxu1 %v22877_v45  ;;  %v22892_v45 = vld [vmem:[#allocation191_spill] sm:$0xff]  ;;  %v22893_v7 = vld [vmem:[#allocation29_spill] sm:$0xff] }
 0x4f4   : > { %13922 = vmatpush1.bf16.msra.mxu0 %v22880_v20  ;;  %7674 = vmatmul.mubr.f32.vlgmr.msra.gmra.mrb[22].mxu1 %v18737_v43  ;;  %v22903_v20 = vld [vmem:[#allocation55_spill] sm:$0xff] }
 0x4f5   : > { %13924 = vmatprep.subr.bf16.mxu0 %v22881_v17  ;;  %14322 = vmatpush3.bf16.msra.mxu1 %v14321_v56  ;;  %v14343_v56 = vpack.c.bf16 %v22788_v49, %v22787_v26  ;;  %v14349_v26 = vpack.c.bf16 %v22811_v37, %v22809_v21  ;;  %v22901_v21 = vld [vmem:[#allocation49_spill] sm:$0xff] }
 0x4f6   : > { %7809 = vmatprep.mubr.f32.mxu1 %v18768_v28  ;;  %14324 = vmatprep.subr.bf16.mxu1 %v14323_v47  ;;  %v13951_v47 = vpack.c.bf16 %v22894_v8, %v22893_v7 }
 0x4f8   : > { %13926 = vmatpush1.bf16.msra.mxu0 %v22884_v36  ;;  %v22906_v36 = vld [vmem:[#allocation61_spill] sm:$0xff] }
 0x4f9   : > { %13928 = vmatprep.subr.bf16.mxu0 %v22885_v46  ;;  %14326 = vmatpush3.bf16.msra.mxu1 %v14325_v24  ;;  %v22904_v24 = vld [vmem:[#allocation62_spill] sm:$0xff]  ;;  %v13961_v46 = vpack.c.bf16 %v22906_v36, %v22737_v18 }
 0x4fa   : > { %14328 = vmatprep.subr.bf16.mxu1 %v14327_v60  ;;  %v22905_v60 = vld [vmem:[#allocation111_spill] sm:$0xff] }
 0x4fc   : > { %13930 = vmatpush1.bf16.msra.mxu0 %v22886_v5  ;;  %v22909_v5 = vld [vmem:[#allocation123_spill] sm:$0xff] }
 0x4fd   : > { %13932 = vmatprep.subr.bf16.mxu0 %v22887_v32  ;;  %14330 = vmatpush3.bf16.msra.mxu1 %v14329_v51  ;;  %v22908_v51 = vld [vmem:[#allocation67_spill] sm:$0xff]  ;;  %v22910_v32 = vld [vmem:[#allocation132_spill] sm:$0xff] }
 0x4fe   : > { %14332 = vmatprep.subr.bf16.mxu1 %v14331_v19 }
 0x500   : > { %13934 = vmatpush1.bf16.msra.mxu0 %v22888_v50 }
 0x501   : > { %13936 = vmatprep.subr.bf16.mxu0 %v22889_v39  ;;  %14334 = vmatpush3.bf16.msra.mxu1 %v14333_v41  ;;  %v22911_v41 = vld [vmem:[#allocation71_spill] sm:$0xff]  ;;  %v22913_v39 = vld [vmem:[#allocation78_spill] sm:$0xff] }
 0x502   : > { %14336 = vmatprep.subr.bf16.mxu1 %v14335_v61  ;;  %v22912_v61 = vld [vmem:[#allocation73_spill] sm:$0xff] }
 0x503   : > { %v13965_v50 = vpack.c.bf16 %v22912_v61, %v22911_v41  ;;  %v22940_v61 = vld [vmem:[#allocation158_spill] sm:$0xff] }
 0x504   : > { %13938 = vmatpush1.bf16.msra.mxu0 %v22890_v63  ;;  %v22915_v63 = vld [vmem:[#allocation144_spill] sm:$0xff] }
 0x505   : > { %13940 = vmatprep.subr.bf16.mxu0 %v22891_v52  ;;  %14338 = vmatpush3.bf16.msra.mxu1 %v14337_v30  ;;  %v13967_v30 = vpack.c.bf16 %v22828_v33, %v22913_v39  ;;  %v22916_v52 = vld [vmem:[#allocation153_spill] sm:$0xff]  ;;  %v22932_v33 = vld [vmem:[#allocation88_spill] sm:$0xff] }
 0x506   : > { %14340 = vmatprep.subr.bf16.mxu1 %v14339_v31  ;;  %v22914_v31 = vld [vmem:[#allocation141_spill] sm:$0xff] }
 0x508   : > { %13942 = vmatpush1.bf16.msra.mxu0 %v22892_v45  ;;  %v22919_v45 = vld [vmem:[#allocation83_spill] sm:$0xff] }
 0x509   : > { %13944 = vmatprep.subr.bf16.mxu0 %v18634_v14  ;;  %14342 = vmatpush3.bf16.msra.mxu1 %v14341_v16  ;;  %v22895_v14 = vld [vmem:[#allocation36_spill] sm:$0xff]  ;;  %v22917_v16 = vld [vmem:[#allocation63_spill] sm:$0xff] }
 0x50a   : > { %14344 = vmatprep.subr.bf16.mxu1 %v14343_v56  ;;  %v13953_v49 = vpack.c.bf16 %v22896_v58, %v22895_v14  ;;  %v22918_v56 = vld [vmem:[#allocation85_spill] sm:$0xff] }
 0x50c   : > { %13946 = vmatpush1.bf16.msra.mxu0 %v18640_v57  ;;  %v22899_v57 = vld [vmem:[#allocation94_spill] sm:$0xff] }
 0x50d   : > { %13948 = vmatprep.subr.bf16.mxu0 %v18662_v35  ;;  %14346 = vmatpush3.bf16.msra.mxu1 %v14345_v27  ;;  %v22900_v35 = vld [vmem:[#allocation43_spill] sm:$0xff]  ;;  %v22920_v27 = vpack.c.bf16 %v22918_v56, %v22919_v45  ;;  %v22933_v56 = vld [vmem:[#allocation24_spill] sm:$0xff] }
 0x50e   : > { %14348 = vmatprep.subr.bf16.mxu1 %v14347_v13  ;;  %v13957_v37 = vpack.c.bf16 %v22901_v21, %v22900_v35  ;;  %v22921_v13 = vld [vmem:[#allocation47_spill] sm:$0xff]  ;;  %v22935_v45 = vld [vmem:[#allocation96_spill] sm:$0xff] }
 0x510   : > { %13950 = vmatpush1.bf16.msra.mxu0 %v18678_v1  ;;  %v22902_v1 = vld [vmem:[#allocation54_spill] sm:$0xff] }
 0x511   : > { %13952 = vmatprep.subr.bf16.mxu0 %v13951_v47  ;;  %14350 = vmatpush3.bf16.msra.mxu1 %v14349_v26  ;;  %v13959_v17 = vpack.c.bf16 %v22903_v20, %v22902_v1  ;;  %v22922_v47 = vld [vmem:[#allocation41_spill] sm:$0xff] }
 0x512   : > { %14352 = vmatprep.subr.bf16.mxu1 %v22899_v57  ;;  %v22923_v26 = vpack.c.bf16 %v22921_v13, %v22922_v47  ;;  %v22938_v47 = vld [vmem:[#allocation92_spill] sm:$0xff] }
 0x513   : > { %6040 = vmatmul.mubr.f32.vlgmr.msra.gmra.mrb[4].mxu0 %v18737_v43 }
 0x514   : > { %13954 = vmatpush1.bf16.msra.mxu0 %v13953_v49  ;;  %6240 = vmatprep.mubr.f32.mxu0 %v18768_v28  ;;  %v22907_v28 = vld [vmem:[#allocation66_spill] sm:$0xff] }
 0x515   : > { %7812 = vmatmul.mubr.f32.vlgmr.msra.gmra.mrb[24].mxu1 %v18762_v23  ;;  %13956 = vmatprep.subr.bf16.mxu0 %v13955_v44  ;;  %v13963_v19 = vpack.c.bf16 %v22908_v51, %v22907_v28  ;;  %v22924_v49 = vld [vmem:[#allocation70_spill] sm:$0xff]  ;;  %v22947_v51 = vld [vmem:[#allocation45_spill] sm:$0xff] }
 0x516   : > { %14354 = vmatpush3.bf16.msra.mxu1 %v22904_v24  ;;  %7916 = vmatprep.mubr.f32.mxu1 %v18792_v54  ;;  %v22925_v44 = vld [vmem:[#allocation82_spill] sm:$0xff] }
 0x517   : > { %14356 = vmatprep.subr.bf16.mxu1 %v22905_v60 }
 0x518   : > { %13958 = vmatpush1.bf16.msra.mxu0 %v13957_v37  ;;  %v22926_v37 = vld [vmem:[#allocation65_spill] sm:$0xff] }
 0x519   : > { %13960 = vmatprep.subr.bf16.mxu0 %v13959_v17  ;;  %v22927_v17 = vld [vmem:[#allocation53_spill] sm:$0xff] }
 0x51a   : > { %14358 = vmatpush3.bf16.msra.mxu1 %v22909_v5 }
 0x51b   : > { %14360 = vmatprep.subr.bf16.mxu1 %v22910_v32 }
 0x51c   : > { %13962 = vmatpush1.bf16.msra.mxu0 %v13961_v46  ;;  %v22928_v46 = vpack.c.bf16 %v22926_v37, %v22927_v17  ;;  %v22941_v37 = vld [vmem:[#allocation161_spill] sm:$0xff]  ;;  %v22945_v17 = vld [vmem:[#allocation16_spill] sm:$0xff] }
 0x51d   : > { %13964 = vmatprep.subr.bf16.mxu0 %v13963_v19  ;;  %v22929_v19 = vld [vmem:[#allocation84_spill] sm:$0xff] }
 0x51e   : > { %14362 = vmatpush3.bf16.msra.mxu1 %v22914_v31 }
 0x51f   : > { %14364 = vmatprep.subr.bf16.mxu1 %v22915_v63 }
 0x520   : > { %13966 = vmatpush1.bf16.msra.mxu0 %v13965_v50  ;;  %v22930_v50 = vld [vmem:[#allocation77_spill] sm:$0xff] }
 0x521   : > { %13968 = vmatprep.subr.bf16.mxu0 %v13967_v30  ;;  %v22931_v30 = vpack.c.bf16 %v22929_v19, %v22930_v50  ;;  %v22944_v50 = vld [vmem:[#allocation20_spill] sm:$0xff] }
 0x522   : > { %14366 = vmatpush3.bf16.msra.mxu1 %v22916_v52  ;;  %v22946_v41 = vpack.c.bf16 %v22944_v50, %v22945_v17  ;;  %v22956_v50 = vld [vmem:[#allocation50_spill] sm:$0xff]  ;;  %v22958_v17 = vld [vmem:[#allocation81_spill] sm:$0xff] }
 0x523   : > { %14368 = vmatprep.subr.bf16.mxu1 %v22917_v16 }
 0x524   : > { %13970 = vmatpush1.bf16.msra.mxu0 %v22920_v27  ;;  %v22934_v27 = vld [vmem:[#allocation101_spill] sm:$0xff] }
 0x525   : > { %13972 = vmatprep.subr.bf16.mxu0 %v22923_v26  ;;  %v22936_v13 = vpack.c.bf16 %v22934_v27, %v22935_v45  ;;  %v22937_v26 = vld [vmem:[#allocation13_spill] sm:$0xff]  ;;  %v22948_v27 = vld [vmem:[#allocation40_spill] sm:$0xff]  ;;  %v22950_v45 = vld [vmem:[#allocation166_spill] sm:$0xff] }
 0x526   : > { %14370 = vmatpush3.bf16.msra.mxu1 %v22924_v49  ;;  %v22939_v39 = vpack.c.bf16 %v22937_v26, %v22938_v47  ;;  %v22952_v26 = vand.u32 4294901760, %v22874_v15  ;;  %v22963_v15 = vand.u32 4294901760, %v22882_v40  ;;  %v22973_v40 = vand.u32 4294901760, %v18241_v3 }
 0x527   : > { %14372 = vmatprep.subr.bf16.mxu1 %v22925_v44  ;;  %v22983_v3 = vand.u32 4294901760, %v22819_v25  ;;  %v22993_v25 = vand.u32 4294901760, %v22846_v42  ;;  %v23005_v42 = vld [vmem:[#allocation157_spill] sm:$0xff] }
 0x528   : > { %13974 = vmatpush1.bf16.msra.mxu0 %v22928_v46  ;;  %v22942_v46 = vand.u32 4294901760, %v22876_v9  ;;  %v22953_v9 = vand.u32 4294901760, %v22878_v53  ;;  %v22964_v53 = vand.u32 4294901760, %v22883_v55  ;;  %v22974_v55 = vand.u32 4294901760, %v18243_v12 }
 0x529   : > { %13976 = vmatprep.subr.bf16.mxu0 %v22931_v30  ;;  %v22943_v30 = vand.u32 4294901760, %v22875_v62  ;;  %v22954_v62 = vand.u32 4294901760, %v22879_v22  ;;  %v22965_v22 = vand.u32 4294901760, %v22751_v2  ;;  %v22975_v2 = vand.u32 4294901760, %v22817_v0 }
 0x52a   : > { %14374 = vmatpush3.bf16.msra.mxu1 %v22932_v33  ;;  %v22984_v12 = vand.u32 4294901760, %v22826_v29  ;;  %v22985_v0 = vand.u32 4294901760, %v22832_v4  ;;  %v22994_v29 = vand.u32 4294901760, %v22847_v38  ;;  %v22996_v4 = vld [vmem:[#allocation57_spill] sm:$0xff] }
 0x52b   : > { %14376 = vmatprep.subr.bf16.mxu1 %v22933_v56  ;;  %v14383_v19 = vpack.c.bf16 %v22943_v30, %v22942_v46  ;;  %v14387_v46 = vpack.c.bf16 %v22954_v62, %v22953_v9  ;;  %v22955_v30 = vld [vmem:[#allocation52_spill] sm:$0xff]  ;;  %v22967_v9 = vld [vmem:[#allocation118_spill] sm:$0xff]  ;;  %v22968_v62 = vld [vmem:[#allocation117_spill] sm:$0xff] }
 0x52c   : > { %13978 = vmatpush1.bf16.msra.mxu0 %v22936_v13  ;;  %v22949_v13 = vpack.c.bf16 %v22947_v51, %v22948_v27  ;;  %v22960_v51 = vld [vmem:[#allocation106_spill] sm:$0xff] }
 0x52d   : > { %13980 = vmatprep.subr.bf16.mxu0 %v22939_v39  ;;  %v22951_v39 = vand.u32 4294901760, %v22873_v10  ;;  %v22962_v10 = vld [vmem:[#allocation135_spill] sm:$0xff] }
 0x52e   : > { %14378 = vmatpush3.bf16.msra.mxu1 %v22940_v61 }
 0x52f   : > { %14380 = vmatprep.subr.bf16.mxu1 %v22941_v37  ;;  %v14385_v47 = vpack.c.bf16 %v22952_v26, %v22951_v39  ;;  %v22966_v26 = vand.u32 4294901760, %v22757_v34  ;;  %v22976_v34 = vand.u32 4294901760, %v22818_v59  ;;  %v22986_v59 = vand.u32 4294901760, %v22833_v11  ;;  %v22998_v11 = vld [vmem:[#allocation148_spill] sm:$0xff] }
 0x530   : > { %13982 = vmatpush1.bf16.msra.mxu0 %v22946_v41  ;;  %v22957_v41 = vpack.c.bf16 %v22955_v30, %v22956_v50 }
 0x531   : > { %13984 = vmatprep.subr.bf16.mxu0 %v22949_v13  ;;  %v22959_v13 = vld [vmem:[#allocation110_spill] sm:$0xff]  ;;  %v14391_v39 = vpack.c.bf16 %v22966_v26, %v22965_v22  ;;  %v22978_v22 = vld [vmem:[#allocation125_spill] sm:$0xff] }
 0x532   : > { %14382 = vmatpush3.bf16.msra.mxu1 %v22950_v45  ;;  %v22961_v27 = vpack.c.bf16 %v22959_v13, %v22960_v51  ;;  %v22970_v13 = vld [vmem:[#allocation122_spill] sm:$0xff] }
 0x533   : > { %14384 = vmatprep.subr.bf16.mxu1 %v14383_v19  ;;  %v14389_v19 = vpack.c.bf16 %v22964_v53, %v22963_v15  ;;  %v14393_v15 = vpack.c.bf16 %v22974_v55, %v22973_v40  ;;  %v22977_v53 = vld [vmem:[#allocation127_spill] sm:$0xff]  ;;  %v22988_v40 = vld [vmem:[#allocation134_spill] sm:$0xff] }
 0x534   : > { %13986 = vmatpush1.bf16.msra.mxu0 %v22957_v41  ;;  %v22969_v41 = vpack.c.bf16 %v22967_v9, %v22968_v62  ;;  %v22979_v26 = vpack.c.bf16 %v22977_v53, %v22978_v22  ;;  %v22981_v9 = vld [vmem:[#allocation130_spill] sm:$0xff] }
 0x535   : > { %7920 = vmatmul.mubr.f32.vlgmr.msra.gmra.mrb[26].mxu1 %v22958_v17  ;;  %13988 = vmatprep.subr.bf16.mxu0 %v22961_v27  ;;  %v22971_v27 = vld [vmem:[#allocation121_spill] sm:$0xff] }
 0x536   : > { %14386 = vmatpush3.bf16.msra.mxu1 %v14385_v47  ;;  %8086 = vmatprep.mubr.f32.mxu1 %v22962_v10  ;;  %v22972_v47 = vpack.c.bf16 %v22970_v13, %v22971_v27 }
 0x537   : > { %14388 = vmatprep.subr.bf16.mxu1 %v14387_v46  ;;  %v14395_v46 = vpack.c.bf16 %v22976_v34, %v22975_v2  ;;  %v22990_v2 = vld [vmem:[#allocation140_spill] sm:$0xff]  ;;  %v22991_v34 = vld [vmem:[#allocation139_spill] sm:$0xff] }
 0x538   : > { %13990 = vmatpush1.bf16.msra.mxu0 %v22969_v41  ;;  %v22980_v41 = vld [vmem:[#allocation131_spill] sm:$0xff] }
 0x539   : > { %13992 = vmatprep.subr.bf16.mxu0 %v22972_v47  ;;  %v22982_v13 = vpack.c.bf16 %v22980_v41, %v22981_v9  ;;  %v22987_v47 = vld [vmem:[#allocation136_spill] sm:$0xff] }
 0x53a   : > { %14390 = vmatpush3.bf16.msra.mxu1 %v14389_v19  ;;  %v14397_v19 = vpack.c.bf16 %v22984_v12, %v22983_v3  ;;  %v22989_v55 = vpack.c.bf16 %v22987_v47, %v22988_v40  ;;  %v22999_v3 = vld [vmem:[#allocation146_spill] sm:$0xff] }
 0x53b   : > { %14392 = vmatprep.subr.bf16.mxu1 %v14391_v39  ;;  %v14399_v39 = vpack.c.bf16 %v22986_v59, %v22985_v0  ;;  %v23000_v12 = vpack.c.bf16 %v22998_v11, %v22999_v3  ;;  %v23001_v0 = vld [vmem:[#allocation138_spill] sm:$0xff]  ;;  %v23002_v59 = vld [vmem:[#allocation152_spill] sm:$0xff] }
 0x53c   : > { %13994 = vmatpush1.bf16.msra.mxu0 %v22979_v26  ;;  %v22992_v26 = vpack.c.bf16 %v22990_v2, %v22991_v34 }
 0x53d   : > { %13996 = vmatprep.subr.bf16.mxu0 %v22982_v13  ;;  %v14401_v13 = vpack.c.bf16 %v22994_v29, %v22993_v25  ;;  %v23009_v25 = vld [vmem:[#allocation93_spill] sm:$0xff]  ;;  %v23010_v29 = vld [vmem:[#allocation15_spill] sm:$0xff] }
 0x53e   : > { %14394 = vmatpush3.bf16.msra.mxu1 %v14393_v15  ;;  %v22995_v15 = vld [vmem:[#allocation143_spill] sm:$0xff] }
 0x53f   : > { %14396 = vmatprep.subr.bf16.mxu1 %v14395_v46  ;;  %v22997_v46 = vpack.c.bf16 %v22995_v15, %v22996_v4 }
 0x540   : > { %13998 = vmatpush1.bf16.msra.mxu0 %v22989_v55  ;;  %v23003_v55 = vld [vmem:[#allocation151_spill] sm:$0xff] }
 0x541   : > { %14000 = vmatprep.subr.bf16.mxu0 %v22992_v26  ;;  %v23006_v26 = vld [vmem:[#allocation155_spill] sm:$0xff] }
 0x542   : > { %14398 = vmatpush3.bf16.msra.mxu1 %v14397_v19  ;;  %v23004_v19 = vpack.c.bf16 %v23002_v59, %v23003_v55  ;;  %v23007_v38 = vpack.c.bf16 %v23005_v42, %v23006_v26  ;;  %v23017_v59 = vld [vmem:[#allocation25_spill] sm:$0xff]  ;;  %v23019_v55 = vld [vmem:[#allocation44_spill] sm:$0xff] }
 0x543   : > { %14400 = vmatprep.subr.bf16.mxu1 %v14399_v39  ;;  %v23008_v39 = vld [vmem:[#allocation87_spill] sm:$0xff] }
 0x544   : > { %14002 = vmatpush1.bf16.msra.mxu0 %v22997_v46  ;;  %v23011_v46 = vld [vmem:[#allocation107_spill] sm:$0xff] }
 0x545   : > { %14004 = vmatprep.subr.bf16.mxu0 %v23000_v12  ;;  %v23012_v15 = vpack.c.bf16 %v23010_v29, %v23011_v46  ;;  %v23013_v12 = vld [vmem:[#allocation32_spill] sm:$0xff] }
 0x546   : > { %14402 = vmatpush3.bf16.msra.mxu1 %v14401_v13  ;;  %v23014_v13 = vld [vmem:[#allocation27_spill] sm:$0xff] }
 0x547   : > { %14404 = vmatprep.subr.bf16.mxu1 %v23001_v0  ;;  %v23015_v11 = vpack.c.bf16 %v23013_v12, %v23014_v13  ;;  %v23016_v0 = vld [vmem:[#allocation19_spill] sm:$0xff] }
 0x548   : > { %14006 = vmatpush1.bf16.msra.mxu0 %v23004_v19  ;;  %v23018_v19 = vld [vmem:[#allocation51_spill] sm:$0xff] }
 0x549   : > { %14008 = vmatprep.subr.bf16.mxu0 %v23007_v38  ;;  %v23020_v42 = vpack.c.bf16 %v23018_v19, %v23019_v55  ;;  %v23021_v38 = vld [vmem:[#allocation90_spill] sm:$0xff] }
 0x54a   : > { %14406 = vmatpush3.bf16.msra.mxu1 %v23008_v39  ;;  %v23022_v39 = vld [vmem:[#allocation37_spill] sm:$0xff] }
 0x54b   : > { %14408 = vmatprep.subr.bf16.mxu1 %v23009_v25  ;;  %v23031_v25 = vld [vmem:[#allocation30_spill] sm:$0xff] }
 0x54c   : > { %14010 = vmatpush1.bf16.msra.mxu0 %v23012_v15  ;;  %v23023_v15 = vld [vmem:[#allocation91_spill] sm:$0xff] }
 0x54d   : > { %14012 = vmatprep.subr.bf16.mxu0 %v23015_v11  ;;  %v23024_v11 = vld [vmem:[#allocation95_spill] sm:$0xff] }
 0x54e   : > { %14410 = vmatpush3.bf16.msra.mxu1 %v23016_v0 }
 0x54f   : > { %14412 = vmatprep.subr.bf16.mxu1 %v23017_v59  ;;  %v23025_v59 = vld [vmem:[#allocation97_spill] sm:$0xff] }
 0x550   : > { %14014 = vmatpush1.bf16.msra.mxu0 %v23020_v42  ;;  %v23026_v42 = vld [vmem:[#allocation102_spill] sm:$0xff] }
 0x551   : > { %14016 = vmatprep.subr.bf16.mxu0 %v23021_v38 }
 0x552   : > { %14414 = vmatpush3.bf16.msra.mxu1 %v23022_v39  ;;  %v5503_v39 = vld [vmem:[#allocation6 + $0x358] sm:$0xff] }
 0x553   : > { %6243 = vmatmul.mubr.f32.vlgmr.msra.gmra.mrb[4].mxu0 %v18762_v23  ;;  %14416 = vmatprep.subr.bf16.mxu1 %v22899_v57  ;;  %v23027_v23 = vld [vmem:[#allocation103_spill] sm:$0xff]  ;;  %v23029_v57 = vld [vmem:[#allocation18_spill] sm:$0xff] }
 0x554   : > { %14018 = vmatpush1.bf16.msra.mxu0 %v23023_v15  ;;  %6380 = vmatprep.mubr.f32.mxu0 %v18792_v54  ;;  %v23028_v54 = vld [vmem:[#allocation14_spill] sm:$0xff] }
 0x555   : > { %8088 = vmatmul.mubr.f32.vlgmr.msra.gmra.mrb[28].mxu1 %v18737_v43  ;;  %14020 = vmatprep.subr.bf16.mxu0 %v23024_v11 }
 0x556   : > { %14418 = vmatpush3.bf16.msra.mxu1 %v22904_v24  ;;  %8190 = vmatprep.mubr.f32.mxu1 %v22962_v10  ;;  %v23030_v24 = vld [vmem:[#allocation23_spill] sm:$0xff] }
 0x557   : > { %14420 = vmatprep.subr.bf16.mxu1 %v22905_v60  ;;  %v5494_v60 = vld [vmem:[#allocation6 + $0x310] sm:$0xff] }
 0x558   : > { %14022 = vmatpush1.bf16.msra.mxu0 %v23025_v59  ;;  %v8198_v0 = vand.u32 4294901760, %v5494_v60 }
 0x559   : > { %14024 = vmatprep.subr.bf16.mxu0 %v23026_v42  ;;  %v23045_v42 = vld [vmem:[#allocation124_spill] sm:$0xff] }
 0x55a   : > { %14422 = vmatpush3.bf16.msra.mxu1 %v22909_v5  ;;  %v5497_v5 = vld [vmem:[#allocation6 + $0x328] sm:$0xff] }
 0x55b   : > { %14424 = vmatprep.subr.bf16.mxu1 %v22910_v32  ;;  %v23032_v32 = vld [vmem:[#allocation35_spill] sm:$0xff] }
 0x55c   : > { %14026 = vmatpush1.bf16.msra.mxu0 %v23027_v23  ;;  %v23044_v23 = vld [vmem:[#allocation120_spill] sm:$0xff] }
 0x55d   : > { %14028 = vmatprep.subr.bf16.mxu0 %v23028_v54  ;;  %v23036_v54 = vld [vmem:[#allocation12_spill] sm:$0xff] }
 0x55e   : > { %14426 = vmatpush3.bf16.msra.mxu1 %v22914_v31  ;;  %v8201_v31 = vand.u32 4294901760, %v5497_v5 }
 0x55f   : > { %14428 = vmatprep.subr.bf16.mxu1 %v22915_v63  ;;  %v5500_v63 = vld [vmem:[#allocation6 + $0x340] sm:$0xff] }
 0x560   : > { %14030 = vmatpush1.bf16.msra.mxu0 %v23029_v57  ;;  %v23033_v57 = vld [vmem:[#allocation60_spill] sm:$0xff] }
 0x561   : > { %14032 = vmatprep.subr.bf16.mxu0 %v23030_v24  ;;  %v23034_v24 = vld [vmem:[#allocation72_spill] sm:$0xff] }
 0x562   : > { %14430 = vmatpush3.bf16.msra.mxu1 %v22916_v52  ;;  %v19182_v52 = vsub.f32 %v5494_v60, %v8198_v0 }
 0x563   : > { %14432 = vmatprep.subr.bf16.mxu1 %v22917_v16  ;;  %v19184_v16 = vsub.f32 %v5497_v5, %v8201_v31  ;;  %v23037_v5 = vld [vmem:[#allocation17_spill] sm:$0xff] }
 0x564   : > { %14034 = vmatpush1.bf16.msra.mxu0 %v23031_v25  ;;  %v8204_v25 = vand.u32 4294901760, %v5500_v63 }
 0x565   : > { %14036 = vmatprep.subr.bf16.mxu0 %v23032_v32  ;;  %v8207_v32 = vand.u32 4294901760, %v5503_v39  ;;  %v21690_v60 = vand.u32 4294901760, %v19184_v16 }
 0x566   : > { %14434 = vmatpush3.bf16.msra.mxu1 %v22924_v49  ;;  %v23035_v49 = vld [vmem:[#allocation89_spill] sm:$0xff] }
 0x567   : > { %14436 = vmatprep.subr.bf16.mxu1 %v22925_v44  ;;  %v19190_v44 = vsub.f32 %v5500_v63, %v8204_v25  ;;  %v8287_v63 = vsub.f32 %v19184_v16, %v21690_v60 }
 0x568   : > { %14038 = vmatpush1.bf16.msra.mxu0 %v23033_v57  ;;  %v19192_v57 = vsub.f32 %v5503_v39, %v8207_v32 }
 0x569   : > { %14040 = vmatprep.subr.bf16.mxu0 %v23034_v24  ;;  %v23038_v24 = vld [vmem:[#allocation39_spill] sm:$0xff]  ;;  %v8293_v39 = vand.u32 4294901760, %v19190_v44 }
 0x56a   : > { %14438 = vmatpush3.bf16.msra.mxu1 %v22932_v33  ;;  %v21691_v33 = vand.u32 4294901760, %v19182_v52 }
 0x56b   : > { %14440 = vmatprep.subr.bf16.mxu1 %v22933_v56  ;;  %v19199_v56 = vpack.c.bf16 %v8201_v31, %v8198_v0  ;;  %v23041_v0 = vld [vmem:[#allocation105_spill] sm:$0xff]  ;;  %v23042_v31 = vmov 0.0  }
 0x56c   : > { %14042 = vmatpush1.bf16.msra.mxu0 %v23035_v49 }
 0x56d   : > { %14044 = vmatprep.subr.bf16.mxu0 %v23036_v54  ;;  %v23039_v54 = vmov 0.0|0.0  }
 0x56e   : > { %14442 = vmatpush3.bf16.msra.mxu1 %v22940_v61  ;;  %v8280_v61 = vsub.f32 %v19182_v52, %v21691_v33  ;;  %v8288_v33 = vand.u32 4294901760, %v8287_v63  ;;  %v23047_v63 = vld [vmem:[#allocation128_spill] sm:$0xff] }
 0x56f   : > { %14444 = vmatprep.subr.bf16.mxu1 %v22941_v37  ;;  %v8300_v37 = vand.u32 4294901760, %v19192_v57 }
 0x570   : > { %14046 = vmatpush1.bf16.msra.mxu0 %v23037_v5  ;;  %v23040_v5 = vld [vmem:[#allocation46_spill] sm:$0xff]  ;;  %v8281_v60 = vand.u32 4294901760, %v8280_v61 }
 0x571   : > { %14048 = vmatprep.subr.bf16.mxu0 %v23038_v24  ;;  %v8294_v24 = vsub.f32 %v19190_v44, %v8293_v39  ;;  %v8301_v49 = vsub.f32 %v19192_v57, %v8300_v37  ;;  %v23046_v61 = vld [vmem:[#allocation190_spill] sm:$0xff] }
 0x572   : > { %14446 = vmatpush3.bf16.msra.mxu1 %v22950_v45  ;;  %v19214_v45 = vpack.c.bf16 %v8207_v32, %v8204_v25  ;;  %v14454_v25 = vpack.c.bf16 %v8288_v33, %v8281_v60  ;;  %v23049_v33 = vld [vmem:[#allocation137_spill] sm:$0xff]  ;;  %v23051_v60 = vld [vmem:[#allocation183_spill] sm:$0xff] }
 0x573   : > { %14447 = vmatprep.subr.bf16.mxu1 %v23039_v54  ;;  %v8295_v32 = vand.u32 4294901760, %v8294_v24  ;;  %v14460_v24 = vpack.c.bf16 %v19184_v16, %v19182_v52 }
 0x574   : > { %14050 = vmatpush1.bf16.msra.mxu0 %v23040_v5  ;;  %v23043_v5 = vld [vmem:[#allocation112_spill] sm:$0xff] }
 0x575   : > { %8192 = vmatmul.mubr.f32.vlgmr.msra.gmra.mrb[30].mxu1 %v18737_v43  ;;  %14052 = vmatprep.subr.bf16.mxu0 %v23041_v0  ;;  %v8302_v0 = vand.u32 4294901760, %v8301_v49  ;;  %v23050_v49 = vld [vmem:[#allocation142_spill] sm:$0xff] }
 0x576   : > { %14449 = vmatpush3.bf16.msra.mxu1 %v19199_v56  ;;  %12775 = vmatprep.mubr.msk.f32.mxu1 %vm15296_vm1, %v23042_v31 }
 0x577   : > { %14450 = vmatprep.subr.bf16.mxu1 %v23039_v54  ;;  %v14457_v59 = vpack.c.bf16 %v8302_v0, %v8295_v32  ;;  %v23052_v0 = vld [vmem:[#allocation145_spill] sm:$0xff] }
 0x578   : > { %14054 = vmatpush1.bf16.msra.mxu0 %v23043_v5 }
 0x579   : > { %14056 = vmatprep.subr.bf16.mxu0 %v23044_v23  ;;  %v23048_v23 = vld [vmem:[#allocation133_spill] sm:$0xff] }
 0x57a   : > { %14452 = vmatpush3.bf16.msra.mxu1 %v19214_v45 }
 0x57b   : > { %14453 = vmatprep.subr.bf16.mxu1 %v23039_v54 }
 0x57c   : > { %14058 = vmatpush1.bf16.msra.mxu0 %v23045_v42  ;;  %v23086_v42 = vld [vmem:[#allocation67_spill] sm:$0xff] }
 0x57d   : > { %12776 = vmatmul.mubr.f32.vlgmr.msra.gmra.mrb[32].mxu1 %v23046_v61  ;;  %14060 = vmatprep.subr.bf16.mxu0 %v23047_v63  ;;  %v23055_v61 = vld [vmem:[#allocation154_spill] sm:$0xff]  ;;  %v23087_v5 = vand.u32 4294901760, %v23086_v42  ;;  %v23088_v42 = vld [vmem:[#allocation71_spill] sm:$0xff] }
 0x57e   : > { %14455 = vmatpush3.bf16.msra.mxu1 %v14454_v25  ;;  %12786 = vmatprep.mubr.msk.f32.mxu1 %vm15296_vm1, %v23042_v31  ;;  %v14463_v25 = vpack.c.bf16 %v19192_v57, %v19190_v44  ;;  %v23059_v57 = vld [vmem:[#allocation21_spill] sm:$0xff]  ;;  %v23060_v44 = vand.u32 4294901760, %v22893_v7  ;;  %v23065_v7 = vand.u32 4294901760, %v22897_v48  ;;  %v23071_v48 = vld [vmem:[#allocation108_spill] sm:$0xff] }
 0x57f   : > { %14456 = vmatprep.subr.bf16.mxu1 %v23039_v54 }
 0x580   : > { %14062 = vmatpush1.bf16.msra.mxu0 %v23048_v23 }
 0x581   : > { %14064 = vmatprep.subr.bf16.mxu0 %v23049_v33  ;;  %v23061_v33 = vand.u32 4294901760, %v22894_v8  ;;  %v23066_v8 = vand.u32 4294901760, %v22898_v6  ;;  %v21693_v6 = vand.u32 4294901760, %v23071_v48 }
 0x582   : > { %14458 = vmatpush3.bf16.msra.mxu1 %v14457_v59  ;;  %v23053_v59 = vld [vmem:[#allocation149_spill] sm:$0xff] }
 0x583   : > { %14459 = vmatprep.subr.bf16.mxu1 %v23039_v54 }
 0x584   : > { %14066 = vmatpush1.bf16.msra.mxu0 %v23050_v49  ;;  %v19246_v32 = vpop.f32.mrb[18].mxu1 }
 0x585   : > { %12787 = vmatmul.mubr.f32.vlgmr.msra.gmra.mrb[32].mxu1 %v23051_v60  ;;  %14068 = vmatprep.subr.bf16.mxu0 %v23052_v0  ;;  %23054 = vst [vmem:[#allocation159_spill] sm:$0xff] %v19246_v32  ;;  %v19249_v49 = vpop.f32.mrb[19].mxu1  ;;  %v23058_v0 = vld [vmem:[#allocation185_spill] sm:$0xff]  ;;  %v23064_v32 = vand.u32 4294901760, %v22896_v58  ;;  %v14475_v58 = vpack.c.bf16 %v8300_v37, %v8293_v39  ;;  %v23078_v39 = vand.u32 4294901760, %v22906_v36 }
 0x586   : > { %14461 = vmatpush3.bf16.msra.mxu1 %v14460_v24  ;;  %12797 = vmatprep.mubr.msk.f32.mxu1 %vm15296_vm1, %v23042_v31  ;;  %23056 = vst [vmem:[#allocation160_spill] sm:$0xff] %v19249_v49  ;;  %v23057_v24 = vld [vmem:[#allocation11_spill] sm:$0xff]  ;;  %v23063_v49 = vand.u32 4294901760, %v22895_v14  ;;  %v23070_v14 = vand.u32 4294901760, %v22901_v21  ;;  %v23076_v21 = vand.u32 4294901760, %v22903_v20  ;;  %v23083_v36 = vld [vmem:[#allocation33_spill] sm:$0xff] }
 0x587   : > { %14462 = vmatprep.subr.bf16.mxu1 %v23039_v54 }
 0x588   : > { %14070 = vmatpush1.bf16.msra.mxu0 %v23053_v59  ;;  %v14079_v59 = vpack.c.bf16 %v23061_v33, %v23060_v44  ;;  %v14083_v33 = vpack.c.bf16 %v23066_v8, %v23065_v7  ;;  %v23067_v44 = vand.u32 4294901760, %v19182_v52  ;;  %v23074_v52 = vld [vmem:[#allocation86_spill] sm:$0xff]  ;;  %v23081_v7 = vld [vmem:[#allocation187_spill] sm:$0xff] }
 0x589   : > { %14072 = vmatprep.subr.bf16.mxu0 %v23055_v61  ;;  %v21694_v8 = vand.u32 4294901760, %v23074_v52 }
 0x58a   : > { %14464 = vmatpush3.bf16.msra.mxu1 %v14463_v25  ;;  %v23062_v25 = vld [vmem:[#allocation38_spill] sm:$0xff] }
 0x58b   : > { %14465 = vmatprep.subr.bf16.mxu1 %v23039_v54 }
 0x58c   : > { %14074 = vmatpush1.bf16.msra.mxu0 %v23057_v24 }
 0x58d   : > { %12798 = vmatmul.mubr.f32.vlgmr.msra.gmra.mrb[32].mxu1 %v23058_v0  ;;  %14076 = vmatprep.subr.bf16.mxu0 %v23059_v57  ;;  %v14081_v0 = vpack.c.bf16 %v23064_v32, %v23063_v49  ;;  %v23068_v57 = vand.u32 4294901760, %v19184_v16  ;;  %v23072_v49 = vld [vmem:[#allocation68_spill] sm:$0xff] }
 0x58e   : > { %14467 = vmatpush3.bf16.msra.mxu1 %v19199_v56  ;;  %12808 = vmatprep.mubr.msk.f32.mxu1 %vm15296_vm1, %v23042_v31  ;;  %v23073_v32 = vld [vmem:[#allocation80_spill] sm:$0xff] }
 0x58f   : > { %14468 = vmatprep.subr.bf16.mxu1 %v23039_v54  ;;  %v14472_v24 = vpack.c.bf16 %v23068_v57, %v23067_v44  ;;  %v23079_v57 = vld [vmem:[#allocation113_spill] sm:$0xff]  ;;  %v23080_v44 = vld [vmem:[#allocation26_spill] sm:$0xff] }
 0x590   : > { %14078 = vmatpush1.bf16.msra.mxu0 %v23062_v25  ;;  %v23069_v25 = vand.u32 4294901760, %v22900_v35  ;;  %v23075_v35 = vand.u32 4294901760, %v22902_v1 }
 0x591   : > { %14080 = vmatprep.subr.bf16.mxu0 %v14079_v59  ;;  %v21692_v59 = vand.u32 4294901760, %v23072_v49 }
 0x592   : > { %14470 = vmatpush3.bf16.msra.mxu1 %v19214_v45  ;;  %v14085_v61 = vpack.c.bf16 %v23070_v14, %v23069_v25  ;;  %v14087_v16 = vpack.c.bf16 %v23076_v21, %v23075_v35  ;;  %v21695_v25 = vand.u32 4294901760, %v23079_v57  ;;  %v21696_v14 = vand.u32 4294901760, %v23080_v44 }
 0x593   : > { %6384 = vmatmul.mubr.f32.vlgmr.msra.gmra.mrb[4].mxu0 %v22958_v17  ;;  %14471 = vmatprep.subr.bf16.mxu1 %v23039_v54  ;;  %v23077_v17 = vand.u32 4294901760, %v22737_v18  ;;  %v6891_v1 = vsub.f32 %v23072_v49, %v21692_v59  ;;  %v23082_v18 = vand.u32 4294901760, %v23073_v32  ;;  %v6908_v35 = vand.u32 4294901760, %v23083_v36 }
 0x594   : > { %14082 = vmatpush1.bf16.msra.mxu0 %v14081_v0  ;;  %6647 = vmatprep.mubr.f32.mxu0 %v22962_v10  ;;  %v6879_v0 = vsub.f32 %v23071_v48, %v21693_v6  ;;  %v6903_v21 = vsub.f32 %v23079_v57, %v21695_v25 }
 0x595   : > { %v14089_v37 = vpack.c.bf16 %v23078_v39, %v23077_v17  ;;  %12809 = vmatmul.mubr.f32.vlgmr.msra.gmra.mrb[32].mxu1 %v23081_v7  ;;  %14084 = vmatprep.subr.bf16.mxu0 %v14083_v33  ;;  %v6885_v20 = vsub.f32 %v23073_v32, %v23082_v18  ;;  %v6897_v33 = vsub.f32 %v23074_v52, %v21694_v8  ;;  %v23084_v39 = vld [vmem:[#allocation34_spill] sm:$0xff]  ;;  %v6892_v59 = vand.u32 4294901760, %v6891_v1 }
 0x596   : > { %14473 = vmatpush3.bf16.msra.mxu1 %v14472_v24  ;;  %12819 = vmatprep.mubr.msk.f32.mxu1 %vm15296_vm1, %v23042_v31  ;;  %v6915_v17 = vsub.f32 %v23080_v44, %v21696_v14  ;;  %v6920_v18 = vand.u32 4294901760, %v23084_v39  ;;  %v6880_v24 = vand.u32 4294901760, %v6879_v0  ;;  %v6909_v7 = vsub.f32 %v23083_v36, %v6908_v35 }
 0x597   : > { %14474 = vmatprep.subr.bf16.mxu1 %v23039_v54  ;;  %v6886_v6 = vand.u32 4294901760, %v6885_v20  ;;  %v6898_v8 = vand.u32 4294901760, %v6897_v33  ;;  %v6904_v23 = vand.u32 4294901760, %v6903_v21  ;;  %v23085_v14 = vand.u32 4294901760, %v22907_v28  ;;  %v23096_v21 = vld [vmem:[#allocation83_spill] sm:$0xff] }
 0x598   : > { %14086 = vmatpush1.bf16.msra.mxu0 %v14085_v61  ;;  %v6916_v63 = vand.u32 4294901760, %v6915_v17  ;;  %v6921_v25 = vsub.f32 %v23084_v39, %v6920_v18  ;;  %v19330_v10 = vpack.c.bf16 %v6892_v59, %v6880_v24  ;;  %v6910_v0 = vand.u32 4294901760, %v6909_v7  ;;  %v23090_v59 = vld [vmem:[#allocation73_spill] sm:$0xff] }
 0x599   : > { %14088 = vmatprep.subr.bf16.mxu0 %v14087_v16  ;;  %v14091_v11 = vpack.c.bf16 %v23087_v5, %v23085_v14  ;;  %v19332_v1 = vpack.c.bf16 %v6898_v8, %v6886_v6  ;;  %v14223_v33 = vpack.c.bf16 %v23072_v49, %v23071_v48  ;;  %v14225_v28 = vpack.c.bf16 %v23074_v52, %v23073_v32  ;;  %v23094_v8 = vld [vmem:[#allocation79_spill] sm:$0xff]  ;;  %v23098_v24 = vld [vmem:[#allocation85_spill] sm:$0xff] }
 0x59a   : > { %14476 = vmatpush3.bf16.msra.mxu1 %v14475_v58  ;;  %v19334_v20 = vpack.c.bf16 %v6916_v63, %v6904_v23  ;;  %v6922_v61 = vand.u32 4294901760, %v6921_v25  ;;  %v23089_v5 = vand.u32 4294901760, %v23088_v42  ;;  %v23091_v16 = vand.u32 4294901760, %v23090_v59  ;;  %v23092_v63 = vld [vmem:[#allocation78_spill] sm:$0xff] }
 0x59b   : > { %14477 = vmatprep.subr.bf16.mxu1 %v23039_v54  ;;  %v23093_v6 = vand.u32 4294901760, %v23092_v63  ;;  %v23095_v25 = vand.u32 4294901760, %v23094_v8  ;;  %v23097_v17 = vand.u32 4294901760, %v23096_v21  ;;  %v23124_v23 = vand.u32 4294901760, %v23071_v48  ;;  %v23206_v48 = vld [vmem:[#allocation185_spill] sm:$0xff] }
 0x59c   : > { %14090 = vmatpush1.bf16.msra.mxu0 %v14089_v37  ;;  %v14093_v7 = vpack.c.bf16 %v23091_v16, %v23089_v5  ;;  %v19345_v58 = vpack.c.bf16 %v6922_v61, %v6910_v0  ;;  %v23100_v61 = vld [vmem:[#allocation41_spill] sm:$0xff]  ;;  %v23102_v5 = vld [vmem:[#allocation47_spill] sm:$0xff] }
 0x59d   : > { %12820 = vmatmul.mubr.f32.vlgmr.msra.gmra.mrb[32].mxu1 %v23051_v60  ;;  %14092 = vmatprep.subr.bf16.mxu0 %v14091_v11  ;;  %v14095_v14 = vpack.c.bf16 %v23095_v25, %v23093_v6  ;;  %v23099_v11 = vand.u32 4294901760, %v23098_v24  ;;  %v23101_v42 = vand.u32 4294901760, %v23100_v61  ;;  %v23103_v59 = vand.u32 4294901760, %v23102_v5  ;;  %v23106_v6 = vld [vmem:[#allocation65_spill] sm:$0xff]  ;;  %v23112_v61 = vld [vmem:[#allocation96_spill] sm:$0xff] }
 0x59e   : > { %14479 = vmatpush3.bf16.msra.mxu1 %v19199_v56  ;;  %12830 = vmatprep.mubr.msk.f32.mxu1 %vm15296_vm1, %v23042_v31  ;;  %v23104_v56 = vld [vmem:[#allocation53_spill] sm:$0xff]  ;;  %v23107_v8 = vand.u32 4294901760, %v23106_v6 }
 0x59f   : > { %14480 = vmatprep.subr.bf16.mxu1 %v23039_v54  ;;  %v14097_v0 = vpack.c.bf16 %v23099_v11, %v23097_v17  ;;  %v14099_v16 = vpack.c.bf16 %v23103_v59, %v23101_v42  ;;  %v23105_v63 = vand.u32 4294901760, %v23104_v56  ;;  %v23110_v17 = vld [vmem:[#allocation84_spill] sm:$0xff]  ;;  %v23118_v6 = vld [vmem:[#allocation13_spill] sm:$0xff] }
 0x5a0   : > { %14094 = vmatpush1.bf16.msra.mxu0 %v14093_v7  ;;  %v23108_v7 = vld [vmem:[#allocation77_spill] sm:$0xff]  ;;  %v23116_v56 = vld [vmem:[#allocation92_spill] sm:$0xff] }
 0x5a1   : > { %14096 = vmatprep.subr.bf16.mxu0 %v14095_v14  ;;  %v14101_v25 = vpack.c.bf16 %v23107_v8, %v23105_v63  ;;  %v23109_v21 = vand.u32 4294901760, %v23108_v7  ;;  %v23111_v14 = vand.u32 4294901760, %v23110_v17  ;;  %v23117_v63 = vand.u32 4294901760, %v23116_v56  ;;  %v23120_v17 = vld [vmem:[#allocation16_spill] sm:$0xff] }
 0x5a2   : > { %14482 = vmatpush3.bf16.msra.mxu1 %v19214_v45  ;;  %v23113_v45 = vand.u32 4294901760, %v23112_v61  ;;  %v23125_v61 = vand.u32 4294901760, %v23072_v49  ;;  %v23207_v49 = vld [vmem:[#allocation74_spill] sm:$0xff] }
 0x5a3   : > { %v14103_v24 = vpack.c.bf16 %v23111_v14, %v23109_v21  ;;  %v23121_v21 = vand.u32 4294901760, %v23120_v17  ;;  %v23122_v14 = vld [vmem:[#allocation20_spill] sm:$0xff]  ;;  %v23134_v17 = vand.u32 4294901760, %v22956_v50 }
 0x5a4   : > { %14098 = vmatpush1.bf16.msra.mxu0 %v14097_v0  ;;  %v23114_v0 = vld [vmem:[#allocation101_spill] sm:$0xff]  ;;  %v23123_v37 = vand.u32 4294901760, %v23122_v14 }
 0x5a5   : > { %12831 = vmatmul.mubr.f32.vlgmr.msra.gmra.mrb[32].mxu1 %v23051_v60  ;;  %14100 = vmatprep.subr.bf16.mxu0 %v14099_v16  ;;  %v23115_v42 = vand.u32 4294901760, %v23114_v0  ;;  %v23119_v16 = vand.u32 4294901760, %v23118_v6  ;;  %v19395_v0 = vpack.c.bf16 %v23125_v61, %v23124_v23  ;;  %v19415_v23 = vpack.c.bf16 %v6920_v18, %v6908_v35  ;;  %v23143_v18 = vld [vmem:[#allocation122_spill] sm:$0xff] }
 0x5a6   : > { %8906 = vmatprep.mubr.f32.mxu1 %v23042_v31  ;;  %v12283_v11 = vpop.f32.mrb[20].mxu1  ;;  %v23136_v61 = vand.u32 4294901760, %v22960_v51  ;;  %v23142_v35 = vand.u32 4294901760, %v22971_v27  ;;  %v23144_v50 = vand.u32 4294901760, %v23143_v18  ;;  %v23146_v51 = vand.u32 4294901760, %v22977_v53 }
 0x5a7   : > { %v14105_v5 = vpack.c.bf16 %v23115_v42, %v23113_v45  ;;  %v12284_v59 = vpop.f32.mrb[21].mxu1  ;;  %v14107_v8 = vpack.c.bf16 %v23119_v16, %v23117_v63  ;;  %v23127_v45 = vand.u32 4294901760, %v23074_v52  ;;  %v23132_v63 = vld [vmem:[#allocation45_spill] sm:$0xff]  ;;  %v23150_v27 = vand.u32 4294901760, %v22987_v47  ;;  %v23159_v47 = vld [vmem:[#allocation151_spill] sm:$0xff]  ;;  %v23209_v52 = vld [vmem:[#allocation28_spill] sm:$0xff] }
 0x5a8   : > { %14102 = vmatpush1.bf16.msra.mxu0 %v14101_v25  ;;  %v12285_v7 = vadd.f32 %v12284_v59, %v12283_v11  ;;  %v14109_v25 = vpack.c.bf16 %v23123_v37, %v23121_v21  ;;  %v23128_v11 = vand.u32 4294901760, %v23079_v57  ;;  %v23130_v37 = vld [vmem:[#allocation40_spill] sm:$0xff]  ;;  %v23133_v6 = vand.u32 4294901760, %v23132_v63 }
 0x5a9   : > { %14104 = vmatprep.subr.bf16.mxu0 %v14103_v24  ;;  %v23126_v24 = vand.u32 4294901760, %v23073_v32  ;;  %v23131_v56 = vand.u32 4294901760, %v23130_v37  ;;  %v23135_v21 = vand.u32 4294901760, %v22955_v30  ;;  %v23145_v30 = vand.u32 4294901760, %v22978_v22  ;;  %v23208_v32 = vld [vmem:[#allocation22_spill] sm:$0xff] }
 0x5aa   : > { %v23152_v22 = vand.u32 4294901760, %v22990_v2  ;;  %v23153_v53 = vand.u32 4294901760, %v22996_v4  ;;  %v23163_v2 = vand.u32 4294901760, %v23006_v26  ;;  %v23170_v26 = vand.u32 4294901760, %v23019_v55  ;;  %v23176_v55 = vld [vmem:[#allocation103_spill] sm:$0xff] }
 0x5ab   : > { %v19401_v42 = vpack.c.bf16 %v23127_v45, %v23126_v24  ;;  %v14111_v16 = vpack.c.bf16 %v23133_v6, %v23131_v56  ;;  %v14113_v14 = vpack.c.bf16 %v23135_v21, %v23134_v17  ;;  %v23137_v24 = vld [vmem:[#allocation110_spill] sm:$0xff]  ;;  %v14121_v63 = vpack.c.bf16 %v23146_v51, %v23145_v30 }
 0x5ac   : > { %14106 = vmatpush1.bf16.msra.mxu0 %v14105_v5  ;;  %v23129_v5 = vand.u32 4294901760, %v23080_v44  ;;  %v23147_v6 = vand.u32 4294901760, %v22981_v9  ;;  %v23149_v17 = vand.u32 4294901760, %v22988_v40 }
 0x5ad   : > { %14108 = vmatprep.subr.bf16.mxu0 %v14107_v8  ;;  %v23138_v8 = vand.u32 4294901760, %v23137_v24  ;;  %v23154_v24 = vld [vmem:[#allocation143_spill] sm:$0xff] }
 0x5ae   : > { %v19407_v59 = vpack.c.bf16 %v23129_v5, %v23128_v11  ;;  %v23139_v11 = vand.u32 4294901760, %v22968_v62  ;;  %v23140_v5 = vld [vmem:[#allocation118_spill] sm:$0xff]  ;;  %v23148_v62 = vand.u32 4294901760, %v22980_v41  ;;  %v14125_v21 = vpack.c.bf16 %v23150_v27, %v23149_v17 }
 0x5af   : > { %v14115_v45 = vpack.c.bf16 %v23138_v8, %v23136_v61  ;;  %v23141_v37 = vand.u32 4294901760, %v23140_v5  ;;  %v23155_v9 = vand.u32 4294901760, %v23154_v24  ;;  %v23156_v41 = vand.u32 4294901760, %v22999_v3  ;;  %v23183_v24 = vld [vmem:[#allocation72_spill] sm:$0xff] }
 0x5b0   : > { %14110 = vmatpush1.bf16.msra.mxu0 %v14109_v25  ;;  %v14119_v25 = vpack.c.bf16 %v23144_v50, %v23142_v35  ;;  %v23160_v5 = vand.u32 4294901760, %v23159_v47  ;;  %v23164_v35 = vld [vmem:[#allocation157_spill] sm:$0xff]  ;;  %v23167_v3 = vand.u32 4294901760, %v23010_v29  ;;  %v23171_v27 = vand.u32 4294901760, %v23018_v19  ;;  %v23172_v29 = vld [vmem:[#allocation135_spill] sm:$0xff]  ;;  %v23177_v19 = vld [vmem:[#allocation14_spill] sm:$0xff] }
 0x5b1   : > { %14112 = vmatprep.subr.bf16.mxu0 %v14111_v16  ;;  %v14117_v56 = vpack.c.bf16 %v23141_v37, %v23139_v11  ;;  %v14123_v16 = vpack.c.bf16 %v23148_v62, %v23147_v6  ;;  %v14129_v8 = vpack.c.bf16 %v23155_v9, %v23153_v53  ;;  %v23161_v37 = vld [vmem:[#allocation152_spill] sm:$0xff]  ;;  %v23165_v4 = vand.u32 4294901760, %v23164_v35  ;;  %v23188_v47 = vld [vmem:[#allocation46_spill] sm:$0xff]  ;;  %v23194_v35 = vld [vmem:[#allocation133_spill] sm:$0xff] }
 0x5b2   : > { %v23169_v6 = vand.u32 4294901760, %v23013_v12  ;;  %v23174_v12 = vld [vmem:[#allocation97_spill] sm:$0xff] }
 0x5b3   : > { %v14135_v18 = vpack.c.bf16 %v23165_v4, %v23163_v2  ;;  %v23193_v2 = vld [vmem:[#allocation128_spill] sm:$0xff]  ;;  %v23195_v4 = vld [vmem:[#allocation137_spill] sm:$0xff] }
 0x5b4   : > { %14114 = vmatpush1.bf16.msra.mxu0 %v14113_v14  ;;  %v23151_v14 = vand.u32 4294901760, %v22991_v34  ;;  %v23162_v34 = vand.u32 4294901760, %v23161_v37  ;;  %v23190_v37 = vld [vmem:[#allocation112_spill] sm:$0xff] }
 0x5b5   : > { %14116 = vmatprep.subr.bf16.mxu0 %v14115_v45  ;;  %v23157_v45 = vld [vmem:[#allocation148_spill] sm:$0xff] }
 0x5b6   : > { %v14127_v61 = vpack.c.bf16 %v23152_v22, %v23151_v14  ;;  %v23158_v40 = vand.u32 4294901760, %v23157_v45  ;;  %v23179_v14 = vld [vmem:[#allocation23_spill] sm:$0xff]  ;;  %v23185_v45 = vld [vmem:[#allocation12_spill] sm:$0xff] }
 0x5b7   : > { %v23181_v22 = vld [vmem:[#allocation35_spill] sm:$0xff] }
 0x5b8   : > { %14118 = vmatpush1.bf16.msra.mxu0 %v14117_v56  ;;  %v14131_v11 = vpack.c.bf16 %v23158_v40, %v23156_v41  ;;  %v14133_v56 = vpack.c.bf16 %v23162_v34, %v23160_v5  ;;  %v23184_v41 = vld [vmem:[#allocation89_spill] sm:$0xff]  ;;  %v23191_v34 = vld [vmem:[#allocation120_spill] sm:$0xff] }
 0x5b9   : > { %14120 = vmatprep.subr.bf16.mxu0 %v14119_v25  ;;  %v23166_v25 = vand.u32 4294901760, %v23011_v46  ;;  %v23173_v46 = vld [vmem:[#allocation95_spill] sm:$0xff]  ;;  %v23186_v40 = vld [vmem:[#allocation17_spill] sm:$0xff] }
 0x5ba   : > { %v23189_v5 = vld [vmem:[#allocation105_spill] sm:$0xff] }
 0x5bb   : > { %v14137_v30 = vpack.c.bf16 %v23167_v3, %v23166_v25  ;;  %v23198_v25 = vld [vmem:[#allocation149_spill] sm:$0xff] }
 0x5bc   : > { %14122 = vmatpush1.bf16.msra.mxu0 %v14121_v63  ;;  %v23168_v63 = vand.u32 4294901760, %v23014_v13  ;;  %v23175_v13 = vld [vmem:[#allocation102_spill] sm:$0xff] }
 0x5bd   : > { %14124 = vmatprep.subr.bf16.mxu0 %v14123_v16 }
 0x5be   : > { %v14139_v62 = vpack.c.bf16 %v23169_v6, %v23168_v63 }
 0x5c0   : > { %14126 = vmatpush1.bf16.msra.mxu0 %v14125_v21  ;;  %v14141_v21 = vpack.c.bf16 %v23171_v27, %v23170_v26  ;;  %v23211_v27 = vld [vmem:[#allocation159_spill] sm:$0xff] }
 0x5c1   : > { %14128 = vmatprep.subr.bf16.mxu0 %v14127_v61 }
 0x5c4   : > { %14130 = vmatpush1.bf16.msra.mxu0 %v14129_v8 }
 0x5c5   : > { %14132 = vmatprep.subr.bf16.mxu0 %v14131_v11  ;;  %v23187_v11 = vld [vmem:[#allocation39_spill] sm:$0xff] }
 0x5c7   : > { %v12318_v50 = vpop.f32.mrb[22].mxu1 }
 0x5c8   : > { %14134 = vmatpush1.bf16.msra.mxu0 %v14133_v56  ;;  %v12319_v51 = vpop.f32.mrb[23].mxu1  ;;  %v23192_v56 = vld [vmem:[#allocation124_spill] sm:$0xff] }
 0x5c9   : > { %14136 = vmatprep.subr.bf16.mxu0 %v14135_v18  ;;  %v12320_v16 = vadd.f32 %v12319_v51, %v12318_v50  ;;  %v23196_v18 = vld [vmem:[#allocation142_spill] sm:$0xff]  ;;  %v23197_v50 = vld [vmem:[#allocation145_spill] sm:$0xff] }
 0x5ca   : > { %v23199_v51 = vld [vmem:[#allocation154_spill] sm:$0xff] }
 0x5cb   : > { %v7676_v17 = vadd.f32 %v12320_v16, %v12285_v7  ;;  %v23178_v7 = vld [vmem:[#allocation18_spill] sm:$0xff]  ;;  %v23201_v16 = vld [vmem:[#allocation21_spill] sm:$0xff] }
 0x5cc   : > { %14138 = vmatpush1.bf16.msra.mxu0 %v14137_v30 }
 0x5cd   : > { %14140 = vmatprep.subr.bf16.mxu0 %v14139_v62  ;;  %v23200_v62 = vld [vmem:[#allocation11_spill] sm:$0xff] }
 0x5d0   : > { %14142 = vmatpush1.bf16.msra.mxu0 %v14141_v21 }
 0x5d1   : > { %14144 = vmatprep.subr.bf16.mxu0 %v23021_v38  ;;  %v23180_v38 = vld [vmem:[#allocation30_spill] sm:$0xff] }
 0x5d3   : > { %6649 = vmatmul.mubr.f32.vlgmr.msra.gmra.mrb[4].mxu0 %v18737_v43 }
 0x5d4   : > { %14146 = vmatpush1.bf16.msra.mxu0 %v23023_v15  ;;  %6784 = vmatprep.mubr.f32.mxu0 %v23172_v29  ;;  %v23182_v15 = vld [vmem:[#allocation60_spill] sm:$0xff] }
 0x5d5   : > { %14148 = vmatprep.subr.bf16.mxu0 %v23173_v46  ;;  %v23212_v46 = vld [vmem:[#allocation160_spill] sm:$0xff] }
 0x5d8   : > { %14150 = vmatpush1.bf16.msra.mxu0 %v23174_v12 }
 0x5d9   : > { %14152 = vmatprep.subr.bf16.mxu0 %v23175_v13 }
 0x5dc   : > { %14154 = vmatpush1.bf16.msra.mxu0 %v23176_v55 }
 0x5dd   : > { %14156 = vmatprep.subr.bf16.mxu0 %v23177_v19 }
 0x5e0   : > { %14158 = vmatpush1.bf16.msra.mxu0 %v23178_v7 }
 0x5e1   : > { %14160 = vmatprep.subr.bf16.mxu0 %v23179_v14 }
 0x5e4   : > { %14162 = vmatpush1.bf16.msra.mxu0 %v23180_v38 }
 0x5e5   : > { %14164 = vmatprep.subr.bf16.mxu0 %v23181_v22 }
 0x5e8   : > { %14166 = vmatpush1.bf16.msra.mxu0 %v23182_v15  ;;  %v12353_v61 = vpop.f32.mrb[24].mxu1 }
 0x5e9   : > { %v12354_v53 = vpop.f32.mrb[25].mxu1  ;;  %14168 = vmatprep.subr.bf16.mxu0 %v23183_v24 }
 0x5ea   : > { %v12355_v9 = vadd.f32 %v12354_v53, %v12353_v61 }
 0x5ec   : > { %v7814_v8 = vadd.f32 %v12355_v9, %v7676_v17  ;;  %14170 = vmatpush1.bf16.msra.mxu0 %v23184_v41  ;;  %v23202_v17 = vld [vmem:[#allocation38_spill] sm:$0xff]  ;;  %v8822_v41 = vld [vmem:[%s20945_s7] sm:$0xf] }
 0x5ed   : > { %14172 = vmatprep.subr.bf16.mxu0 %v23185_v45 }
 0x5f0   : > { %14174 = vmatpush1.bf16.msra.mxu0 %v23186_v40 }
 0x5f1   : > { %14176 = vmatprep.subr.bf16.mxu0 %v23187_v11 }
 0x5f4   : > { %14178 = vmatpush1.bf16.msra.mxu0 %v23188_v47 }
 0x5f5   : > { %14180 = vmatprep.subr.bf16.mxu0 %v23189_v5 }
 0x5f8   : > { %14182 = vmatpush1.bf16.msra.mxu0 %v23190_v37 }
 0x5f9   : > { %14184 = vmatprep.subr.bf16.mxu0 %v23191_v34 }
 0x5fc   : > { %14186 = vmatpush1.bf16.msra.mxu0 %v23192_v56 }
 0x5fd   : > { %14188 = vmatprep.subr.bf16.mxu0 %v23193_v2 }
 0x600   : > { %14190 = vmatpush1.bf16.msra.mxu0 %v23194_v35 }
 0x601   : > { %14192 = vmatprep.subr.bf16.mxu0 %v23195_v4 }
 0x604   : > { %14194 = vmatpush1.bf16.msra.mxu0 %v23196_v18 }
 0x605   : > { %14196 = vmatprep.subr.bf16.mxu0 %v23197_v50 }
 0x608   : > { %14198 = vmatpush1.bf16.msra.mxu0 %v23198_v25  ;;  %v12388_v3 = vpop.f32.mrb[26].mxu1 }
 0x609   : > { %v12389_v30 = vpop.f32.mrb[27].mxu1  ;;  %14200 = vmatprep.subr.bf16.mxu0 %v23199_v51 }
 0x60a   : > { %v12390_v63 = vadd.f32 %v12389_v30, %v12388_v3 }
 0x60c   : > { %v7922_v6 = vadd.f32 %v12390_v63, %v7814_v8  ;;  %14202 = vmatpush1.bf16.msra.mxu0 %v23200_v62  ;;  %v8806_v62 = vld [vmem:[%s20944_s6] sm:$0xf] }
 0x60d   : > { %14204 = vmatprep.subr.bf16.mxu0 %v23201_v16 }
 0x610   : > { %14206 = vmatpush1.bf16.msra.mxu0 %v23202_v17  ;;  %v8830_v17 = vsel %vm8828_vm14, %v8806_v62, 0 }
 0x611   : > { %14216 = vmatprep.subr.bf16.mxu0 %v19330_v10  ;;  %v23204_v10 = vpack.c.bf16 %v23084_v39, %v23083_v36 }
 0x613   : > { %6786 = vmatmul.mubr.f32.vlgmr.msra.gmra.mrb[4].mxu0 %v18737_v43  ;;  %v23203_v43 = vpack.c.bf16 %v23080_v44, %v23079_v57  ;;  %v23210_v44 = vld [vmem:[#allocation187_spill] sm:$0xff] }
 0x614   : > { %14218 = vmatpush1.bf16.msra.mxu0 %v19332_v1  ;;  %6980 = vmatprep.mubr.f32.mxu0 %v23042_v31  ;;  %v23205_v1 = vld [vmem:[#allocation115_spill] sm:$0xff] }
 0x615   : > { %14220 = vmatprep.subr.bf16.mxu0 %v19334_v20 }
 0x618   : > { %14222 = vmatpush1.bf16.msra.mxu0 %v19345_v58 }
 0x619   : > { %14224 = vmatprep.subr.bf16.mxu0 %v14223_v33 }
 0x61b   : > { %6982 = vmatmul.mubr.f32.vlgmr.msra.gmra.mrb[6].mxu0 %v23051_v60 }
 0x61c   : > { %14226 = vmatpush1.bf16.msra.mxu0 %v14225_v28  ;;  %7068 = vmatprep.mubr.f32.mxu0 %v23042_v31 }
 0x61d   : > { %14228 = vmatprep.subr.bf16.mxu0 %v23203_v43 }
 0x620   : > { %14230 = vmatpush1.bf16.msra.mxu0 %v23204_v10 }
 0x621   : > { %14232 = vmatprep.subr.bf16.mxu0 %v23205_v1 }
 0x623   : > { %7071 = vmatmul.mubr.f32.vlgmr.msra.gmra.mrb[6].mxu0 %v23206_v48 }
 0x624   : > { %14234 = vmatpush1.bf16.msra.mxu0 %v23207_v49  ;;  %7149 = vmatprep.mubr.f32.mxu0 %v23042_v31 }
 0x625   : > { %14236 = vmatprep.subr.bf16.mxu0 %v23208_v32 }
 0x628   : > { %14238 = vmatpush1.bf16.msra.mxu0 %v23209_v52  ;;  %v12423_v20 = vpop.f32.mrb[28].mxu1 }
 0x629   : > { %v12424_v33 = vpop.f32.mrb[29].mxu1  ;;  %14240 = vmatprep.subr.bf16.mxu0 %v19395_v0 }
 0x62a   : > { %v12425_v57 = vadd.f32 %v12424_v33, %v12423_v20 }
 0x62b   : > { %7153 = vmatmul.mubr.f32.vlgmr.msra.gmra.mrb[6].mxu0 %v23210_v44 }
 0x62c   : > { %v8090_v36 = vadd.f32 %v12425_v57, %v7922_v6  ;;  %14242 = vmatpush1.bf16.msra.mxu0 %v19401_v42  ;;  %7247 = vmatprep.mubr.f32.mxu0 %v23042_v31 }
 0x62d   : > { %14244 = vmatprep.subr.bf16.mxu0 %v19407_v59 }
 0x630   : > { %14246 = vmatpush1.bf16.msra.mxu0 %v19415_v23 }
 0x631   : > { %14248 = vmatprep.subr.bf16.mxu0 %v23205_v1 }
 0x633   : > { %7249 = vmatmul.mubr.f32.vlgmr.msra.gmra.mrb[6].mxu0 %v23051_v60 }
 0x634   : > { %14250 = vmatpush1.bf16.msra.mxu0 %v23207_v49  ;;  %7327 = vmatprep.mubr.f32.mxu0 %v23042_v31 }
 0x635   : > { %14252 = vmatprep.subr.bf16.mxu0 %v23208_v32 }
 0x638   : > { %14254 = vmatpush1.bf16.msra.mxu0 %v23209_v52  ;;  %v19606_v52 = vand.u32 4294901760, %v8830_v17 }
 0x63b   : > { %7329 = vmatmul.mubr.f32.vlgmr.msra.gmra.mrb[6].mxu0 %v23051_v60 }
 0x648   : > { %v12458_v39 = vpop.f32.mrb[30].mxu1 }
 0x649   : > { %v12459_v28 = vpop.f32.mrb[31].mxu1 }
 0x64a   : > { %v12460_v58 = vadd.f32 %v12459_v28, %v12458_v39 }
 0x64c   : > { %v8194_v0 = vadd.f32 %v12460_v58, %v8090_v36 }
 0x678   : > { %v8678_v42 = vpop.f32.mrb[32].mxu1 }
 0x679   : > { %v15006_v59 = vadd.f32 %v8678_v42, %v8194_v0  ;;  %v12832_v23 = vpop.f32.mrb[33].mxu1 }
 0x67a   : > { %v19618_v23 = vsub.f32 %v8830_v17, %v19606_v52 }
 0x67b   : > { %8687 = vst.msk [vmem:[#allocation3 + $0x10] sm:$0xf] %vm3882_vm2, %v15006_v59  ;;  %8740 = vrot.lane.b32.xlu0 %v15006_v59, %s15300_s24  ;;  %8712 = vrot.lane.b32.xlu1 %v15006_v59, %s15297_s11  ;;  %v8693_v26 = vrot.slane %v15006_v59, 4 }
 0x67f   : > { %8768 = vrot.lane.b32.xlu0 %v15006_v59, %s15302_s26  ;;  %8698 = vrot.lane.b32.xlu1 %v8693_v26, %s15298_s21 }
 0x683   : > { %8754 = vrot.lane.b32.xlu0 %v8693_v26, %s15301_s25  ;;  %8726 = vrot.lane.b32.xlu1 %v8693_v26, %s15299_s23 }
 0x687   : > { %8782 = vrot.lane.b32.xlu0 %v8693_v26, %s15303_s27 }
 0x6e6   : > { %v6787_v60 = vpop.f32.mrb[4].mxu0 }
 0x6e7   : > { %v15002_v21 = vadd.f32 %v23211_v27, %v6787_v60  ;;  %v6789_v29 = vpop.f32.mrb[5].mxu0 }
 0x6e8   : > { %v15004_v12 = vadd.f32 %v23212_v46, %v6789_v29 }
 0x6ed   : > { %v8741_v13 = vpop.permute.xlu0 %8740  ;;  %v8713_v55 = vpop.permute.xlu1 %8712 }
 0x6ee   : > { %8749 = vst.msk [vmem:[#allocation3 + $0x40] sm:$0xf] %vm3882_vm2, %v8741_v13  ;;  %8721 = vst.msk [vmem:[#allocation3 + $0x28] sm:$0xf] %vm3882_vm2, %v8713_v55 }
 0x6f1   : > { %v8769_v19 = vpop.permute.xlu0 %8768  ;;  %v8699_v7 = vpop.permute.xlu1 %8698 }
 0x6f2   : > { %8777 = vst.msk [vmem:[#allocation3 + $0x58] sm:$0xf] %vm3882_vm2, %v8769_v19 }
 0x6f3   : > { %8707 = vst.msk [vmem:[#allocation3 + $0x10] sm:$0xf0] %vm3895_vm3, %v8699_v7 }
 0x6f5   : > { %v19564_v14 = vpop.permute.xlu0 %8754  ;;  %v8727_v38 = vpop.permute.xlu1 %8726 }
 0x6f6   : > { %8763 = vst.msk [vmem:[#allocation3 + $0x40] sm:$0xf0] %vm3895_vm3, %v19564_v14  ;;  %8735 = vst.msk [vmem:[#allocation3 + $0x28] sm:$0xf0] %vm3895_vm3, %v8727_v38 }
 0x6f9   : > { %v19569_v22 = vpop.permute.xlu0 %8782 }
 0x6fa   : > { %8791 = vst.msk [vmem:[#allocation3 + $0x58] sm:$0xf0] %vm3895_vm3, %v19569_v22 }
 0x70e   : > { %v7330_v15 = vpop.f32.mrb[6].mxu0 }
 0x70f   : > { %v15003_v61 = vadd.f32 %v15002_v21, %v7330_v15  ;;  %v7332_v53 = vpop.f32.mrb[7].mxu0 }
 0x710   : > { %v15005_v24 = vadd.f32 %v15004_v12, %v7332_v53 }
 0x711   : > { %8685 = vst [vmem:[#allocation3] sm:$0xf] %v15003_v61  ;;  %8708 = vrot.lane.b32.xlu1 %v15003_v61, %s15297_s11  ;;  %v8691_v9 = vrot.slane %v15003_v61, 4 }
 0x712   : > { %8686 = vst [vmem:[#allocation3 + $0x8] sm:$0xf] %v15005_v24  ;;  %8710 = vrot.lane.b32.xlu0 %v15005_v24, %s15297_s11  ;;  %v8692_v8 = vrot.slane %v15005_v24, 4 }
 0x715   : > { %8736 = vrot.lane.b32.xlu1 %v15003_v61, %s15300_s24 }
 0x716   : > { %8694 = vrot.lane.b32.xlu0 %v8691_v9, %s15298_s21 }
 0x719   : > { %8738 = vrot.lane.b32.xlu1 %v15005_v24, %s15300_s24 }
 0x71a   : > { %8722 = vrot.lane.b32.xlu0 %v8691_v9, %s15299_s23 }
 0x71d   : > { %8766 = vrot.lane.b32.xlu1 %v15005_v24, %s15302_s26 }
 0x71e   : > { %8724 = vrot.lane.b32.xlu0 %v8692_v8, %s15299_s23 }
 0x721   : > { %8696 = vrot.lane.b32.xlu1 %v8692_v8, %s15298_s21  ;;  %s420_s21 = scalar_lea.vmem %s20948_s10, %s11925_s15 }
 0x722   : > { %8750 = vrot.lane.b32.xlu0 %v8691_v9, %s15301_s25 }
 0x725   : > { %8764 = vrot.lane.b32.xlu1 %v15003_v61, %s15302_s26 }
 0x726   : > { %8778 = vrot.lane.b32.xlu0 %v8691_v9, %s15303_s27 }
 0x729   : > { %8752 = vrot.lane.b32.xlu1 %v8692_v8, %s15301_s25 }
 0x72a   : > { %8796 = vrot.lane.b32.xlu0 %v15006_v59, %s15304_s29 }
 0x72d   : > { %8780 = vrot.lane.b32.xlu1 %v8692_v8, %s15303_s27 }
 0x72e   : > { %8825 = vperm.xlu0 %15185, %v8822_v41  }
 0x731   : > { %8794 = vrot.lane.b32.xlu1 %v15005_v24, %s15304_s29 }
 0x735   : > { %8792 = vrot.lane.b32.xlu1 %v15003_v61, %s15304_s29  ;;  %v9902_v61 = vld [vmem:[#allocation8] sm:$0xff] }
 0x783   : > { %v8709_v45 = vpop.permute.xlu1 %8708 }
 0x784   : > { %v8711_v40 = vpop.permute.xlu0 %8710 }
 0x785   : > { %v8714_v11 = vsel %vm3935_vm4, %v8709_v45, %v8711_v40  ;;  %v8715_v47 = vsel %vm3935_vm4, %v8711_v40, %v8713_v55 }
 0x786   : > { %8719 = vst [vmem:[#allocation3 + $0x18] sm:$0xf] %v8714_v11  ;;  %8720 = vst [vmem:[#allocation3 + $0x20] sm:$0xf] %v8715_v47 }
 0x787   : > { %v8737_v5 = vpop.permute.xlu1 %8736 }
 0x788   : > { %v8695_v37 = vpop.permute.xlu0 %8694 }
 0x78b   : > { %v8739_v34 = vpop.permute.xlu1 %8738 }
 0x78c   : > { %v8742_v56 = vsel %vm3993_vm6, %v8737_v5, %v8739_v34  ;;  %v8743_v2 = vsel %vm3993_vm6, %v8739_v34, %v8741_v13  ;;  %v8723_v35 = vpop.permute.xlu0 %8722 }
 0x78d   : > { %8747 = vst [vmem:[#allocation3 + $0x30] sm:$0xf] %v8742_v56  ;;  %8748 = vst [vmem:[#allocation3 + $0x38] sm:$0xf] %v8743_v2 }
 0x78f   : > { %v8767_v4 = vpop.permute.xlu1 %8766 }
 0x790   : > { %v8771_v18 = vsel %vm4051_vm8, %v8767_v4, %v8769_v19  ;;  %v8725_v50 = vpop.permute.xlu0 %8724 }
 0x791   : > { %8776 = vst [vmem:[#allocation3 + $0x50] sm:$0xf] %v8771_v18  ;;  %v8728_v25 = vsel %vm3964_vm5, %v8723_v35, %v8725_v50  ;;  %v8729_v3 = vsel %vm3964_vm5, %v8725_v50, %v8727_v38  ;;  %v9979_v35 = vand.u32 4294901760, %v9902_v61 }
 0x792   : > { %8733 = vst [vmem:[#allocation3 + $0x18] sm:$0xf0] %v8728_v25  ;;  %8734 = vst [vmem:[#allocation3 + $0x20] sm:$0xf0] %v8729_v3 }
 0x793   : > { %v8697_v30 = vpop.permute.xlu1 %8696 }
 0x794   : > { %v8700_v51 = vsel %vm3906_vm10, %v8695_v37, %v8697_v30  ;;  %v8701_v63 = vsel %vm3906_vm10, %v8697_v30, %v8699_v7  ;;  %v8751_v6 = vpop.permute.xlu0 %8750  ;;  %v9903_v7 = vld [vmem:[#allocation8 + $0x8] sm:$0xff]  ;;  %v9904_v37 = vld [vmem:[#allocation8 + $0x10] sm:$0xff] }
 0x795   : > { %8705 = vst [vmem:[#allocation3] sm:$0xf0] %v8700_v51  ;;  %8706 = vst [vmem:[#allocation3 + $0x8] sm:$0xf0] %v8701_v63  ;;  %v9977_v41 = vand.u32 4294901760, %v9903_v7  ;;  %v9983_v62 = vand.u32 4294901760, %v9904_v37 }
 0x797   : > { %v8765_v16 = vpop.permute.xlu1 %8764  ;;  %v19654_v56 = vsub.f32 %v9903_v7, %v9977_v41 }
 0x798   : > { %v8770_v43 = vsel %vm4051_vm8, %v8765_v16, %v8767_v4  ;;  %v8779_v10 = vpop.permute.xlu0 %8778  ;;  %v19665_v16 = vsub.f32 %v9902_v61, %v9979_v35 }
 0x799   : > { %8775 = vst [vmem:[#allocation3 + $0x48] sm:$0xf] %v8770_v43  ;;  %v8811_v1 = vld [vmem:[#allocation3 + $0x20] sm:$0xff]  ;;  %v8810_v48 = vld [vmem:[#allocation3 + $0x18] sm:$0xff]  ;;  %23214 = vst [vmem:[#allocation165_spill] sm:$0xff] %v19654_v56 }
 0x79a   : > { %v8836_v49 = vand.u32 4294901760, %v8811_v1  ;;  %v8838_v32 = vand.u32 4294901760, %v8810_v48  ;;  %23216 = vst [vmem:[#allocation170_spill] sm:$0xff] %v19665_v16  ;;  %v19786_v16 = vld [vmem:[#allocation8 + $0xd8] sm:$0xff] }
 0x79b   : > { %v8753_v20 = vpop.permute.xlu1 %8752 }
 0x79c   : > { %v8756_v33 = vsel %vm4022_vm7, %v8751_v6, %v8753_v20  ;;  %v8757_v57 = vsel %vm4022_vm7, %v8753_v20, %v19564_v14  ;;  %v8797_v44 = vpop.permute.xlu0 %8796  ;;  %v8808_v36 = vld [vmem:[#allocation3 + $0x8] sm:$0xff]  ;;  %v19611_v39 = vsub.f32 %v8811_v1, %v8836_v49  ;;  %v8807_v28 = vld [vmem:[#allocation3] sm:$0xff]  ;;  %v19613_v58 = vsub.f32 %v8810_v48, %v8838_v32  ;;  %v9905_v14 = vld [vmem:[#allocation8 + $0x18] sm:$0xff] }
 0x79d   : > { %8761 = vst [vmem:[#allocation3 + $0x30] sm:$0xf0] %v8756_v33  ;;  %8762 = vst [vmem:[#allocation3 + $0x38] sm:$0xf0] %v8757_v57  ;;  %v8832_v0 = vand.u32 4294901760, %v8808_v36  ;;  %v8834_v42 = vand.u32 4294901760, %v8807_v28  ;;  %v19670_v33 = vpack.c.bf16 %v9983_v62, %v9979_v35  ;;  %v19672_v57 = vsub.f32 %v9904_v37, %v9983_v62 }
 0x79e   : > { %8805 = vst.msk [vmem:[#allocation3 + $0x70] sm:$0xf] %vm3882_vm2, %v8797_v44  ;;  %v21706_v59 = vand.u32 4294901760, %v19611_v39  ;;  %v21703_v13 = vand.u32 4294901760, %v19613_v58  ;;  %v9981_v45 = vand.u32 4294901760, %v9905_v14  ;;  %v9907_v48 = vld [vmem:[#allocation8 + $0x28] sm:$0xff] }
 0x79f   : > { %v8781_v26 = vpop.permute.xlu1 %8780  ;;  %v19620_v60 = vpack.c.bf16 %v8836_v49, %v8832_v0  ;;  %v19622_v27 = vsub.f32 %v8808_v36, %v8832_v0  ;;  %v19624_v21 = vpack.c.bf16 %v8838_v32, %v8834_v42  ;;  %v19626_v29 = vsub.f32 %v8807_v28, %v8834_v42  ;;  %v9909_v49 = vld [vmem:[#allocation8 + $0x38] sm:$0xff]  ;;  %23217 = vst [vmem:[#allocation147_spill] sm:$0xff] %v19670_v33  ;;  %v9910_v62 = vld [vmem:[#allocation8 + $0x40] sm:$0xff] }
 0x7a0   : > { %v8784_v46 = vsel %vm4080_vm9, %v8779_v10, %v8781_v26  ;;  %v8785_v12 = vsel %vm4080_vm9, %v8781_v26, %v19569_v22  ;;  %v8933_v15 = vsub.f32 %v19611_v39, %v21706_v59  ;;  %v19640_v22 = vand.u32 4294901760, %v19618_v23  ;;  %23218 = vst [vmem:[#allocation150_spill] sm:$0xff] %v19672_v57 }
 0x7a1   : > { %8789 = vst [vmem:[#allocation3 + $0x48] sm:$0xf0] %v8784_v46  ;;  %8790 = vst [vmem:[#allocation3 + $0x50] sm:$0xf0] %v8785_v12  ;;  %14484 = vmatprep.subr.bf16.mxu1 %v19620_v60  ;;  %v21707_v55 = vand.u32 4294901760, %v19622_v27  ;;  %v21705_v19 = vand.u32 4294901760, %v19626_v29  ;;  %v8939_v8 = vsub.f32 %v19613_v58, %v21703_v13  ;;  %v19652_v34 = vpack.c.bf16 %v9981_v45, %v9977_v41 }
 0x7a2   : > { %14486 = vmatpush1.bf16.msra.mxu1 %v19624_v21  ;;  %v19656_v2 = vsub.f32 %v9905_v14, %v9981_v45  ;;  %v8934_v25 = vand.u32 4294901760, %v8933_v15  ;;  %v8910_v3 = vsub.f32 %v19618_v23, %v19640_v22  ;;  %v9985_v12 = vand.u32 4294901760, %v9907_v48  ;;  %v19754_v13 = vld [vmem:[#allocation8 + $0x90] sm:$0xff] }
 0x7a3   : > { %v8795_v38 = vpop.permute.xlu1 %8794  ;;  %v8921_v47 = vsub.f32 %v19622_v27, %v21707_v55  ;;  %v8927_v5 = vsub.f32 %v19626_v29, %v21705_v19  ;;  %23213 = vst [vmem:[#allocation164_spill] sm:$0xff] %v19652_v34  ;;  %v8940_v6 = vand.u32 4294901760, %v8939_v8  ;;  %14568 = vmatprep.subr.bf16.mxu0 %v19652_v34  ;;  %v9989_v7 = vand.u32 4294901760, %v9909_v49 }
 0x7a4   : > { %v8799_v53 = vsel %vm4109_vm12, %v8795_v38, %v8797_v44  ;;  %v8814_v24 = vld [vmem:[#allocation3 + $0x38] sm:$0xff]  ;;  %v8813_v9 = vld [vmem:[#allocation3 + $0x30] sm:$0xff]  ;;  %23215 = vst [vmem:[#allocation167_spill] sm:$0xff] %v19656_v2  ;;  %14570 = vmatpush1.bf16.msra.mxu0 %v19670_v33  ;;  %v14501_v19 = vpack.c.bf16 %v19613_v58, %v19626_v29 }
 0x7a5   : > { %8804 = vst [vmem:[#allocation3 + $0x68] sm:$0xf] %v8799_v53  ;;  %v8840_v40 = vand.u32 4294901760, %v8814_v24  ;;  %v8842_v11 = vand.u32 4294901760, %v8813_v9  ;;  %v8922_v32 = vand.u32 4294901760, %v8921_v47  ;;  %v8928_v20 = vand.u32 4294901760, %v8927_v5 }
 0x7a6   : > { %v19695_v53 = vand.u32 4294901760, %v8910_v3  ;;  %v9911_v47 = vld [vmem:[#allocation8 + $0x48] sm:$0xff]  ;;  %v9913_v5 = vld [vmem:[#allocation8 + $0x58] sm:$0xff]  ;;  %v19711_v3 = vsub.f32 %v9909_v49, %v9989_v7 }
 0x7a7   : > { %v8793_v4 = vpop.permute.xlu1 %8792  ;;  %v19658_v18 = vsub.f32 %v8814_v24, %v8840_v40  ;;  %v19660_v50 = vsub.f32 %v8813_v9, %v8842_v11  ;;  %v14491_v61 = vpack.c.bf16 %v8934_v25, %v8922_v32  ;;  %v14493_v24 = vpack.c.bf16 %v8940_v6, %v8928_v20  ;;  %v9906_v9 = vld [vmem:[#allocation8 + $0x20] sm:$0xff] }
 0x7a8   : > { %v8798_v30 = vsel %vm4109_vm12, %v8793_v4, %v8795_v38  ;;  %v8817_v51 = vld [vmem:[#allocation3 + $0x50] sm:$0xff]  ;;  %v8816_v63 = vld [vmem:[#allocation3 + $0x48] sm:$0xff]  ;;  %v19707_v4 = vpack.c.bf16 %v9989_v7, %v9985_v12  ;;  %v19709_v25 = vsub.f32 %v9907_v48, %v9985_v12  ;;  %23221 = vst [vmem:[#allocation64_spill] sm:$0xff] %v19711_v3  ;;  %v9993_v32 = vand.u32 4294901760, %v9911_v47  ;;  %v9915_v12 = vld [vmem:[#allocation8 + $0x68] sm:$0xff] }
 0x7a9   : > { %8803 = vst [vmem:[#allocation3 + $0x60] sm:$0xf] %v8798_v30  ;;  %v8844_v17 = vand.u32 4294901760, %v8817_v51  ;;  %v8846_v43 = vand.u32 4294901760, %v8816_v63  ;;  %v21702_v10 = vand.u32 4294901760, %v19658_v18  ;;  %v21699_v1 = vand.u32 4294901760, %v19660_v50 }
 0x7aa   : > { %23219 = vst [vmem:[#allocation156_spill] sm:$0xff] %v19707_v4  ;;  %23220 = vst [vmem:[#allocation58_spill] sm:$0xff] %v19709_v25  ;;  %14572 = vmatprep.subr.bf16.mxu0 %v19707_v4  ;;  %v9997_v20 = vand.u32 4294901760, %v9913_v5  ;;  %v19773_v3 = vld [vmem:[#allocation8 + $0xb0] sm:$0xff] }
 0x7ab   : > { %v19674_v44 = vpack.c.bf16 %v8844_v17, %v8840_v40  ;;  %v19676_v36 = vsub.f32 %v8817_v51, %v8844_v17  ;;  %v19678_v28 = vpack.c.bf16 %v8846_v43, %v8842_v11  ;;  %v19680_v0 = vsub.f32 %v8816_v63, %v8846_v43  ;;  %v9908_v11 = vld [vmem:[#allocation8 + $0x30] sm:$0xff] }
 0x7ac   : > { %v8820_v42 = vld [vmem:[#allocation3 + $0x68] sm:$0xff]  ;;  %v8945_v26 = vsub.f32 %v19658_v18, %v21702_v10  ;;  %v8951_v46 = vsub.f32 %v19660_v50, %v21699_v1  ;;  %v9987_v17 = vand.u32 4294901760, %v9906_v9  ;;  %v9991_v43 = vand.u32 4294901760, %v9908_v11  ;;  %v9914_v1 = vld [vmem:[#allocation8 + $0x60] sm:$0xff] }
 0x7ad   : > { %14488 = vmatprep.subr.bf16.mxu1 %v19674_v44  ;;  %v19690_v14 = vand.u32 4294901760, %v8820_v42  ;;  %v21701_v38 = vand.u32 4294901760, %v19676_v36  ;;  %v21698_v15 = vand.u32 4294901760, %v19680_v0 }
 0x7ae   : > { %14490 = vmatpush1.bf16.msra.mxu1 %v19678_v28  ;;  %v8946_v8 = vand.u32 4294901760, %v8945_v26  ;;  %v8952_v35 = vand.u32 4294901760, %v8951_v46  ;;  %v9912_v46 = vld [vmem:[#allocation8 + $0x50] sm:$0xff]  ;;  %v19725_v7 = vpack.c.bf16 %v9991_v43, %v9987_v17 }
 0x7af   : > { %8849 = vmatprep.subr.mxu1 %v19690_v14  ;;  %v8957_v41 = vsub.f32 %v19676_v36, %v21701_v38  ;;  %v8963_v45 = vsub.f32 %v19680_v0, %v21698_v15  ;;  %v19705_v40 = vsub.f32 %v8820_v42, %v19690_v14  ;;  %v9995_v15 = vand.u32 4294901760, %v9910_v62 }
 0x7b0   : > { %v8819_v37 = vld [vmem:[#allocation3 + $0x60] sm:$0xff]  ;;  %23222 = vst [vmem:[#allocation69_spill] sm:$0xff] %v19725_v7  ;;  %14574 = vmatpush1.bf16.msra.mxu0 %v19725_v7  ;;  %v10003_v38 = vand.u32 4294901760, %v9914_v1 }
 0x7b1   : > { %v19713_v30 = vand.u32 4294901760, %v8819_v37  ;;  %v8958_v51 = vand.u32 4294901760, %v8957_v41  ;;  %v8964_v63 = vand.u32 4294901760, %v8963_v45  ;;  %v21700_v6 = vand.u32 4294901760, %v19705_v40 }
 0x7b2   : > { %v19727_v41 = vsub.f32 %v9906_v9, %v9987_v17  ;;  %v19729_v45 = vsub.f32 %v9908_v11, %v9991_v43  ;;  %v19737_v9 = vsub.f32 %v9913_v5, %v9997_v20  ;;  %v9999_v11 = vand.u32 4294901760, %v9912_v46 }
 0x7b3   : > { %8851 = vmatpush1.msra.mxu1 %v19713_v30  ;;  %v19719_v48 = vsub.f32 %v8819_v37, %v19713_v30  ;;  %v14495_v49 = vpack.c.bf16 %v8958_v51, %v8946_v8  ;;  %v14497_v42 = vpack.c.bf16 %v8964_v63, %v8952_v35  ;;  %v8969_v26 = vsub.f32 %v19705_v40, %v21700_v6  ;;  %v9917_v37 = vld [vmem:[#allocation8 + $0x78] sm:$0xff]  ;;  %v9916_v8 = vld [vmem:[#allocation8 + $0x70] sm:$0xff]  ;;  %v9919_v6 = vld [vmem:[#allocation8 + $0x88] sm:$0xff] }
 0x7b4   : > { %14492 = vmatprep.subr.bf16.mxu1 %v14491_v61  ;;  %8912 = vmatmul.mubr.f32.vlgmr.msra.gmra.mrb[34].mxu1 %v19695_v53  ;;  %23223 = vst [vmem:[#allocation171_spill] sm:$0xff] %v19727_v41  ;;  %23224 = vst [vmem:[#allocation56_spill] sm:$0xff] %v19729_v45  ;;  %v19733_v63 = vpack.c.bf16 %v9997_v20, %v9993_v32  ;;  %v19735_v61 = vsub.f32 %v9911_v47, %v9993_v32  ;;  %v10001_v43 = vand.u32 4294901760, %v9915_v12  ;;  %v9921_v32 = vld [vmem:[#allocation8 + $0x98] sm:$0xff]  ;;  %v19771_v41 = vld [vmem:[#allocation8 + $0xa0] sm:$0xff] }
 0x7b5   : > { %14494 = vmatpush1.bf16.msra.mxu1 %v14493_v24  ;;  %v8970_v35 = vand.u32 4294901760, %v8969_v26  ;;  %v21704_v51 = vand.u32 4294901760, %v19719_v48  ;;  %9032 = vmatprep.mubr.f32.mxu1 %v23042_v31  ;;  %23227 = vst [vmem:[#allocation76_spill] sm:$0xff] %v19737_v9  ;;  %v19740_v17 = vsub.f32 %v9910_v62, %v9995_v15  ;;  %v10005_v26 = vand.u32 4294901760, %v9917_v37  ;;  %v19752_v62 = vld [vmem:[#allocation8 + $0x80] sm:$0xff] }
 0x7b6   : > { %23225 = vst [vmem:[#allocation172_spill] sm:$0xff] %v19733_v63  ;;  %23226 = vst [vmem:[#allocation75_spill] sm:$0xff] %v19735_v61  ;;  %14496 = vmatprep.subr.bf16.mxu1 %v14495_v49  ;;  %14576 = vmatprep.subr.bf16.mxu0 %v19733_v63  ;;  %v10007_v47 = vand.u32 4294901760, %v9916_v8  ;;  %v19746_v10 = vpack.c.bf16 %v9999_v11, %v9995_v15  ;;  %v19748_v5 = vsub.f32 %v9912_v46, %v9999_v11  ;;  %v9923_v46 = vld [vmem:[#allocation8 + $0xa8] sm:$0xff]  ;;  %v9925_v11 = vld [vmem:[#allocation8 + $0xb8] sm:$0xff] }
 0x7b7   : > { %23228 = vst [vmem:[#allocation176_spill] sm:$0xff] %v19740_v17  ;;  %v8975_v24 = vsub.f32 %v19719_v48, %v21704_v51  ;;  %v19750_v20 = vsub.f32 %v9915_v12, %v10001_v43  ;;  %v10009_v49 = vand.u32 4294901760, %v9919_v6  ;;  %v14499_v51 = vpack.c.bf16 %v19611_v39, %v19622_v27  ;;  %v19934_v17 = vld [vmem:[#allocation8 + $0x148] sm:$0xff] }
 0x7b8   : > { %23229 = vst [vmem:[#allocation182_spill] sm:$0xff] %v19746_v10  ;;  %23230 = vst [vmem:[#allocation48_spill] sm:$0xff] %v19748_v5  ;;  %v19760_v59 = vpack.c.bf16 %v10005_v26, %v10001_v43  ;;  %v19762_v15 = vsub.f32 %v9917_v37, %v10005_v26  ;;  %14578 = vmatpush1.bf16.msra.mxu0 %v19746_v10  ;;  %v19765_v12 = vsub.f32 %v9914_v1, %v10003_v38  ;;  %v19780_v26 = vld [vmem:[#allocation8 + $0xc8] sm:$0xff] }
 0x7b9   : > { %23231 = vst [vmem:[#allocation162_spill] sm:$0xff] %v19750_v20  ;;  %14498 = vmatpush1.bf16.msra.mxu1 %v14497_v42  ;;  %v19767_v55 = vsub.f32 %v9916_v8, %v10007_v47  ;;  %v10013_v42 = vand.u32 4294901760, %v9921_v32  ;;  %v19769_v45 = vsub.f32 %v9919_v6, %v10009_v49  ;;  %v8976_v43 = vand.u32 4294901760, %v8975_v24  ;;  %v19788_v24 = vld [vmem:[#allocation8 + $0xc0] sm:$0xff] }
 0x7ba   : > { %23232 = vst [vmem:[#allocation163_spill] sm:$0xff] %v19760_v59  ;;  %23233 = vst [vmem:[#allocation168_spill] sm:$0xff] %v19762_v15  ;;  %8971 = vmatprep.subr.mxu1 %v8970_v35  ;;  %v14503_v37 = vpack.c.bf16 %v19676_v36, %v19658_v18  ;;  %14580 = vmatprep.subr.bf16.mxu0 %v19760_v59  ;;  %v10011_v35 = vand.u32 4294901760, %v19752_v62  ;;  %v10015_v1 = vand.u32 4294901760, %v19754_v13  ;;  %v10017_v25 = vand.u32 4294901760, %v9923_v46  ;;  %v19856_v15 = vld [vmem:[#allocation8 + $0x110] sm:$0xff] }
 0x7bb   : > { %23234 = vst [vmem:[#allocation169_spill] sm:$0xff] %v19765_v12  ;;  %23235 = vst [vmem:[#allocation173_spill] sm:$0xff] %v19767_v55  ;;  %v19782_v8 = vpack.c.bf16 %v10007_v47, %v10003_v38  ;;  %v19784_v6 = vsub.f32 %v9921_v32, %v10013_v42  ;;  %v10021_v57 = vand.u32 4294901760, %v9925_v11  ;;  %v19798_v47 = vld [vmem:[#allocation8 + $0xd0] sm:$0xff]  ;;  %v19800_v32 = vld [vmem:[#allocation8 + $0xe8] sm:$0xff]  ;;  %v23244_v38 = vand.u32 4294901760, %v19771_v41 }
 0x7bc   : > { %23236 = vst [vmem:[#allocation174_spill] sm:$0xff] %v19769_v45  ;;  %v19791_v45 = vsub.f32 %v19752_v62, %v10011_v35  ;;  %v19794_v55 = vsub.f32 %v19754_v13, %v10015_v1  ;;  %v21723_v13 = vand.u32 4294901760, %v19780_v26  ;;  %v19812_v12 = vld [vmem:[#allocation8 + $0xe0] sm:$0xff]  ;;  %v19858_v20 = vpack.c.bf16 %v10015_v1, %v10011_v35  ;;  %v19882_v1 = vld [vmem:[#allocation8 + $0x128] sm:$0xff] }
 0x7bd   : > { %23237 = vst [vmem:[#allocation175_spill] sm:$0xff] %v19782_v8  ;;  %23238 = vst [vmem:[#allocation98_spill] sm:$0xff] %v19784_v6  ;;  %8977 = vmatpush1.msra.mxu1 %v8976_v43  ;;  %v19803_v6 = vpack.c.bf16 %v10013_v42, %v10009_v49  ;;  %v19805_v43 = vsub.f32 %v9923_v46, %v10017_v25  ;;  %v19807_v62 = vsub.f32 %v9925_v11, %v10021_v57 }
 0x7be   : > { %23239 = vst [vmem:[#allocation104_spill] sm:$0xff] %v19791_v45  ;;  %23240 = vst [vmem:[#allocation100_spill] sm:$0xff] %v19794_v55  ;;  %14500 = vmatprep.subr.bf16.mxu1 %v14499_v51  ;;  %9034 = vmatmul.mubr.f32.vlgmr.msra.gmra.mrb[34].mxu1 %v19606_v52  ;;  %v19810_v55 = vld [vmem:[#allocation8 + $0xf8] sm:$0xff]  ;;  %v19818_v51 = vsub.f32 %v19771_v41, %v23244_v38  ;;  %v23246_v49 = vand.u32 4294901760, %v19773_v3  ;;  %v10029_v11 = vand.u32 4294901760, %v19786_v16  ;;  %v21729_v42 = vand.u32 4294901760, %v19788_v24 }
 0x7bf   : > { %23241 = vst [vmem:[#allocation99_spill] sm:$0xff] %v19803_v6  ;;  %23242 = vst [vmem:[#allocation116_spill] sm:$0xff] %v19805_v43  ;;  %14502 = vmatpush1.bf16.msra.mxu1 %v14501_v19  ;;  %9124 = vmatprep.mubr.f32.mxu1 %v23042_v31  ;;  %v14505_v19 = vpack.c.bf16 %v19680_v0, %v19660_v50  ;;  %v19833_v38 = vsub.f32 %v19780_v26, %v21723_v13  ;;  %v21732_v13 = vand.u32 4294901760, %v19810_v55  ;;  %v19852_v45 = vld [vmem:[#allocation8 + $0x118] sm:$0xff] }
 0x7c0   : > { %23243 = vst [vmem:[#allocation119_spill] sm:$0xff] %v19807_v62  ;;  %23245 = vst [vmem:[#allocation177_spill] sm:$0xff] %v19818_v51  ;;  %v19823_v46 = vsub.f32 %v19773_v3, %v23246_v49  ;;  %14504 = vmatprep.subr.bf16.mxu1 %v14503_v37  ;;  %14582 = vmatpush1.bf16.msra.mxu0 %v19782_v8  ;;  %v10031_v51 = vand.u32 4294901760, %v19798_v47  ;;  %v19839_v62 = vld [vmem:[#allocation8 + $0x108] sm:$0xff]  ;;  %v19843_v37 = vsub.f32 %v19786_v16, %v10029_v11  ;;  %v19854_v49 = vld [vmem:[#allocation8 + $0x100] sm:$0xff] }
 0x7c1   : > { %23248 = vst [vmem:[#allocation126_spill] sm:$0xff] %v19833_v38  ;;  %14584 = vmatprep.subr.bf16.mxu0 %v19803_v6  ;;  %v19848_v43 = vsub.f32 %v19788_v24, %v21729_v42  ;;  %23251 = vst [vmem:[#allocation180_spill] sm:$0xff] %v19858_v20  ;;  %v19860_v5 = vpack.c.bf16 %v10021_v57, %v10017_v25  ;;  %v23254_v42 = vand.u32 4294901760, %v19800_v32  ;;  %v23257_v35 = vand.u32 4294901760, %v19812_v12 }
 0x7c2   : > { %23247 = vst [vmem:[#allocation178_spill] sm:$0xff] %v19823_v46  ;;  %v19837_v46 = vld [vmem:[#allocation8 + $0xf0] sm:$0xff]  ;;  %23249 = vst [vmem:[#allocation129_spill] sm:$0xff] %v19843_v37  ;;  %v19863_v16 = vsub.f32 %v19798_v47, %v10031_v51  ;;  %v19873_v38 = vsub.f32 %v19810_v55, %v21732_v13  ;;  %v21739_v25 = vand.u32 4294901760, %v19839_v62  ;;  %v19884_v47 = vld [vmem:[#allocation8 + $0x138] sm:$0xff]  ;;  %v23261_v13 = vand.u32 4294901760, %v19852_v45 }
 0x7c3   : > { %23250 = vst [vmem:[#allocation179_spill] sm:$0xff] %v19848_v43  ;;  %23252 = vst [vmem:[#allocation181_spill] sm:$0xff] %v19860_v5  ;;  %v19868_v43 = vsub.f32 %v19800_v32, %v23254_v42  ;;  %14506 = vmatpush1.bf16.msra.mxu1 %v14505_v19  ;;  %v21737_v37 = vand.u32 4294901760, %v19837_v46  ;;  %v19879_v57 = vsub.f32 %v19812_v12, %v23257_v35  ;;  %v19906_v19 = vld [vmem:[#allocation8 + $0x130] sm:$0xff]  ;;  %v23273_v9 = vand.u32 4294901760, %v19780_v26 }
 0x7c4   : > { %23253 = vst [vmem:[#allocation184_spill] sm:$0xff] %v19863_v16  ;;  %23256 = vst [vmem:[#allocation188_spill] sm:$0xff] %v19873_v38  ;;  %9066 = vmatprep.subr.mxu1 %v19705_v40  ;;  %14586 = vmatpush1.bf16.msra.mxu0 %v19858_v20  ;;  %v21745_v38 = vand.u32 4294901760, %v19882_v1  ;;  %v19911_v16 = vsub.f32 %v19852_v45, %v23261_v13  ;;  %v23268_v13 = vand.u32 4294901760, %v19884_v47  ;;  %v23285_v2 = vand.u32 4294901760, %v19800_v32 }
 0x7c5   : > { %23255 = vst [vmem:[#allocation186_spill] sm:$0xff] %v19868_v43  ;;  %23258 = vst [vmem:[#allocation189_spill] sm:$0xff] %v19879_v57  ;;  %14588 = vmatprep.subr.bf16.mxu0 %v19860_v5  ;;  %v19895_v35 = vsub.f32 %v19837_v46, %v21737_v37  ;;  %v19900_v57 = vsub.f32 %v19839_v62, %v21739_v25  ;;  %v19904_v43 = vld [vmem:[#allocation8 + $0x120] sm:$0xff]  ;;  %v23263_v37 = vand.u32 4294901760, %v19854_v49  ;;  %v23265_v25 = vand.u32 4294901760, %v19856_v15 }
 0x7c6   : > { %23262 = vst [vmem:[#allocation29_spill] sm:$0xff] %v19911_v16  ;;  %v19932_v16 = vsub.f32 %v19884_v47, %v23268_v13  ;;  %v19948_v13 = vld [vmem:[#allocation8 + $0x140] sm:$0xff]  ;;  %v19956_v61 = vpack.c.bf16 %v10029_v11, %v23273_v9  ;;  %v23277_v11 = vand.u32 4294901760, %v19788_v24  ;;  %v19991_v9 = vld [vmem:[#allocation8 + $0x178] sm:$0xff] }
 0x7c7   : > { %23259 = vst [vmem:[#allocation59_spill] sm:$0xff] %v19895_v35  ;;  %23260 = vst [vmem:[#allocation191_spill] sm:$0xff] %v19900_v57  ;;  %v19916_v35 = vsub.f32 %v19854_v49, %v23263_v37  ;;  %9069 = vmatpush1.msra.mxu1 %v19719_v48  ;;  %v19922_v42 = vsub.f32 %v19856_v15, %v23265_v25  ;;  %v19927_v57 = vsub.f32 %v19882_v1, %v21745_v38  ;;  %v19936_v37 = vld [vmem:[#allocation8 + $0x158] sm:$0xff] }
 0x7c8   : > { %23269 = vst [vmem:[#allocation114_spill] sm:$0xff] %v19932_v16  ;;  %14508 = vmatprep.subr.bf16.mxu1 %v19620_v60  ;;  %9127 = vmatmul.mubr.f32.vlgmr.msra.gmra.mrb[34].mxu1 %v19618_v23  ;;  %v23270_v25 = vand.u32 4294901760, %v19771_v41  ;;  %v21750_v38 = vand.u32 4294901760, %v19904_v43  ;;  %v19950_v16 = vld [vmem:[#allocation8 + $0x150] sm:$0xff]  ;;  %23274 = vst [vmem:[#allocation94_spill] sm:$0xff] %v19956_v61  ;;  %v19976_v41 = vpack.c.bf16 %v10031_v51, %v23277_v11  ;;  %v23282_v24 = vand.u32 4294901760, %v19948_v13 }
 0x7c9   : > { %23264 = vst [vmem:[#allocation31_spill] sm:$0xff] %v19916_v35  ;;  %23266 = vst [vmem:[#allocation36_spill] sm:$0xff] %v19922_v42  ;;  %v23271_v42 = vand.u32 4294901760, %v19773_v3  ;;  %14510 = vmatpush1.bf16.msra.mxu1 %v19624_v21  ;;  %9207 = vmatprep.mubr.f32.mxu1 %v23042_v31  ;;  %v21754_v3 = vand.u32 4294901760, %v19934_v17  ;;  %v21760_v26 = vand.u32 4294901760, %v19950_v16 }
 0x7ca   : > { %23267 = vst [vmem:[#allocation109_spill] sm:$0xff] %v19927_v57  ;;  %v21752_v57 = vand.u32 4294901760, %v19906_v19  ;;  %14512 = vmatprep.subr.bf16.mxu1 %v19674_v44  ;;  %23278 = vst [vmem:[#allocation54_spill] sm:$0xff] %v19976_v41  ;;  %v19996_v51 = vsub.f32 %v19948_v13, %v23282_v24  ;;  %v23286_v24 = vand.u32 4294901760, %v19810_v55 }
 0x7cb   : > { %v19944_v35 = vpack.c.bf16 %v23271_v42, %v23270_v25  ;;  %v19965_v42 = vsub.f32 %v19904_v43, %v21750_v38  ;;  %v19982_v38 = vsub.f32 %v19934_v17, %v21754_v3  ;;  %v20001_v11 = vsub.f32 %v19950_v16, %v21760_v26 }
 0x7cc   : > { %v19970_v25 = vsub.f32 %v19906_v19, %v21752_v57  ;;  %23283 = vst [vmem:[#allocation111_spill] sm:$0xff] %v19996_v51  ;;  %v20014_v51 = vpack.c.bf16 %v23286_v24, %v23285_v2  ;;  %v20041_v24 = vld [vmem:[#allocation8 + $0x188] sm:$0xff] }
 0x7cd   : > { %23272 = vst [vmem:[#allocation42_spill] sm:$0xff] %v19944_v35  ;;  %14590 = vmatpush1.bf16.msra.mxu0 %v19944_v35  ;;  %23275 = vst [vmem:[#allocation43_spill] sm:$0xff] %v19965_v42  ;;  %v23280_v42 = vand.u32 4294901760, %v19936_v37  ;;  %14514 = vmatpush1.bf16.msra.mxu1 %v19678_v28  ;;  %v23300_v35 = vand.u32 4294901760, %v19837_v46 }
 0x7ce   : > { %23276 = vst [vmem:[#allocation49_spill] sm:$0xff] %v19970_v25  ;;  %14592 = vmatprep.subr.bf16.mxu0 %v19956_v61  ;;  %23279 = vst [vmem:[#allocation55_spill] sm:$0xff] %v19982_v38  ;;  %v19989_v25 = vld [vmem:[#allocation8 + $0x168] sm:$0xff]  ;;  %9150 = vmatprep.subr.mxu1 %v19690_v14 }
 0x7cf   : > { %v19987_v57 = vsub.f32 %v19936_v37, %v23280_v42  ;;  %23284 = vst [vmem:[#allocation61_spill] sm:$0xff] %v20001_v11  ;;  %v21762_v3 = vand.u32 4294901760, %v19989_v25  ;;  %v20005_v42 = vld [vmem:[#allocation8 + $0x160] sm:$0xff]  ;;  %23287 = vst [vmem:[#allocation66_spill] sm:$0xff] %v20014_v51  ;;  %v23289_v11 = vand.u32 4294901760, %v19991_v9 }
 0x7d0   : > { %v21769_v56 = vand.u32 4294901760, %v20005_v42 }
 0x7d1   : > { %23281 = vst [vmem:[#allocation62_spill] sm:$0xff] %v19987_v57  ;;  %v20007_v57 = vld [vmem:[#allocation8 + $0x170] sm:$0xff]  ;;  %14594 = vmatpush1.bf16.msra.mxu0 %v19976_v41  ;;  %v20023_v38 = vsub.f32 %v19989_v25, %v21762_v3  ;;  %v20028_v32 = vsub.f32 %v19991_v9, %v23289_v11  ;;  %v20043_v3 = vld [vmem:[#allocation8 + $0x198] sm:$0xff]  ;;  %v23294_v11 = vand.u32 4294901760, %v19611_v39  ;;  %9152 = vmatpush1.msra.mxu1 %v19713_v30  ;;  %v23298_v39 = vand.u32 4294901760, %v19676_v36 }
 0x7d2   : > { %v21771_v26 = vand.u32 4294901760, %v20007_v57  ;;  %14596 = vmatprep.subr.bf16.mxu0 %v20014_v51  ;;  %v20034_v55 = vsub.f32 %v20005_v42, %v21769_v56  ;;  %v20051_v56 = vld [vmem:[#allocation8 + $0x180] sm:$0xff]  ;;  %9211 = vmatmul.mubr.f32.vlgmr.msra.gmra.mrb[34].mxu1 %v19640_v22  ;;  %v23299_v51 = vand.u32 4294901760, %v19812_v12  ;;  %v23304_v36 = vand.u32 4294901760, %v20043_v3 }
 0x7d3   : > { %23288 = vst [vmem:[#allocation123_spill] sm:$0xff] %v20023_v38  ;;  %23290 = vst [vmem:[#allocation132_spill] sm:$0xff] %v20028_v32  ;;  %v23293_v38 = vand.u32 4294901760, %v19622_v27  ;;  %v23297_v27 = vand.u32 4294901760, %v19658_v18  ;;  %9311 = vmatprep.mubr.f32.mxu1 %v23042_v31  ;;  %v23307_v12 = vand.u32 4294901760, %v19852_v45 }
 0x7d4   : > { %23291 = vst [vmem:[#allocation141_spill] sm:$0xff] %v20034_v55  ;;  %v20039_v2 = vsub.f32 %v20007_v57, %v21771_v26  ;;  %v20053_v55 = vld [vmem:[#allocation8 + $0x190] sm:$0xff]  ;;  %v23295_v26 = vand.u32 4294901760, %v19626_v29  ;;  %v20071_v29 = vpack.c.bf16 %v23300_v35, %v23299_v51 }
 0x7d5   : > { %v14515_v32 = vpack.c.bf16 %v23294_v11, %v23293_v38  ;;  %v14519_v38 = vpack.c.bf16 %v23298_v39, %v23297_v27  ;;  %v10075_v11 = vand.u32 4294901760, %v20051_v56  ;;  %v10079_v41 = vand.u32 4294901760, %v20053_v55 }
 0x7d6   : > { %23292 = vst [vmem:[#allocation144_spill] sm:$0xff] %v20039_v2  ;;  %v23296_v2 = vand.u32 4294901760, %v19613_v58  ;;  %23301 = vst [vmem:[#allocation153_spill] sm:$0xff] %v20071_v29  ;;  %v23302_v58 = vand.u32 4294901760, %v20041_v24  ;;  %14598 = vmatpush1.bf16.msra.mxu0 %v20071_v29  ;;  %v23314_v27 = vand.u32 4294901760, %v19856_v15  ;;  %v23320_v15 = vand.u32 4294901760, %v19719_v48 }
 0x7d7   : > { %14516 = vmatprep.subr.bf16.mxu1 %v14515_v32  ;;  %v23306_v32 = vand.u32 4294901760, %v19839_v62  ;;  %v20093_v35 = vsub.f32 %v20051_v56, %v10075_v11  ;;  %v20098_v51 = vsub.f32 %v20053_v55, %v10079_v41  ;;  %v23312_v62 = vand.u32 4294901760, %v19680_v0  ;;  %v8812_v0 = vld [vmem:[#allocation3 + $0x28] sm:$0xff] }
 0x7d8   : > { %v14517_v61 = vpack.c.bf16 %v23296_v2, %v23295_v26  ;;  %v20076_v18 = vsub.f32 %v20041_v24, %v23302_v58  ;;  %v20081_v26 = vsub.f32 %v20043_v3, %v23304_v36  ;;  %v23313_v2 = vand.u32 4294901760, %v19854_v49  ;;  %v8809_v49 = vld [vmem:[#allocation3 + $0x10] sm:$0xff] }
 0x7d9   : > { %v20088_v46 = vpack.c.bf16 %v23307_v12, %v23306_v32  ;;  %23309 = vst [vmem:[#allocation88_spill] sm:$0xff] %v20093_v35  ;;  %23310 = vst [vmem:[#allocation24_spill] sm:$0xff] %v20098_v51  ;;  %v23316_v58 = vand.u32 4294901760, %v19882_v1  ;;  %v9405_v32 = vand.u32 4294901760, %v8812_v0  ;;  %v8818_v1 = vld [vmem:[#allocation3 + $0x58] sm:$0xff]  ;;  %v23324_v48 = vand.u32 4294901760, %v19934_v17 }
 0x7da   : > { %23303 = vst [vmem:[#allocation63_spill] sm:$0xff] %v20076_v18  ;;  %23305 = vst [vmem:[#allocation70_spill] sm:$0xff] %v20081_v26  ;;  %14518 = vmatpush1.bf16.msra.mxu1 %v14517_v61  ;;  %v23311_v61 = vand.u32 4294901760, %v19660_v50  ;;  %v20110_v39 = vpack.c.bf16 %v23314_v27, %v23313_v2  ;;  %v23319_v50 = vand.u32 4294901760, %v19705_v40  ;;  %v23322_v40 = vand.u32 4294901760, %v19906_v19 }
 0x7db   : > { %23308 = vst [vmem:[#allocation82_spill] sm:$0xff] %v20088_v46  ;;  %14520 = vmatprep.subr.bf16.mxu1 %v14519_v38  ;;  %14600 = vmatprep.subr.bf16.mxu0 %v20088_v46  ;;  %v23317_v38 = vand.u32 4294901760, %v19884_v47  ;;  %v23321_v47 = vand.u32 4294901760, %v19904_v43  ;;  %v20142_v43 = vsub.f32 %v8812_v0, %v9405_v32  ;;  %v9411_v19 = vand.u32 4294901760, %v8818_v1 }
 0x7dc   : > { %v14521_v45 = vpack.c.bf16 %v23312_v62, %v23311_v61  ;;  %23315 = vst [vmem:[#allocation158_spill] sm:$0xff] %v20110_v39  ;;  %14602 = vmatpush1.bf16.msra.mxu0 %v20110_v39  ;;  %v9402_v61 = vand.u32 4294901760, %v8809_v49  ;;  %v23325_v62 = vand.u32 4294901760, %v19936_v37  ;;  %v23328_v2 = vand.u32 4294901760, %v19950_v16 }
 0x7dd   : > { %v20116_v36 = vpack.c.bf16 %v23317_v38, %v23316_v58  ;;  %v20130_v12 = vpack.c.bf16 %v23322_v40, %v23321_v47  ;;  %v23331_v58 = vand.u32 4294901760, %v19991_v9  ;;  %v9491_v16 = vand.u32 4294901760, %v20142_v43 }
 0x7de   : > { %14522 = vmatpush1.bf16.msra.mxu1 %v14521_v45  ;;  %v20138_v45 = vpack.c.bf16 %v23325_v62, %v23324_v48  ;;  %v20152_v17 = vsub.f32 %v8809_v49, %v9402_v61  ;;  %v23334_v0 = vand.u32 4294901760, %v20007_v57 }
 0x7df   : > { %23318 = vst [vmem:[#allocation161_spill] sm:$0xff] %v20116_v36  ;;  %9252 = vmatprep.subr.mxu1 %v23319_v50  ;;  %14604 = vmatprep.subr.bf16.mxu0 %v20116_v36  ;;  %23323 = vst [vmem:[#allocation166_spill] sm:$0xff] %v20130_v12  ;;  %v20167_v50 = vpack.c.bf16 %v9405_v32, %v9402_v61 }
 0x7e0   : > { %23326 = vst [vmem:[#allocation52_spill] sm:$0xff] %v20138_v45  ;;  %14606 = vmatpush1.bf16.msra.mxu0 %v20130_v12  ;;  %v9484_v9 = vand.u32 4294901760, %v20152_v17 }
 0x7e1   : > { %14608 = vmatprep.subr.bf16.mxu0 %v20138_v45 }
 0x7e2   : > { %9256 = vmatpush1.msra.mxu1 %v23320_v15  ;;  %v9485_v40 = vsub.f32 %v20152_v17, %v9484_v9 }
 0x7e3   : > { %14524 = vmatprep.subr.bf16.mxu1 %v19620_v60  ;;  %9313 = vmatmul.mubr.f32.vlgmr.msra.gmra.mrb[34].mxu1 %v19606_v52  ;;  %v8815_v60 = vld [vmem:[#allocation3 + $0x40] sm:$0xff] }
 0x7e4   : > { %14526 = vmatpush1.bf16.msra.mxu1 %v19624_v21  ;;  %9393 = vmatprep.mubr.f32.mxu1 %v23042_v31  ;;  %v23327_v21 = vand.u32 4294901760, %v19948_v13  ;;  %v9408_v37 = vand.u32 4294901760, %v8815_v60  ;;  %v20162_v13 = vsub.f32 %v8818_v1, %v9411_v19  ;;  %v23336_v1 = vand.u32 4294901760, %v20041_v24 }
 0x7e5   : > { %14528 = vmatprep.subr.bf16.mxu1 %v19674_v44  ;;  %v23330_v44 = vand.u32 4294901760, %v19989_v25  ;;  %v20204_v24 = vpack.c.bf16 %v10079_v41, %v10075_v11 }
 0x7e6   : > { %v20149_v27 = vpack.c.bf16 %v23328_v2, %v23327_v21  ;;  %v20169_v25 = vsub.f32 %v8815_v60, %v9408_v37  ;;  %v9505_v32 = vand.u32 4294901760, %v20162_v13  ;;  %v14535_v47 = vpack.c.bf16 %v9411_v19, %v9408_v37 }
 0x7e7   : > { %v20158_v38 = vpack.c.bf16 %v23331_v58, %v23330_v44  ;;  %23339 = vst [vmem:[#allocation121_spill] sm:$0xff] %v20204_v24  ;;  %v9486_v60 = vand.u32 4294901760, %v9485_v40  ;;  %v14544_v44 = vpack.c.bf16 %v20142_v43, %v20152_v17  ;;  %v14556_v17 = vpack.c.bf16 %v9491_v16, %v9484_v9  ;;  %v9955_v58 = vld [vmem:[#allocation8 + $0x1a8] sm:$0xff] }
 0x7e8   : > { %23329 = vst [vmem:[#allocation50_spill] sm:$0xff] %v20149_v27  ;;  %14530 = vmatpush1.bf16.msra.mxu1 %v19678_v28  ;;  %14610 = vmatpush1.bf16.msra.mxu0 %v20149_v27  ;;  %v8821_v28 = vld [vmem:[#allocation3 + $0x70] sm:$0xff]  ;;  %v9498_v61 = vand.u32 4294901760, %v20169_v25  ;;  %v9506_v62 = vsub.f32 %v20162_v13, %v9505_v32 }
 0x7e9   : > { %23332 = vst [vmem:[#allocation81_spill] sm:$0xff] %v20158_v38  ;;  %9336 = vmatprep.subr.mxu1 %v19690_v14  ;;  %14612 = vmatprep.subr.bf16.mxu0 %v20158_v38  ;;  %v23333_v14 = vand.u32 4294901760, %v20005_v42  ;;  %v20181_v15 = vand.u32 4294901760, %v8821_v28  ;;  %v23337_v42 = vand.u32 4294901760, %v20043_v3 }
 0x7ea   : > { %v9499_v19 = vsub.f32 %v20169_v25, %v9498_v61  ;;  %v9507_v21 = vand.u32 4294901760, %v9506_v62  ;;  %v9965_v62 = vld [vmem:[#allocation8 + $0x1f8] sm:$0xff] }
 0x7eb   : > { %v20178_v49 = vpack.c.bf16 %v23334_v0, %v23333_v14  ;;  %v20193_v57 = vpack.c.bf16 %v23337_v42, %v23336_v1  ;;  %v9511_v3 = vsub.f32 %v8821_v28, %v20181_v15  ;;  %v10081_v28 = vand.u32 4294901760, %v9955_v58  ;;  %v9959_v14 = vld [vmem:[#allocation8 + $0x1c8] sm:$0xff]  ;;  %v9961_v0 = vld [vmem:[#allocation8 + $0x1d8] sm:$0xff]  ;;  %v9958_v1 = vld [vmem:[#allocation8 + $0x1c0] sm:$0xff] }
 0x7ec   : > { %9338 = vmatpush1.msra.mxu1 %v19713_v30  ;;  %v9492_v30 = vsub.f32 %v20142_v43, %v9491_v16  ;;  %v9500_v41 = vand.u32 4294901760, %v9499_v19  ;;  %v23343_v43 = vld [vmem:[#allocation66_spill] sm:$0xff]  ;;  %v9954_v16 = vld [vmem:[#allocation8 + $0x1a0] sm:$0xff]  ;;  %v9960_v42 = vld [vmem:[#allocation8 + $0x1d0] sm:$0xff] }
 0x7ed   : > { %9395 = vmatmul.mubr.f32.vlgmr.msra.gmra.mrb[34].mxu1 %v19606_v52  ;;  %14531 = vmatprep.subr.bf16.mxu1 %v23039_v54  ;;  %23335 = vst [vmem:[#allocation106_spill] sm:$0xff] %v20178_v49  ;;  %23338 = vst [vmem:[#allocation117_spill] sm:$0xff] %v20193_v57  ;;  %v9512_v55 = vand.u32 4294901760, %v9511_v3  ;;  %v10083_v9 = vand.u32 4294901760, %v9954_v16 }
 0x7ee   : > { %14533 = vmatpush3.bf16.msra.mxu1 %v20167_v50  ;;  %12843 = vmatprep.mubr.msk.f32.mxu1 %vm15296_vm1, %v23042_v31  ;;  %v9493_v48 = vand.u32 4294901760, %v9492_v30  ;;  %v14541_v11 = vpack.c.bf16 %v9507_v21, %v9500_v41  ;;  %v10089_v30 = vand.u32 4294901760, %v9959_v14  ;;  %v9964_v41 = vld [vmem:[#allocation8 + $0x1f0] sm:$0xff] }
 0x7ef   : > { %14534 = vmatprep.subr.bf16.mxu1 %v23039_v54  ;;  %14614 = vmatpush1.bf16.msra.mxu0 %v20178_v49  ;;  %v9513_v2 = vsub.f32 %v9511_v3, %v9512_v55 }
 0x7f0   : > { %14616 = vmatprep.subr.bf16.mxu0 %v20193_v57  ;;  %v14538_v56 = vpack.c.bf16 %v9493_v48, %v9486_v60  ;;  %v20279_v48 = vsub.f32 %v9954_v16, %v10083_v9  ;;  %v9962_v60 = vld [vmem:[#allocation8 + $0x1e0] sm:$0xff] }
 0x7f1   : > { %v9514_v37 = vand.u32 4294901760, %v9513_v2  ;;  %v10091_v2 = vand.u32 4294901760, %v9958_v1 }
 0x7f2   : > { %14536 = vmatpush3.bf16.msra.mxu1 %v14535_v47  ;;  %23347 = vst [vmem:[#allocation130_spill] sm:$0xff] %v20279_v48 }
 0x7f3   : > { %12841 = vmatprep.subr.mxu1 %v23042_v31  ;;  %14618 = vmatpush1.bf16.msra.mxu0 %v20204_v24 }
 0x7f6   : > { %12842 = vmatpush3.msra.mxu1 %v20181_v15 }
 0x7f7   : > { %14537 = vmatprep.subr.bf16.mxu1 %v23039_v54  ;;  %12844 = vmatmul.mubr.f32.vlgmr.msra.gmra.mrb[36].mxu1 %v19695_v53  ;;  %v14547_v53 = vpack.c.bf16 %v20162_v13, %v20169_v25  ;;  %v9957_v13 = vld [vmem:[#allocation8 + $0x1b8] sm:$0xff]  ;;  %v9956_v25 = vld [vmem:[#allocation8 + $0x1b0] sm:$0xff] }
 0x7f8   : > { %14539 = vmatpush3.bf16.msra.mxu1 %v14538_v56  ;;  %12856 = vmatprep.mubr.msk.f32.mxu1 %vm15296_vm1, %v23042_v31 }
 0x7f9   : > { %14540 = vmatprep.subr.bf16.mxu1 %v23039_v54 }
 0x7fc   : > { %14542 = vmatpush3.bf16.msra.mxu1 %v14541_v11 }
 0x7fd   : > { %12854 = vmatprep.subr.mxu1 %v23042_v31 }
 0x800   : > { %12855 = vmatpush3.msra.mxu1 %v9514_v37  ;;  %v10095_v37 = vand.u32 4294901760, %v9960_v42 }
 0x801   : > { %14543 = vmatprep.subr.bf16.mxu1 %v23039_v54  ;;  %12857 = vmatmul.mubr.f32.vlgmr.msra.gmra.mrb[36].mxu1 %v19606_v52 }
 0x802   : > { %14545 = vmatpush3.bf16.msra.mxu1 %v14544_v44  ;;  %12869 = vmatprep.mubr.msk.f32.mxu1 %vm15296_vm1, %v23042_v31  ;;  %v20298_v16 = vsub.f32 %v9960_v42, %v10095_v37 }
 0x803   : > { %14546 = vmatprep.subr.bf16.mxu1 %v23039_v54 }
 0x804   : > { %23354 = vst [vmem:[#allocation146_spill] sm:$0xff] %v20298_v16 }
 0x806   : > { %14548 = vmatpush3.bf16.msra.mxu1 %v14547_v53  ;;  %v10101_v53 = vand.u32 4294901760, %v9965_v62 }
 0x807   : > { %12867 = vmatprep.subr.mxu1 %v23042_v31 }
 0x80a   : > { %12868 = vmatpush3.msra.mxu1 %v9511_v3 }
 0x80b   : > { %14549 = vmatprep.subr.bf16.mxu1 %v23039_v54  ;;  %12870 = vmatmul.mubr.f32.vlgmr.msra.gmra.mrb[36].mxu1 %v19618_v23  ;;  %v14559_v23 = vpack.c.bf16 %v9505_v32, %v9498_v61  ;;  %v10093_v32 = vand.u32 4294901760, %v9961_v0  ;;  %v20275_v61 = vsub.f32 %v9955_v58, %v10081_v28 }
 0x80c   : > { %14551 = vmatpush3.bf16.msra.mxu1 %v20167_v50  ;;  %12882 = vmatprep.mubr.msk.f32.mxu1 %vm15296_vm1, %v23042_v31 }
 0x80d   : > { %14552 = vmatprep.subr.bf16.mxu1 %v23039_v54  ;;  %23345 = vst [vmem:[#allocation125_spill] sm:$0xff] %v20275_v61  ;;  %v20286_v21 = vpack.c.bf16 %v10093_v32, %v10089_v30  ;;  %v20291_v11 = vsub.f32 %v9961_v0, %v10093_v32  ;;  %v20307_v0 = vsub.f32 %v9965_v62, %v10101_v53 }
 0x80f   : > { %23350 = vst [vmem:[#allocation140_spill] sm:$0xff] %v20286_v21  ;;  %23352 = vst [vmem:[#allocation57_spill] sm:$0xff] %v20291_v11 }
 0x810   : > { %14554 = vmatpush3.bf16.msra.mxu1 %v14535_v47 }
 0x811   : > { %12880 = vmatprep.subr.mxu1 %v23042_v31 }
 0x814   : > { %12881 = vmatpush3.msra.mxu1 %v20181_v15 }
 0x815   : > { %14555 = vmatprep.subr.bf16.mxu1 %v23039_v54  ;;  %12883 = vmatmul.mubr.f32.vlgmr.msra.gmra.mrb[36].mxu1 %v19640_v22  ;;  %v23342_v22 = vld [vmem:[#allocation54_spill] sm:$0xff] }
 0x816   : > { %14557 = vmatpush3.bf16.msra.mxu1 %v14556_v17  ;;  %12895 = vmatprep.mubr.msk.f32.mxu1 %vm15296_vm1, %v23042_v31  ;;  %v10099_v17 = vand.u32 4294901760, %v9962_v60 }
 0x817   : > { %14558 = vmatprep.subr.bf16.mxu1 %v23039_v54 }
 0x81a   : > { %14560 = vmatpush3.bf16.msra.mxu1 %v14559_v23  ;;  %v23353_v23 = vld [vmem:[#allocation165_spill] sm:$0xff] }
 0x81b   : > { %12893 = vmatprep.subr.mxu1 %v23042_v31  ;;  %v10124_v58 = vand.u32 4294901760, %v23353_v23 }
 0x81e   : > { %12894 = vmatpush3.msra.mxu1 %v9512_v55  ;;  %v20288_v55 = vsub.f32 %v9959_v14, %v10089_v30  ;;  %v20311_v30 = vsub.f32 %v9962_v60, %v10099_v17 }
 0x81f   : > { %14561 = vmatprep.subr.bf16.mxu1 %v23039_v54  ;;  %12896 = vmatmul.mubr.f32.vlgmr.msra.gmra.mrb[36].mxu1 %v19606_v52 }
 0x820   : > { %14563 = vmatpush3.bf16.msra.mxu1 %v20167_v50  ;;  %12908 = vmatprep.mubr.msk.f32.mxu1 %vm15296_vm1, %v23042_v31  ;;  %v10085_v50 = vand.u32 4294901760, %v9957_v13  ;;  %23351 = vst [vmem:[#allocation139_spill] sm:$0xff] %v20288_v55 }
 0x821   : > { %14564 = vmatprep.subr.bf16.mxu1 %v23039_v54  ;;  %v23340_v54 = vld [vmem:[#allocation42_spill] sm:$0xff] }
 0x822   : > { %v20273_v40 = vpack.c.bf16 %v10085_v50, %v10081_v28  ;;  %v20277_v3 = vsub.f32 %v9957_v13, %v10085_v50  ;;  %v20296_v13 = vsub.f32 %v9958_v1, %v10091_v2  ;;  %v10103_v28 = vand.u32 4294901760, %v9964_v41  ;;  %v23355_v50 = vld [vmem:[#allocation167_spill] sm:$0xff] }
 0x823   : > { %v10125_v1 = vsub.f32 %v23353_v23, %v10124_v58 }
 0x824   : > { %14566 = vmatpush3.bf16.msra.mxu1 %v14535_v47  ;;  %v9963_v47 = vld [vmem:[#allocation8 + $0x1e8] sm:$0xff]  ;;  %23344 = vst [vmem:[#allocation127_spill] sm:$0xff] %v20273_v40  ;;  %23346 = vst [vmem:[#allocation131_spill] sm:$0xff] %v20277_v3  ;;  %14620 = vmatprep.subr.bf16.mxu0 %v20273_v40  ;;  %v20313_v32 = vsub.f32 %v9964_v41, %v10103_v28  ;;  %v23359_v41 = vld [vmem:[#allocation75_spill] sm:$0xff] }
 0x825   : > { %12906 = vmatprep.subr.mxu1 %v23042_v31  ;;  %v10097_v44 = vand.u32 4294901760, %v9963_v47  ;;  %v10126_v62 = vand.u32 4294901760, %v10125_v1  ;;  %v23361_v31 = vld [vmem:[#allocation176_spill] sm:$0xff] }
 0x827   : > { %v20305_v14 = vsub.f32 %v9963_v47, %v10097_v44  ;;  %v20321_v47 = vpack.c.bf16 %v10103_v28, %v10099_v17 }
 0x828   : > { %12907 = vmatpush3.msra.mxu1 %v20181_v15  ;;  %v10087_v15 = vand.u32 4294901760, %v9956_v25 }
 0x829   : > { %12909 = vmatmul.mubr.f32.vlgmr.msra.gmra.mrb[36].mxu1 %v19606_v52  ;;  %14760 = vmatprep.subr.bf16.mxu1 %v19652_v34  ;;  %v23341_v52 = vld [vmem:[#allocation94_spill] sm:$0xff]  ;;  %23358 = vst [vmem:[#allocation87_spill] sm:$0xff] %v20321_v47 }
 0x82a   : > { %14762 = vmatpush1.bf16.msra.mxu1 %v19670_v33  ;;  %v20282_v19 = vpack.c.bf16 %v10087_v15, %v10083_v9  ;;  %v20284_v56 = vsub.f32 %v9956_v25, %v10087_v15  ;;  %v10136_v25 = vand.u32 4294901760, %v23355_v50  ;;  %v20303_v9 = vpack.c.bf16 %v10095_v37, %v10091_v2 }
 0x82b   : > { %14764 = vmatprep.subr.bf16.mxu1 %v19707_v4  ;;  %v20309_v15 = vpack.c.bf16 %v10101_v53, %v10097_v44  ;;  %v10172_v37 = vand.u32 4294901760, %v23359_v41  ;;  %v23360_v44 = vld [vmem:[#allocation76_spill] sm:$0xff] }
 0x82c   : > { %23348 = vst [vmem:[#allocation136_spill] sm:$0xff] %v20282_v19  ;;  %23349 = vst [vmem:[#allocation134_spill] sm:$0xff] %v20284_v56  ;;  %14622 = vmatpush1.bf16.msra.mxu0 %v20282_v19  ;;  %v10137_v42 = vsub.f32 %v23355_v50, %v10136_v25  ;;  %v10184_v53 = vand.u32 4294901760, %v23360_v44 }
 0x82d   : > { %14624 = vmatprep.subr.bf16.mxu0 %v20286_v21  ;;  %23356 = vst [vmem:[#allocation138_spill] sm:$0xff] %v20303_v9  ;;  %23357 = vst [vmem:[#allocation155_spill] sm:$0xff] %v20309_v15  ;;  %v10173_v28 = vsub.f32 %v23359_v41, %v10172_v37 }
 0x82e   : > { %14766 = vmatpush1.bf16.msra.mxu1 %v19725_v7  ;;  %v10138_v2 = vand.u32 4294901760, %v10137_v42  ;;  %v20330_v17 = vpack.c.bf16 %v10184_v53, %v10172_v37  ;;  %v10185_v42 = vsub.f32 %v23360_v44, %v10184_v53  ;;  %v23367_v37 = vld [vmem:[#allocation169_spill] sm:$0xff] }
 0x82f   : > { %14768 = vmatprep.subr.bf16.mxu1 %v19733_v63  ;;  %v23384_v63 = vld [vmem:[#allocation178_spill] sm:$0xff] }
 0x830   : > { %14626 = vmatpush1.bf16.msra.mxu0 %v20303_v9  ;;  %v14631_v60 = vpack.c.bf16 %v10138_v2, %v10126_v62  ;;  %23363 = vst [vmem:[#allocation93_spill] sm:$0xff] %v20330_v17  ;;  %v23365_v62 = vld [vmem:[#allocation162_spill] sm:$0xff]  ;;  %v10262_v7 = vand.u32 4294901760, %v23384_v63 }
 0x831   : > { %14628 = vmatprep.subr.bf16.mxu0 %v20309_v15  ;;  %v10196_v2 = vand.u32 4294901760, %v23365_v62 }
 0x832   : > { %14770 = vmatpush1.bf16.msra.mxu1 %v19746_v10 }
 0x833   : > { %14772 = vmatprep.subr.bf16.mxu1 %v19760_v59 }
 0x834   : > { %14630 = vmatpush1.bf16.msra.mxu0 %v20321_v47 }
 0x835   : > { %14632 = vmatprep.subr.bf16.mxu0 %v14631_v60 }
 0x836   : > { %14774 = vmatpush1.bf16.msra.mxu1 %v19782_v8 }
 0x837   : > { %14776 = vmatprep.subr.bf16.mxu1 %v19803_v6 }
 0x83a   : > { %14778 = vmatpush1.bf16.msra.mxu1 %v19858_v20 }
 0x83b   : > { %14780 = vmatprep.subr.bf16.mxu1 %v19860_v5 }
 0x83e   : > { %14782 = vmatpush1.bf16.msra.mxu1 %v23340_v54 }
 0x83f   : > { %14784 = vmatprep.subr.bf16.mxu1 %v23341_v52  ;;  %v23373_v52 = vld [vmem:[#allocation98_spill] sm:$0xff] }
 0x840   : > { %v10232_v54 = vand.u32 4294901760, %v23373_v52 }
 0x842   : > { %14786 = vmatpush1.bf16.msra.mxu1 %v23342_v22 }
 0x843   : > { %14788 = vmatprep.subr.bf16.mxu1 %v23343_v43 }
 0x846   : > { %14790 = vmatpush1.bf16.msra.mxu1 %v20071_v29 }
 0x847   : > { %14792 = vmatprep.subr.bf16.mxu1 %v20088_v46  ;;  %v23368_v46 = vld [vmem:[#allocation173_spill] sm:$0xff] }
 0x848   : > { %v10214_v29 = vand.u32 4294901760, %v23368_v46 }
 0x84a   : > { %14794 = vmatpush1.bf16.msra.mxu1 %v20110_v39  ;;  %v10202_v39 = vand.u32 4294901760, %v23367_v37 }
 0x84b   : > { %14796 = vmatprep.subr.bf16.mxu1 %v20116_v36 }
 0x84c   : > { %v10203_v5 = vsub.f32 %v23367_v37, %v10202_v39 }
 0x84e   : > { %14798 = vmatpush1.bf16.msra.mxu1 %v20130_v12  ;;  %v10186_v12 = vand.u32 4294901760, %v10185_v42 }
 0x84f   : > { %14800 = vmatprep.subr.bf16.mxu1 %v20138_v45 }
 0x852   : > { %14802 = vmatpush1.bf16.msra.mxu1 %v20149_v27  ;;  %v10174_v27 = vand.u32 4294901760, %v10173_v28 }
 0x853   : > { %14804 = vmatprep.subr.bf16.mxu1 %v20158_v38  ;;  %v23362_v38 = vld [vmem:[#allocation48_spill] sm:$0xff] }
 0x856   : > { %14806 = vmatpush1.bf16.msra.mxu1 %v20178_v49  ;;  %v10178_v49 = vand.u32 4294901760, %v23361_v31 }
 0x857   : > { %14808 = vmatprep.subr.bf16.mxu1 %v20193_v57  ;;  %v10190_v57 = vand.u32 4294901760, %v23362_v38 }
 0x858   : > { %v10179_v45 = vsub.f32 %v23361_v31, %v10178_v49 }
 0x859   : > { %v20333_v1 = vpack.c.bf16 %v10190_v57, %v10178_v49  ;;  %v10191_v36 = vsub.f32 %v23362_v38, %v10190_v57  ;;  %v20350_v49 = vpack.c.bf16 %v10214_v29, %v10202_v39  ;;  %v10233_v39 = vsub.f32 %v23373_v52, %v10232_v54 }
 0x85a   : > { %14810 = vmatpush1.bf16.msra.mxu1 %v20204_v24  ;;  %v14823_v24 = vpack.c.bf16 %v10136_v25, %v10124_v58  ;;  %v10180_v43 = vand.u32 4294901760, %v10179_v45  ;;  %v20348_v25 = vpack.c.bf16 %v10186_v12, %v10174_v27  ;;  %v10215_v12 = vsub.f32 %v23368_v46, %v10214_v29  ;;  %v23375_v27 = vld [vmem:[#allocation104_spill] sm:$0xff] }
 0x85b   : > { %14812 = vmatprep.subr.bf16.mxu1 %v20273_v40  ;;  %23364 = vst [vmem:[#allocation15_spill] sm:$0xff] %v20333_v1  ;;  %v23366_v40 = vld [vmem:[#allocation168_spill] sm:$0xff]  ;;  %v10192_v28 = vand.u32 4294901760, %v10191_v36  ;;  %23371 = vst [vmem:[#allocation27_spill] sm:$0xff] %v20350_v49  ;;  %v10226_v36 = vand.u32 4294901760, %v23375_v27 }
 0x85c   : > { %v10208_v60 = vand.u32 4294901760, %v23366_v40  ;;  %23370 = vst [vmem:[#allocation32_spill] sm:$0xff] %v20348_v25 }
 0x85d   : > { %v20357_v45 = vpack.c.bf16 %v10192_v28, %v10180_v43  ;;  %v23380_v43 = vld [vmem:[#allocation116_spill] sm:$0xff] }
 0x85e   : > { %14814 = vmatpush1.bf16.msra.mxu1 %v20282_v19  ;;  %v20344_v53 = vpack.c.bf16 %v10208_v60, %v10196_v2  ;;  %v10197_v19 = vsub.f32 %v23365_v62, %v10196_v2  ;;  %v10209_v58 = vsub.f32 %v23366_v40, %v10208_v60  ;;  %v23376_v2 = vld [vmem:[#allocation100_spill] sm:$0xff]  ;;  %v10244_v28 = vand.u32 4294901760, %v23380_v43 }
 0x85f   : > { %14816 = vmatprep.subr.bf16.mxu1 %v20286_v21  ;;  %v23372_v21 = vld [vmem:[#allocation174_spill] sm:$0xff]  ;;  %23374 = vst [vmem:[#allocation19_spill] sm:$0xff] %v20357_v45  ;;  %v10238_v60 = vand.u32 4294901760, %v23376_v2 }
 0x860   : > { %23369 = vst [vmem:[#allocation107_spill] sm:$0xff] %v20344_v53  ;;  %v10220_v42 = vand.u32 4294901760, %v23372_v21  ;;  %v10198_v57 = vand.u32 4294901760, %v10197_v19  ;;  %v10210_v22 = vand.u32 4294901760, %v10209_v58  ;;  %v10204_v19 = vand.u32 4294901760, %v10203_v5 }
 0x861   : > { %v20367_v8 = vpack.c.bf16 %v10238_v60, %v10226_v36 }
 0x862   : > { %14818 = vmatpush1.bf16.msra.mxu1 %v20303_v9  ;;  %v20362_v20 = vpack.c.bf16 %v10210_v22, %v10198_v57  ;;  %v20364_v6 = vpack.c.bf16 %v10232_v54, %v10220_v42  ;;  %v10221_v58 = vsub.f32 %v23372_v21, %v10220_v42  ;;  %v10216_v9 = vand.u32 4294901760, %v10215_v12  ;;  %v23383_v12 = vld [vmem:[#allocation177_spill] sm:$0xff] }
 0x863   : > { %14820 = vmatprep.subr.bf16.mxu1 %v20309_v15  ;;  %23379 = vst [vmem:[#allocation44_spill] sm:$0xff] %v20367_v8  ;;  %v23381_v15 = vld [vmem:[#allocation119_spill] sm:$0xff]  ;;  %v10227_v22 = vsub.f32 %v23375_v27, %v10226_v36  ;;  %v10239_v57 = vsub.f32 %v23376_v2, %v10238_v60  ;;  %v10234_v42 = vand.u32 4294901760, %v10233_v39  ;;  %v10250_v10 = vand.u32 4294901760, %v23383_v12  ;;  %v23390_v39 = vld [vmem:[#allocation129_spill] sm:$0xff] }
 0x864   : > { %23377 = vst [vmem:[#allocation25_spill] sm:$0xff] %v20362_v20  ;;  %23378 = vst [vmem:[#allocation51_spill] sm:$0xff] %v20364_v6  ;;  %v10222_v29 = vand.u32 4294901760, %v10221_v58  ;;  %v10256_v59 = vand.u32 4294901760, %v23381_v15  ;;  %v20375_v5 = vpack.c.bf16 %v10216_v9, %v10204_v19  ;;  %v10245_v58 = vsub.f32 %v23380_v43, %v10244_v28 }
 0x865   : > { %v10228_v4 = vand.u32 4294901760, %v10227_v22  ;;  %v10240_v33 = vand.u32 4294901760, %v10239_v57  ;;  %v20384_v50 = vpack.c.bf16 %v10262_v7, %v10250_v10  ;;  %v10280_v23 = vand.u32 4294901760, %v23390_v39  ;;  %v23391_v57 = vld [vmem:[#allocation179_spill] sm:$0xff] }
 0x866   : > { %14822 = vmatpush1.bf16.msra.mxu1 %v20321_v47  ;;  %23382 = vst [vmem:[#allocation90_spill] sm:$0xff] %v20375_v5  ;;  %v20379_v54 = vpack.c.bf16 %v10256_v59, %v10244_v28  ;;  %v20382_v47 = vpack.c.bf16 %v10234_v42, %v10222_v29  ;;  %v10257_v36 = vsub.f32 %v23381_v15, %v10256_v59  ;;  %v10246_v19 = vand.u32 4294901760, %v10245_v58  ;;  %v23392_v29 = vld [vmem:[#allocation184_spill] sm:$0xff] }
 0x867   : > { %14824 = vmatprep.subr.bf16.mxu1 %v14823_v24  ;;  %23387 = vst [vmem:[#allocation190_spill] sm:$0xff] %v20384_v50  ;;  %v23388_v24 = vld [vmem:[#allocation126_spill] sm:$0xff]  ;;  %v20388_v60 = vpack.c.bf16 %v10240_v33, %v10228_v4  ;;  %v10251_v34 = vsub.f32 %v23383_v12, %v10250_v10  ;;  %v10263_v22 = vsub.f32 %v23384_v63, %v10262_v7  ;;  %v10274_v28 = vand.u32 4294901760, %v23391_v57  ;;  %v23397_v5 = vld [vmem:[#allocation188_spill] sm:$0xff] }
 0x868   : > { %23385 = vst [vmem:[#allocation37_spill] sm:$0xff] %v20379_v54  ;;  %23386 = vst [vmem:[#allocation91_spill] sm:$0xff] %v20382_v47  ;;  %v10268_v9 = vand.u32 4294901760, %v23388_v24  ;;  %v10258_v54 = vand.u32 4294901760, %v10257_v36  ;;  %v10286_v42 = vand.u32 4294901760, %v23392_v29  ;;  %v10281_v33 = vsub.f32 %v23390_v39, %v10280_v23  ;;  %v23396_v10 = vld [vmem:[#allocation186_spill] sm:$0xff] }
 0x869   : > { %23389 = vst [vmem:[#allocation183_spill] sm:$0xff] %v20388_v60  ;;  %v10252_v50 = vand.u32 4294901760, %v10251_v34  ;;  %v10264_v58 = vand.u32 4294901760, %v10263_v22  ;;  %v10292_v36 = vand.u32 4294901760, %v23396_v10  ;;  %v10304_v6 = vand.u32 4294901760, %v23397_v5 }
 0x86a   : > { %v20395_v47 = vpack.c.bf16 %v10280_v23, %v10268_v9  ;;  %v10269_v59 = vsub.f32 %v23388_v24, %v10268_v9  ;;  %v20399_v4 = vpack.c.bf16 %v10258_v54, %v10246_v19  ;;  %v20401_v60 = vpack.c.bf16 %v10286_v42, %v10274_v28  ;;  %v23399_v9 = vld [vmem:[#allocation189_spill] sm:$0xff]  ;;  %v23400_v23 = vld [vmem:[#allocation59_spill] sm:$0xff] }
 0x86b   : > { %v10282_v7 = vand.u32 4294901760, %v10281_v33  ;;  %v10275_v20 = vsub.f32 %v23391_v57, %v10274_v28  ;;  %v20406_v49 = vpack.c.bf16 %v10264_v58, %v10252_v50  ;;  %v10287_v34 = vsub.f32 %v23392_v29, %v10286_v42  ;;  %v23404_v50 = vld [vmem:[#allocation191_spill] sm:$0xff]  ;;  %v23405_v42 = vld [vmem:[#allocation29_spill] sm:$0xff] }
 0x86c   : > { %23393 = vst [vmem:[#allocation108_spill] sm:$0xff] %v20395_v47  ;;  %23394 = vst [vmem:[#allocation68_spill] sm:$0xff] %v20399_v4  ;;  %v10270_v8 = vand.u32 4294901760, %v10269_v59  ;;  %v10298_v47 = vand.u32 4294901760, %v23399_v9  ;;  %v10310_v54 = vand.u32 4294901760, %v23400_v23  ;;  %v20413_v22 = vpack.c.bf16 %v10304_v6, %v10292_v36 }
 0x86d   : > { %23395 = vst [vmem:[#allocation80_spill] sm:$0xff] %v20401_v60  ;;  %23398 = vst [vmem:[#allocation86_spill] sm:$0xff] %v20406_v49  ;;  %v10276_v60 = vand.u32 4294901760, %v10275_v20  ;;  %v10293_v59 = vsub.f32 %v23396_v10, %v10292_v36  ;;  %v10288_v33 = vand.u32 4294901760, %v10287_v34  ;;  %v10305_v28 = vsub.f32 %v23397_v5, %v10304_v6  ;;  %v23407_v20 = vld [vmem:[#allocation31_spill] sm:$0xff]  ;;  %v23408_v36 = vld [vmem:[#allocation36_spill] sm:$0xff] }
 0x86e   : > { %v20411_v19 = vpack.c.bf16 %v10282_v7, %v10270_v8  ;;  %23402 = vst [vmem:[#allocation26_spill] sm:$0xff] %v20413_v22  ;;  %v20416_v4 = vpack.c.bf16 %v10310_v54, %v10298_v47  ;;  %v10316_v58 = vand.u32 4294901760, %v23404_v50  ;;  %v10328_v45 = vand.u32 4294901760, %v23405_v42 }
 0x86f   : > { %v10294_v49 = vand.u32 4294901760, %v10293_v59  ;;  %v10299_v53 = vsub.f32 %v23399_v9, %v10298_v47  ;;  %v10311_v8 = vsub.f32 %v23400_v23, %v10310_v54  ;;  %v20423_v7 = vpack.c.bf16 %v10288_v33, %v10276_v60  ;;  %v23412_v54 = vld [vmem:[#allocation109_spill] sm:$0xff] }
 0x870   : > { %23401 = vst [vmem:[#allocation113_spill] sm:$0xff] %v20411_v19  ;;  %23403 = vst [vmem:[#allocation33_spill] sm:$0xff] %v20416_v4  ;;  %v10306_v22 = vand.u32 4294901760, %v10305_v28  ;;  %v10322_v19 = vand.u32 4294901760, %v23407_v20  ;;  %v10334_v34 = vand.u32 4294901760, %v23408_v36  ;;  %v20427_v25 = vpack.c.bf16 %v10328_v45, %v10316_v58 }
 0x871   : > { %23406 = vst [vmem:[#allocation34_spill] sm:$0xff] %v20423_v7  ;;  %v10300_v4 = vand.u32 4294901760, %v10299_v53  ;;  %v10312_v6 = vand.u32 4294901760, %v10311_v8  ;;  %v10317_v1 = vsub.f32 %v23404_v50, %v10316_v58  ;;  %v10329_v47 = vsub.f32 %v23405_v42, %v10328_v45  ;;  %v23414_v7 = vld [vmem:[#allocation114_spill] sm:$0xff]  ;;  %v23415_v8 = vld [vmem:[#allocation43_spill] sm:$0xff] }
 0x872   : > { %23409 = vst [vmem:[#allocation67_spill] sm:$0xff] %v20427_v25  ;;  %v20430_v59 = vpack.c.bf16 %v10306_v22, %v10294_v49  ;;  %v20432_v17 = vpack.c.bf16 %v10334_v34, %v10322_v19  ;;  %v10340_v60 = vand.u32 4294901760, %v23412_v54  ;;  %v10352_v23 = vand.u32 4294901760, %v23414_v7  ;;  %v23416_v49 = vld [vmem:[#allocation49_spill] sm:$0xff] }
 0x873   : > { %v20436_v33 = vpack.c.bf16 %v10312_v6, %v10300_v4  ;;  %v10318_v28 = vand.u32 4294901760, %v10317_v1  ;;  %v10323_v9 = vsub.f32 %v23407_v20, %v10322_v19  ;;  %v10330_v25 = vand.u32 4294901760, %v10329_v47  ;;  %v23420_v19 = vld [vmem:[#allocation55_spill] sm:$0xff] }
 0x874   : > { %23410 = vst [vmem:[#allocation71_spill] sm:$0xff] %v20430_v59  ;;  %23411 = vst [vmem:[#allocation73_spill] sm:$0xff] %v20432_v17  ;;  %v10335_v53 = vsub.f32 %v23408_v36, %v10334_v34  ;;  %v10346_v58 = vand.u32 4294901760, %v23415_v8  ;;  %v10358_v22 = vand.u32 4294901760, %v23416_v49  ;;  %v20443_v59 = vpack.c.bf16 %v10352_v23, %v10340_v60  ;;  %v23421_v36 = vld [vmem:[#allocation62_spill] sm:$0xff] }
 0x875   : > { %23413 = vst [vmem:[#allocation78_spill] sm:$0xff] %v20436_v33  ;;  %v10324_v17 = vand.u32 4294901760, %v10323_v9  ;;  %v10341_v45 = vsub.f32 %v23412_v54, %v10340_v60  ;;  %v10353_v4 = vsub.f32 %v23414_v7, %v10352_v23  ;;  %v20447_v6 = vpack.c.bf16 %v10330_v25, %v10318_v28  ;;  %v23423_v60 = vld [vmem:[#allocation111_spill] sm:$0xff]  ;;  %v23424_v23 = vld [vmem:[#allocation61_spill] sm:$0xff] }
 0x876   : > { %23417 = vst [vmem:[#allocation79_spill] sm:$0xff] %v20443_v59  ;;  %v10336_v1 = vand.u32 4294901760, %v10335_v53  ;;  %v20449_v33 = vpack.c.bf16 %v10358_v22, %v10346_v58  ;;  %v10364_v47 = vand.u32 4294901760, %v23420_v19  ;;  %v10376_v42 = vand.u32 4294901760, %v23421_v36 }
 0x877   : > { %23418 = vst [vmem:[#allocation83_spill] sm:$0xff] %v20447_v6  ;;  %v10342_v20 = vand.u32 4294901760, %v10341_v45  ;;  %v10354_v34 = vand.u32 4294901760, %v10353_v4  ;;  %v10347_v50 = vsub.f32 %v23415_v8, %v10346_v58  ;;  %v10359_v9 = vsub.f32 %v23416_v49, %v10358_v22  ;;  %v23429_v22 = vld [vmem:[#allocation132_spill] sm:$0xff] }
 0x878   : > { %23419 = vst [vmem:[#allocation85_spill] sm:$0xff] %v20449_v33  ;;  %v20454_v5 = vpack.c.bf16 %v10336_v1, %v10324_v17  ;;  %v10370_v59 = vand.u32 4294901760, %v23423_v60  ;;  %v10382_v25 = vand.u32 4294901760, %v23424_v23  ;;  %v20461_v53 = vpack.c.bf16 %v10376_v42, %v10364_v47  ;;  %v23428_v17 = vld [vmem:[#allocation123_spill] sm:$0xff] }
 0x879   : > { %v20459_v28 = vpack.c.bf16 %v10354_v34, %v10342_v20  ;;  %v10348_v33 = vand.u32 4294901760, %v10347_v50  ;;  %v10365_v45 = vsub.f32 %v23420_v19, %v10364_v47  ;;  %v10360_v4 = vand.u32 4294901760, %v10359_v9  ;;  %v23431_v50 = vld [vmem:[#allocation141_spill] sm:$0xff]  ;;  %v23432_v47 = vld [vmem:[#allocation144_spill] sm:$0xff] }
 0x87a   : > { %23422 = vst [vmem:[#allocation41_spill] sm:$0xff] %v20454_v5  ;;  %23426 = vst [vmem:[#allocation53_spill] sm:$0xff] %v20461_v53  ;;  %v20464_v6 = vpack.c.bf16 %v10382_v25, %v10370_v59  ;;  %v10377_v58 = vsub.f32 %v23421_v36, %v10376_v42  ;;  %v10388_v1 = vand.u32 4294901760, %v23428_v17  ;;  %v10400_v49 = vand.u32 4294901760, %v23429_v22 }
 0x87b   : > { %23425 = vst [vmem:[#allocation47_spill] sm:$0xff] %v20459_v28  ;;  %v10366_v5 = vand.u32 4294901760, %v10365_v45  ;;  %v10371_v8 = vsub.f32 %v23423_v60, %v10370_v59  ;;  %v10383_v20 = vsub.f32 %v23424_v23, %v10382_v25  ;;  %v20471_v34 = vpack.c.bf16 %v10360_v4, %v10348_v33  ;;  %v23464_v60 = vld [vmem:[#allocation150_spill] sm:$0xff] }
 0x87c   : > { %23427 = vst [vmem:[#allocation65_spill] sm:$0xff] %v20464_v6  ;;  %v10378_v53 = vand.u32 4294901760, %v10377_v58  ;;  %v10394_v28 = vand.u32 4294901760, %v23431_v50  ;;  %v10406_v9 = vand.u32 4294901760, %v23432_v47  ;;  %v20475_v19 = vpack.c.bf16 %v10400_v49, %v10388_v1 }
 0x87d   : > { %23430 = vst [vmem:[#allocation77_spill] sm:$0xff] %v20471_v34  ;;  %v10372_v6 = vand.u32 4294901760, %v10371_v8  ;;  %v10384_v42 = vand.u32 4294901760, %v10383_v20  ;;  %v10389_v59 = vsub.f32 %v23428_v17, %v10388_v1  ;;  %v10401_v33 = vsub.f32 %v23429_v22, %v10400_v49 }
 0x87e   : > { %23433 = vst [vmem:[#allocation84_spill] sm:$0xff] %v20475_v19  ;;  %v20477_v36 = vpack.c.bf16 %v10378_v53, %v10366_v5  ;;  %v20479_v45 = vpack.c.bf16 %v10406_v9, %v10394_v28  ;;  %v10412_v25 = vand.u32 4294901760, %v20076_v18  ;;  %v10424_v4 = vand.u32 4294901760, %v20081_v26 }
 0x87f   : > { %v20481_v7 = vpack.c.bf16 %v10384_v42, %v10372_v6  ;;  %v10395_v58 = vsub.f32 %v23431_v50, %v10394_v28  ;;  %v10407_v19 = vsub.f32 %v23432_v47, %v10406_v9  ;;  %v10418_v8 = vand.u32 4294901760, %v20093_v35 }
 0x880   : > { %23434 = vst [vmem:[#allocation96_spill] sm:$0xff] %v20477_v36  ;;  %23435 = vst [vmem:[#allocation101_spill] sm:$0xff] %v20479_v45  ;;  %v10430_v5 = vand.u32 4294901760, %v20098_v51  ;;  %v10390_v53 = vand.u32 4294901760, %v10389_v59  ;;  %v10402_v20 = vand.u32 4294901760, %v10401_v33  ;;  %v20491_v6 = vpack.c.bf16 %v10424_v4, %v10412_v25 }
 0x881   : > { %23436 = vst [vmem:[#allocation92_spill] sm:$0xff] %v20481_v7  ;;  %v10413_v1 = vsub.f32 %v20076_v18, %v10412_v25  ;;  %v10396_v42 = vand.u32 4294901760, %v10395_v58  ;;  %v10408_v49 = vand.u32 4294901760, %v10407_v19  ;;  %v10425_v7 = vsub.f32 %v20081_v26, %v10424_v4 }
 0x882   : > { %23437 = vst [vmem:[#allocation13_spill] sm:$0xff] %v20491_v6  ;;  %v20494_v45 = vpack.c.bf16 %v10430_v5, %v10418_v8  ;;  %v20497_v36 = vpack.c.bf16 %v10402_v20, %v10390_v53  ;;  %v10436_v9 = vand.u32 4294901760, %v20275_v61  ;;  %v10448_v34 = vand.u32 4294901760, %v20277_v3 }
 0x883   : > { %v10414_v28 = vand.u32 4294901760, %v10413_v1  ;;  %v20501_v47 = vpack.c.bf16 %v10408_v49, %v10396_v42  ;;  %v10426_v59 = vand.u32 4294901760, %v10425_v7  ;;  %v10419_v33 = vsub.f32 %v20093_v35, %v10418_v8 }
 0x884   : > { %23438 = vst [vmem:[#allocation16_spill] sm:$0xff] %v20494_v45  ;;  %23439 = vst [vmem:[#allocation20_spill] sm:$0xff] %v20497_v36  ;;  %v10431_v25 = vsub.f32 %v20098_v51, %v10430_v5  ;;  %v20505_v58 = vpack.c.bf16 %v10448_v34, %v10436_v9  ;;  %v10442_v19 = vand.u32 4294901760, %v20279_v48  ;;  %v10454_v4 = vand.u32 4294901760, %v20284_v56 }
 0x885   : > { %23440 = vst [vmem:[#allocation40_spill] sm:$0xff] %v20501_v47  ;;  %v10437_v53 = vsub.f32 %v20275_v61, %v10436_v9  ;;  %v20510_v20 = vpack.c.bf16 %v10426_v59, %v10414_v28  ;;  %v10420_v1 = vand.u32 4294901760, %v10419_v33  ;;  %v10449_v42 = vsub.f32 %v20277_v3, %v10448_v34 }
 0x886   : > { %23441 = vst [vmem:[#allocation45_spill] sm:$0xff] %v20505_v58  ;;  %v10432_v45 = vand.u32 4294901760, %v10431_v25  ;;  %v20513_v49 = vpack.c.bf16 %v10454_v4, %v10442_v19  ;;  %v10460_v8 = vand.u32 4294901760, %v20288_v55  ;;  %v10472_v5 = vand.u32 4294901760, %v20291_v11 }
 0x887   : > { %23442 = vst [vmem:[#allocation110_spill] sm:$0xff] %v20510_v20  ;;  %v10438_v7 = vand.u32 4294901760, %v10437_v53  ;;  %v10450_v47 = vand.u32 4294901760, %v10449_v42  ;;  %v10443_v6 = vsub.f32 %v20279_v48, %v10442_v19  ;;  %v10455_v9 = vsub.f32 %v20284_v56, %v10454_v4  ;;  %v23469_v56 = vld [vmem:[#allocation146_spill] sm:$0xff] }
 0x888   : > { %23443 = vst [vmem:[#allocation118_spill] sm:$0xff] %v20513_v49  ;;  %v20517_v58 = vpack.c.bf16 %v10432_v45, %v10420_v1  ;;  %v20521_v28 = vpack.c.bf16 %v10472_v5, %v10460_v8  ;;  %v10466_v59 = vand.u32 4294901760, %v20296_v13  ;;  %v10478_v34 = vand.u32 4294901760, %v20298_v16 }
 0x889   : > { %v10461_v33 = vsub.f32 %v20288_v55, %v10460_v8  ;;  %v20526_v25 = vpack.c.bf16 %v10450_v47, %v10438_v7  ;;  %v10444_v53 = vand.u32 4294901760, %v10443_v6  ;;  %v10456_v49 = vand.u32 4294901760, %v10455_v9 }
 0x88a   : > { %23444 = vst [vmem:[#allocation122_spill] sm:$0xff] %v20517_v58  ;;  %23445 = vst [vmem:[#allocation143_spill] sm:$0xff] %v20521_v28  ;;  %v10473_v45 = vsub.f32 %v20291_v11, %v10472_v5  ;;  %v20529_v1 = vpack.c.bf16 %v10478_v34, %v10466_v59  ;;  %v10484_v19 = vand.u32 4294901760, %v20305_v14  ;;  %v10496_v4 = vand.u32 4294901760, %v20307_v0 }
 0x88b   : > { %23446 = vst [vmem:[#allocation148_spill] sm:$0xff] %v20526_v25  ;;  %v10462_v42 = vand.u32 4294901760, %v10461_v33  ;;  %v20533_v28 = vpack.c.bf16 %v10456_v49, %v10444_v53  ;;  %v10467_v20 = vsub.f32 %v20296_v13, %v10466_v59  ;;  %v10479_v8 = vsub.f32 %v20298_v16, %v10478_v34 }
 0x88c   : > { %23447 = vst [vmem:[#allocation151_spill] sm:$0xff] %v20529_v1  ;;  %v10474_v58 = vand.u32 4294901760, %v10473_v45  ;;  %v20537_v47 = vpack.c.bf16 %v10496_v4, %v10484_v19  ;;  %v10490_v6 = vand.u32 4294901760, %v20311_v30  ;;  %v10502_v7 = vand.u32 4294901760, %v20313_v32 }
 0x88d   : > { %23448 = vst [vmem:[#allocation152_spill] sm:$0xff] %v20533_v28  ;;  %v10485_v5 = vsub.f32 %v20305_v14, %v10484_v19  ;;  %v10468_v33 = vand.u32 4294901760, %v10467_v20  ;;  %v10480_v1 = vand.u32 4294901760, %v10479_v8  ;;  %v10497_v49 = vsub.f32 %v20307_v0, %v10496_v4  ;;  %v20597_v4 = vpop.permute.xlu0 %8825  ;;  %v23468_v20 = vld [vmem:[#allocation56_spill] sm:$0xff] }
 0x88e   : > { %23449 = vst [vmem:[#allocation157_spill] sm:$0xff] %v20537_v47  ;;  %v20542_v9 = vpack.c.bf16 %v10474_v58, %v10462_v42  ;;  %v20545_v53 = vpack.c.bf16 %v10502_v7, %v10490_v6  ;;  %v10491_v59 = vsub.f32 %v20311_v30, %v10490_v6  ;;  %v10503_v34 = vsub.f32 %v20313_v32, %v10502_v7  ;;  %v23450_v7 = vld [vmem:[#allocation188_spill] sm:$0xff] }
 0x88f   : > { %v10486_v45 = vand.u32 4294901760, %v10485_v5  ;;  %v20549_v47 = vpack.c.bf16 %v10480_v1, %v10468_v33  ;;  %v10498_v28 = vand.u32 4294901760, %v10497_v49  ;;  %v10142_v23 = vand.u32 4294901760, %v23464_v60 }
 0x890   : > { %v10492_v25 = vand.u32 4294901760, %v10491_v59  ;;  %v10504_v36 = vand.u32 4294901760, %v10503_v34  ;;  %v23465_v59 = vld [vmem:[#allocation58_spill] sm:$0xff]  ;;  %v14755_v11 = vpack.c.bf16 %v20307_v0, %v20305_v14  ;;  %v23612_v0 = vmov 0.0  }
 0x891   : > { %v20551_v16 = vpack.c.bf16 %v10498_v28, %v10486_v45  ;;  %v10148_v50 = vand.u32 4294901760, %v23465_v59  ;;  %v23466_v28 = vld [vmem:[#allocation64_spill] sm:$0xff]  ;;  %v10143_v51 = vsub.f32 %v23464_v60, %v10142_v23 }
 0x892   : > { %v20557_v42 = vpack.c.bf16 %v10504_v36, %v10492_v25  ;;  %v23463_v25 = vld [vmem:[#allocation170_spill] sm:$0xff]  ;;  %v10160_v1 = vand.u32 4294901760, %v23466_v28  ;;  %v10166_v36 = vand.u32 4294901760, %v23468_v20 }
 0x893   : > { %v10130_v5 = vand.u32 4294901760, %v23463_v25  ;;  %v10144_v34 = vand.u32 4294901760, %v10143_v51 }
 0x894   : > { %v10161_v18 = vsub.f32 %v23466_v28, %v10160_v1  ;;  %v14827_v33 = vpack.c.bf16 %v10160_v1, %v10148_v50  ;;  %v10167_v10 = vsub.f32 %v23468_v20, %v10166_v36 }
 0x895   : > { %v10131_v35 = vsub.f32 %v23463_v25, %v10130_v5  ;;  %v14825_v6 = vpack.c.bf16 %v10142_v23, %v10130_v5  ;;  %v14757_v5 = vpack.c.bf16 %v20313_v32, %v20311_v30 }
 0x896   : > { %v10168_v1 = vand.u32 4294901760, %v10167_v10  ;;  %v23472_v10 = vld [vmem:[#allocation32_spill] sm:$0xff] }
 0x897   : > { %v10132_v8 = vand.u32 4294901760, %v10131_v35 }
 0x899   : > { %v14633_v35 = vpack.c.bf16 %v10144_v34, %v10132_v8  ;;  %v23473_v8 = vld [vmem:[#allocation107_spill] sm:$0xff] }
 0x89a   : > { %v23480_v34 = vld [vmem:[#allocation91_spill] sm:$0xff] }
 0x8c0   : > { %v9396_v19 = vpop.f32.mrb[34].mxu1 }
 0x8c1   : > { %v15007_v57 = vadd.f32 %v9396_v19, %v20597_v4  ;;  %v9398_v24 = vpop.f32.mrb[35].mxu1 }
 0x8c2   : > { %v15008_v45 = vadd.f32 %v9398_v24, %v20597_v4  ;;  %v23467_v24 = vld [vmem:[#allocation171_spill] sm:$0xff] }
 0x8c3   : > { %v9899_v17 = vmax.f32 %v15007_v57, 0.0  ;;  %v10154_v57 = vand.u32 4294901760, %v23467_v24 }
 0x8c4   : > { %v9900_v26 = vmax.f32 %v15008_v45, 0.0  ;;  %v10149_v45 = vsub.f32 %v23465_v59, %v10148_v50 }
 0x8c5   : > { %v20611_v19 = vand.u32 4294901760, %v9899_v17  ;;  %v10155_v49 = vsub.f32 %v23467_v24, %v10154_v57  ;;  %v14829_v51 = vpack.c.bf16 %v10166_v36, %v10154_v57  ;;  %v23477_v36 = vld [vmem:[#allocation51_spill] sm:$0xff]  ;;  %v23481_v57 = vld [vmem:[#allocation37_spill] sm:$0xff] }
 0x8c6   : > { %v20615_v22 = vand.u32 4294901760, %v9900_v26  ;;  %v10150_v55 = vand.u32 4294901760, %v10149_v45 }
 0x8c7   : > { %v20620_v54 = vsub.f32 %v9899_v17, %v20611_v19  ;;  %v10156_v50 = vand.u32 4294901760, %v10155_v49  ;;  %v23479_v49 = vld [vmem:[#allocation44_spill] sm:$0xff] }
 0x8c8   : > { %v20627_v48 = vsub.f32 %v9900_v26, %v20615_v22  ;;  %v10162_v26 = vand.u32 4294901760, %v10161_v18 }
 0x8c9   : > { %v10113_v3 = vand.u32 4294901760, %v20620_v54 }
 0x8ca   : > { %v10107_v17 = vand.u32 4294901760, %v20627_v48  ;;  %v14635_v45 = vpack.c.bf16 %v10162_v26, %v10150_v55  ;;  %v23475_v55 = vld [vmem:[#allocation27_spill] sm:$0xff] }
 0x8cb   : > { %v10114_v58 = vsub.f32 %v20620_v54, %v10113_v3  ;;  %v23482_v26 = vld [vmem:[#allocation183_spill] sm:$0xff] }
 0x8cc   : > { %10849 = vmatprep.mubr.f32.mxu1 %v10107_v17  ;;  %v10108_v61 = vsub.f32 %v20627_v48, %v10107_v17  ;;  %v14637_v17 = vpack.c.bf16 %v10168_v1, %v10156_v50  ;;  %v23486_v50 = vld [vmem:[#allocation86_spill] sm:$0xff]  ;;  %v23487_v1 = vld [vmem:[#allocation80_spill] sm:$0xff] }
 0x8cd   : > { %10853 = vmatmul.mubr.f32.vlgmr.msra.gmra.mrb[38].mxu1 %v10113_v3  ;;  %v10115_v18 = vand.u32 4294901760, %v10114_v58  ;;  %v23470_v3 = vld [vmem:[#allocation93_spill] sm:$0xff] }
 0x8ce   : > { %14826 = vmatpush1.bf16.msra.mxu1 %v14825_v6  ;;  %11116 = vmatprep.mubr.f32.mxu1 %v20615_v22  ;;  %v10109_v23 = vand.u32 4294901760, %v10108_v61  ;;  %v23471_v61 = vld [vmem:[#allocation15_spill] sm:$0xff]  ;;  %v23476_v58 = vld [vmem:[#allocation25_spill] sm:$0xff] }
 0x8cf   : > { %14828 = vmatprep.subr.bf16.mxu1 %v14827_v33  ;;  %v23474_v6 = vld [vmem:[#allocation19_spill] sm:$0xff]  ;;  %v23478_v33 = vld [vmem:[#allocation90_spill] sm:$0xff] }
 0x8d0   : > { %10110 = vmatprep.mubr.f32.mxu0 %v10109_v23  ;;  %v23485_v23 = vld [vmem:[#allocation108_spill] sm:$0xff] }
 0x8d1   : > { %10116 = vmatmul.mubr.f32.vlgmr.msra.gmra.mrb[8].mxu0 %v10115_v18  ;;  %v23488_v18 = vld [vmem:[#allocation113_spill] sm:$0xff] }
 0x8d2   : > { %14634 = vmatpush1.bf16.msra.mxu0 %v14633_v35  ;;  %14830 = vmatpush1.bf16.msra.mxu1 %v14829_v51  ;;  %v23483_v35 = vld [vmem:[#allocation190_spill] sm:$0xff]  ;;  %v23484_v51 = vld [vmem:[#allocation68_spill] sm:$0xff] }
 0x8d3   : > { %10507 = vmatprep.mubr.f32.mxu0 %v20615_v22  ;;  %14636 = vmatprep.subr.bf16.mxu0 %v14635_v45  ;;  %v23489_v45 = vld [vmem:[#allocation26_spill] sm:$0xff] }
 0x8d4   : > { %14832 = vmatprep.subr.bf16.mxu1 %v23470_v3  ;;  %v23491_v3 = vld [vmem:[#allocation33_spill] sm:$0xff] }
 0x8d6   : > { %14638 = vmatpush1.bf16.msra.mxu0 %v14637_v17  ;;  %14834 = vmatpush1.bf16.msra.mxu1 %v23471_v61  ;;  %v23490_v17 = vld [vmem:[#allocation34_spill] sm:$0xff]  ;;  %v23492_v61 = vld [vmem:[#allocation71_spill] sm:$0xff] }
 0x8d7   : > { %14640 = vmatprep.subr.bf16.mxu0 %v23472_v10  ;;  %14836 = vmatprep.subr.bf16.mxu1 %v23473_v8  ;;  %v23493_v10 = vld [vmem:[#allocation67_spill] sm:$0xff]  ;;  %v23494_v8 = vld [vmem:[#allocation78_spill] sm:$0xff] }
 0x8da   : > { %14642 = vmatpush1.bf16.msra.mxu0 %v23474_v6  ;;  %14838 = vmatpush1.bf16.msra.mxu1 %v23475_v55  ;;  %v23495_v6 = vld [vmem:[#allocation73_spill] sm:$0xff]  ;;  %v23496_v55 = vld [vmem:[#allocation83_spill] sm:$0xff] }
 0x8db   : > { %14644 = vmatprep.subr.bf16.mxu0 %v23476_v58  ;;  %14840 = vmatprep.subr.bf16.mxu1 %v23477_v36  ;;  %v23497_v58 = vld [vmem:[#allocation79_spill] sm:$0xff]  ;;  %v23498_v36 = vld [vmem:[#allocation41_spill] sm:$0xff] }
 0x8de   : > { %14646 = vmatpush1.bf16.msra.mxu0 %v23478_v33  ;;  %14842 = vmatpush1.bf16.msra.mxu1 %v23479_v49  ;;  %v23499_v33 = vld [vmem:[#allocation85_spill] sm:$0xff]  ;;  %v23500_v49 = vld [vmem:[#allocation47_spill] sm:$0xff] }
 0x8df   : > { %14648 = vmatprep.subr.bf16.mxu0 %v23480_v34  ;;  %14844 = vmatprep.subr.bf16.mxu1 %v23481_v57  ;;  %v23501_v34 = vld [vmem:[#allocation53_spill] sm:$0xff] }
 0x8e0   : > { %v23502_v57 = vld [vmem:[#allocation77_spill] sm:$0xff] }
 0x8e2   : > { %14650 = vmatpush1.bf16.msra.mxu0 %v23482_v26  ;;  %14846 = vmatpush1.bf16.msra.mxu1 %v23483_v35  ;;  %v23503_v26 = vld [vmem:[#allocation65_spill] sm:$0xff]  ;;  %v23504_v35 = vld [vmem:[#allocation96_spill] sm:$0xff] }
 0x8e3   : > { %14652 = vmatprep.subr.bf16.mxu0 %v23484_v51  ;;  %14848 = vmatprep.subr.bf16.mxu1 %v23485_v23  ;;  %v23505_v51 = vld [vmem:[#allocation84_spill] sm:$0xff] }
 0x8e4   : > { %v23506_v23 = vld [vmem:[#allocation92_spill] sm:$0xff] }
 0x8e6   : > { %14654 = vmatpush1.bf16.msra.mxu0 %v23486_v50  ;;  %14850 = vmatpush1.bf16.msra.mxu1 %v23487_v1  ;;  %v23507_v50 = vld [vmem:[#allocation101_spill] sm:$0xff]  ;;  %v23508_v1 = vld [vmem:[#allocation20_spill] sm:$0xff] }
 0x8e7   : > { %14656 = vmatprep.subr.bf16.mxu0 %v23488_v18  ;;  %14852 = vmatprep.subr.bf16.mxu1 %v23489_v45  ;;  %v23509_v18 = vld [vmem:[#allocation13_spill] sm:$0xff] }
 0x8ea   : > { %14658 = vmatpush1.bf16.msra.mxu0 %v23490_v17  ;;  %14854 = vmatpush1.bf16.msra.mxu1 %v23491_v3 }
 0x8eb   : > { %14660 = vmatprep.subr.bf16.mxu0 %v23492_v61  ;;  %14856 = vmatprep.subr.bf16.mxu1 %v23493_v10  ;;  %v23510_v61 = vld [vmem:[#allocation40_spill] sm:$0xff] }
 0x8ec   : > { %v23511_v10 = vld [vmem:[#allocation16_spill] sm:$0xff] }
 0x8ee   : > { %14662 = vmatpush1.bf16.msra.mxu0 %v23494_v8  ;;  %14858 = vmatpush1.bf16.msra.mxu1 %v23495_v6  ;;  %v23512_v8 = vld [vmem:[#allocation110_spill] sm:$0xff]  ;;  %v23513_v6 = vld [vmem:[#allocation45_spill] sm:$0xff] }
 0x8ef   : > { %14664 = vmatprep.subr.bf16.mxu0 %v23496_v55  ;;  %14860 = vmatprep.subr.bf16.mxu1 %v23497_v58  ;;  %v23514_v55 = vld [vmem:[#allocation122_spill] sm:$0xff] }
 0x8f0   : > { %v23515_v58 = vld [vmem:[#allocation118_spill] sm:$0xff] }
 0x8f2   : > { %14666 = vmatpush1.bf16.msra.mxu0 %v23498_v36  ;;  %14862 = vmatpush1.bf16.msra.mxu1 %v23499_v33  ;;  %v23516_v36 = vld [vmem:[#allocation148_spill] sm:$0xff]  ;;  %v23517_v33 = vld [vmem:[#allocation143_spill] sm:$0xff] }
 0x8f3   : > { %14668 = vmatprep.subr.bf16.mxu0 %v23500_v49  ;;  %14864 = vmatprep.subr.bf16.mxu1 %v23501_v34  ;;  %v23518_v49 = vld [vmem:[#allocation152_spill] sm:$0xff]  ;;  %v23520_v34 = vld [vmem:[#allocation157_spill] sm:$0xff] }
 0x8f6   : > { %14670 = vmatpush1.bf16.msra.mxu0 %v23502_v57  ;;  %14866 = vmatpush1.bf16.msra.mxu1 %v23503_v26  ;;  %v23521_v57 = vld [vmem:[#allocation164_spill] sm:$0xff]  ;;  %v23522_v26 = vld [vmem:[#allocation165_spill] sm:$0xff] }
 0x8f7   : > { %14672 = vmatprep.subr.bf16.mxu0 %v23504_v35  ;;  %14868 = vmatprep.subr.bf16.mxu1 %v23505_v51  ;;  %v23523_v35 = vld [vmem:[#allocation167_spill] sm:$0xff] }
 0x8f8   : > { %v14695_v51 = vpack.c.bf16 %v23523_v35, %v23522_v26  ;;  %v23571_v26 = vld [vmem:[#allocation43_spill] sm:$0xff] }
 0x8fa   : > { %14674 = vmatpush1.bf16.msra.mxu0 %v23506_v23  ;;  %14870 = vmatpush1.bf16.msra.mxu1 %v23507_v50  ;;  %v23524_v23 = vld [vmem:[#allocation147_spill] sm:$0xff]  ;;  %v23535_v50 = vpack.c.bf16 %v23368_v46, %v23367_v37  ;;  %v23542_v46 = vld [vmem:[#allocation94_spill] sm:$0xff]  ;;  %v23543_v37 = vpack.c.bf16 %v23384_v63, %v23383_v12 }
 0x8fb   : > { %14676 = vmatprep.subr.bf16.mxu0 %v23508_v1  ;;  %14872 = vmatprep.subr.bf16.mxu1 %v23509_v18  ;;  %v23553_v63 = vld [vmem:[#allocation82_spill] sm:$0xff]  ;;  %v23554_v12 = vld [vmem:[#allocation59_spill] sm:$0xff] }
 0x8fc   : > { %v9895_v45 = vpop.f32.mrb[36].mxu1 }
 0x8fd   : > { %v20684_v17 = vadd.f32 %v9895_v45, %v20597_v4  ;;  %v12910_v3 = vpop.f32.mrb[37].mxu1  ;;  %v23519_v4 = vld [vmem:[#allocation151_spill] sm:$0xff] }
 0x8fe   : > { %14678 = vmatpush1.bf16.msra.mxu0 %v23510_v61  ;;  %14874 = vmatpush1.bf16.msra.mxu1 %v23511_v10  ;;  %v23555_v3 = vld [vmem:[#allocation189_spill] sm:$0xff] }
 0x8ff   : > { %14680 = vmatprep.subr.bf16.mxu0 %v23512_v8  ;;  %14876 = vmatprep.subr.bf16.mxu1 %v23513_v6  ;;  %v23556_v61 = vpack.c.bf16 %v23554_v12, %v23555_v3  ;;  %v23558_v10 = vld [vmem:[#allocation29_spill] sm:$0xff]  ;;  %v23559_v8 = vld [vmem:[#allocation191_spill] sm:$0xff] }
 0x900   : > { %v23560_v6 = vpack.c.bf16 %v23558_v10, %v23559_v8  ;;  %v9970_v3 = vld [vmem:[#allocation8 + $0x220] sm:$0xff]  ;;  %v23594_v10 = vld [vmem:[#allocation24_spill] sm:$0xff] }
 0x901   : > { %v23595_v8 = vld [vmem:[#allocation88_spill] sm:$0xff] }
 0x902   : > { %14682 = vmatpush1.bf16.msra.mxu0 %v23514_v55  ;;  %14878 = vmatpush1.bf16.msra.mxu1 %v23515_v58  ;;  %v23562_v55 = vld [vmem:[#allocation36_spill] sm:$0xff]  ;;  %v23563_v58 = vld [vmem:[#allocation31_spill] sm:$0xff] }
 0x903   : > { %14684 = vmatprep.subr.bf16.mxu0 %v23516_v36  ;;  %14880 = vmatprep.subr.bf16.mxu1 %v23517_v33  ;;  %v23564_v36 = vpack.c.bf16 %v23562_v55, %v23563_v58  ;;  %v23566_v33 = vld [vmem:[#allocation114_spill] sm:$0xff]  ;;  %v23597_v55 = vld [vmem:[#allocation136_spill] sm:$0xff]  ;;  %v23598_v58 = vld [vmem:[#allocation131_spill] sm:$0xff] }
 0x906   : > { %14686 = vmatpush1.bf16.msra.mxu0 %v23518_v49  ;;  %14882 = vmatpush1.bf16.msra.mxu1 %v23519_v4  ;;  %v23567_v49 = vld [vmem:[#allocation109_spill] sm:$0xff] }
 0x907   : > { %14688 = vmatprep.subr.bf16.mxu0 %v20542_v9  ;;  %14884 = vmatprep.subr.bf16.mxu1 %v23520_v34  ;;  %v14697_v9 = vpack.c.bf16 %v23464_v60, %v23463_v25  ;;  %v23527_v60 = vld [vmem:[#allocation172_spill] sm:$0xff]  ;;  %v23530_v25 = vld [vmem:[#allocation163_spill] sm:$0xff]  ;;  %v23568_v4 = vpack.c.bf16 %v23566_v33, %v23567_v49 }
 0x908   : > { %v23569_v34 = vld [vmem:[#allocation52_spill] sm:$0xff] }
 0x90a   : > { %14690 = vmatpush1.bf16.msra.mxu0 %v20549_v47  ;;  %14886 = vmatpush1.bf16.msra.mxu1 %v20545_v53  ;;  %v23525_v47 = vld [vmem:[#allocation156_spill] sm:$0xff]  ;;  %v14701_v53 = vpack.c.bf16 %v23468_v20, %v23467_v24  ;;  %v23533_v20 = vpack.c.bf16 %v23366_v40, %v23365_v62  ;;  %v23534_v24 = vld [vmem:[#allocation99_spill] sm:$0xff]  ;;  %v23540_v40 = vld [vmem:[#allocation42_spill] sm:$0xff]  ;;  %v23541_v62 = vpack.c.bf16 %v23381_v15, %v23380_v43 }
 0x90b   : > { %14692 = vmatprep.subr.bf16.mxu0 %v20551_v16  ;;  %14888 = vmatprep.subr.bf16.mxu1 %v23521_v57  ;;  %v14699_v16 = vpack.c.bf16 %v23466_v28, %v23465_v59  ;;  %v23529_v28 = vpack.c.bf16 %v23360_v44, %v23359_v41  ;;  %v23532_v59 = vld [vmem:[#allocation175_spill] sm:$0xff]  ;;  %v23536_v41 = vld [vmem:[#allocation180_spill] sm:$0xff]  ;;  %v23537_v44 = vpack.c.bf16 %v23373_v52, %v23372_v21  ;;  %v23544_v52 = vld [vmem:[#allocation54_spill] sm:$0xff] }
 0x90c   : > { %v23545_v21 = vld [vmem:[#allocation126_spill] sm:$0xff]  ;;  %v23550_v15 = vld [vmem:[#allocation153_spill] sm:$0xff] }
 0x90d   : > { %11118 = vmatmul.mubr.f32.vlgmr.msra.gmra.mrb[38].mxu1 %v20611_v19  ;;  %v23546_v1 = vpack.c.bf16 %v23390_v39, %v23545_v21  ;;  %v23551_v43 = vld [vmem:[#allocation186_spill] sm:$0xff]  ;;  %v23570_v57 = vld [vmem:[#allocation49_spill] sm:$0xff] }
 0x90e   : > { %14694 = vmatpush1.bf16.msra.mxu0 %v20557_v42  ;;  %14890 = vmatpush1.bf16.msra.mxu1 %v23524_v23  ;;  %v23526_v42 = vld [vmem:[#allocation69_spill] sm:$0xff]  ;;  %v23552_v45 = vpack.c.bf16 %v23450_v7, %v23551_v43  ;;  %v23557_v39 = vld [vmem:[#allocation158_spill] sm:$0xff]  ;;  %v23572_v35 = vpack.c.bf16 %v23570_v57, %v23571_v26  ;;  %v23601_v26 = vld [vmem:[#allocation140_spill] sm:$0xff] }
 0x90f   : > { %11253 = vmatprep.mubr.f32.mxu1 %v20615_v22  ;;  %14696 = vmatprep.subr.bf16.mxu0 %v14695_v51  ;;  %v23528_v22 = vld [vmem:[#allocation182_spill] sm:$0xff] }
 0x910   : > { %14892 = vmatprep.subr.bf16.mxu1 %v23525_v47  ;;  %v23565_v7 = vld [vmem:[#allocation166_spill] sm:$0xff]  ;;  %v23577_v47 = vld [vmem:[#allocation81_spill] sm:$0xff] }
 0x911   : > { %10509 = vmatmul.mubr.f32.vlgmr.msra.gmra.mrb[8].mxu0 %v20611_v19  ;;  %v23573_v51 = vld [vmem:[#allocation50_spill] sm:$0xff] }
 0x912   : > { %14698 = vmatpush1.bf16.msra.mxu0 %v14697_v9  ;;  %10709 = vmatprep.mubr.f32.mxu0 %v20627_v48  ;;  %v23531_v48 = vpack.c.bf16 %v23362_v38, %v23361_v31  ;;  %v23538_v31 = vld [vmem:[#allocation181_spill] sm:$0xff]  ;;  %v23539_v38 = vpack.c.bf16 %v23376_v2, %v23375_v27  ;;  %v23547_v27 = vld [vmem:[#allocation66_spill] sm:$0xff]  ;;  %v23548_v2 = vld [vmem:[#allocation179_spill] sm:$0xff] }
 0x913   : > { %14894 = vmatpush1.bf16.msra.mxu1 %v23526_v42  ;;  %14700 = vmatprep.subr.bf16.mxu0 %v14699_v16  ;;  %v23549_v18 = vpack.c.bf16 %v23392_v29, %v23548_v2  ;;  %v23561_v29 = vld [vmem:[#allocation161_spill] sm:$0xff]  ;;  %v23574_v23 = vld [vmem:[#allocation62_spill] sm:$0xff]  ;;  %v23575_v9 = vld [vmem:[#allocation55_spill] sm:$0xff] }
 0x914   : > { %14896 = vmatprep.subr.bf16.mxu1 %v23527_v60  ;;  %v23576_v16 = vpack.c.bf16 %v23574_v23, %v23575_v9  ;;  %v9969_v42 = vld [vmem:[#allocation8 + $0x218] sm:$0xff]  ;;  %v23578_v60 = vld [vmem:[#allocation61_spill] sm:$0xff]  ;;  %v23591_v2 = vld [vmem:[#allocation63_spill] sm:$0xff] }
 0x915   : > { %v23602_v9 = vld [vmem:[#allocation134_spill] sm:$0xff] }
 0x916   : > { %14702 = vmatpush1.bf16.msra.mxu0 %v14701_v53  ;;  %v9967_v53 = vld [vmem:[#allocation8 + $0x208] sm:$0xff] }
 0x917   : > { %14898 = vmatpush1.bf16.msra.mxu1 %v23528_v22  ;;  %14704 = vmatprep.subr.bf16.mxu0 %v23529_v28  ;;  %v23579_v22 = vld [vmem:[#allocation111_spill] sm:$0xff] }
 0x918   : > { %14900 = vmatprep.subr.bf16.mxu1 %v23530_v25  ;;  %v23580_v28 = vpack.c.bf16 %v23578_v60, %v23579_v22  ;;  %v23581_v25 = vld [vmem:[#allocation106_spill] sm:$0xff]  ;;  %v23606_v22 = vld [vmem:[#allocation57_spill] sm:$0xff] }
 0x919   : > { %v23605_v60 = vld [vmem:[#allocation138_spill] sm:$0xff] }
 0x91a   : > { %14706 = vmatpush1.bf16.msra.mxu0 %v23531_v48  ;;  %v23582_v48 = vld [vmem:[#allocation132_spill] sm:$0xff] }
 0x91b   : > { %14902 = vmatpush1.bf16.msra.mxu1 %v23532_v59  ;;  %14708 = vmatprep.subr.bf16.mxu0 %v23533_v20  ;;  %v23583_v59 = vld [vmem:[#allocation123_spill] sm:$0xff] }
 0x91c   : > { %14904 = vmatprep.subr.bf16.mxu1 %v23534_v24  ;;  %v23584_v20 = vpack.c.bf16 %v23582_v48, %v23583_v59  ;;  %v9966_v24 = vld [vmem:[#allocation8 + $0x200] sm:$0xff] }
 0x91d   : > { %v11263_v21 = vand.u32 4294901760, %v9966_v24 }
 0x91e   : > { %14710 = vmatpush1.bf16.msra.mxu0 %v23535_v50  ;;  %v23585_v50 = vld [vmem:[#allocation117_spill] sm:$0xff] }
 0x91f   : > { %14906 = vmatpush1.bf16.msra.mxu1 %v23536_v41  ;;  %14712 = vmatprep.subr.bf16.mxu0 %v23537_v44  ;;  %v11261_v41 = vand.u32 4294901760, %v9967_v53  ;;  %v11265_v44 = vand.u32 4294901760, %v9969_v42 }
 0x920   : > { %14908 = vmatprep.subr.bf16.mxu1 %v23538_v31  ;;  %v9968_v31 = vld [vmem:[#allocation8 + $0x210] sm:$0xff] }
 0x921   : > { %v20807_v12 = vsub.f32 %v9969_v42, %v11265_v44 }
 0x922   : > { %14714 = vmatpush1.bf16.msra.mxu0 %v23539_v38  ;;  %v9971_v38 = vld [vmem:[#allocation8 + $0x228] sm:$0xff] }
 0x923   : > { %14910 = vmatpush1.bf16.msra.mxu1 %v23540_v40  ;;  %14716 = vmatprep.subr.bf16.mxu0 %v23541_v62  ;;  %v9901_v40 = vmax.f32 %v20684_v17, 0.0  ;;  %v9973_v62 = vld [vmem:[#allocation8 + $0x238] sm:$0xff]  ;;  %v11269_v43 = vand.u32 4294901760, %v9971_v38  ;;  %v11359_v23 = vand.u32 4294901760, %v20807_v12 }
 0x924   : > { %14912 = vmatprep.subr.bf16.mxu1 %v23542_v46  ;;  %v23586_v46 = vld [vmem:[#allocation144_spill] sm:$0xff]  ;;  %v11273_v17 = vand.u32 4294901760, %v9973_v62 }
 0x925   : > { %v20821_v49 = vsub.f32 %v9971_v38, %v11269_v43 }
 0x926   : > { %14718 = vmatpush1.bf16.msra.mxu0 %v23543_v37  ;;  %v23587_v37 = vld [vmem:[#allocation141_spill] sm:$0xff] }
 0x927   : > { %14914 = vmatpush1.bf16.msra.mxu1 %v23544_v52  ;;  %14720 = vmatprep.subr.bf16.mxu0 %v23546_v1  ;;  %v23588_v52 = vpack.c.bf16 %v23586_v46, %v23587_v37  ;;  %v23589_v1 = vld [vmem:[#allocation121_spill] sm:$0xff]  ;;  %v20862_v46 = vpack.c.bf16 %v11273_v17, %v11269_v43 }
 0x928   : > { %14916 = vmatprep.subr.bf16.mxu1 %v23547_v27  ;;  %v23590_v27 = vld [vmem:[#allocation70_spill] sm:$0xff] }
 0x92a   : > { %14722 = vmatpush1.bf16.msra.mxu0 %v23549_v18  ;;  %v23592_v18 = vpack.c.bf16 %v23590_v27, %v23591_v2 }
 0x92b   : > { %14918 = vmatpush1.bf16.msra.mxu1 %v23550_v15  ;;  %14724 = vmatprep.subr.bf16.mxu0 %v23552_v45  ;;  %v11267_v15 = vand.u32 4294901760, %v9968_v31  ;;  %v23593_v45 = vld [vmem:[#allocation127_spill] sm:$0xff] }
 0x92c   : > { %14920 = vmatprep.subr.bf16.mxu1 %v23553_v63  ;;  %v20805_v63 = vsub.f32 %v9967_v53, %v11261_v41  ;;  %v20833_v53 = vpack.c.bf16 %v11265_v44, %v11261_v41  ;;  %v23609_v41 = vld [vmem:[#allocation155_spill] sm:$0xff] }
 0x92d   : > { %v20819_v33 = vsub.f32 %v9968_v31, %v11267_v15  ;;  %v11360_v31 = vsub.f32 %v20807_v12, %v11359_v23 }
 0x92e   : > { %14726 = vmatpush1.bf16.msra.mxu0 %v23556_v61  ;;  %v9972_v61 = vld [vmem:[#allocation8 + $0x230] sm:$0xff] }
 0x92f   : > { %14922 = vmatpush1.bf16.msra.mxu1 %v23557_v39  ;;  %14728 = vmatprep.subr.bf16.mxu0 %v23560_v6  ;;  %v9975_v39 = vsel %vm5504_vm13, %v9901_v40, 0  ;;  %v23596_v6 = vpack.c.bf16 %v23594_v10, %v23595_v8  ;;  %v23610_v40 = vpack.c.bf16 %v23469_v56, %v20296_v13 }
 0x930   : > { %14924 = vmatprep.subr.bf16.mxu1 %v23561_v29  ;;  %v20813_v29 = vsub.f32 %v9966_v24, %v11263_v21  ;;  %v20823_v57 = vand.u32 4294901760, %v9975_v39  ;;  %v11371_v24 = vand.u32 4294901760, %v20821_v49 }
 0x932   : > { %14730 = vmatpush1.bf16.msra.mxu0 %v23564_v36  ;;  %v23599_v36 = vld [vmem:[#allocation125_spill] sm:$0xff]  ;;  %v11353_v42 = vand.u32 4294901760, %v20813_v29  ;;  %v11372_v56 = vsub.f32 %v20821_v49, %v11371_v24 }
 0x933   : > { %14926 = vmatpush1.bf16.msra.mxu1 %v23565_v7  ;;  %14732 = vmatprep.subr.bf16.mxu0 %v23568_v4  ;;  %v23600_v7 = vpack.c.bf16 %v23598_v58, %v23599_v36  ;;  %v11271_v4 = vand.u32 4294901760, %v9970_v3 }
 0x934   : > { %14928 = vmatprep.subr.bf16.mxu1 %v23569_v34  ;;  %v11275_v34 = vand.u32 4294901760, %v9972_v61  ;;  %v11354_v37 = vsub.f32 %v20813_v29, %v11353_v42 }
 0x935   : > { %v20840_v48 = vsub.f32 %v9970_v3, %v11271_v4 }
 0x936   : > { %14734 = vmatpush1.bf16.msra.mxu0 %v23572_v35  ;;  %v20826_v35 = vsub.f32 %v9973_v62, %v11273_v17  ;;  %v20842_v59 = vsub.f32 %v9972_v61, %v11275_v34  ;;  %v20860_v62 = vpack.c.bf16 %v11267_v15, %v11263_v21  ;;  %v14957_v14 = vpack.c.bf16 %v11275_v34, %v11271_v4 }
 0x937   : > { %14930 = vmatpush1.bf16.msra.mxu1 %v23573_v51  ;;  %14736 = vmatprep.subr.bf16.mxu0 %v23576_v16  ;;  %v11347_v51 = vand.u32 4294901760, %v20805_v63  ;;  %v23603_v16 = vld [vmem:[#allocation130_spill] sm:$0xff]  ;;  %v11377_v13 = vand.u32 4294901760, %v20840_v48  ;;  %v11355_v15 = vand.u32 4294901760, %v11354_v37  ;;  %v11373_v61 = vand.u32 4294901760, %v11372_v56 }
 0x938   : > { %14932 = vmatprep.subr.bf16.mxu1 %v23577_v47  ;;  %v23604_v47 = vpack.c.bf16 %v23602_v9, %v23603_v16  ;;  %v11383_v38 = vand.u32 4294901760, %v20826_v35  ;;  %v11389_v21 = vand.u32 4294901760, %v20842_v59  ;;  %v14971_v58 = vpack.c.bf16 %v20826_v35, %v20821_v49 }
 0x939   : > { %v11348_v44 = vsub.f32 %v20805_v63, %v11347_v51  ;;  %v14973_v36 = vpack.c.bf16 %v20842_v59, %v20840_v48 }
 0x93a   : > { %14738 = vmatpush1.bf16.msra.mxu0 %v23580_v28  ;;  %v23607_v28 = vld [vmem:[#allocation139_spill] sm:$0xff]  ;;  %v11390_v17 = vsub.f32 %v20842_v59, %v11389_v21  ;;  %v14987_v34 = vpack.c.bf16 %v11383_v38, %v11371_v24 }
 0x93b   : > { %14934 = vmatpush1.bf16.msra.mxu1 %v23581_v25  ;;  %14740 = vmatprep.subr.bf16.mxu0 %v23584_v20  ;;  %v23608_v25 = vpack.c.bf16 %v23606_v22, %v23607_v28  ;;  %v11365_v20 = vand.u32 4294901760, %v20819_v33  ;;  %v11349_v2 = vand.u32 4294901760, %v11348_v44 }
 0x93c   : > { %14936 = vmatprep.subr.bf16.mxu1 %v23585_v50  ;;  %v20847_v50 = vsub.f32 %v9975_v39, %v20823_v57 }
 0x93d   : > { %v14985_v4 = vpack.c.bf16 %v11365_v20, %v11353_v42 }
 0x93e   : > { %14742 = vmatpush1.bf16.msra.mxu0 %v23588_v52  ;;  %v23611_v52 = vld [vmem:[#allocation87_spill] sm:$0xff]  ;;  %v11336_v27 = vand.u32 4294901760, %v20847_v50 }
 0x93f   : > { %14938 = vmatpush1.bf16.msra.mxu1 %v23589_v1  ;;  %14744 = vmatprep.subr.bf16.mxu0 %v23592_v18  ;;  %v11366_v1 = vsub.f32 %v20819_v33, %v11365_v20  ;;  %v11361_v18 = vand.u32 4294901760, %v11360_v31 }
 0x940   : > { %14940 = vmatprep.subr.bf16.mxu1 %v23593_v45  ;;  %v11378_v45 = vsub.f32 %v20840_v48, %v11377_v13  ;;  %v11337_v3 = vsub.f32 %v20847_v50, %v11336_v27 }
 0x941   : > { %v11367_v43 = vand.u32 4294901760, %v11366_v1 }
 0x942   : > { %14746 = vmatpush1.bf16.msra.mxu0 %v23596_v6  ;;  %v11379_v32 = vand.u32 4294901760, %v11378_v45  ;;  %v11338_v10 = vand.u32 4294901760, %v11337_v3 }
 0x943   : > { %14942 = vmatpush1.bf16.msra.mxu1 %v23597_v55  ;;  %14748 = vmatprep.subr.bf16.mxu0 %v23600_v7  ;;  %v14961_v30 = vpack.c.bf16 %v11367_v43, %v11355_v15  ;;  %v14967_v55 = vpack.c.bf16 %v20807_v12, %v20805_v63  ;;  %v14983_v7 = vpack.c.bf16 %v11359_v23, %v11347_v51 }
 0x944   : > { %14944 = vmatprep.subr.bf16.mxu1 %v23601_v26  ;;  %v14989_v26 = vpack.c.bf16 %v11389_v21, %v11377_v13 }
 0x946   : > { %14750 = vmatpush1.bf16.msra.mxu0 %v23604_v47 }
 0x947   : > { %14946 = vmatpush1.bf16.msra.mxu1 %v23605_v60  ;;  %14752 = vmatprep.subr.bf16.mxu0 %v23608_v25 }
 0x948   : > { %14948 = vmatprep.subr.bf16.mxu1 %v23609_v41 }
 0x94a   : > { %14754 = vmatpush1.bf16.msra.mxu0 %v23610_v40 }
 0x94b   : > { %14950 = vmatpush1.bf16.msra.mxu1 %v23611_v52  ;;  %14756 = vmatprep.subr.bf16.mxu0 %v14755_v11  ;;  %v11384_v11 = vsub.f32 %v20826_v35, %v11383_v38 }
 0x94c   : > { %14952 = vmatprep.subr.bf16.mxu1 %v20833_v53 }
 0x94d   : > { %v11385_v39 = vand.u32 4294901760, %v11384_v11 }
 0x94e   : > { %11255 = vmatmul.mubr.f32.vlgmr.msra.gmra.mrb[38].mxu1 %v20611_v19  ;;  %14758 = vmatpush1.bf16.msra.mxu0 %v14757_v5  ;;  %v14959_v19 = vpack.c.bf16 %v11361_v18, %v11349_v2  ;;  %v11391_v5 = vand.u32 4294901760, %v11390_v17 }
 0x94f   : > { %14954 = vmatpush1.bf16.msra.mxu1 %v20860_v62  ;;  %11333 = vmatprep.mubr.f32.mxu1 %v23612_v0  ;;  %v14963_v8 = vpack.c.bf16 %v11385_v39, %v11373_v61 }
 0x950   : > { %14956 = vmatprep.subr.bf16.mxu1 %v20862_v46  ;;  %v14965_v6 = vpack.c.bf16 %v11391_v5, %v11379_v32 }
 0x951   : > { %10712 = vmatmul.mubr.f32.vlgmr.msra.gmra.mrb[8].mxu0 %v20620_v54  ;;  %v14969_v54 = vpack.c.bf16 %v20819_v33, %v20813_v29 }
 0x953   : > { %14958 = vmatpush1.bf16.msra.mxu1 %v14957_v14 }
 0x954   : > { %14960 = vmatprep.subr.bf16.mxu1 %v14959_v19 }
 0x956   : > { %11339 = vmatmul.mubr.f32.vlgmr.msra.gmra.mrb[38].mxu1 %v11338_v10 }
 0x957   : > { %14962 = vmatpush1.bf16.msra.mxu1 %v14961_v30  ;;  %11449 = vmatprep.mubr.f32.mxu1 %v23612_v0 }
 0x958   : > { %14964 = vmatprep.subr.bf16.mxu1 %v14963_v8 }
 0x95b   : > { %14966 = vmatpush1.bf16.msra.mxu1 %v14965_v6 }
 0x95c   : > { %14968 = vmatprep.subr.bf16.mxu1 %v14967_v55 }
 0x95e   : > { %11451 = vmatmul.mubr.f32.vlgmr.msra.gmra.mrb[38].mxu1 %v20823_v57 }
 0x95f   : > { %14970 = vmatpush1.bf16.msra.mxu1 %v14969_v54  ;;  %11537 = vmatprep.mubr.f32.mxu1 %v23612_v0 }
 0x960   : > { %14972 = vmatprep.subr.bf16.mxu1 %v14971_v58 }
 0x963   : > { %14974 = vmatpush1.bf16.msra.mxu1 %v14973_v36 }
 0x964   : > { %14976 = vmatprep.subr.bf16.mxu1 %v20833_v53 }
 0x966   : > { %11540 = vmatmul.mubr.f32.vlgmr.msra.gmra.mrb[38].mxu1 %v20847_v50 }
 0x967   : > { %14978 = vmatpush1.bf16.msra.mxu1 %v20860_v62  ;;  %11618 = vmatprep.mubr.f32.mxu1 %v23612_v0 }
 0x968   : > { %14980 = vmatprep.subr.bf16.mxu1 %v20862_v46 }
 0x96b   : > { %14982 = vmatpush1.bf16.msra.mxu1 %v14957_v14 }
 0x96c   : > { %14984 = vmatprep.subr.bf16.mxu1 %v14983_v7 }
 0x96e   : > { %11622 = vmatmul.mubr.f32.vlgmr.msra.gmra.mrb[38].mxu1 %v11336_v27 }
 0x96f   : > { %14986 = vmatpush1.bf16.msra.mxu1 %v14985_v4  ;;  %11716 = vmatprep.mubr.f32.mxu1 %v23612_v0 }
 0x970   : > { %14988 = vmatprep.subr.bf16.mxu1 %v14987_v34 }
 0x973   : > { %14990 = vmatpush1.bf16.msra.mxu1 %v14989_v26 }
 0x974   : > { %14992 = vmatprep.subr.bf16.mxu1 %v20833_v53 }
 0x976   : > { %11718 = vmatmul.mubr.f32.vlgmr.msra.gmra.mrb[38].mxu1 %v20823_v57 }
 0x977   : > { %14994 = vmatpush1.bf16.msra.mxu1 %v20860_v62  ;;  %11796 = vmatprep.mubr.f32.mxu1 %v23612_v0 }
 0x978   : > { %14996 = vmatprep.subr.bf16.mxu1 %v20862_v46 }
 0x97b   : > { %14998 = vmatpush1.bf16.msra.mxu1 %v14957_v14 }
 0x97e   : > { %11798 = vmatmul.mubr.f32.vlgmr.msra.gmra.mrb[38].mxu1 %v20823_v57 }
 0xa24   : > { %v10713_v63 = vpop.f32.mrb[8].mxu0 }
 0xa25   : > { %v10715_v12 = vpop.f32.mrb[9].mxu0 }
 0xa51   : > { %v11799_v29 = vpop.f32.mrb[38].mxu1 }
 0xa52   : > { %v15010_v33 = vadd.f32 %v11799_v29, %v10713_v63  ;;  %v11801_v49 = vpop.f32.mrb[39].mxu1 }
 0xa53   : > { %v15011_v35 = vadd.f32 %v11801_v49, %v10715_v12 }
 0xa55   : > { %v11806_v51 = vcombine.low %v15010_v33, %v15011_v35 }
 0xa57   : > { %11808 = vst [vmem:[%s420_s21] sm:$0xff] %v11806_v51 }
 0xa58 PF: > { %s22_s13 = sadd.s32 1, %s15285_s13  }
 0xa59   : > { %p19_p3 = scmp.ge.s32.totalorder %s22_s13, 4  }
 0xa5b   :  { %21 = sbr.rel (!%p19_p3) target bundleno = 2 (0x2), region = 106 }
 0xa62   :  { %11830 = vsyncpa [#allocation5], 1 }
 0xa63   :  { %11832 = vsyncpa [#allocation5 + $0x1], 1 }
 0xa64   :  { %11833 = vsyncpa [#allocation7], 1 }

</bundles_post_ra>
